<compile_context>
chip_gen: v7x
topology: tpu7x:2x2x1
jax: 0.10.0
libtpu: 0.0.40
codegen_flags: <defaults>
</compile_context>

<pallas_src>
import functools

import jax
import jax.numpy as jnp
from jax import lax
from jax.experimental import pallas as pl
from jax.experimental.pallas import tpu as pltpu


# ------------------------------ fused kernel -------------------------------

def _deepz_kernel(flux_ref, coadd_ref,
                  enc0_w_ref, enc0_b_ref, enc_w_ref, enc_b_ref,
                  enc_last_w_ref, enc_last_b_ref,
                  m1wc_ref, m1wf_ref, m1b_ref, m2w_ref, m2b_ref,
                  m3w_ref, m3b_ref, m4s_ref, m4t_ref,
                  hw_ref, hb_ref, z_ref,
                  prob_ref, *, Nl, NL3, K):
    f32 = jnp.float32
    bf16 = jnp.bfloat16

    def mm(x, w, b):
        # bf16 MXU inputs, f32 accumulation, f32 bias add.
        return jnp.dot(x.astype(bf16), w, preferred_element_type=f32) + b

    # ------------------------------ Encoder ------------------------------
    x = mm(flux_ref[...], enc0_w_ref[...], enc0_b_ref[...])          # (TB, 250)

    def enc_body(i, x):
        return jnp.maximum(mm(x, enc_w_ref[i], enc_b_ref[i]), 0.0)   # folded BN+Linear, ReLU
    x = lax.fori_loop(0, Nl, enc_body, x, unroll=True)

    feat = mm(x, enc_last_w_ref[...], enc_last_b_ref[...])           # (TB, Nfeat)

    # ------------------------------ MDN trunk ----------------------------
    # zp(BatchNorm) folded into lin1; concat([coadd, feat]) replaced by a split matmul.
    h = (jnp.dot(coadd_ref[...].astype(bf16), m1wc_ref[...], preferred_element_type=f32)
         + jnp.dot(feat.astype(bf16), m1wf_ref[...], preferred_element_type=f32)
         + m1b_ref[...])
    h = jnp.maximum(h, 0.0)                                          # (TB, 400)
    h = jnp.maximum(mm(h, m2w_ref[...], m2b_ref[...]), 0.0)          # (TB, 250)

    def mdn3_body(i, h):
        return jnp.maximum(mm(h, m3w_ref[i], m3b_ref[i]), 0.0)
    h = lax.fori_loop(0, NL3, mdn3_body, h, unroll=True)

    # lin4: BN + ReLU, fused as an elementwise epilogue.
    h = jnp.maximum(h * m4s_ref[...] + m4t_ref[...], 0.0)

    # ------------------------------ Heads --------------------------------
    heads = mm(h, hw_ref[...], hb_ref[...])                          # (TB, 3K)
    la = heads[:, 0:K]
    mu = heads[:, K:2 * K]
    ls = heads[:, 2 * K:3 * K]

    # ------------------------- p(z) on the grid --------------------------
    # Per-component log prob: lp_k = (la_k - ls_k) - 0.5*(z - mu_k)^2 * exp(-2 ls_k).
    # lp_k <= c_k everywhere, so shifting by the per-row scalar M = max_k c_k makes
    # exp(lp_k - M) overflow-free; the shift (and the logalpha logsumexp term of the
    # reference) are per-row constants that cancel in prob / sum(prob).
    z = z_ref[...]                                                   # (1, G)
    c = la - ls                                                      # (TB, K)
    inv2var = 0.5 * jnp.exp(-2.0 * ls)                               # (TB, K)
    M = jnp.max(c, axis=1, keepdims=True)                            # (TB, 1)
    cM = c - M                                                       # (TB, K), all <= 0

    TB, G = prob_ref.shape
    acc = jnp.zeros((TB, G), f32)
    for k in range(K):                                               # K = 10, static unroll
        d = z - mu[:, k:k + 1]                                       # (TB, G)
        lp = cM[:, k:k + 1] - d * d * inv2var[:, k:k + 1]
        acc = acc + jnp.exp(lp)                                      # single exp pass / comp.

    inv = 1.0 / jnp.sum(acc, axis=1, keepdims=True)                  # exact tiny (TB,1) recip
    prob_ref[...] = acc * inv


def deepz_forward_impl(params, flux, coadd):
    B, Nbands = flux.shape
    G = 2100
    K = 10
    Nl = params["enc_w"].shape[0]
    NL3 = params["mdn3_w"].shape[0]
    z = jnp.linspace(0.0, 2.1, G, dtype=jnp.float32).reshape(1, -1)

    # Batch tile: whole batch for small B, else a power-of-two divisor (<= 64) so
    # per-step VMEM (activations + (TB, G) slabs) stays comfortably bounded.
    TB = B
    if B > 64:
        for cand in (64, 32, 16, 8):
            if B % cand == 0:
                TB = cand
                break
    nb = B // TB

    def bspec(d):
        return pl.BlockSpec((TB, d), lambda b: (b, 0))

    def wspec(x):
        return pl.BlockSpec(x.shape, lambda b, nd=x.ndim: (0,) * nd)

    weights = (params["enc0_w"], params["enc0_b"], params["enc_w"], params["enc_b"],
               params["enc_last_w"], params["enc_last_b"],
               params["mdn1_w_coadd"], params["mdn1_w_feat"], params["mdn1_b"],
               params["mdn2_w"], params["mdn2_b"],
               params["mdn3_w"], params["mdn3_b"],
               params["mdn4_s"], params["mdn4_t"],
               params["heads_w"], params["heads_b"], z)

    kernel = functools.partial(_deepz_kernel, Nl=Nl, NL3=NL3, K=K)
    return pl.pallas_call(
        kernel,
        out_shape=jax.ShapeDtypeStruct((B, G), jnp.float32),
        grid=(nb,),
        in_specs=[bspec(Nbands), bspec(Nbands)] + [wspec(w) for w in weights],
        out_specs=pl.BlockSpec((TB, G), lambda b: (b, 0)),
        compiler_params=pltpu.CompilerParams(dimension_semantics=("parallel",)),
    )(flux, coadd, *weights)


deepz_forward = jax.jit(deepz_forward_impl)


# ------------------------- parameter init (glue) ---------------------------

class KeyGen:
    def __init__(self, key):
        self.key = key

    def __call__(self):
        self.key, k = jax.random.split(self.key)
        return k


def init_linear(key, din, dout):
    # PyTorch default: U(-1/sqrt(fan_in), 1/sqrt(fan_in)) for weight and bias.
    kw, kb = jax.random.split(key)
    bound = 1.0 / jnp.sqrt(jnp.float32(din))
    W = jax.random.uniform(kw, (dout, din), jnp.float32, -bound, bound)
    b = jax.random.uniform(kb, (dout,), jnp.float32, -bound, bound)
    return W, b


def init_bn(key, d):
    k1, k2, k3, k4 = jax.random.split(key, 4)
    gamma = jax.random.uniform(k1, (d,), jnp.float32, 0.8, 1.2)
    beta = jax.random.uniform(k2, (d,), jnp.float32, -0.1, 0.1)
    mean = jax.random.uniform(k3, (d,), jnp.float32, -0.1, 0.1)
    var = jax.random.uniform(k4, (d,), jnp.float32, 0.8, 1.2)
    return gamma, beta, mean, var


def fold_bn_linear(bn, W, b, eps=1e-5):
    # eval-mode BN followed by Linear(W, b):
    #   y = ((x - m)/sqrt(v+eps)*g + be) @ W^T + b = x @ (W*s)^T + (b + W @ t)
    g, be, m, v = bn
    s = g / jnp.sqrt(v + eps)
    t = be - m * s
    Weff = W * s[None, :]
    beff = b + W @ t
    return Weff.T, beff          # (Din, Dout) ready for the kernel, bias (Dout,)


def init_params(key, Nbands, Nfeat, Nl):
    kg = KeyGen(key)
    Nw, n2, n3, K = 250, 400, 250, 10
    bf16 = jnp.bfloat16
    p = {}

    # ---- Encoder: Linear(Nbands,250), Nl x [BN,Linear,Dropout,ReLU], Linear(250,Nfeat)
    W0, b0 = init_linear(kg(), Nbands, Nw)
    p["enc0_w"] = W0.T.astype(bf16)
    p["enc0_b"] = b0.reshape(1, -1)

    ws, bs = [], []
    for _ in range(Nl):
        bn = init_bn(kg(), Nw)
        W, b = init_linear(kg(), Nw, Nw)
        wT, be = fold_bn_linear(bn, W, b)
        ws.append(wT); bs.append(be)
    p["enc_w"] = jnp.stack(ws).astype(bf16)                      # (Nl, 250, 250)
    p["enc_b"] = jnp.stack(bs).reshape(Nl, 1, Nw)                # (Nl, 1, 250)

    Wl, bl = init_linear(kg(), Nw, Nfeat)
    p["enc_last_w"] = Wl.T.astype(bf16)
    p["enc_last_b"] = bl.reshape(1, -1)

    # ---- MDN net
    Nin = Nbands + Nfeat
    bn0 = init_bn(kg(), Nin)
    W1, b1 = init_linear(kg(), Nin, n2)
    w1T, b1e = fold_bn_linear(bn0, W1, b1)                       # zp + lin1  (Nin, 400)
    p["mdn1_w_coadd"] = w1T[:Nbands].astype(bf16)                # split -> no concat needed
    p["mdn1_w_feat"] = w1T[Nbands:].astype(bf16)
    p["mdn1_b"] = b1e.reshape(1, -1)

    bn2 = init_bn(kg(), n2)
    W2, b2 = init_linear(kg(), n2, n3)
    w2T, b2e = fold_bn_linear(bn2, W2, b2)                       # lin2
    p["mdn2_w"] = w2T.astype(bf16)
    p["mdn2_b"] = b2e.reshape(1, -1)

    ws, bs = [], []
    for _ in range(13):                                          # lin3 (10 + 3 blocks)
        bn = init_bn(kg(), n3)
        W, b = init_linear(kg(), n3, n3)
        wT, be = fold_bn_linear(bn, W, b)
        ws.append(wT); bs.append(be)
    p["mdn3_w"] = jnp.stack(ws).astype(bf16)                     # (13, 250, 250)
    p["mdn3_b"] = jnp.stack(bs).reshape(13, 1, n3)

    g, be, m, v = init_bn(kg(), n3)                              # lin4: BN + ReLU
    s = g / jnp.sqrt(v + 1e-5)
    p["mdn4_s"] = s.reshape(1, -1)
    p["mdn4_t"] = (be - m * s).reshape(1, -1)

    hws, hbs = [], []
    for _ in range(3):                                           # heads: la | mu | ls
        W, b = init_linear(kg(), n3, K)
        hws.append(W.T); hbs.append(b)
    p["heads_w"] = jnp.concatenate(hws, axis=1).astype(bf16)     # (250, 30)
    p["heads_b"] = jnp.concatenate(hbs).reshape(1, -1)           # (1, 30)
    return p


if __name__ == "__main__":
    Nbands, Nfeat, Nl, B = 46, 10, 5, 8

    root = jax.random.PRNGKey(0)
    k_params, k_flux, k_coadd = jax.random.split(root, 3)
    params = init_params(k_params, Nbands, Nfeat, Nl)

    flux = jax.random.normal(k_flux, (B, Nbands), jnp.float32)
    coadd = jax.random.normal(k_coadd, (B, Nbands), jnp.float32)

    prob = deepz_forward(params, flux, coadd)
    prob = jax.block_until_ready(prob)

    assert prob.shape == (B, 2100)
    assert bool(jnp.all(jnp.isfinite(prob)))
    assert bool(jnp.all(prob >= 0.0))
    # rows normalize to 1 (matches torch: prob / prob.sum(1)[:, None])
    assert bool(jnp.allclose(jnp.sum(prob, axis=1), 1.0, atol=1e-4))
    print("KERNEL_OK")
</pallas_src>

<mosaic_0001>
module attributes {stable_mosaic.version = 11 : i64} {
  func.func @_deepz_kernel(%arg0: i32, %arg1: memref<8x46xf32, #tpu.memory_space<vmem>>, %arg2: memref<8x46xf32, #tpu.memory_space<vmem>>, %arg3: memref<46x250xbf16, #tpu.memory_space<vmem>>, %arg4: memref<1x250xf32, #tpu.memory_space<vmem>>, %arg5: memref<5x250x250xbf16, #tpu.memory_space<vmem>>, %arg6: memref<5x1x250xf32, #tpu.memory_space<vmem>>, %arg7: memref<250x10xbf16, #tpu.memory_space<vmem>>, %arg8: memref<1x10xf32, #tpu.memory_space<vmem>>, %arg9: memref<46x400xbf16, #tpu.memory_space<vmem>>, %arg10: memref<10x400xbf16, #tpu.memory_space<vmem>>, %arg11: memref<1x400xf32, #tpu.memory_space<vmem>>, %arg12: memref<400x250xbf16, #tpu.memory_space<vmem>>, %arg13: memref<1x250xf32, #tpu.memory_space<vmem>>, %arg14: memref<13x250x250xbf16, #tpu.memory_space<vmem>>, %arg15: memref<13x1x250xf32, #tpu.memory_space<vmem>>, %arg16: memref<1x250xf32, #tpu.memory_space<vmem>>, %arg17: memref<1x250xf32, #tpu.memory_space<vmem>>, %arg18: memref<250x30xbf16, #tpu.memory_space<vmem>>, %arg19: memref<1x30xf32, #tpu.memory_space<vmem>>, %arg20: memref<1x2100xf32, #tpu.memory_space<vmem>>, %arg21: memref<8x2100xf32, #tpu.memory_space<vmem>>) attributes {dimension_semantics = [#tpu.dimension_semantics<parallel>], iteration_bounds = array<i64: 1>, scalar_prefetch = 0 : i64, scratch_operands = 0 : i64, tpu.core_type = #tpu.core_type<tc>, window_params = [{transform_indices = @transform_0, window_bounds = array<i64: 8, 46>}, {transform_indices = @transform_1, window_bounds = array<i64: 8, 46>}, {pipeline_mode = #tpu.pipeline_mode<synchronous>, transform_indices = @transform_2, window_bounds = array<i64: 46, 250>}, {pipeline_mode = #tpu.pipeline_mode<synchronous>, transform_indices = @transform_3, window_bounds = array<i64: 1, 250>}, {pipeline_mode = #tpu.pipeline_mode<synchronous>, transform_indices = @transform_4, window_bounds = array<i64: 5, 250, 250>}, {pipeline_mode = #tpu.pipeline_mode<synchronous>, transform_indices = @transform_5, window_bounds = array<i64: 5, 1, 250>}, {pipeline_mode = #tpu.pipeline_mode<synchronous>, transform_indices = @transform_6, window_bounds = array<i64: 250, 10>}, {pipeline_mode = #tpu.pipeline_mode<synchronous>, transform_indices = @transform_7, window_bounds = array<i64: 1, 10>}, {pipeline_mode = #tpu.pipeline_mode<synchronous>, transform_indices = @transform_8, window_bounds = array<i64: 46, 400>}, {pipeline_mode = #tpu.pipeline_mode<synchronous>, transform_indices = @transform_9, window_bounds = array<i64: 10, 400>}, {pipeline_mode = #tpu.pipeline_mode<synchronous>, transform_indices = @transform_10, window_bounds = array<i64: 1, 400>}, {pipeline_mode = #tpu.pipeline_mode<synchronous>, transform_indices = @transform_11, window_bounds = array<i64: 400, 250>}, {pipeline_mode = #tpu.pipeline_mode<synchronous>, transform_indices = @transform_12, window_bounds = array<i64: 1, 250>}, {pipeline_mode = #tpu.pipeline_mode<synchronous>, transform_indices = @transform_13, window_bounds = array<i64: 13, 250, 250>}, {pipeline_mode = #tpu.pipeline_mode<synchronous>, transform_indices = @transform_14, window_bounds = array<i64: 13, 1, 250>}, {pipeline_mode = #tpu.pipeline_mode<synchronous>, transform_indices = @transform_15, window_bounds = array<i64: 1, 250>}, {pipeline_mode = #tpu.pipeline_mode<synchronous>, transform_indices = @transform_16, window_bounds = array<i64: 1, 250>}, {pipeline_mode = #tpu.pipeline_mode<synchronous>, transform_indices = @transform_17, window_bounds = array<i64: 250, 30>}, {pipeline_mode = #tpu.pipeline_mode<synchronous>, transform_indices = @transform_18, window_bounds = array<i64: 1, 30>}, {pipeline_mode = #tpu.pipeline_mode<synchronous>, transform_indices = @transform_19, window_bounds = array<i64: 1, 2100>}, {transform_indices = @transform_20, window_bounds = array<i64: 8, 2100>}]} {
    %c0 = arith.constant 0 : index
    %c0_0 = arith.constant 0 : index
    %0 = vector.load %arg1[%c0, %c0_0] : memref<8x46xf32, #tpu.memory_space<vmem>>, vector<8x46xf32>
    %c0_1 = arith.constant 0 : index
    %c0_2 = arith.constant 0 : index
    %1 = vector.load %arg3[%c0_1, %c0_2] : memref<46x250xbf16, #tpu.memory_space<vmem>>, vector<46x250xbf16>
    %c0_3 = arith.constant 0 : index
    %c0_4 = arith.constant 0 : index
    %2 = vector.load %arg4[%c0_3, %c0_4] : memref<1x250xf32, #tpu.memory_space<vmem>>, vector<1x250xf32>
    %3 = arith.truncf %0 : vector<8x46xf32> to vector<8x46xbf16>
    %cst = arith.constant dense<0.000000e+00> : vector<8x250xf32>
    %4 = tpu.matmul %3, %1, %cst {dimension_numbers = #tpu.dot_dimension_numbers<[1], [0], [0], [1], [0, 0, 1, 1], [], []>} : vector<8x46xbf16>, vector<46x250xbf16>, vector<8x250xf32> -> vector<8x250xf32>
    %5 = vector.broadcast %2 : vector<1x250xf32> to vector<8x250xf32>
    %6 = arith.addf %4, %5 : vector<8x250xf32>
    %c0_i32 = arith.constant 0 : i32
    %7 = arith.index_cast %c0_i32 : i32 to index
    %c0_5 = arith.constant 0 : index
    %c0_6 = arith.constant 0 : index
    %8 = vector.load %arg5[%7, %c0_5, %c0_6] : memref<5x250x250xbf16, #tpu.memory_space<vmem>>, vector<1x250x250xbf16>
    %9 = vector.shape_cast %8 : vector<1x250x250xbf16> to vector<250x250xbf16>
    %10 = arith.index_cast %c0_i32 : i32 to index
    %c0_7 = arith.constant 0 : index
    %c0_8 = arith.constant 0 : index
    %11 = vector.load %arg6[%10, %c0_7, %c0_8] : memref<5x1x250xf32, #tpu.memory_space<vmem>>, vector<1x1x250xf32>
    %12 = vector.shape_cast %11 : vector<1x1x250xf32> to vector<1x250xf32>
    %13 = arith.truncf %6 : vector<8x250xf32> to vector<8x250xbf16>
    %cst_9 = arith.constant dense<0.000000e+00> : vector<8x250xf32>
    %14 = tpu.matmul %13, %9, %cst_9 {dimension_numbers = #tpu.dot_dimension_numbers<[1], [0], [0], [1], [0, 0, 1, 1], [], []>} : vector<8x250xbf16>, vector<250x250xbf16>, vector<8x250xf32> -> vector<8x250xf32>
    %15 = vector.broadcast %12 : vector<1x250xf32> to vector<8x250xf32>
    %16 = arith.addf %14, %15 : vector<8x250xf32>
    %cst_10 = arith.constant 0.000000e+00 : f32
    %17 = vector.broadcast %cst_10 : f32 to vector<8x250xf32>
    %18 = arith.maximumf %16, %17 : vector<8x250xf32>
    %c1_i32 = arith.constant 1 : i32
    %19 = arith.index_cast %c1_i32 : i32 to index
    %c0_11 = arith.constant 0 : index
    %c0_12 = arith.constant 0 : index
    %20 = vector.load %arg5[%19, %c0_11, %c0_12] : memref<5x250x250xbf16, #tpu.memory_space<vmem>>, vector<1x250x250xbf16>
    %21 = vector.shape_cast %20 : vector<1x250x250xbf16> to vector<250x250xbf16>
    %22 = arith.index_cast %c1_i32 : i32 to index
    %c0_13 = arith.constant 0 : index
    %c0_14 = arith.constant 0 : index
    %23 = vector.load %arg6[%22, %c0_13, %c0_14] : memref<5x1x250xf32, #tpu.memory_space<vmem>>, vector<1x1x250xf32>
    %24 = vector.shape_cast %23 : vector<1x1x250xf32> to vector<1x250xf32>
    %25 = arith.truncf %18 : vector<8x250xf32> to vector<8x250xbf16>
    %cst_15 = arith.constant dense<0.000000e+00> : vector<8x250xf32>
    %26 = tpu.matmul %25, %21, %cst_15 {dimension_numbers = #tpu.dot_dimension_numbers<[1], [0], [0], [1], [0, 0, 1, 1], [], []>} : vector<8x250xbf16>, vector<250x250xbf16>, vector<8x250xf32> -> vector<8x250xf32>
    %27 = vector.broadcast %24 : vector<1x250xf32> to vector<8x250xf32>
    %28 = arith.addf %26, %27 : vector<8x250xf32>
    %cst_16 = arith.constant 0.000000e+00 : f32
    %29 = vector.broadcast %cst_16 : f32 to vector<8x250xf32>
    %30 = arith.maximumf %28, %29 : vector<8x250xf32>
    %c2_i32 = arith.constant 2 : i32
    %31 = arith.index_cast %c2_i32 : i32 to index
    %c0_17 = arith.constant 0 : index
    %c0_18 = arith.constant 0 : index
    %32 = vector.load %arg5[%31, %c0_17, %c0_18] : memref<5x250x250xbf16, #tpu.memory_space<vmem>>, vector<1x250x250xbf16>
    %33 = vector.shape_cast %32 : vector<1x250x250xbf16> to vector<250x250xbf16>
    %34 = arith.index_cast %c2_i32 : i32 to index
    %c0_19 = arith.constant 0 : index
    %c0_20 = arith.constant 0 : index
    %35 = vector.load %arg6[%34, %c0_19, %c0_20] : memref<5x1x250xf32, #tpu.memory_space<vmem>>, vector<1x1x250xf32>
    %36 = vector.shape_cast %35 : vector<1x1x250xf32> to vector<1x250xf32>
    %37 = arith.truncf %30 : vector<8x250xf32> to vector<8x250xbf16>
    %cst_21 = arith.constant dense<0.000000e+00> : vector<8x250xf32>
    %38 = tpu.matmul %37, %33, %cst_21 {dimension_numbers = #tpu.dot_dimension_numbers<[1], [0], [0], [1], [0, 0, 1, 1], [], []>} : vector<8x250xbf16>, vector<250x250xbf16>, vector<8x250xf32> -> vector<8x250xf32>
    %39 = vector.broadcast %36 : vector<1x250xf32> to vector<8x250xf32>
    %40 = arith.addf %38, %39 : vector<8x250xf32>
    %cst_22 = arith.constant 0.000000e+00 : f32
    %41 = vector.broadcast %cst_22 : f32 to vector<8x250xf32>
    %42 = arith.maximumf %40, %41 : vector<8x250xf32>
    %c3_i32 = arith.constant 3 : i32
    %43 = arith.index_cast %c3_i32 : i32 to index
    %c0_23 = arith.constant 0 : index
    %c0_24 = arith.constant 0 : index
    %44 = vector.load %arg5[%43, %c0_23, %c0_24] : memref<5x250x250xbf16, #tpu.memory_space<vmem>>, vector<1x250x250xbf16>
    %45 = vector.shape_cast %44 : vector<1x250x250xbf16> to vector<250x250xbf16>
    %46 = arith.index_cast %c3_i32 : i32 to index
    %c0_25 = arith.constant 0 : index
    %c0_26 = arith.constant 0 : index
    %47 = vector.load %arg6[%46, %c0_25, %c0_26] : memref<5x1x250xf32, #tpu.memory_space<vmem>>, vector<1x1x250xf32>
    %48 = vector.shape_cast %47 : vector<1x1x250xf32> to vector<1x250xf32>
    %49 = arith.truncf %42 : vector<8x250xf32> to vector<8x250xbf16>
    %cst_27 = arith.constant dense<0.000000e+00> : vector<8x250xf32>
    %50 = tpu.matmul %49, %45, %cst_27 {dimension_numbers = #tpu.dot_dimension_numbers<[1], [0], [0], [1], [0, 0, 1, 1], [], []>} : vector<8x250xbf16>, vector<250x250xbf16>, vector<8x250xf32> -> vector<8x250xf32>
    %51 = vector.broadcast %48 : vector<1x250xf32> to vector<8x250xf32>
    %52 = arith.addf %50, %51 : vector<8x250xf32>
    %cst_28 = arith.constant 0.000000e+00 : f32
    %53 = vector.broadcast %cst_28 : f32 to vector<8x250xf32>
    %54 = arith.maximumf %52, %53 : vector<8x250xf32>
    %c4_i32 = arith.constant 4 : i32
    %55 = arith.index_cast %c4_i32 : i32 to index
    %c0_29 = arith.constant 0 : index
    %c0_30 = arith.constant 0 : index
    %56 = vector.load %arg5[%55, %c0_29, %c0_30] : memref<5x250x250xbf16, #tpu.memory_space<vmem>>, vector<1x250x250xbf16>
    %57 = vector.shape_cast %56 : vector<1x250x250xbf16> to vector<250x250xbf16>
    %58 = arith.index_cast %c4_i32 : i32 to index
    %c0_31 = arith.constant 0 : index
    %c0_32 = arith.constant 0 : index
    %59 = vector.load %arg6[%58, %c0_31, %c0_32] : memref<5x1x250xf32, #tpu.memory_space<vmem>>, vector<1x1x250xf32>
    %60 = vector.shape_cast %59 : vector<1x1x250xf32> to vector<1x250xf32>
    %61 = arith.truncf %54 : vector<8x250xf32> to vector<8x250xbf16>
    %cst_33 = arith.constant dense<0.000000e+00> : vector<8x250xf32>
    %62 = tpu.matmul %61, %57, %cst_33 {dimension_numbers = #tpu.dot_dimension_numbers<[1], [0], [0], [1], [0, 0, 1, 1], [], []>} : vector<8x250xbf16>, vector<250x250xbf16>, vector<8x250xf32> -> vector<8x250xf32>
    %63 = vector.broadcast %60 : vector<1x250xf32> to vector<8x250xf32>
    %64 = arith.addf %62, %63 : vector<8x250xf32>
    %cst_34 = arith.constant 0.000000e+00 : f32
    %65 = vector.broadcast %cst_34 : f32 to vector<8x250xf32>
    %66 = arith.maximumf %64, %65 : vector<8x250xf32>
    %c5_i32 = arith.constant 5 : i32
    %c0_35 = arith.constant 0 : index
    %c0_36 = arith.constant 0 : index
    %67 = vector.load %arg7[%c0_35, %c0_36] : memref<250x10xbf16, #tpu.memory_space<vmem>>, vector<250x10xbf16>
    %c0_37 = arith.constant 0 : index
    %c0_38 = arith.constant 0 : index
    %68 = vector.load %arg8[%c0_37, %c0_38] : memref<1x10xf32, #tpu.memory_space<vmem>>, vector<1x10xf32>
    %69 = arith.truncf %66 : vector<8x250xf32> to vector<8x250xbf16>
    %cst_39 = arith.constant dense<0.000000e+00> : vector<8x10xf32>
    %70 = tpu.matmul %69, %67, %cst_39 {dimension_numbers = #tpu.dot_dimension_numbers<[1], [0], [0], [1], [0, 0, 1, 1], [], []>} : vector<8x250xbf16>, vector<250x10xbf16>, vector<8x10xf32> -> vector<8x10xf32>
    %71 = vector.broadcast %68 : vector<1x10xf32> to vector<8x10xf32>
    %72 = arith.addf %70, %71 : vector<8x10xf32>
    %c0_40 = arith.constant 0 : index
    %c0_41 = arith.constant 0 : index
    %73 = vector.load %arg2[%c0_40, %c0_41] : memref<8x46xf32, #tpu.memory_space<vmem>>, vector<8x46xf32>
    %74 = arith.truncf %73 : vector<8x46xf32> to vector<8x46xbf16>
    %c0_42 = arith.constant 0 : index
    %c0_43 = arith.constant 0 : index
    %75 = vector.load %arg9[%c0_42, %c0_43] : memref<46x400xbf16, #tpu.memory_space<vmem>>, vector<46x400xbf16>
    %cst_44 = arith.constant dense<0.000000e+00> : vector<8x400xf32>
    %76 = tpu.matmul %74, %75, %cst_44 {dimension_numbers = #tpu.dot_dimension_numbers<[1], [0], [0], [1], [0, 0, 1, 1], [], []>} : vector<8x46xbf16>, vector<46x400xbf16>, vector<8x400xf32> -> vector<8x400xf32>
    %77 = arith.truncf %72 : vector<8x10xf32> to vector<8x10xbf16>
    %c0_45 = arith.constant 0 : index
    %c0_46 = arith.constant 0 : index
    %78 = vector.load %arg10[%c0_45, %c0_46] : memref<10x400xbf16, #tpu.memory_space<vmem>>, vector<10x400xbf16>
    %cst_47 = arith.constant dense<0.000000e+00> : vector<8x400xf32>
    %79 = tpu.matmul %77, %78, %cst_47 {dimension_numbers = #tpu.dot_dimension_numbers<[1], [0], [0], [1], [0, 0, 1, 1], [], []>} : vector<8x10xbf16>, vector<10x400xbf16>, vector<8x400xf32> -> vector<8x400xf32>
    %80 = arith.addf %76, %79 : vector<8x400xf32>
    %c0_48 = arith.constant 0 : index
    %c0_49 = arith.constant 0 : index
    %81 = vector.load %arg11[%c0_48, %c0_49] : memref<1x400xf32, #tpu.memory_space<vmem>>, vector<1x400xf32>
    %82 = vector.broadcast %81 : vector<1x400xf32> to vector<8x400xf32>
    %83 = arith.addf %80, %82 : vector<8x400xf32>
    %cst_50 = arith.constant 0.000000e+00 : f32
    %84 = vector.broadcast %cst_50 : f32 to vector<8x400xf32>
    %85 = arith.maximumf %83, %84 : vector<8x400xf32>
    %c0_51 = arith.constant 0 : index
    %c0_52 = arith.constant 0 : index
    %86 = vector.load %arg12[%c0_51, %c0_52] : memref<400x250xbf16, #tpu.memory_space<vmem>>, vector<400x250xbf16>
    %c0_53 = arith.constant 0 : index
    %c0_54 = arith.constant 0 : index
    %87 = vector.load %arg13[%c0_53, %c0_54] : memref<1x250xf32, #tpu.memory_space<vmem>>, vector<1x250xf32>
    %88 = arith.truncf %85 : vector<8x400xf32> to vector<8x400xbf16>
    %cst_55 = arith.constant dense<0.000000e+00> : vector<8x250xf32>
    %89 = tpu.matmul %88, %86, %cst_55 {dimension_numbers = #tpu.dot_dimension_numbers<[1], [0], [0], [1], [0, 0, 1, 1], [], []>} : vector<8x400xbf16>, vector<400x250xbf16>, vector<8x250xf32> -> vector<8x250xf32>
    %90 = vector.broadcast %87 : vector<1x250xf32> to vector<8x250xf32>
    %91 = arith.addf %89, %90 : vector<8x250xf32>
    %cst_56 = arith.constant 0.000000e+00 : f32
    %92 = vector.broadcast %cst_56 : f32 to vector<8x250xf32>
    %93 = arith.maximumf %91, %92 : vector<8x250xf32>
    %c0_i32_57 = arith.constant 0 : i32
    %94 = arith.index_cast %c0_i32_57 : i32 to index
    %c0_58 = arith.constant 0 : index
    %c0_59 = arith.constant 0 : index
    %95 = vector.load %arg14[%94, %c0_58, %c0_59] : memref<13x250x250xbf16, #tpu.memory_space<vmem>>, vector<1x250x250xbf16>
    %96 = vector.shape_cast %95 : vector<1x250x250xbf16> to vector<250x250xbf16>
    %97 = arith.index_cast %c0_i32_57 : i32 to index
    %c0_60 = arith.constant 0 : index
    %c0_61 = arith.constant 0 : index
    %98 = vector.load %arg15[%97, %c0_60, %c0_61] : memref<13x1x250xf32, #tpu.memory_space<vmem>>, vector<1x1x250xf32>
    %99 = vector.shape_cast %98 : vector<1x1x250xf32> to vector<1x250xf32>
    %100 = arith.truncf %93 : vector<8x250xf32> to vector<8x250xbf16>
    %cst_62 = arith.constant dense<0.000000e+00> : vector<8x250xf32>
    %101 = tpu.matmul %100, %96, %cst_62 {dimension_numbers = #tpu.dot_dimension_numbers<[1], [0], [0], [1], [0, 0, 1, 1], [], []>} : vector<8x250xbf16>, vector<250x250xbf16>, vector<8x250xf32> -> vector<8x250xf32>
    %102 = vector.broadcast %99 : vector<1x250xf32> to vector<8x250xf32>
    %103 = arith.addf %101, %102 : vector<8x250xf32>
    %cst_63 = arith.constant 0.000000e+00 : f32
    %104 = vector.broadcast %cst_63 : f32 to vector<8x250xf32>
    %105 = arith.maximumf %103, %104 : vector<8x250xf32>
    %c1_i32_64 = arith.constant 1 : i32
    %106 = arith.index_cast %c1_i32_64 : i32 to index
    %c0_65 = arith.constant 0 : index
    %c0_66 = arith.constant 0 : index
    %107 = vector.load %arg14[%106, %c0_65, %c0_66] : memref<13x250x250xbf16, #tpu.memory_space<vmem>>, vector<1x250x250xbf16>
    %108 = vector.shape_cast %107 : vector<1x250x250xbf16> to vector<250x250xbf16>
    %109 = arith.index_cast %c1_i32_64 : i32 to index
    %c0_67 = arith.constant 0 : index
    %c0_68 = arith.constant 0 : index
    %110 = vector.load %arg15[%109, %c0_67, %c0_68] : memref<13x1x250xf32, #tpu.memory_space<vmem>>, vector<1x1x250xf32>
    %111 = vector.shape_cast %110 : vector<1x1x250xf32> to vector<1x250xf32>
    %112 = arith.truncf %105 : vector<8x250xf32> to vector<8x250xbf16>
    %cst_69 = arith.constant dense<0.000000e+00> : vector<8x250xf32>
    %113 = tpu.matmul %112, %108, %cst_69 {dimension_numbers = #tpu.dot_dimension_numbers<[1], [0], [0], [1], [0, 0, 1, 1], [], []>} : vector<8x250xbf16>, vector<250x250xbf16>, vector<8x250xf32> -> vector<8x250xf32>
    %114 = vector.broadcast %111 : vector<1x250xf32> to vector<8x250xf32>
    %115 = arith.addf %113, %114 : vector<8x250xf32>
    %cst_70 = arith.constant 0.000000e+00 : f32
    %116 = vector.broadcast %cst_70 : f32 to vector<8x250xf32>
    %117 = arith.maximumf %115, %116 : vector<8x250xf32>
    %c2_i32_71 = arith.constant 2 : i32
    %118 = arith.index_cast %c2_i32_71 : i32 to index
    %c0_72 = arith.constant 0 : index
    %c0_73 = arith.constant 0 : index
    %119 = vector.load %arg14[%118, %c0_72, %c0_73] : memref<13x250x250xbf16, #tpu.memory_space<vmem>>, vector<1x250x250xbf16>
    %120 = vector.shape_cast %119 : vector<1x250x250xbf16> to vector<250x250xbf16>
    %121 = arith.index_cast %c2_i32_71 : i32 to index
    %c0_74 = arith.constant 0 : index
    %c0_75 = arith.constant 0 : index
    %122 = vector.load %arg15[%121, %c0_74, %c0_75] : memref<13x1x250xf32, #tpu.memory_space<vmem>>, vector<1x1x250xf32>
    %123 = vector.shape_cast %122 : vector<1x1x250xf32> to vector<1x250xf32>
    %124 = arith.truncf %117 : vector<8x250xf32> to vector<8x250xbf16>
    %cst_76 = arith.constant dense<0.000000e+00> : vector<8x250xf32>
    %125 = tpu.matmul %124, %120, %cst_76 {dimension_numbers = #tpu.dot_dimension_numbers<[1], [0], [0], [1], [0, 0, 1, 1], [], []>} : vector<8x250xbf16>, vector<250x250xbf16>, vector<8x250xf32> -> vector<8x250xf32>
    %126 = vector.broadcast %123 : vector<1x250xf32> to vector<8x250xf32>
    %127 = arith.addf %125, %126 : vector<8x250xf32>
    %cst_77 = arith.constant 0.000000e+00 : f32
    %128 = vector.broadcast %cst_77 : f32 to vector<8x250xf32>
    %129 = arith.maximumf %127, %128 : vector<8x250xf32>
    %c3_i32_78 = arith.constant 3 : i32
    %130 = arith.index_cast %c3_i32_78 : i32 to index
    %c0_79 = arith.constant 0 : index
    %c0_80 = arith.constant 0 : index
    %131 = vector.load %arg14[%130, %c0_79, %c0_80] : memref<13x250x250xbf16, #tpu.memory_space<vmem>>, vector<1x250x250xbf16>
    %132 = vector.shape_cast %131 : vector<1x250x250xbf16> to vector<250x250xbf16>
    %133 = arith.index_cast %c3_i32_78 : i32 to index
    %c0_81 = arith.constant 0 : index
    %c0_82 = arith.constant 0 : index
    %134 = vector.load %arg15[%133, %c0_81, %c0_82] : memref<13x1x250xf32, #tpu.memory_space<vmem>>, vector<1x1x250xf32>
    %135 = vector.shape_cast %134 : vector<1x1x250xf32> to vector<1x250xf32>
    %136 = arith.truncf %129 : vector<8x250xf32> to vector<8x250xbf16>
    %cst_83 = arith.constant dense<0.000000e+00> : vector<8x250xf32>
    %137 = tpu.matmul %136, %132, %cst_83 {dimension_numbers = #tpu.dot_dimension_numbers<[1], [0], [0], [1], [0, 0, 1, 1], [], []>} : vector<8x250xbf16>, vector<250x250xbf16>, vector<8x250xf32> -> vector<8x250xf32>
    %138 = vector.broadcast %135 : vector<1x250xf32> to vector<8x250xf32>
    %139 = arith.addf %137, %138 : vector<8x250xf32>
    %cst_84 = arith.constant 0.000000e+00 : f32
    %140 = vector.broadcast %cst_84 : f32 to vector<8x250xf32>
    %141 = arith.maximumf %139, %140 : vector<8x250xf32>
    %c4_i32_85 = arith.constant 4 : i32
    %142 = arith.index_cast %c4_i32_85 : i32 to index
    %c0_86 = arith.constant 0 : index
    %c0_87 = arith.constant 0 : index
    %143 = vector.load %arg14[%142, %c0_86, %c0_87] : memref<13x250x250xbf16, #tpu.memory_space<vmem>>, vector<1x250x250xbf16>
    %144 = vector.shape_cast %143 : vector<1x250x250xbf16> to vector<250x250xbf16>
    %145 = arith.index_cast %c4_i32_85 : i32 to index
    %c0_88 = arith.constant 0 : index
    %c0_89 = arith.constant 0 : index
    %146 = vector.load %arg15[%145, %c0_88, %c0_89] : memref<13x1x250xf32, #tpu.memory_space<vmem>>, vector<1x1x250xf32>
    %147 = vector.shape_cast %146 : vector<1x1x250xf32> to vector<1x250xf32>
    %148 = arith.truncf %141 : vector<8x250xf32> to vector<8x250xbf16>
    %cst_90 = arith.constant dense<0.000000e+00> : vector<8x250xf32>
    %149 = tpu.matmul %148, %144, %cst_90 {dimension_numbers = #tpu.dot_dimension_numbers<[1], [0], [0], [1], [0, 0, 1, 1], [], []>} : vector<8x250xbf16>, vector<250x250xbf16>, vector<8x250xf32> -> vector<8x250xf32>
    %150 = vector.broadcast %147 : vector<1x250xf32> to vector<8x250xf32>
    %151 = arith.addf %149, %150 : vector<8x250xf32>
    %cst_91 = arith.constant 0.000000e+00 : f32
    %152 = vector.broadcast %cst_91 : f32 to vector<8x250xf32>
    %153 = arith.maximumf %151, %152 : vector<8x250xf32>
    %c5_i32_92 = arith.constant 5 : i32
    %154 = arith.index_cast %c5_i32_92 : i32 to index
    %c0_93 = arith.constant 0 : index
    %c0_94 = arith.constant 0 : index
    %155 = vector.load %arg14[%154, %c0_93, %c0_94] : memref<13x250x250xbf16, #tpu.memory_space<vmem>>, vector<1x250x250xbf16>
    %156 = vector.shape_cast %155 : vector<1x250x250xbf16> to vector<250x250xbf16>
    %157 = arith.index_cast %c5_i32_92 : i32 to index
    %c0_95 = arith.constant 0 : index
    %c0_96 = arith.constant 0 : index
    %158 = vector.load %arg15[%157, %c0_95, %c0_96] : memref<13x1x250xf32, #tpu.memory_space<vmem>>, vector<1x1x250xf32>
    %159 = vector.shape_cast %158 : vector<1x1x250xf32> to vector<1x250xf32>
    %160 = arith.truncf %153 : vector<8x250xf32> to vector<8x250xbf16>
    %cst_97 = arith.constant dense<0.000000e+00> : vector<8x250xf32>
    %161 = tpu.matmul %160, %156, %cst_97 {dimension_numbers = #tpu.dot_dimension_numbers<[1], [0], [0], [1], [0, 0, 1, 1], [], []>} : vector<8x250xbf16>, vector<250x250xbf16>, vector<8x250xf32> -> vector<8x250xf32>
    %162 = vector.broadcast %159 : vector<1x250xf32> to vector<8x250xf32>
    %163 = arith.addf %161, %162 : vector<8x250xf32>
    %cst_98 = arith.constant 0.000000e+00 : f32
    %164 = vector.broadcast %cst_98 : f32 to vector<8x250xf32>
    %165 = arith.maximumf %163, %164 : vector<8x250xf32>
    %c6_i32 = arith.constant 6 : i32
    %166 = arith.index_cast %c6_i32 : i32 to index
    %c0_99 = arith.constant 0 : index
    %c0_100 = arith.constant 0 : index
    %167 = vector.load %arg14[%166, %c0_99, %c0_100] : memref<13x250x250xbf16, #tpu.memory_space<vmem>>, vector<1x250x250xbf16>
    %168 = vector.shape_cast %167 : vector<1x250x250xbf16> to vector<250x250xbf16>
    %169 = arith.index_cast %c6_i32 : i32 to index
    %c0_101 = arith.constant 0 : index
    %c0_102 = arith.constant 0 : index
    %170 = vector.load %arg15[%169, %c0_101, %c0_102] : memref<13x1x250xf32, #tpu.memory_space<vmem>>, vector<1x1x250xf32>
    %171 = vector.shape_cast %170 : vector<1x1x250xf32> to vector<1x250xf32>
    %172 = arith.truncf %165 : vector<8x250xf32> to vector<8x250xbf16>
    %cst_103 = arith.constant dense<0.000000e+00> : vector<8x250xf32>
    %173 = tpu.matmul %172, %168, %cst_103 {dimension_numbers = #tpu.dot_dimension_numbers<[1], [0], [0], [1], [0, 0, 1, 1], [], []>} : vector<8x250xbf16>, vector<250x250xbf16>, vector<8x250xf32> -> vector<8x250xf32>
    %174 = vector.broadcast %171 : vector<1x250xf32> to vector<8x250xf32>
    %175 = arith.addf %173, %174 : vector<8x250xf32>
    %cst_104 = arith.constant 0.000000e+00 : f32
    %176 = vector.broadcast %cst_104 : f32 to vector<8x250xf32>
    %177 = arith.maximumf %175, %176 : vector<8x250xf32>
    %c7_i32 = arith.constant 7 : i32
    %178 = arith.index_cast %c7_i32 : i32 to index
    %c0_105 = arith.constant 0 : index
    %c0_106 = arith.constant 0 : index
    %179 = vector.load %arg14[%178, %c0_105, %c0_106] : memref<13x250x250xbf16, #tpu.memory_space<vmem>>, vector<1x250x250xbf16>
    %180 = vector.shape_cast %179 : vector<1x250x250xbf16> to vector<250x250xbf16>
    %181 = arith.index_cast %c7_i32 : i32 to index
    %c0_107 = arith.constant 0 : index
    %c0_108 = arith.constant 0 : index
    %182 = vector.load %arg15[%181, %c0_107, %c0_108] : memref<13x1x250xf32, #tpu.memory_space<vmem>>, vector<1x1x250xf32>
    %183 = vector.shape_cast %182 : vector<1x1x250xf32> to vector<1x250xf32>
    %184 = arith.truncf %177 : vector<8x250xf32> to vector<8x250xbf16>
    %cst_109 = arith.constant dense<0.000000e+00> : vector<8x250xf32>
    %185 = tpu.matmul %184, %180, %cst_109 {dimension_numbers = #tpu.dot_dimension_numbers<[1], [0], [0], [1], [0, 0, 1, 1], [], []>} : vector<8x250xbf16>, vector<250x250xbf16>, vector<8x250xf32> -> vector<8x250xf32>
    %186 = vector.broadcast %183 : vector<1x250xf32> to vector<8x250xf32>
    %187 = arith.addf %185, %186 : vector<8x250xf32>
    %cst_110 = arith.constant 0.000000e+00 : f32
    %188 = vector.broadcast %cst_110 : f32 to vector<8x250xf32>
    %189 = arith.maximumf %187, %188 : vector<8x250xf32>
    %c8_i32 = arith.constant 8 : i32
    %190 = arith.index_cast %c8_i32 : i32 to index
    %c0_111 = arith.constant 0 : index
    %c0_112 = arith.constant 0 : index
    %191 = vector.load %arg14[%190, %c0_111, %c0_112] : memref<13x250x250xbf16, #tpu.memory_space<vmem>>, vector<1x250x250xbf16>
    %192 = vector.shape_cast %191 : vector<1x250x250xbf16> to vector<250x250xbf16>
    %193 = arith.index_cast %c8_i32 : i32 to index
    %c0_113 = arith.constant 0 : index
    %c0_114 = arith.constant 0 : index
    %194 = vector.load %arg15[%193, %c0_113, %c0_114] : memref<13x1x250xf32, #tpu.memory_space<vmem>>, vector<1x1x250xf32>
    %195 = vector.shape_cast %194 : vector<1x1x250xf32> to vector<1x250xf32>
    %196 = arith.truncf %189 : vector<8x250xf32> to vector<8x250xbf16>
    %cst_115 = arith.constant dense<0.000000e+00> : vector<8x250xf32>
    %197 = tpu.matmul %196, %192, %cst_115 {dimension_numbers = #tpu.dot_dimension_numbers<[1], [0], [0], [1], [0, 0, 1, 1], [], []>} : vector<8x250xbf16>, vector<250x250xbf16>, vector<8x250xf32> -> vector<8x250xf32>
    %198 = vector.broadcast %195 : vector<1x250xf32> to vector<8x250xf32>
    %199 = arith.addf %197, %198 : vector<8x250xf32>
    %cst_116 = arith.constant 0.000000e+00 : f32
    %200 = vector.broadcast %cst_116 : f32 to vector<8x250xf32>
    %201 = arith.maximumf %199, %200 : vector<8x250xf32>
    %c9_i32 = arith.constant 9 : i32
    %202 = arith.index_cast %c9_i32 : i32 to index
    %c0_117 = arith.constant 0 : index
    %c0_118 = arith.constant 0 : index
    %203 = vector.load %arg14[%202, %c0_117, %c0_118] : memref<13x250x250xbf16, #tpu.memory_space<vmem>>, vector<1x250x250xbf16>
    %204 = vector.shape_cast %203 : vector<1x250x250xbf16> to vector<250x250xbf16>
    %205 = arith.index_cast %c9_i32 : i32 to index
    %c0_119 = arith.constant 0 : index
    %c0_120 = arith.constant 0 : index
    %206 = vector.load %arg15[%205, %c0_119, %c0_120] : memref<13x1x250xf32, #tpu.memory_space<vmem>>, vector<1x1x250xf32>
    %207 = vector.shape_cast %206 : vector<1x1x250xf32> to vector<1x250xf32>
    %208 = arith.truncf %201 : vector<8x250xf32> to vector<8x250xbf16>
    %cst_121 = arith.constant dense<0.000000e+00> : vector<8x250xf32>
    %209 = tpu.matmul %208, %204, %cst_121 {dimension_numbers = #tpu.dot_dimension_numbers<[1], [0], [0], [1], [0, 0, 1, 1], [], []>} : vector<8x250xbf16>, vector<250x250xbf16>, vector<8x250xf32> -> vector<8x250xf32>
    %210 = vector.broadcast %207 : vector<1x250xf32> to vector<8x250xf32>
    %211 = arith.addf %209, %210 : vector<8x250xf32>
    %cst_122 = arith.constant 0.000000e+00 : f32
    %212 = vector.broadcast %cst_122 : f32 to vector<8x250xf32>
    %213 = arith.maximumf %211, %212 : vector<8x250xf32>
    %c10_i32 = arith.constant 10 : i32
    %214 = arith.index_cast %c10_i32 : i32 to index
    %c0_123 = arith.constant 0 : index
    %c0_124 = arith.constant 0 : index
    %215 = vector.load %arg14[%214, %c0_123, %c0_124] : memref<13x250x250xbf16, #tpu.memory_space<vmem>>, vector<1x250x250xbf16>
    %216 = vector.shape_cast %215 : vector<1x250x250xbf16> to vector<250x250xbf16>
    %217 = arith.index_cast %c10_i32 : i32 to index
    %c0_125 = arith.constant 0 : index
    %c0_126 = arith.constant 0 : index
    %218 = vector.load %arg15[%217, %c0_125, %c0_126] : memref<13x1x250xf32, #tpu.memory_space<vmem>>, vector<1x1x250xf32>
    %219 = vector.shape_cast %218 : vector<1x1x250xf32> to vector<1x250xf32>
    %220 = arith.truncf %213 : vector<8x250xf32> to vector<8x250xbf16>
    %cst_127 = arith.constant dense<0.000000e+00> : vector<8x250xf32>
    %221 = tpu.matmul %220, %216, %cst_127 {dimension_numbers = #tpu.dot_dimension_numbers<[1], [0], [0], [1], [0, 0, 1, 1], [], []>} : vector<8x250xbf16>, vector<250x250xbf16>, vector<8x250xf32> -> vector<8x250xf32>
    %222 = vector.broadcast %219 : vector<1x250xf32> to vector<8x250xf32>
    %223 = arith.addf %221, %222 : vector<8x250xf32>
    %cst_128 = arith.constant 0.000000e+00 : f32
    %224 = vector.broadcast %cst_128 : f32 to vector<8x250xf32>
    %225 = arith.maximumf %223, %224 : vector<8x250xf32>
    %c11_i32 = arith.constant 11 : i32
    %226 = arith.index_cast %c11_i32 : i32 to index
    %c0_129 = arith.constant 0 : index
    %c0_130 = arith.constant 0 : index
    %227 = vector.load %arg14[%226, %c0_129, %c0_130] : memref<13x250x250xbf16, #tpu.memory_space<vmem>>, vector<1x250x250xbf16>
    %228 = vector.shape_cast %227 : vector<1x250x250xbf16> to vector<250x250xbf16>
    %229 = arith.index_cast %c11_i32 : i32 to index
    %c0_131 = arith.constant 0 : index
    %c0_132 = arith.constant 0 : index
    %230 = vector.load %arg15[%229, %c0_131, %c0_132] : memref<13x1x250xf32, #tpu.memory_space<vmem>>, vector<1x1x250xf32>
    %231 = vector.shape_cast %230 : vector<1x1x250xf32> to vector<1x250xf32>
    %232 = arith.truncf %225 : vector<8x250xf32> to vector<8x250xbf16>
    %cst_133 = arith.constant dense<0.000000e+00> : vector<8x250xf32>
    %233 = tpu.matmul %232, %228, %cst_133 {dimension_numbers = #tpu.dot_dimension_numbers<[1], [0], [0], [1], [0, 0, 1, 1], [], []>} : vector<8x250xbf16>, vector<250x250xbf16>, vector<8x250xf32> -> vector<8x250xf32>
    %234 = vector.broadcast %231 : vector<1x250xf32> to vector<8x250xf32>
    %235 = arith.addf %233, %234 : vector<8x250xf32>
    %cst_134 = arith.constant 0.000000e+00 : f32
    %236 = vector.broadcast %cst_134 : f32 to vector<8x250xf32>
    %237 = arith.maximumf %235, %236 : vector<8x250xf32>
    %c12_i32 = arith.constant 12 : i32
    %238 = arith.index_cast %c12_i32 : i32 to index
    %c0_135 = arith.constant 0 : index
    %c0_136 = arith.constant 0 : index
    %239 = vector.load %arg14[%238, %c0_135, %c0_136] : memref<13x250x250xbf16, #tpu.memory_space<vmem>>, vector<1x250x250xbf16>
    %240 = vector.shape_cast %239 : vector<1x250x250xbf16> to vector<250x250xbf16>
    %241 = arith.index_cast %c12_i32 : i32 to index
    %c0_137 = arith.constant 0 : index
    %c0_138 = arith.constant 0 : index
    %242 = vector.load %arg15[%241, %c0_137, %c0_138] : memref<13x1x250xf32, #tpu.memory_space<vmem>>, vector<1x1x250xf32>
    %243 = vector.shape_cast %242 : vector<1x1x250xf32> to vector<1x250xf32>
    %244 = arith.truncf %237 : vector<8x250xf32> to vector<8x250xbf16>
    %cst_139 = arith.constant dense<0.000000e+00> : vector<8x250xf32>
    %245 = tpu.matmul %244, %240, %cst_139 {dimension_numbers = #tpu.dot_dimension_numbers<[1], [0], [0], [1], [0, 0, 1, 1], [], []>} : vector<8x250xbf16>, vector<250x250xbf16>, vector<8x250xf32> -> vector<8x250xf32>
    %246 = vector.broadcast %243 : vector<1x250xf32> to vector<8x250xf32>
    %247 = arith.addf %245, %246 : vector<8x250xf32>
    %cst_140 = arith.constant 0.000000e+00 : f32
    %248 = vector.broadcast %cst_140 : f32 to vector<8x250xf32>
    %249 = arith.maximumf %247, %248 : vector<8x250xf32>
    %c13_i32 = arith.constant 13 : i32
    %c0_141 = arith.constant 0 : index
    %c0_142 = arith.constant 0 : index
    %250 = vector.load %arg16[%c0_141, %c0_142] : memref<1x250xf32, #tpu.memory_space<vmem>>, vector<1x250xf32>
    %251 = vector.broadcast %250 : vector<1x250xf32> to vector<8x250xf32>
    %252 = arith.mulf %249, %251 : vector<8x250xf32>
    %c0_143 = arith.constant 0 : index
    %c0_144 = arith.constant 0 : index
    %253 = vector.load %arg17[%c0_143, %c0_144] : memref<1x250xf32, #tpu.memory_space<vmem>>, vector<1x250xf32>
    %254 = vector.broadcast %253 : vector<1x250xf32> to vector<8x250xf32>
    %255 = arith.addf %252, %254 : vector<8x250xf32>
    %cst_145 = arith.constant 0.000000e+00 : f32
    %256 = vector.broadcast %cst_145 : f32 to vector<8x250xf32>
    %257 = arith.maximumf %255, %256 : vector<8x250xf32>
    %c0_146 = arith.constant 0 : index
    %c0_147 = arith.constant 0 : index
    %258 = vector.load %arg18[%c0_146, %c0_147] : memref<250x30xbf16, #tpu.memory_space<vmem>>, vector<250x30xbf16>
    %c0_148 = arith.constant 0 : index
    %c0_149 = arith.constant 0 : index
    %259 = vector.load %arg19[%c0_148, %c0_149] : memref<1x30xf32, #tpu.memory_space<vmem>>, vector<1x30xf32>
    %260 = arith.truncf %257 : vector<8x250xf32> to vector<8x250xbf16>
    %cst_150 = arith.constant dense<0.000000e+00> : vector<8x30xf32>
    %261 = tpu.matmul %260, %258, %cst_150 {dimension_numbers = #tpu.dot_dimension_numbers<[1], [0], [0], [1], [0, 0, 1, 1], [], []>} : vector<8x250xbf16>, vector<250x30xbf16>, vector<8x30xf32> -> vector<8x30xf32>
    %262 = vector.broadcast %259 : vector<1x30xf32> to vector<8x30xf32>
    %263 = arith.addf %261, %262 : vector<8x30xf32>
    %264 = vector.extract_strided_slice %263 {offsets = [0, 0], sizes = [8, 10], strides = [1, 1]} : vector<8x30xf32> to vector<8x10xf32>
    %265 = vector.extract_strided_slice %263 {offsets = [0, 10], sizes = [8, 10], strides = [1, 1]} : vector<8x30xf32> to vector<8x10xf32>
    %266 = vector.extract_strided_slice %263 {offsets = [0, 20], sizes = [8, 10], strides = [1, 1]} : vector<8x30xf32> to vector<8x10xf32>
    %c0_151 = arith.constant 0 : index
    %c0_152 = arith.constant 0 : index
    %267 = vector.load %arg20[%c0_151, %c0_152] : memref<1x2100xf32, #tpu.memory_space<vmem>>, vector<1x2100xf32>
    %268 = arith.subf %264, %266 : vector<8x10xf32>
    %cst_153 = arith.constant -2.000000e+00 : f32
    %269 = vector.broadcast %cst_153 : f32 to vector<8x10xf32>
    %270 = arith.mulf %269, %266 : vector<8x10xf32>
    %271 = math.exp %270 : vector<8x10xf32>
    %cst_154 = arith.constant 5.000000e-01 : f32
    %272 = vector.broadcast %cst_154 : f32 to vector<8x10xf32>
    %273 = arith.mulf %272, %271 : vector<8x10xf32>
    %cst_155 = arith.constant dense<0xFF800000> : vector<8xf32>
    %274 = vector.multi_reduction <maximumf>, %268, %cst_155 [1] : vector<8x10xf32> to vector<8xf32>
    %275 = vector.shape_cast %274 : vector<8xf32> to vector<8x1xf32>
    %276 = vector.broadcast %275 : vector<8x1xf32> to vector<8x10xf32>
    %277 = arith.subf %268, %276 : vector<8x10xf32>
    %cst_156 = arith.constant 0.000000e+00 : f32
    %278 = vector.broadcast %cst_156 : f32 to vector<8x2100xf32>
    %279 = vector.extract_strided_slice %265 {offsets = [0, 0], sizes = [8, 1], strides = [1, 1]} : vector<8x10xf32> to vector<8x1xf32>
    %280 = vector.broadcast %267 : vector<1x2100xf32> to vector<8x2100xf32>
    %281 = vector.broadcast %279 : vector<8x1xf32> to vector<8x2100xf32>
    %282 = arith.subf %280, %281 : vector<8x2100xf32>
    %283 = vector.extract_strided_slice %277 {offsets = [0, 0], sizes = [8, 1], strides = [1, 1]} : vector<8x10xf32> to vector<8x1xf32>
    %284 = arith.mulf %282, %282 : vector<8x2100xf32>
    %285 = vector.extract_strided_slice %273 {offsets = [0, 0], sizes = [8, 1], strides = [1, 1]} : vector<8x10xf32> to vector<8x1xf32>
    %286 = vector.broadcast %285 : vector<8x1xf32> to vector<8x2100xf32>
    %287 = arith.mulf %284, %286 : vector<8x2100xf32>
    %288 = vector.broadcast %283 : vector<8x1xf32> to vector<8x2100xf32>
    %289 = arith.subf %288, %287 : vector<8x2100xf32>
    %290 = math.exp %289 : vector<8x2100xf32>
    %291 = arith.addf %278, %290 : vector<8x2100xf32>
    %292 = vector.extract_strided_slice %265 {offsets = [0, 1], sizes = [8, 1], strides = [1, 1]} : vector<8x10xf32> to vector<8x1xf32>
    %293 = vector.broadcast %267 : vector<1x2100xf32> to vector<8x2100xf32>
    %294 = vector.broadcast %292 : vector<8x1xf32> to vector<8x2100xf32>
    %295 = arith.subf %293, %294 : vector<8x2100xf32>
    %296 = vector.extract_strided_slice %277 {offsets = [0, 1], sizes = [8, 1], strides = [1, 1]} : vector<8x10xf32> to vector<8x1xf32>
    %297 = arith.mulf %295, %295 : vector<8x2100xf32>
    %298 = vector.extract_strided_slice %273 {offsets = [0, 1], sizes = [8, 1], strides = [1, 1]} : vector<8x10xf32> to vector<8x1xf32>
    %299 = vector.broadcast %298 : vector<8x1xf32> to vector<8x2100xf32>
    %300 = arith.mulf %297, %299 : vector<8x2100xf32>
    %301 = vector.broadcast %296 : vector<8x1xf32> to vector<8x2100xf32>
    %302 = arith.subf %301, %300 : vector<8x2100xf32>
    %303 = math.exp %302 : vector<8x2100xf32>
    %304 = arith.addf %291, %303 : vector<8x2100xf32>
    %305 = vector.extract_strided_slice %265 {offsets = [0, 2], sizes = [8, 1], strides = [1, 1]} : vector<8x10xf32> to vector<8x1xf32>
    %306 = vector.broadcast %267 : vector<1x2100xf32> to vector<8x2100xf32>
    %307 = vector.broadcast %305 : vector<8x1xf32> to vector<8x2100xf32>
    %308 = arith.subf %306, %307 : vector<8x2100xf32>
    %309 = vector.extract_strided_slice %277 {offsets = [0, 2], sizes = [8, 1], strides = [1, 1]} : vector<8x10xf32> to vector<8x1xf32>
    %310 = arith.mulf %308, %308 : vector<8x2100xf32>
    %311 = vector.extract_strided_slice %273 {offsets = [0, 2], sizes = [8, 1], strides = [1, 1]} : vector<8x10xf32> to vector<8x1xf32>
    %312 = vector.broadcast %311 : vector<8x1xf32> to vector<8x2100xf32>
    %313 = arith.mulf %310, %312 : vector<8x2100xf32>
    %314 = vector.broadcast %309 : vector<8x1xf32> to vector<8x2100xf32>
    %315 = arith.subf %314, %313 : vector<8x2100xf32>
    %316 = math.exp %315 : vector<8x2100xf32>
    %317 = arith.addf %304, %316 : vector<8x2100xf32>
    %318 = vector.extract_strided_slice %265 {offsets = [0, 3], sizes = [8, 1], strides = [1, 1]} : vector<8x10xf32> to vector<8x1xf32>
    %319 = vector.broadcast %267 : vector<1x2100xf32> to vector<8x2100xf32>
    %320 = vector.broadcast %318 : vector<8x1xf32> to vector<8x2100xf32>
    %321 = arith.subf %319, %320 : vector<8x2100xf32>
    %322 = vector.extract_strided_slice %277 {offsets = [0, 3], sizes = [8, 1], strides = [1, 1]} : vector<8x10xf32> to vector<8x1xf32>
    %323 = arith.mulf %321, %321 : vector<8x2100xf32>
    %324 = vector.extract_strided_slice %273 {offsets = [0, 3], sizes = [8, 1], strides = [1, 1]} : vector<8x10xf32> to vector<8x1xf32>
    %325 = vector.broadcast %324 : vector<8x1xf32> to vector<8x2100xf32>
    %326 = arith.mulf %323, %325 : vector<8x2100xf32>
    %327 = vector.broadcast %322 : vector<8x1xf32> to vector<8x2100xf32>
    %328 = arith.subf %327, %326 : vector<8x2100xf32>
    %329 = math.exp %328 : vector<8x2100xf32>
    %330 = arith.addf %317, %329 : vector<8x2100xf32>
    %331 = vector.extract_strided_slice %265 {offsets = [0, 4], sizes = [8, 1], strides = [1, 1]} : vector<8x10xf32> to vector<8x1xf32>
    %332 = vector.broadcast %267 : vector<1x2100xf32> to vector<8x2100xf32>
    %333 = vector.broadcast %331 : vector<8x1xf32> to vector<8x2100xf32>
    %334 = arith.subf %332, %333 : vector<8x2100xf32>
    %335 = vector.extract_strided_slice %277 {offsets = [0, 4], sizes = [8, 1], strides = [1, 1]} : vector<8x10xf32> to vector<8x1xf32>
    %336 = arith.mulf %334, %334 : vector<8x2100xf32>
    %337 = vector.extract_strided_slice %273 {offsets = [0, 4], sizes = [8, 1], strides = [1, 1]} : vector<8x10xf32> to vector<8x1xf32>
    %338 = vector.broadcast %337 : vector<8x1xf32> to vector<8x2100xf32>
    %339 = arith.mulf %336, %338 : vector<8x2100xf32>
    %340 = vector.broadcast %335 : vector<8x1xf32> to vector<8x2100xf32>
    %341 = arith.subf %340, %339 : vector<8x2100xf32>
    %342 = math.exp %341 : vector<8x2100xf32>
    %343 = arith.addf %330, %342 : vector<8x2100xf32>
    %344 = vector.extract_strided_slice %265 {offsets = [0, 5], sizes = [8, 1], strides = [1, 1]} : vector<8x10xf32> to vector<8x1xf32>
    %345 = vector.broadcast %267 : vector<1x2100xf32> to vector<8x2100xf32>
    %346 = vector.broadcast %344 : vector<8x1xf32> to vector<8x2100xf32>
    %347 = arith.subf %345, %346 : vector<8x2100xf32>
    %348 = vector.extract_strided_slice %277 {offsets = [0, 5], sizes = [8, 1], strides = [1, 1]} : vector<8x10xf32> to vector<8x1xf32>
    %349 = arith.mulf %347, %347 : vector<8x2100xf32>
    %350 = vector.extract_strided_slice %273 {offsets = [0, 5], sizes = [8, 1], strides = [1, 1]} : vector<8x10xf32> to vector<8x1xf32>
    %351 = vector.broadcast %350 : vector<8x1xf32> to vector<8x2100xf32>
    %352 = arith.mulf %349, %351 : vector<8x2100xf32>
    %353 = vector.broadcast %348 : vector<8x1xf32> to vector<8x2100xf32>
    %354 = arith.subf %353, %352 : vector<8x2100xf32>
    %355 = math.exp %354 : vector<8x2100xf32>
    %356 = arith.addf %343, %355 : vector<8x2100xf32>
    %357 = vector.extract_strided_slice %265 {offsets = [0, 6], sizes = [8, 1], strides = [1, 1]} : vector<8x10xf32> to vector<8x1xf32>
    %358 = vector.broadcast %267 : vector<1x2100xf32> to vector<8x2100xf32>
    %359 = vector.broadcast %357 : vector<8x1xf32> to vector<8x2100xf32>
    %360 = arith.subf %358, %359 : vector<8x2100xf32>
    %361 = vector.extract_strided_slice %277 {offsets = [0, 6], sizes = [8, 1], strides = [1, 1]} : vector<8x10xf32> to vector<8x1xf32>
    %362 = arith.mulf %360, %360 : vector<8x2100xf32>
    %363 = vector.extract_strided_slice %273 {offsets = [0, 6], sizes = [8, 1], strides = [1, 1]} : vector<8x10xf32> to vector<8x1xf32>
    %364 = vector.broadcast %363 : vector<8x1xf32> to vector<8x2100xf32>
    %365 = arith.mulf %362, %364 : vector<8x2100xf32>
    %366 = vector.broadcast %361 : vector<8x1xf32> to vector<8x2100xf32>
    %367 = arith.subf %366, %365 : vector<8x2100xf32>
    %368 = math.exp %367 : vector<8x2100xf32>
    %369 = arith.addf %356, %368 : vector<8x2100xf32>
    %370 = vector.extract_strided_slice %265 {offsets = [0, 7], sizes = [8, 1], strides = [1, 1]} : vector<8x10xf32> to vector<8x1xf32>
    %371 = vector.broadcast %267 : vector<1x2100xf32> to vector<8x2100xf32>
    %372 = vector.broadcast %370 : vector<8x1xf32> to vector<8x2100xf32>
    %373 = arith.subf %371, %372 : vector<8x2100xf32>
    %374 = vector.extract_strided_slice %277 {offsets = [0, 7], sizes = [8, 1], strides = [1, 1]} : vector<8x10xf32> to vector<8x1xf32>
    %375 = arith.mulf %373, %373 : vector<8x2100xf32>
    %376 = vector.extract_strided_slice %273 {offsets = [0, 7], sizes = [8, 1], strides = [1, 1]} : vector<8x10xf32> to vector<8x1xf32>
    %377 = vector.broadcast %376 : vector<8x1xf32> to vector<8x2100xf32>
    %378 = arith.mulf %375, %377 : vector<8x2100xf32>
    %379 = vector.broadcast %374 : vector<8x1xf32> to vector<8x2100xf32>
    %380 = arith.subf %379, %378 : vector<8x2100xf32>
    %381 = math.exp %380 : vector<8x2100xf32>
    %382 = arith.addf %369, %381 : vector<8x2100xf32>
    %383 = vector.extract_strided_slice %265 {offsets = [0, 8], sizes = [8, 1], strides = [1, 1]} : vector<8x10xf32> to vector<8x1xf32>
    %384 = vector.broadcast %267 : vector<1x2100xf32> to vector<8x2100xf32>
    %385 = vector.broadcast %383 : vector<8x1xf32> to vector<8x2100xf32>
    %386 = arith.subf %384, %385 : vector<8x2100xf32>
    %387 = vector.extract_strided_slice %277 {offsets = [0, 8], sizes = [8, 1], strides = [1, 1]} : vector<8x10xf32> to vector<8x1xf32>
    %388 = arith.mulf %386, %386 : vector<8x2100xf32>
    %389 = vector.extract_strided_slice %273 {offsets = [0, 8], sizes = [8, 1], strides = [1, 1]} : vector<8x10xf32> to vector<8x1xf32>
    %390 = vector.broadcast %389 : vector<8x1xf32> to vector<8x2100xf32>
    %391 = arith.mulf %388, %390 : vector<8x2100xf32>
    %392 = vector.broadcast %387 : vector<8x1xf32> to vector<8x2100xf32>
    %393 = arith.subf %392, %391 : vector<8x2100xf32>
    %394 = math.exp %393 : vector<8x2100xf32>
    %395 = arith.addf %382, %394 : vector<8x2100xf32>
    %396 = vector.extract_strided_slice %265 {offsets = [0, 9], sizes = [8, 1], strides = [1, 1]} : vector<8x10xf32> to vector<8x1xf32>
    %397 = vector.broadcast %267 : vector<1x2100xf32> to vector<8x2100xf32>
    %398 = vector.broadcast %396 : vector<8x1xf32> to vector<8x2100xf32>
    %399 = arith.subf %397, %398 : vector<8x2100xf32>
    %400 = vector.extract_strided_slice %277 {offsets = [0, 9], sizes = [8, 1], strides = [1, 1]} : vector<8x10xf32> to vector<8x1xf32>
    %401 = arith.mulf %399, %399 : vector<8x2100xf32>
    %402 = vector.extract_strided_slice %273 {offsets = [0, 9], sizes = [8, 1], strides = [1, 1]} : vector<8x10xf32> to vector<8x1xf32>
    %403 = vector.broadcast %402 : vector<8x1xf32> to vector<8x2100xf32>
    %404 = arith.mulf %401, %403 : vector<8x2100xf32>
    %405 = vector.broadcast %400 : vector<8x1xf32> to vector<8x2100xf32>
    %406 = arith.subf %405, %404 : vector<8x2100xf32>
    %407 = math.exp %406 : vector<8x2100xf32>
    %408 = arith.addf %395, %407 : vector<8x2100xf32>
    %cst_157 = arith.constant dense<0.000000e+00> : vector<8xf32>
    %409 = vector.multi_reduction <add>, %408, %cst_157 [1] : vector<8x2100xf32> to vector<8xf32>
    %410 = vector.shape_cast %409 : vector<8xf32> to vector<8x1xf32>
    %cst_158 = arith.constant 1.000000e+00 : f32
    %411 = vector.broadcast %cst_158 : f32 to vector<8x1xf32>
    %412 = arith.divf %411, %410 : vector<8x1xf32>
    %413 = vector.broadcast %412 : vector<8x1xf32> to vector<8x2100xf32>
    %414 = arith.mulf %408, %413 : vector<8x2100xf32>
    %c0_159 = arith.constant 0 : index
    %c0_160 = arith.constant 0 : index
    %415 = vector.load %arg21[%c0_159, %c0_160] : memref<8x2100xf32, #tpu.memory_space<vmem>>, vector<8x2100xf32>
    tpu.vector_store %arg21[%c0_159, %c0_160], %414 {strides = array<i32>} : memref<8x2100xf32, #tpu.memory_space<vmem>>, vector<8x2100xf32>,
    return
  }
  func.func @transform_0(%arg0: i32) -> (i32, i32) {
    %c0_i32 = arith.constant 0 : i32
    %c0_i32_0 = arith.constant 0 : i32
    return %arg0, %c0_i32 : i32, i32
  }
  func.func @transform_1(%arg0: i32) -> (i32, i32) {
    %c0_i32 = arith.constant 0 : i32
    %c0_i32_0 = arith.constant 0 : i32
    return %arg0, %c0_i32 : i32, i32
  }
  func.func @transform_2(%arg0: i32) -> (i32, i32) {
    %c0_i32 = arith.constant 0 : i32
    %c0_i32_0 = arith.constant 0 : i32
    %c0_i32_1 = arith.constant 0 : i32
    return %c0_i32, %c0_i32_0 : i32, i32
  }
  func.func @transform_3(%arg0: i32) -> (i32, i32) {
    %c0_i32 = arith.constant 0 : i32
    %c0_i32_0 = arith.constant 0 : i32
    %c0_i32_1 = arith.constant 0 : i32
    return %c0_i32, %c0_i32_0 : i32, i32
  }
  func.func @transform_4(%arg0: i32) -> (i32, i32, i32) {
    %c0_i32 = arith.constant 0 : i32
    %c0_i32_0 = arith.constant 0 : i32
    %c0_i32_1 = arith.constant 0 : i32
    %c0_i32_2 = arith.constant 0 : i32
    return %c0_i32, %c0_i32_0, %c0_i32_1 : i32, i32, i32
  }
  func.func @transform_5(%arg0: i32) -> (i32, i32, i32) {
    %c0_i32 = arith.constant 0 : i32
    %c0_i32_0 = arith.constant 0 : i32
    %c0_i32_1 = arith.constant 0 : i32
    %c0_i32_2 = arith.constant 0 : i32
    return %c0_i32, %c0_i32_0, %c0_i32_1 : i32, i32, i32
  }
  func.func @transform_6(%arg0: i32) -> (i32, i32) {
    %c0_i32 = arith.constant 0 : i32
    %c0_i32_0 = arith.constant 0 : i32
    %c0_i32_1 = arith.constant 0 : i32
    return %c0_i32, %c0_i32_0 : i32, i32
  }
  func.func @transform_7(%arg0: i32) -> (i32, i32) {
    %c0_i32 = arith.constant 0 : i32
    %c0_i32_0 = arith.constant 0 : i32
    %c0_i32_1 = arith.constant 0 : i32
    return %c0_i32, %c0_i32_0 : i32, i32
  }
  func.func @transform_8(%arg0: i32) -> (i32, i32) {
    %c0_i32 = arith.constant 0 : i32
    %c0_i32_0 = arith.constant 0 : i32
    %c0_i32_1 = arith.constant 0 : i32
    return %c0_i32, %c0_i32_0 : i32, i32
  }
  func.func @transform_9(%arg0: i32) -> (i32, i32) {
    %c0_i32 = arith.constant 0 : i32
    %c0_i32_0 = arith.constant 0 : i32
    %c0_i32_1 = arith.constant 0 : i32
    return %c0_i32, %c0_i32_0 : i32, i32
  }
  func.func @transform_10(%arg0: i32) -> (i32, i32) {
    %c0_i32 = arith.constant 0 : i32
    %c0_i32_0 = arith.constant 0 : i32
    %c0_i32_1 = arith.constant 0 : i32
    return %c0_i32, %c0_i32_0 : i32, i32
  }
  func.func @transform_11(%arg0: i32) -> (i32, i32) {
    %c0_i32 = arith.constant 0 : i32
    %c0_i32_0 = arith.constant 0 : i32
    %c0_i32_1 = arith.constant 0 : i32
    return %c0_i32, %c0_i32_0 : i32, i32
  }
  func.func @transform_12(%arg0: i32) -> (i32, i32) {
    %c0_i32 = arith.constant 0 : i32
    %c0_i32_0 = arith.constant 0 : i32
    %c0_i32_1 = arith.constant 0 : i32
    return %c0_i32, %c0_i32_0 : i32, i32
  }
  func.func @transform_13(%arg0: i32) -> (i32, i32, i32) {
    %c0_i32 = arith.constant 0 : i32
    %c0_i32_0 = arith.constant 0 : i32
    %c0_i32_1 = arith.constant 0 : i32
    %c0_i32_2 = arith.constant 0 : i32
    return %c0_i32, %c0_i32_0, %c0_i32_1 : i32, i32, i32
  }
  func.func @transform_14(%arg0: i32) -> (i32, i32, i32) {
    %c0_i32 = arith.constant 0 : i32
    %c0_i32_0 = arith.constant 0 : i32
    %c0_i32_1 = arith.constant 0 : i32
    %c0_i32_2 = arith.constant 0 : i32
    return %c0_i32, %c0_i32_0, %c0_i32_1 : i32, i32, i32
  }
  func.func @transform_15(%arg0: i32) -> (i32, i32) {
    %c0_i32 = arith.constant 0 : i32
    %c0_i32_0 = arith.constant 0 : i32
    %c0_i32_1 = arith.constant 0 : i32
    return %c0_i32, %c0_i32_0 : i32, i32
  }
  func.func @transform_16(%arg0: i32) -> (i32, i32) {
    %c0_i32 = arith.constant 0 : i32
    %c0_i32_0 = arith.constant 0 : i32
    %c0_i32_1 = arith.constant 0 : i32
    return %c0_i32, %c0_i32_0 : i32, i32
  }
  func.func @transform_17(%arg0: i32) -> (i32, i32) {
    %c0_i32 = arith.constant 0 : i32
    %c0_i32_0 = arith.constant 0 : i32
    %c0_i32_1 = arith.constant 0 : i32
    return %c0_i32, %c0_i32_0 : i32, i32
  }
  func.func @transform_18(%arg0: i32) -> (i32, i32) {
    %c0_i32 = arith.constant 0 : i32
    %c0_i32_0 = arith.constant 0 : i32
    %c0_i32_1 = arith.constant 0 : i32
    return %c0_i32, %c0_i32_0 : i32, i32
  }
  func.func @transform_19(%arg0: i32) -> (i32, i32) {
    %c0_i32 = arith.constant 0 : i32
    %c0_i32_0 = arith.constant 0 : i32
    %c0_i32_1 = arith.constant 0 : i32
    return %c0_i32, %c0_i32_0 : i32, i32
  }
  func.func @transform_20(%arg0: i32) -> (i32, i32) {
    %c0_i32 = arith.constant 0 : i32
    %c0_i32_0 = arith.constant 0 : i32
    return %arg0, %c0_i32 : i32, i32
  }
}

</mosaic_0001>

<bundles_post_ra>
// kernel: deepz_forward_impl.1
= control target key start
LH: loop header
LB: loop body
LE: loop exit
PB: predicated region body
PF: predicated region fallthrough
CT: control target
= control target key end

     0   :  { %s12727_s0 = inlined_call_operand.hbm [shape: f32[8,46], index: 0, kind: input, shape index: {}]   ;;  %s12728_s1 = inlined_call_operand.hbm [shape: f32[8,46], index: 1, kind: input, shape index: {}]   ;;  %s12729_s2 = inlined_call_operand.hbm [shape: bf16[46,250], index: 2, kind: input, shape index: {}]   ;;  %s12730_s3 = inlined_call_operand.hbm [shape: f32[1,250], index: 3, kind: input, shape index: {}]   ;;  %s12731_s4 = inlined_call_operand.hbm [shape: bf16[5,250,250], index: 4, kind: input, shape index: {}]   ;;  %s12732_s5 = inlined_call_operand.hbm [shape: f32[5,1,250], index: 5, kind: input, shape index: {}]   ;;  %s12733_s6 = inlined_call_operand.vmem [shape: bf16[250,10], index: 6, kind: input, shape index: {}]   ;;  %s12734_s7 = inlined_call_operand.hbm [shape: f32[1,10], index: 7, kind: input, shape index: {}]   ;;  %s12735_s8 = inlined_call_operand.hbm [shape: bf16[46,400], index: 8, kind: input, shape index: {}]   ;;  %s12736_s9 = inlined_call_operand.hbm [shape: bf16[10,400], index: 9, kind: input, shape index: {}]   ;;  %s12737_s10 = inlined_call_operand.hbm [shape: f32[1,400], index: 10, kind: input, shape index: {}]   ;;  %s12738_s11 = inlined_call_operand.hbm [shape: bf16[400,250], index: 11, kind: input, shape index: {}]   ;;  %s12739_s12 = inlined_call_operand.hbm [shape: f32[1,250], index: 12, kind: input, shape index: {}]   ;;  %s12740_s13 = inlined_call_operand.hbm [shape: bf16[13,250,250], index: 13, kind: input, shape index: {}]   ;;  %s12741_s14 = inlined_call_operand.hbm [shape: f32[13,1,250], index: 14, kind: input, shape index: {}]   ;;  %s12742_s15 = inlined_call_operand.hbm [shape: f32[1,250], index: 15, kind: input, shape index: {}]   ;;  %s12743_s16 = inlined_call_operand.hbm [shape: f32[1,250], index: 16, kind: input, shape index: {}]   ;;  %s12744_s17 = inlined_call_operand.vmem [shape: bf16[250,30], index: 17, kind: input, shape index: {}]   ;;  %s12745_s18 = inlined_call_operand.hbm [shape: f32[1,30], index: 18, kind: input, shape index: {}]   ;;  %s12746_s19 = inlined_call_operand.vmem [shape: f32[1,2100], index: 19, kind: input, shape index: {}]   ;;  %s12747_s20 = inlined_call_operand.hbm [shape: f32[8,2100], index: 20, kind: output, shape index: {}]  }
   0x1   :  { %12780 = sst [smem:[#allocation161_spill]] %s12727_s0 }
   0x2   :  { %12781 = sst [smem:[#allocation162_spill]] %s12728_s1 }
   0x3   :  { %12782 = sst [smem:[#allocation163_spill]] %s12729_s2 }
   0x4   :  { %12783 = sst [smem:[#allocation164_spill]] %s12730_s3 }
   0x5   :  { %12784 = sst [smem:[#allocation165_spill]] %s12731_s4 }
   0x6   :  { %25 = vsyncpa [#allocation3], 0 }
   0x7   :  { %26 = vsyncpa [#allocation6], 0 }
   0x8   :  { %27 = vsyncpa [#allocation9], 0 }
   0x9   :  { %28 = vsyncpa [#allocation12], 0 }
   0xa   :  { %29 = vsyncpa [#allocation15], 0 }
   0xb   :  { %30 = vsyncpa [#allocation18], 0 }
   0xc   :  { %31 = vsyncpa [#allocation21], 0 }
   0xd   :  { %32 = vsyncpa [#allocation24], 0 }
   0xe   :  { %33 = vsyncpa [#allocation27], 0 }
   0xf   :  { %34 = vsyncpa [#allocation4], 0  ;;  %s10265_s1 = smov [#allocation5]   ;;  %s10266_s23 = smov [#allocation8]  }
  0x10   :  { %s51_s22 = sshll.u32 %s10265_s1, 4  ;;  %s73_s24 = sshll.u32 %s10266_s23, 4  ;;  %s52_s22 = int_to_ptr.vmem [resolvable:$true] %s51_s22  ;;  %s74_s24 = int_to_ptr.vmem [resolvable:$true] %s73_s24 }
  0x11   :  { %s12785_s3 = sld [smem:[#allocation162_spill]] }
  0x17   :  { %s9849_s26 = scalar_lea.hbm %s12785_s3, 128 }
  0x18   :  { %p9850_p0 = scmp.ne.s32.totalorder %s12785_s3, %s9849_s26  ;;  %p9853_p1 = scmp.lt.u32.totalorder %s9849_s26, %s12785_s3 }
  0x1a   :  { %p9855_p2 = pnand %p9853_p1, %p9850_p0 }
  0x1c   :  { %9858 = shalt.err (!%p9855_p2)
}
  0x1d   :  { %s9859_s30 = scalar_lea.vmem %s52_s22, 128  ;;  %p9864_p4 = scmp.lt.s32.totalorder %s52_s22, %s52_s22 }
  0x1e   :  { %p9860_p3 = scmp.ne.s32.totalorder %s52_s22, %s9859_s30  ;;  %p9865_p5 = scmp.lt.s32.totalorder %s9859_s30, %s9859_s30 }
  0x20   :  { %p9866_p6 = por %p9865_p5, %p9864_p4 }
  0x22   :  { %p9867_p7 = pnand %p9866_p6, %p9860_p3 }
  0x24   :  { %9870 = shalt.err (!%p9867_p7)
}
  0x25   :  { %54 = dma.hbm_to_vmem [thread:$0]  %s12785_s3, 128, %s52_s22, [#allocation6]  }
  0x26   :  { %s12786_s2 = sld [smem:[#allocation164_spill]] }
  0x2c   :  { %s9871_s25 = scalar_lea.hbm %s12786_s2, 32 }
  0x2d   :  { %p9872_p8 = scmp.ne.s32.totalorder %s12786_s2, %s9871_s25  ;;  %p9875_p9 = scmp.lt.u32.totalorder %s9871_s25, %s12786_s2 }
  0x2f   :  { %p9877_p10 = pnand %p9875_p9, %p9872_p8 }
  0x31   :  { %9880 = shalt.err (!%p9877_p10)
}
  0x32   :  { %s9881_s29 = scalar_lea.vmem %s74_s24, 32  ;;  %p9886_p12 = scmp.lt.s32.totalorder %s74_s24, %s74_s24 }
  0x33   :  { %p9882_p11 = scmp.ne.s32.totalorder %s74_s24, %s9881_s29  ;;  %p9887_p13 = scmp.lt.s32.totalorder %s9881_s29, %s9881_s29 }
  0x35   :  { %p9888_p0 = por %p9887_p13, %p9886_p12 }
  0x37   :  { %p9889_p1 = pnand %p9888_p0, %p9882_p11 }
  0x39   :  { %9892 = shalt.err (!%p9889_p1)
}
  0x3a   :  { %76 = dma.hbm_to_vmem [thread:$0]  %s12786_s2, 32, %s74_s24, [#allocation9]  }
  0x3b   :  { %s10267_s30 = smov [#allocation11]   ;;  %s9893_s23 = scalar_lea.hbm %s12732_s5, 160 }
  0x3c   :  { %s94_s0 = sshll.u32 %s10267_s30, 4  ;;  %p9894_p2 = scmp.ne.s32.totalorder %s12732_s5, %s9893_s23  ;;  %s95_s0 = int_to_ptr.vmem [resolvable:$true] %s94_s0 }
  0x3d   :  { %p9897_p3 = scmp.lt.u32.totalorder %s9893_s23, %s12732_s5 }
  0x3f   :  { %p9899_p4 = pnand %p9897_p3, %p9894_p2 }
  0x41   :  { %9902 = shalt.err (!%p9899_p4)
}
  0x42   :  { %s9903_s4 = scalar_lea.vmem %s95_s0, 160  ;;  %p9908_p6 = scmp.lt.s32.totalorder %s95_s0, %s95_s0 }
  0x43   :  { %p9904_p5 = scmp.ne.s32.totalorder %s95_s0, %s9903_s4  ;;  %p9909_p7 = scmp.lt.s32.totalorder %s9903_s4, %s9903_s4 }
  0x45   :  { %p9910_p8 = por %p9909_p7, %p9908_p6 }
  0x47   :  { %p9911_p9 = pnand %p9910_p8, %p9904_p5 }
  0x49   :  { %9914 = shalt.err (!%p9911_p9)
}
  0x4a   :  { %s12753_s24 = smov 32   ;;  %s12754_s2 = smov 2  }
  0x4b   :  { %100 = dma.hbm_to_vmem [thread:$0]  %s12732_s5, 160, %s95_s0, [#allocation12], %s12753_s24, %s12753_s24, %s12754_s2  }
  0x4c   :  { %s10270_s3 = smov [#allocation14]   ;;  %s9915_s23 = scalar_lea.hbm %s12735_s8, 1536 }
  0x4d   :  { %s118_s30 = sshll.u32 %s10270_s3, 4  ;;  %p9916_p10 = scmp.ne.s32.totalorder %s12735_s8, %s9915_s23  ;;  %s119_s30 = int_to_ptr.vmem [resolvable:$true] %s118_s30 }
  0x4e   :  { %p9919_p11 = scmp.lt.u32.totalorder %s9915_s23, %s12735_s8 }
  0x50   :  { %p9921_p12 = pnand %p9919_p11, %p9916_p10 }
  0x52   :  { %9924 = shalt.err (!%p9921_p12)
}
  0x53   :  { %s9925_s4 = scalar_lea.vmem %s119_s30, 1536  ;;  %p9930_p0 = scmp.lt.s32.totalorder %s119_s30, %s119_s30 }
  0x54   :  { %p9926_p13 = scmp.ne.s32.totalorder %s119_s30, %s9925_s4  ;;  %p9931_p1 = scmp.lt.s32.totalorder %s9925_s4, %s9925_s4 }
  0x56   :  { %p9932_p2 = por %p9931_p1, %p9930_p0 }
  0x58   :  { %p9933_p3 = pnand %p9932_p2, %p9926_p13 }
  0x5a   :  { %9936 = shalt.err (!%p9933_p3)
}
  0x5b   :  { %s10271_s5 = smov 256   ;;  %s10272_s0 = smov 16  }
  0x5c   :  { %124 = dma.hbm_to_vmem [thread:$0]  %s12735_s8, 1536, %s119_s30, [#allocation15], %s10271_s5, %s10271_s5, %s10272_s0  }
  0x5d   :  { %s10273_s3 = smov [#allocation17]   ;;  %s10274_s1 = smov [#allocation20]  }
  0x5e   :  { %s143_s21 = sshll.u32 %s10273_s3, 4  ;;  %s165_s23 = sshll.u32 %s10274_s1, 4  ;;  %s144_s21 = int_to_ptr.vmem [resolvable:$true] %s143_s21  ;;  %s166_s23 = int_to_ptr.vmem [resolvable:$true] %s165_s23 }
  0x5f   :  { %s9937_s28 = scalar_lea.hbm %s12737_s10, 64 }
  0x60   :  { %p9938_p4 = scmp.ne.s32.totalorder %s12737_s10, %s9937_s28  ;;  %p9941_p5 = scmp.lt.u32.totalorder %s9937_s28, %s12737_s10 }
  0x62   :  { %p9943_p6 = pnand %p9941_p5, %p9938_p4 }
  0x64   :  { %9946 = shalt.err (!%p9943_p6)
}
  0x65   :  { %s9947_s8 = scalar_lea.vmem %s144_s21, 64  ;;  %p9952_p8 = scmp.lt.s32.totalorder %s144_s21, %s144_s21 }
  0x66   :  { %p9948_p7 = scmp.ne.s32.totalorder %s144_s21, %s9947_s8  ;;  %p9953_p9 = scmp.lt.s32.totalorder %s9947_s8, %s9947_s8 }
  0x68   :  { %p9954_p10 = por %p9953_p9, %p9952_p8 }
  0x6a   :  { %p9955_p11 = pnand %p9954_p10, %p9948_p7 }
  0x6c   :  { %9958 = shalt.err (!%p9955_p11)
}
  0x6d   :  { %146 = dma.hbm_to_vmem [thread:$0]  %s12737_s10, 64, %s144_s21, [#allocation18]  }
  0x6e   :  { %s9959_s1 = scalar_lea.hbm %s12739_s12, 32 }
  0x6f   :  { %p9960_p12 = scmp.ne.s32.totalorder %s12739_s12, %s9959_s1  ;;  %p9963_p13 = scmp.lt.u32.totalorder %s9959_s1, %s12739_s12 }
  0x71   :  { %p9965_p0 = pnand %p9963_p13, %p9960_p12 }
  0x73   :  { %9968 = shalt.err (!%p9965_p0)
}
  0x74   :  { %s9969_s28 = scalar_lea.vmem %s166_s23, 32  ;;  %p9974_p2 = scmp.lt.s32.totalorder %s166_s23, %s166_s23 }
  0x75   :  { %p9970_p1 = scmp.ne.s32.totalorder %s166_s23, %s9969_s28  ;;  %p9975_p3 = scmp.lt.s32.totalorder %s9969_s28, %s9969_s28 }
  0x77   :  { %p9976_p4 = por %p9975_p3, %p9974_p2 }
  0x79   :  { %p9977_p5 = pnand %p9976_p4, %p9970_p1 }
  0x7b   :  { %9980 = shalt.err (!%p9977_p5)
}
  0x7c   :  { %168 = dma.hbm_to_vmem [thread:$0]  %s12739_s12, 32, %s166_s23, [#allocation21]  }
  0x7d   :  { %s10275_s26 = smov [#allocation23]   ;;  %s10276_s8 = smov [#allocation26]  }
  0x7e   :  { %s186_s4 = sshll.u32 %s10275_s26, 4  ;;  %s209_s30 = sshll.u32 %s10276_s8, 4  ;;  %s187_s4 = int_to_ptr.vmem [resolvable:$true] %s186_s4  ;;  %s210_s30 = int_to_ptr.vmem [resolvable:$true] %s209_s30 }
  0x7f   :  { %s9981_s3 = scalar_lea.hbm %s12741_s14, 416 }
  0x80   :  { %p9982_p6 = scmp.ne.s32.totalorder %s12741_s14, %s9981_s3  ;;  %p9985_p7 = scmp.lt.u32.totalorder %s9981_s3, %s12741_s14 }
  0x82   :  { %p9987_p8 = pnand %p9985_p7, %p9982_p6 }
  0x84   :  { %9990 = shalt.err (!%p9987_p8)
}
  0x85   :  { %s9991_s12 = scalar_lea.vmem %s187_s4, 416  ;;  %p9996_p10 = scmp.lt.s32.totalorder %s187_s4, %s187_s4 }
  0x86   :  { %p9992_p9 = scmp.ne.s32.totalorder %s187_s4, %s9991_s12  ;;  %p9997_p11 = scmp.lt.s32.totalorder %s9991_s12, %s9991_s12 }
  0x88   :  { %p9998_p12 = por %p9997_p11, %p9996_p10 }
  0x8a   :  { %p9999_p13 = pnand %p9998_p12, %p9992_p9 }
  0x8c   :  { %10002 = shalt.err (!%p9999_p13)
}
  0x8d   :  { %s12787_s23 = smov 2   ;;  %s12788_s27 = smov 32  }
  0x8e   :  { %192 = dma.hbm_to_vmem [thread:$0]  %s12741_s14, 416, %s187_s4, [#allocation24], %s12788_s27, %s12788_s27, %s12787_s23  }
  0x8f   :  { %s10003_s8 = scalar_lea.hbm %s12743_s16, 32 }
  0x90   :  { %p10004_p0 = scmp.ne.s32.totalorder %s12743_s16, %s10003_s8  ;;  %p10007_p1 = scmp.lt.u32.totalorder %s10003_s8, %s12743_s16 }
  0x92   :  { %p10009_p2 = pnand %p10007_p1, %p10004_p0 }
  0x94   :  { %10012 = shalt.err (!%p10009_p2)
}
  0x95   :  { %s10013_s25 = scalar_lea.vmem %s210_s30, 32  ;;  %p10018_p4 = scmp.lt.s32.totalorder %s210_s30, %s210_s30 }
  0x96   :  { %p10014_p3 = scmp.ne.s32.totalorder %s210_s30, %s10013_s25  ;;  %p10019_p5 = scmp.lt.s32.totalorder %s10013_s25, %s10013_s25 }
  0x98   :  { %p10020_p6 = por %p10019_p5, %p10018_p4 }
  0x9a   :  { %p10021_p7 = pnand %p10020_p6, %p10014_p3 }
  0x9c   :  { %10024 = shalt.err (!%p10021_p7)
}
  0x9d   :  { %212 = dma.hbm_to_vmem [thread:$0]  %s12743_s16, 32, %s210_s30, [#allocation27]  }
  0x9e   :  { %s10277_s24 = smov [#allocation2]   ;;  %s10278_s12 = smov [#allocation7]  }
  0x9f   :  { %s41_s2 = sshll.u32 %s10277_s24, 4  ;;  %s60_s23 = sshll.u32 %s10278_s12, 4  ;;  %s42_s2 = int_to_ptr.vmem [resolvable:$true] %s41_s2  ;;  %s10530_s23 = int_to_ptr.vmem [resolvable:$true] %s60_s23 }
  0xa0   :  { %s12789_s10 = sld [smem:[#allocation161_spill]] }
  0xa6   :  { %s10025_s21 = scalar_lea.hbm %s12789_s10, 128 }
  0xa7   :  { %p10026_p8 = scmp.ne.s32.totalorder %s12789_s10, %s10025_s21  ;;  %p10029_p9 = scmp.lt.u32.totalorder %s10025_s21, %s12789_s10 }
  0xa9   :  { %p10031_p10 = pnand %p10029_p9, %p10026_p8 }
  0xab   :  { %10034 = shalt.err (!%p10031_p10)
}
  0xac   :  { %s10035_s16 = scalar_lea.vmem %s42_s2, 128  ;;  %p10040_p12 = scmp.lt.s32.totalorder %s42_s2, %s42_s2 }
  0xad   :  { %p10036_p11 = scmp.ne.s32.totalorder %s42_s2, %s10035_s16  ;;  %p10041_p13 = scmp.lt.s32.totalorder %s10035_s16, %s10035_s16 }
  0xaf   :  { %p10042_p0 = por %p10041_p13, %p10040_p12 }
  0xb1   :  { %p10043_p1 = pnand %p10042_p0, %p10036_p11 }
  0xb3   :  { %10046 = shalt.err (!%p10043_p1)
}
  0xb4   :  { %44 = dma.hbm_to_vmem [thread:$0]  %s12789_s10, 128, %s42_s2, [#allocation3]  }
  0xb5   :  { %s12790_s14 = sld [smem:[#allocation163_spill]] }
  0xbb   :  { %s10047_s4 = scalar_lea.hbm %s12790_s14, 768 }
  0xbc   :  { %p10048_p2 = scmp.ne.s32.totalorder %s12790_s14, %s10047_s4  ;;  %p10051_p3 = scmp.lt.u32.totalorder %s10047_s4, %s12790_s14 }
  0xbe   :  { %p10053_p4 = pnand %p10051_p3, %p10048_p2 }
  0xc0   :  { %10056 = shalt.err (!%p10053_p4)
}
  0xc1   :  { %s10057_s21 = scalar_lea.vmem %s10530_s23, 768  ;;  %p10062_p6 = scmp.lt.s32.totalorder %s10530_s23, %s10530_s23 }
  0xc2   :  { %p10058_p5 = scmp.ne.s32.totalorder %s10530_s23, %s10057_s21  ;;  %p10063_p7 = scmp.lt.s32.totalorder %s10057_s21, %s10057_s21 }
  0xc4   :  { %p10064_p8 = por %p10063_p7, %p10062_p6 }
  0xc6   :  { %p10065_p9 = pnand %p10064_p8, %p10058_p5 }
  0xc8   :  { %10068 = shalt.err (!%p10065_p9)
}
  0xc9   :  { %s10279_s2 = smov 128   ;;  %s10280_s10 = smov 8  }
  0xca   :  { %66 = dma.hbm_to_vmem [thread:$0]  %s12790_s14, 768, %s10530_s23, [#allocation6], %s10279_s2, %s10279_s2, %s10280_s10  }
  0xcb   :  { %s10281_s29 = smov [#allocation10]   ;;  %s10282_s16 = smov [#allocation13]  }
  0xcc   :  { %s82_s22 = sshll.u32 %s10281_s29, 4  ;;  %s109_s30 = sshll.u32 %s10282_s16, 4  ;;  %s83_s22 = int_to_ptr.vmem [resolvable:$true] %s82_s22  ;;  %s110_s30 = int_to_ptr.vmem [resolvable:$true] %s109_s30 }
  0xcd   :  { %s12791_s25 = sld [smem:[#allocation165_spill]] }
  0xd3   :  { %s10069_s4 = scalar_lea.hbm %s12791_s25, 20480 }
  0xd4   :  { %p10070_p10 = scmp.ne.s32.totalorder %s12791_s25, %s10069_s4  ;;  %p10073_p11 = scmp.lt.u32.totalorder %s10069_s4, %s12791_s25 }
  0xd6   :  { %p10075_p12 = pnand %p10073_p11, %p10070_p10 }
  0xd8   :  { %10078 = shalt.err (!%p10075_p12)
}
  0xd9   :  { %s10079_s23 = scalar_lea.vmem %s83_s22, 20480  ;;  %p10084_p0 = scmp.lt.s32.totalorder %s83_s22, %s83_s22 }
  0xda   :  { %p10080_p13 = scmp.ne.s32.totalorder %s83_s22, %s10079_s23  ;;  %p10085_p1 = scmp.lt.s32.totalorder %s10079_s23, %s10079_s23 }
  0xdc   :  { %p10086_p2 = por %p10085_p1, %p10084_p0 }
  0xde   :  { %p10087_p3 = pnand %p10086_p2, %p10080_p13 }
  0xe0   :  { %10090 = shalt.err (!%p10087_p3)
}
  0xe1   :  { %88 = dma.hbm_to_vmem [thread:$0]  %s12791_s25, 20480, %s83_s22, [#allocation9], %s10279_s2, %s10279_s2, %s10280_s10  }
  0xe2   :  { %s10091_s29 = scalar_lea.hbm %s12734_s7, 16 }
  0xe3   :  { %p10092_p4 = scmp.ne.s32.totalorder %s12734_s7, %s10091_s29  ;;  %p10095_p5 = scmp.lt.u32.totalorder %s10091_s29, %s12734_s7 }
  0xe5   :  { %p10097_p6 = pnand %p10095_p5, %p10092_p4 }
  0xe7   :  { %10100 = shalt.err (!%p10097_p6)
}
  0xe8   :  { %s10101_s24 = scalar_lea.vmem %s110_s30, 16  ;;  %s10105_s12 = scalar_lea.vmem %s110_s30, 32 }
  0xe9   :  { %p10102_p7 = scmp.ne.s32.totalorder %s110_s30, %s10101_s24  ;;  %p10106_p8 = scmp.lt.s32.totalorder %s110_s30, %s110_s30 }
  0xea   :  { %p10107_p9 = scmp.lt.s32.totalorder %s10105_s12, %s10101_s24 }
  0xec   :  { %p10108_p10 = por %p10107_p9, %p10106_p8 }
  0xee   :  { %p10109_p11 = pnand %p10108_p10, %p10102_p7 }
  0xf0   :  { %10112 = shalt.err (!%p10109_p11)
}
  0xf1   :  { %112 = dma.hbm_to_vmem [thread:$0]  %s12734_s7, 16, %s110_s30, [#allocation12]  }
  0xf2   :  { %s10283_s27 = smov [#allocation16]   ;;  %s10284_s23 = smov [#allocation19]  }
  0xf3   :  { %s130_s28 = sshll.u32 %s10283_s27, 4  ;;  %s152_s14 = sshll.u32 %s10284_s23, 4  ;;  %s131_s28 = int_to_ptr.vmem [resolvable:$true] %s130_s28  ;;  %s10591_s14 = int_to_ptr.vmem [resolvable:$true] %s152_s14 }
  0xf4   :  { %s10113_s8 = scalar_lea.hbm %s12736_s9, 512 }
  0xf5   :  { %p10114_p12 = scmp.ne.s32.totalorder %s12736_s9, %s10113_s8  ;;  %p10117_p13 = scmp.lt.u32.totalorder %s10113_s8, %s12736_s9 }
  0xf7   :  { %p10119_p0 = pnand %p10117_p13, %p10114_p12 }
  0xf9   :  { %10122 = shalt.err (!%p10119_p0)
}
  0xfa   :  { %s10123_s7 = scalar_lea.vmem %s131_s28, 512  ;;  %p10128_p2 = scmp.lt.s32.totalorder %s131_s28, %s131_s28 }
  0xfb   :  { %p10124_p1 = scmp.ne.s32.totalorder %s131_s28, %s10123_s7  ;;  %p10129_p3 = scmp.lt.s32.totalorder %s10123_s7, %s10123_s7 }
  0xfd   :  { %p10130_p4 = por %p10129_p3, %p10128_p2 }
  0xff   :  { %p10131_p5 = pnand %p10130_p4, %p10124_p1 }
 0x101   :  { %10134 = shalt.err (!%p10131_p5)
}
 0x102   :  { %136 = dma.hbm_to_vmem [thread:$0]  %s12736_s9, 512, %s131_s28, [#allocation15], %s10271_s5, %s10271_s5, %s10272_s0  }
 0x103   :  { %s10135_s22 = scalar_lea.hbm %s12738_s11, 6400 }
 0x104   :  { %p10136_p6 = scmp.ne.s32.totalorder %s12738_s11, %s10135_s22  ;;  %p10139_p7 = scmp.lt.u32.totalorder %s10135_s22, %s12738_s11 }
 0x106   :  { %p10141_p8 = pnand %p10139_p7, %p10136_p6 }
 0x108   :  { %10144 = shalt.err (!%p10141_p8)
}
 0x109   :  { %s10145_s26 = scalar_lea.vmem %s10591_s14, 6400  ;;  %p10150_p10 = scmp.lt.s32.totalorder %s10591_s14, %s10591_s14 }
 0x10a   :  { %p10146_p9 = scmp.ne.s32.totalorder %s10591_s14, %s10145_s26  ;;  %p10151_p11 = scmp.lt.s32.totalorder %s10145_s26, %s10145_s26 }
 0x10c   :  { %p10152_p12 = por %p10151_p11, %p10150_p10 }
 0x10e   :  { %p10153_p13 = pnand %p10152_p12, %p10146_p9 }
 0x110   :  { %10156 = shalt.err (!%p10153_p13)
}
 0x111   :  { %158 = dma.hbm_to_vmem [thread:$0]  %s12738_s11, 6400, %s10591_s14, [#allocation18], %s10279_s2, %s10279_s2, %s10280_s10  }
 0x112   :  { %s10285_s0 = smov [#allocation22]   ;;  %s10286_s8 = smov [#allocation25]  }
 0x113   :  { %s174_s28 = sshll.u32 %s10285_s0, 4  ;;  %s199_s29 = sshll.u32 %s10286_s8, 4  ;;  %s175_s28 = int_to_ptr.vmem [resolvable:$true] %s174_s28  ;;  %s200_s29 = int_to_ptr.vmem [resolvable:$true] %s199_s29 }
 0x114   :  { %s10157_s1 = scalar_lea.hbm %s12740_s13, 53248 }
 0x115   :  { %p10158_p0 = scmp.ne.s32.totalorder %s12740_s13, %s10157_s1  ;;  %p10161_p1 = scmp.lt.u32.totalorder %s10157_s1, %s12740_s13 }
 0x117   :  { %p10163_p2 = pnand %p10161_p1, %p10158_p0 }
 0x119   :  { %10166 = shalt.err (!%p10163_p2)
}
 0x11a   :  { %s10167_s11 = scalar_lea.vmem %s175_s28, 53248  ;;  %p10172_p4 = scmp.lt.s32.totalorder %s175_s28, %s175_s28 }
 0x11b   :  { %p10168_p3 = scmp.ne.s32.totalorder %s175_s28, %s10167_s11  ;;  %p10173_p5 = scmp.lt.s32.totalorder %s10167_s11, %s10167_s11 }
 0x11d   :  { %p10174_p6 = por %p10173_p5, %p10172_p4 }
 0x11f   :  { %p10175_p7 = pnand %p10174_p6, %p10168_p3 }
 0x121   :  { %10178 = shalt.err (!%p10175_p7)
}
 0x122   :  { %180 = dma.hbm_to_vmem [thread:$0]  %s12740_s13, 53248, %s175_s28, [#allocation21], %s10279_s2, %s10279_s2, %s10280_s10  }
 0x123   :  { %s10179_s27 = scalar_lea.hbm %s12742_s15, 32 }
 0x124   :  { %p10180_p8 = scmp.ne.s32.totalorder %s12742_s15, %s10179_s27  ;;  %p10183_p9 = scmp.lt.u32.totalorder %s10179_s27, %s12742_s15 }
 0x126   :  { %p10185_p10 = pnand %p10183_p9, %p10180_p8 }
 0x128   :  { %10188 = shalt.err (!%p10185_p10)
}
 0x129   :  { %s10189_s5 = scalar_lea.vmem %s200_s29, 32  ;;  %p10194_p12 = scmp.lt.s32.totalorder %s200_s29, %s200_s29 }
 0x12a   :  { %p10190_p11 = scmp.ne.s32.totalorder %s200_s29, %s10189_s5  ;;  %p10195_p13 = scmp.lt.s32.totalorder %s10189_s5, %s10189_s5 }
 0x12c   :  { %p10196_p0 = por %p10195_p13, %p10194_p12 }
 0x12e   :  { %p10197_p1 = pnand %p10196_p0, %p10190_p11 }
 0x130   :  { %10200 = shalt.err (!%p10197_p1)
}
 0x131   :  { %202 = dma.hbm_to_vmem [thread:$0]  %s12742_s15, 32, %s200_s29, [#allocation24]  }
 0x132   :  { %s10287_s10 = smov [#allocation28]   ;;  %s10201_s16 = scalar_lea.hbm %s12745_s18, 16 }
 0x133   :  { %s221_s0 = sshll.u32 %s10287_s10, 4  ;;  %p10202_p2 = scmp.ne.s32.totalorder %s12745_s18, %s10201_s16  ;;  %s222_s0 = int_to_ptr.vmem [resolvable:$true] %s221_s0 }
 0x134   :  { %p10205_p3 = scmp.lt.u32.totalorder %s10201_s16, %s12745_s18 }
 0x136   :  { %p10207_p4 = pnand %p10205_p3, %p10202_p2 }
 0x138   :  { %10210 = shalt.err (!%p10207_p4)
}
 0x139   :  { %s10211_s4 = scalar_lea.vmem %s222_s0, 16  ;;  %s10215_s15 = scalar_lea.vmem %s222_s0, 32 }
 0x13a   :  { %p10212_p5 = scmp.ne.s32.totalorder %s222_s0, %s10211_s4  ;;  %p10216_p6 = scmp.lt.s32.totalorder %s222_s0, %s222_s0 }
 0x13b   :  { %p10217_p7 = scmp.lt.s32.totalorder %s10215_s15, %s10211_s4 }
 0x13d   :  { %p10218_p8 = por %p10217_p7, %p10216_p6 }
 0x13f   :  { %p10219_p9 = pnand %p10218_p8, %p10212_p5 }
 0x141   :  { %10222 = shalt.err (!%p10219_p9)
}
 0x142   :  { %224 = dma.hbm_to_vmem [thread:$0]  %s12745_s18, 16, %s222_s0, [#allocation27]  }
 0x143   :  { %10245 = dma.done.wait [#allocation3], 128  }
 0x144   :  { %10246 = vsyncadd [#allocation3], 4294967168 }
 0x145   :  { %10247 = dma.done.wait [#allocation6], 896  }
 0x146   :  { %10248 = vsyncadd [#allocation6], 4294966400 }
 0x147   :  { %10249 = dma.done.wait [#allocation9], 20512  }
 0x148   :  { %10250 = vsyncadd [#allocation9], 4294946784 }
 0x149   :  { %10251 = dma.done.wait [#allocation12], 176  }
 0x14a   :  { %10252 = vsyncadd [#allocation12], 4294967120 }
 0x14b   :  { %10253 = dma.done.wait [#allocation15], 2048  }
 0x14c   :  { %10254 = vsyncadd [#allocation15], 4294965248 }
 0x14d   :  { %10255 = dma.done.wait [#allocation18], 6464  }
 0x14e   :  { %10256 = vsyncadd [#allocation18], 4294960832 }
 0x14f   :  { %10257 = dma.done.wait [#allocation21], 53280  }
 0x150   :  { %10258 = vsyncadd [#allocation21], 4294914016 }
 0x151   :  { %10259 = dma.done.wait [#allocation24], 448  }
 0x152   :  { %10260 = vsyncadd [#allocation24], 4294966848 }
 0x153   :  { %10261 = dma.done.wait [#allocation27], 48  }
 0x154   :  { %10262 = vsyncadd [#allocation27], 4294967248  ;;  %v10288_v0 = vmov 0   ;;  %v8500_v1 = vld [vmem:[#allocation7 + $0x4] ss:$8 sps:$4 sm:$0xff]   ;;  %vm331_vm0 = vcmask 1046528  }
 0x155   :  { %370 = vmatprep.mubr.bf16.mxu0 %v10288_v0  ;;  %v8502_v2 = vld [vmem:[#allocation7] ss:$8 sps:$4 sm:$0xff]   ;;  %338 = vmatprep.subr.bf16.mxu0 %v8500_v1  ;;  %v8503_v3 = vld [vmem:[#allocation7 + $0x14] ss:$8 sps:$4 sm:$0xff]   ;;  %v8505_v4 = vld [vmem:[#allocation7 + $0x10] ss:$8 sps:$4 sm:$0xff]  }
 0x156   :  { %339 = vmatpush1.bf16.msra.mxu0 %v8502_v2  ;;  %v8506_v5 = vld [vmem:[#allocation7 + $0x24] ss:$8 sps:$4 sm:$0x7f]   ;;  %v8508_v6 = vld [vmem:[#allocation7 + $0x20] ss:$8 sps:$4 sm:$0x7f]  }
 0x157   :  { %340 = vmatprep.subr.bf16.mxu0 %v8503_v3  ;;  %v8509_v7 = vld [vmem:[#allocation10 + $0x4] ss:$8 sps:$4 sm:$0xff]   ;;  %v8511_v8 = vld [vmem:[#allocation10] ss:$8 sps:$4 sm:$0xff]   ;;  %v8512_v9 = vld [vmem:[#allocation10 + $0x14] ss:$8 sps:$4 sm:$0xff]  }
 0x158   :  { %v279_v10 = vld [vmem:[#allocation2] sm:$0xff]  ;;  %594 = vmatprep.subr.bf16.mxu1 %v8509_v7  ;;  %v333_v11 = vsel %vm331_vm0, %v8508_v6, 0  ;;  %v8514_v12 = vld [vmem:[#allocation10 + $0x10] ss:$8 sps:$4 sm:$0xff]   ;;  %vm327_vm1 = vcmask 375808   ;;  %vm587_vm2 = vcmask 1044480  }
 0x159   :  { %595 = vmatpush1.bf16.msra.mxu1 %v8511_v8  ;;  %v8515_v13 = vld [vmem:[#allocation10 + $0x24] ss:$8 sps:$4 sm:$0xff]   ;;  %v287_v14 = vpack.c.bf16 %v279_v10, %v279_v10  ;;  %v8517_v15 = vld [vmem:[#allocation10 + $0x20] ss:$8 sps:$4 sm:$0xff]   ;;  %v8518_v16 = vld [vmem:[#allocation10 + $0x34] ss:$8 sps:$4 sm:$0xff]   ;;  %v289_v8 = vlaneseq }
 0x15a   :  { %341 = vmatpush1.bf16.msra.mxu0 %v8505_v4  ;;  %596 = vmatprep.subr.bf16.mxu1 %v8512_v9  ;;  %v8520_v17 = vld [vmem:[#allocation10 + $0x30] ss:$8 sps:$4 sm:$0xff]   ;;  %v8521_v18 = vld [vmem:[#allocation10 + $0x44] ss:$8 sps:$4 sm:$0xff]   ;;  %v8523_v19 = vld [vmem:[#allocation10 + $0x40] ss:$8 sps:$4 sm:$0xff]  }
 0x15b   :  { %7636 = vmatprep.subr.msk.bf16.mxu0 %vm331_vm0, %v8506_v5  ;;  %v8524_v20 = vld [vmem:[#allocation10 + $0x54] ss:$8 sps:$4 sm:$0xff]   ;;  %v8526_v21 = vld [vmem:[#allocation10 + $0x50] ss:$8 sps:$4 sm:$0xff]   ;;  %v8527_v22 = vld [vmem:[#allocation10 + $0x64] ss:$8 sps:$4 sm:$0xff]  }
 0x15c   :  { %v8529_v23 = vld [vmem:[#allocation10 + $0x60] ss:$8 sps:$4 sm:$0xff]   ;;  %v8530_v24 = vld [vmem:[#allocation10 + $0x74] ss:$8 sps:$4 sm:$0xff]   ;;  %v8532_v25 = vld [vmem:[#allocation10 + $0x70] ss:$8 sps:$4 sm:$0xff]  }
 0x15d   :  { %597 = vmatpush1.bf16.msra.mxu1 %v8514_v12  ;;  %v8533_v26 = vld [vmem:[#allocation10 + $0x84] ss:$8 sps:$4 sm:$0xff]   ;;  %v8535_v27 = vld [vmem:[#allocation10 + $0x80] ss:$8 sps:$4 sm:$0xff]   ;;  %v8536_v28 = vld [vmem:[#allocation10 + $0x94] ss:$8 sps:$4 sm:$0xff]  }
 0x15e   :  { %343 = vmatpush1.bf16.msra.mxu0 %v333_v11  ;;  %598 = vmatprep.subr.bf16.mxu1 %v8515_v13  ;;  %v8538_v29 = vld [vmem:[#allocation10 + $0x90] ss:$8 sps:$4 sm:$0xff]   ;;  %v8539_v30 = vld [vmem:[#allocation10 + $0xa4] ss:$8 sps:$4 sm:$0xff]   ;;  %v8541_v31 = vld [vmem:[#allocation10 + $0xa0] ss:$8 sps:$4 sm:$0xff]  }
 0x15f   :  { %v8542_v32 = vld [vmem:[#allocation10 + $0xb4] ss:$8 sps:$4 sm:$0xff]   ;;  %v8544_v33 = vld [vmem:[#allocation10 + $0xb0] ss:$8 sps:$4 sm:$0xff]   ;;  %v8545_v34 = vld [vmem:[#allocation10 + $0xc4] ss:$8 sps:$4 sm:$0xff]  }
 0x160   :  { %v8547_v35 = vld [vmem:[#allocation10 + $0xc0] ss:$8 sps:$4 sm:$0xff]   ;;  %v8548_v36 = vld [vmem:[#allocation10 + $0xd4] ss:$8 sps:$4 sm:$0xff]   ;;  %v8550_v37 = vld [vmem:[#allocation10 + $0xd0] ss:$8 sps:$4 sm:$0xff]  }
 0x161   :  { %7637 = vmatmul.mubr.msk.bf16.vlgmr.msra.gmra.mrb[0].mxu0 %vm327_vm1, %v287_v14  ;;  %599 = vmatpush1.bf16.msra.mxu1 %v8517_v15  ;;  %v8551_v38 = vld [vmem:[#allocation10 + $0xe4] ss:$8 sps:$4 sm:$0xff]   ;;  %v8553_v39 = vld [vmem:[#allocation10 + $0xe0] ss:$8 sps:$4 sm:$0xff]   ;;  %v8562_v45 = vld [vmem:[#allocation10 + $0x114] ss:$8 sps:$4 sm:$0xff]  }
 0x162   :  { %600 = vmatprep.subr.bf16.mxu1 %v8518_v16  ;;  %v8554_v40 = vld [vmem:[#allocation10 + $0xf4] ss:$8 sps:$4 sm:$0x1f]   ;;  %v8556_v41 = vld [vmem:[#allocation10 + $0xf0] ss:$8 sps:$4 sm:$0x1f]  }
 0x163   :  { %v589_v42 = vsel %vm587_vm2, %v8556_v41, 0  ;;  %v8557_v43 = vld [vmem:[#allocation10 + $0x100] ss:$8 sps:$4 sm:$0xff]   ;;  %v8559_v44 = vld [vmem:[#allocation10 + $0x104] ss:$8 sps:$4 sm:$0xff]   ;;  %v10673_v9 = vshrl.u32 %v289_v8, 7 }
 0x164   :  { %852 = vmatprep.subr.bf16.mxu0 %v8559_v44  ;;  %v8560_v46 = vld [vmem:[#allocation10 + $0x110] ss:$8 sps:$4 sm:$0xff]   ;;  %v8565_v47 = vld [vmem:[#allocation10 + $0x124] ss:$8 sps:$4 sm:$0xff]   ;;  %v8563_v48 = vld [vmem:[#allocation10 + $0x120] ss:$8 sps:$4 sm:$0xff]  }
 0x165   :  { %601 = vmatpush1.bf16.msra.mxu1 %v8520_v17  ;;  %853 = vmatpush1.bf16.msra.mxu0 %v8557_v43  ;;  %v8568_v49 = vld [vmem:[#allocation10 + $0x134] ss:$8 sps:$4 sm:$0xff]   ;;  %v8566_v50 = vld [vmem:[#allocation10 + $0x130] ss:$8 sps:$4 sm:$0xff]   ;;  %v8571_v51 = vld [vmem:[#allocation10 + $0x144] ss:$8 sps:$4 sm:$0xff]  }
 0x166   :  { %602 = vmatprep.subr.bf16.mxu1 %v8521_v18  ;;  %854 = vmatprep.subr.bf16.mxu0 %v8562_v45  ;;  %v8569_v52 = vld [vmem:[#allocation10 + $0x140] ss:$8 sps:$4 sm:$0xff]   ;;  %v8574_v53 = vld [vmem:[#allocation10 + $0x154] ss:$8 sps:$4 sm:$0xff]   ;;  %v8572_v54 = vld [vmem:[#allocation10 + $0x150] ss:$8 sps:$4 sm:$0xff]  }
 0x167   :  { %v8577_v55 = vld [vmem:[#allocation10 + $0x164] ss:$8 sps:$4 sm:$0xff]   ;;  %v8575_v56 = vld [vmem:[#allocation10 + $0x160] ss:$8 sps:$4 sm:$0xff]   ;;  %v8580_v57 = vld [vmem:[#allocation10 + $0x174] ss:$8 sps:$4 sm:$0xff]  }
 0x168   :  { %v8578_v58 = vld [vmem:[#allocation10 + $0x170] ss:$8 sps:$4 sm:$0xff]   ;;  %v8583_v59 = vld [vmem:[#allocation10 + $0x184] ss:$8 sps:$4 sm:$0xff]   ;;  %v8581_v60 = vld [vmem:[#allocation10 + $0x180] ss:$8 sps:$4 sm:$0xff]  }
 0x169   :  { %603 = vmatpush1.bf16.msra.mxu1 %v8523_v19  ;;  %855 = vmatpush1.bf16.msra.mxu0 %v8560_v46  ;;  %v8586_v61 = vld [vmem:[#allocation10 + $0x194] ss:$8 sps:$4 sm:$0xff]   ;;  %v8584_v62 = vld [vmem:[#allocation10 + $0x190] ss:$8 sps:$4 sm:$0xff]   ;;  %v8589_v63 = vld [vmem:[#allocation10 + $0x1a4] ss:$8 sps:$4 sm:$0xff]  }
 0x16a   :  { %604 = vmatprep.subr.bf16.mxu1 %v8524_v20  ;;  %856 = vmatprep.subr.bf16.mxu0 %v8565_v47  ;;  %v8587_v1 = vld [vmem:[#allocation10 + $0x1a0] ss:$8 sps:$4 sm:$0xff]   ;;  %v8592_v2 = vld [vmem:[#allocation10 + $0x1b4] ss:$8 sps:$4 sm:$0xff]   ;;  %v8590_v3 = vld [vmem:[#allocation10 + $0x1b0] ss:$8 sps:$4 sm:$0xff]  }
 0x16b   :  { %v8595_v4 = vld [vmem:[#allocation10 + $0x1c4] ss:$8 sps:$4 sm:$0xff]   ;;  %v8593_v5 = vld [vmem:[#allocation10 + $0x1c0] ss:$8 sps:$4 sm:$0xff]   ;;  %v8598_v6 = vld [vmem:[#allocation10 + $0x1d4] ss:$8 sps:$4 sm:$0xff]  }
 0x16c   :  { %v8596_v7 = vld [vmem:[#allocation10 + $0x1d0] ss:$8 sps:$4 sm:$0xff]   ;;  %v286_v10 = vld [vmem:[#allocation8] sm:$0x3]  ;;  %v10676_v11 = vsub.s32 0, %v10673_v9  ;;  %v10679_v12 = vsub.s32 1, %v10673_v9 }
 0x16d   :  { %605 = vmatpush1.bf16.msra.mxu1 %v8526_v21  ;;  %857 = vmatpush1.bf16.msra.mxu0 %v8563_v48  ;;  %vm583_vm3 = vcmask 998400   ;;  %v8623_v41 = vld [vmem:[#allocation10 + $0x260] ss:$8 sps:$4 sm:$0xff]   ;;  %v8626_v43 = vld [vmem:[#allocation10 + $0x270] ss:$8 sps:$4 sm:$0xff]   ;;  %vm1886_vm4 = vcmask 80896  }
 0x16e   :  { %606 = vmatprep.subr.bf16.mxu1 %v8527_v22  ;;  %858 = vmatprep.subr.bf16.mxu0 %v8568_v49  ;;  %v292_v13 = vrot.slane %v286_v10, %v10676_v11  ;;  %v296_v14 = vrot.slane %v286_v10, %v10679_v12  ;;  %v8631_v44 = vld [vmem:[#allocation10 + $0x284] ss:$8 sps:$4 sm:$0xff]   ;;  %v8629_v45 = vld [vmem:[#allocation10 + $0x280] ss:$8 sps:$4 sm:$0xff]   ;;  %v8634_v46 = vld [vmem:[#allocation10 + $0x294] ss:$8 sps:$4 sm:$0xff]  }
 0x16f   :  { %v8632_v47 = vld [vmem:[#allocation10 + $0x290] ss:$8 sps:$4 sm:$0xff]   ;;  %v8637_v48 = vld [vmem:[#allocation10 + $0x2a4] ss:$8 sps:$4 sm:$0xff]   ;;  %v8635_v49 = vld [vmem:[#allocation10 + $0x2a0] ss:$8 sps:$4 sm:$0xff]  }
 0x170   :  { %v8650_v8 = vld [vmem:[#allocation10 + $0x2f4] ss:$8 sps:$4 sm:$0x1f]   ;;  %v8652_v10 = vld [vmem:[#allocation10 + $0x2f0] ss:$8 sps:$4 sm:$0x1f]  }
 0x171   :  { %607 = vmatpush1.bf16.msra.mxu1 %v8529_v23  ;;  %859 = vmatpush1.bf16.msra.mxu0 %v8566_v50  ;;  %v8601_v23 = vld [vmem:[#allocation10 + $0x1e4] ss:$8 sps:$4 sm:$0xff]   ;;  %v8640_v50 = vld [vmem:[#allocation10 + $0x2b4] ss:$8 sps:$4 sm:$0xff]   ;;  %vm2483_vm5 = vcmask 130048   ;;  %vm7566_vm6 = vcmask 424960  }
 0x172   :  { %608 = vmatprep.subr.bf16.mxu1 %v8530_v24  ;;  %860 = vmatprep.subr.bf16.mxu0 %v8571_v51  ;;  %v8599_v24 = vld [vmem:[#allocation10 + $0x1e0] ss:$8 sps:$4 sm:$0xff]   ;;  %v8638_v51 = vld [vmem:[#allocation10 + $0x2b0] ss:$8 sps:$4 sm:$0xff]  }
 0x175   :  { %609 = vmatpush1.bf16.msra.mxu1 %v8532_v25  ;;  %861 = vmatpush1.bf16.msra.mxu0 %v8569_v52  ;;  %v8602_v25 = vld [vmem:[#allocation10 + $0x1f4] ss:$8 sps:$4 sm:$0x1f]   ;;  %v8643_v52 = vld [vmem:[#allocation10 + $0x2c4] ss:$8 sps:$4 sm:$0xff]  }
 0x176   :  { %610 = vmatprep.subr.bf16.mxu1 %v8533_v26  ;;  %862 = vmatprep.subr.bf16.mxu0 %v8574_v53  ;;  %v8604_v26 = vld [vmem:[#allocation10 + $0x1f0] ss:$8 sps:$4 sm:$0x1f]   ;;  %v8641_v53 = vld [vmem:[#allocation10 + $0x2c0] ss:$8 sps:$4 sm:$0xff]  }
 0x179   :  { %611 = vmatpush1.bf16.msra.mxu1 %v8535_v27  ;;  %863 = vmatpush1.bf16.msra.mxu0 %v8572_v54  ;;  %v847_v27 = vsel %vm587_vm2, %v8604_v26, 0  ;;  %v8646_v54 = vld [vmem:[#allocation10 + $0x2d4] ss:$8 sps:$4 sm:$0xff]   ;;  %v8673_v26 = vld [vmem:[#allocation10 + $0x364] ss:$8 sps:$4 sm:$0xff]  }
 0x17a   :  { %612 = vmatprep.subr.bf16.mxu1 %v8536_v28  ;;  %864 = vmatprep.subr.bf16.mxu0 %v8577_v55  ;;  %v8605_v28 = vld [vmem:[#allocation10 + $0x200] ss:$8 sps:$4 sm:$0xff]   ;;  %v8644_v55 = vld [vmem:[#allocation10 + $0x2d0] ss:$8 sps:$4 sm:$0xff]  }
 0x17d   :  { %613 = vmatpush1.bf16.msra.mxu1 %v8538_v29  ;;  %865 = vmatpush1.bf16.msra.mxu0 %v8575_v56  ;;  %v8607_v29 = vld [vmem:[#allocation10 + $0x204] ss:$8 sps:$4 sm:$0xff]   ;;  %v411_v56 = vld [vmem:[#allocation11] sm:$0x3] }
 0x17e   :  { %614 = vmatprep.subr.bf16.mxu1 %v8539_v30  ;;  %866 = vmatprep.subr.bf16.mxu0 %v8580_v57  ;;  %v8610_v30 = vld [vmem:[#allocation10 + $0x214] ss:$8 sps:$4 sm:$0xff]   ;;  %v418_v57 = vrot.slane %v411_v56, %v10676_v11 }
 0x181   :  { %615 = vmatpush1.bf16.msra.mxu1 %v8541_v31  ;;  %867 = vmatpush1.bf16.msra.mxu0 %v8578_v58  ;;  %v8608_v31 = vld [vmem:[#allocation10 + $0x210] ss:$8 sps:$4 sm:$0xff]   ;;  %v422_v58 = vrot.slane %v411_v56, %v10679_v12  ;;  %v8695_v56 = vld [vmem:[#allocation10 + $0x3e0] ss:$8 sps:$4 sm:$0xff]  }
 0x182   :  { %616 = vmatprep.subr.bf16.mxu1 %v8542_v32  ;;  %868 = vmatprep.subr.bf16.mxu0 %v8583_v59  ;;  %v8613_v32 = vld [vmem:[#allocation10 + $0x224] ss:$8 sps:$4 sm:$0xff]  }
 0x185   :  { %617 = vmatpush1.bf16.msra.mxu1 %v8544_v33  ;;  %869 = vmatpush1.bf16.msra.mxu0 %v8581_v60  ;;  %v8611_v33 = vld [vmem:[#allocation10 + $0x220] ss:$8 sps:$4 sm:$0xff]  }
 0x186   :  { %618 = vmatprep.subr.bf16.mxu1 %v8545_v34  ;;  %870 = vmatprep.subr.bf16.mxu0 %v8586_v61  ;;  %v8616_v34 = vld [vmem:[#allocation10 + $0x234] ss:$8 sps:$4 sm:$0xff]  }
 0x189   :  { %619 = vmatpush1.bf16.msra.mxu1 %v8547_v35  ;;  %871 = vmatpush1.bf16.msra.mxu0 %v8584_v62  ;;  %v8614_v35 = vld [vmem:[#allocation10 + $0x230] ss:$8 sps:$4 sm:$0xff]  }
 0x18a   :  { %620 = vmatprep.subr.bf16.mxu1 %v8548_v36  ;;  %872 = vmatprep.subr.bf16.mxu0 %v8589_v63  ;;  %v8619_v36 = vld [vmem:[#allocation10 + $0x244] ss:$8 sps:$4 sm:$0xff]  }
 0x18d   :  { %621 = vmatpush1.bf16.msra.mxu1 %v8550_v37  ;;  %873 = vmatpush1.bf16.msra.mxu0 %v8587_v1  ;;  %v8617_v37 = vld [vmem:[#allocation10 + $0x240] ss:$8 sps:$4 sm:$0xff]  }
 0x18e   :  { %622 = vmatprep.subr.bf16.mxu1 %v8551_v38  ;;  %874 = vmatprep.subr.bf16.mxu0 %v8592_v2  ;;  %v8622_v38 = vld [vmem:[#allocation10 + $0x254] ss:$8 sps:$4 sm:$0xff]  }
 0x191   :  { %623 = vmatpush1.bf16.msra.mxu1 %v8553_v39  ;;  %875 = vmatpush1.bf16.msra.mxu0 %v8590_v3  ;;  %v8620_v39 = vld [vmem:[#allocation10 + $0x250] ss:$8 sps:$4 sm:$0xff]  }
 0x192   :  { %7670 = vmatprep.subr.msk.bf16.mxu1 %vm587_vm2, %v8554_v40  ;;  %876 = vmatprep.subr.bf16.mxu0 %v8595_v4  ;;  %v8625_v40 = vld [vmem:[#allocation10 + $0x264] ss:$8 sps:$4 sm:$0xff]  }
 0x195   :  { %625 = vmatpush1.bf16.msra.mxu1 %v589_v42  ;;  %877 = vmatpush1.bf16.msra.mxu0 %v8593_v5  ;;  %v8628_v42 = vld [vmem:[#allocation10 + $0x274] ss:$8 sps:$4 sm:$0xff]  }
 0x196   :  { %878 = vmatprep.subr.bf16.mxu0 %v8598_v6  ;;  %1110 = vmatprep.subr.bf16.mxu1 %v8607_v29  ;;  %v8649_v6 = vld [vmem:[#allocation10 + $0x2e4] ss:$8 sps:$4 sm:$0xff]   ;;  %v8674_v29 = vld [vmem:[#allocation10 + $0x370] ss:$8 sps:$4 sm:$0xff]  }
 0x199   :  { %879 = vmatpush1.bf16.msra.mxu0 %v8596_v7  ;;  %v8647_v7 = vld [vmem:[#allocation10 + $0x2e0] ss:$8 sps:$4 sm:$0xff]  }
 0x19a   :  { %880 = vmatprep.subr.bf16.mxu0 %v8601_v23  ;;  %v8665_v23 = vld [vmem:[#allocation10 + $0x340] ss:$8 sps:$4 sm:$0xff]  }
 0x19d   :  { %881 = vmatpush1.bf16.msra.mxu0 %v8599_v24  ;;  %v8670_v24 = vld [vmem:[#allocation10 + $0x354] ss:$8 sps:$4 sm:$0xff]  }
 0x19e   :  { %7704 = vmatprep.subr.msk.bf16.mxu0 %vm587_vm2, %v8602_v25  ;;  %v8668_v25 = vld [vmem:[#allocation10 + $0x350] ss:$8 sps:$4 sm:$0xff]  }
 0x1a1   :  { %883 = vmatpush1.bf16.msra.mxu0 %v847_v27  ;;  %v8671_v27 = vld [vmem:[#allocation10 + $0x360] ss:$8 sps:$4 sm:$0xff]  }
 0x234   :  { %v372_v15 = vpop.f32.mrb[0].mxu0 }
 0x235   :  { %v373_v16 = vadd.f32 %v372_v15, %v292_v13  ;;  %v374_v17 = vpop.f32.mrb[1].mxu0  ;;  %v1105_v13 = vsel %vm587_vm2, %v8652_v10, 0  ;;  %v8655_v15 = vld [vmem:[#allocation10 + $0x304] ss:$8 sps:$4 sm:$0xff]  }
 0x236   :  { %v375_v18 = vadd.f32 %v374_v17, %v296_v14  ;;  %v376_v19 = vpop.f32.mrb[2].mxu0  ;;  %v8653_v14 = vld [vmem:[#allocation10 + $0x300] ss:$8 sps:$4 sm:$0xff]   ;;  %1368 = vmatprep.subr.bf16.mxu0 %v8655_v15  ;;  %v8656_v17 = vld [vmem:[#allocation10 + $0x310] ss:$8 sps:$4 sm:$0xff]  }
 0x237   :  { %v377_v20 = vpop.f32.mrb[3].mxu0  ;;  %v412_v22 = vpack.c.bf16 %v373_v16, %v373_v16  ;;  %v8658_v16 = vld [vmem:[#allocation10 + $0x314] ss:$8 sps:$4 sm:$0xff]   ;;  %v8659_v19 = vld [vmem:[#allocation10 + $0x320] ss:$8 sps:$4 sm:$0xff]  }
 0x238   :  { %v413_v21 = vpack.c.bf16 %v375_v18, %v375_v18  ;;  %v8661_v18 = vld [vmem:[#allocation10 + $0x324] ss:$8 sps:$4 sm:$0xff]   ;;  %v8664_v20 = vld [vmem:[#allocation10 + $0x334] ss:$8 sps:$4 sm:$0xff]   ;;  %v8722_v15 = vld [vmem:[#allocation10 + $0x470] ss:$8 sps:$4 sm:$0xff]  }
 0x239   :  { %v8721_v10 = vld [vmem:[#allocation10 + $0x464] ss:$8 sps:$4 sm:$0xff]  }
 0x23a   :  { %7671 = vmatprep.mubr.msk.bf16.mxu1 %vm583_vm3, %v413_v21  ;;  %v8662_v21 = vld [vmem:[#allocation10 + $0x330] ss:$8 sps:$4 sm:$0xff]  }
 0x23b   :  { %627 = vmatmul.mubr.bf16.vlgmr.msra.gmra.mrb[0].mxu1 %v412_v22  ;;  %v8667_v22 = vld [vmem:[#allocation10 + $0x344] ss:$8 sps:$4 sm:$0xff]  }
 0x23c   :  { %1111 = vmatpush1.bf16.msra.mxu1 %v8605_v28  ;;  %v8676_v28 = vld [vmem:[#allocation10 + $0x374] ss:$8 sps:$4 sm:$0xff]  }
 0x23d   :  { %1112 = vmatprep.subr.bf16.mxu1 %v8610_v30  ;;  %v8679_v30 = vld [vmem:[#allocation10 + $0x384] ss:$8 sps:$4 sm:$0xff]  }
 0x240   :  { %1113 = vmatpush1.bf16.msra.mxu1 %v8608_v31  ;;  %v8677_v31 = vld [vmem:[#allocation10 + $0x380] ss:$8 sps:$4 sm:$0xff]  }
 0x241   :  { %1114 = vmatprep.subr.bf16.mxu1 %v8613_v32  ;;  %v8682_v32 = vld [vmem:[#allocation10 + $0x394] ss:$8 sps:$4 sm:$0xff]  }
 0x244   :  { %1115 = vmatpush1.bf16.msra.mxu1 %v8611_v33  ;;  %v8680_v33 = vld [vmem:[#allocation10 + $0x390] ss:$8 sps:$4 sm:$0xff]  }
 0x245   :  { %1116 = vmatprep.subr.bf16.mxu1 %v8616_v34  ;;  %v8685_v34 = vld [vmem:[#allocation10 + $0x3a4] ss:$8 sps:$4 sm:$0xff]  }
 0x248   :  { %1117 = vmatpush1.bf16.msra.mxu1 %v8614_v35  ;;  %v8683_v35 = vld [vmem:[#allocation10 + $0x3a0] ss:$8 sps:$4 sm:$0xff]  }
 0x249   :  { %1118 = vmatprep.subr.bf16.mxu1 %v8619_v36  ;;  %v8688_v36 = vld [vmem:[#allocation10 + $0x3b4] ss:$8 sps:$4 sm:$0xff]  }
 0x24c   :  { %1119 = vmatpush1.bf16.msra.mxu1 %v8617_v37  ;;  %v8686_v37 = vld [vmem:[#allocation10 + $0x3b0] ss:$8 sps:$4 sm:$0xff]  }
 0x24d   :  { %1120 = vmatprep.subr.bf16.mxu1 %v8622_v38  ;;  %v8691_v38 = vld [vmem:[#allocation10 + $0x3c4] ss:$8 sps:$4 sm:$0xff]  }
 0x250   :  { %1121 = vmatpush1.bf16.msra.mxu1 %v8620_v39  ;;  %v8689_v39 = vld [vmem:[#allocation10 + $0x3c0] ss:$8 sps:$4 sm:$0xff]  }
 0x251   :  { %1122 = vmatprep.subr.bf16.mxu1 %v8625_v40  ;;  %v8694_v40 = vld [vmem:[#allocation10 + $0x3d4] ss:$8 sps:$4 sm:$0xff]  }
 0x254   :  { %1123 = vmatpush1.bf16.msra.mxu1 %v8623_v41  ;;  %v8692_v41 = vld [vmem:[#allocation10 + $0x3d0] ss:$8 sps:$4 sm:$0xff]  }
 0x255   :  { %1124 = vmatprep.subr.bf16.mxu1 %v8628_v42  ;;  %v671_v42 = vld [vmem:[#allocation11 + $0x2] sm:$0x3] }
 0x258   :  { %1125 = vmatpush1.bf16.msra.mxu1 %v8626_v43  ;;  %v678_v43 = vrot.slane %v671_v42, %v10676_v11 }
 0x259   :  { %1126 = vmatprep.subr.bf16.mxu1 %v8631_v44  ;;  %v682_v44 = vrot.slane %v671_v42, %v10679_v12  ;;  %v8743_v42 = vld [vmem:[#allocation10 + $0x4e0] ss:$8 sps:$4 sm:$0xff]  }
 0x25c   :  { %1127 = vmatpush1.bf16.msra.mxu1 %v8629_v45 }
 0x25d   :  { %1128 = vmatprep.subr.bf16.mxu1 %v8634_v46 }
 0x260   :  { %1129 = vmatpush1.bf16.msra.mxu1 %v8632_v47 }
 0x261   :  { %1130 = vmatprep.subr.bf16.mxu1 %v8637_v48 }
 0x264   :  { %1131 = vmatpush1.bf16.msra.mxu1 %v8635_v49 }
 0x265   :  { %1132 = vmatprep.subr.bf16.mxu1 %v8640_v50 }
 0x268   :  { %1133 = vmatpush1.bf16.msra.mxu1 %v8638_v51 }
 0x269   :  { %1134 = vmatprep.subr.bf16.mxu1 %v8643_v52 }
 0x26c   :  { %1135 = vmatpush1.bf16.msra.mxu1 %v8641_v53 }
 0x26d   :  { %1136 = vmatprep.subr.bf16.mxu1 %v8646_v54 }
 0x270   :  { %1137 = vmatpush1.bf16.msra.mxu1 %v8644_v55  ;;  %v8697_v55 = vld [vmem:[#allocation10 + $0x3e4] ss:$8 sps:$4 sm:$0xff]  }
 0x271   :  { %1138 = vmatprep.subr.bf16.mxu1 %v8649_v6  ;;  %v8713_v6 = vld [vmem:[#allocation10 + $0x440] ss:$8 sps:$4 sm:$0xff]  }
 0x274   :  { %1139 = vmatpush1.bf16.msra.mxu1 %v8647_v7  ;;  %v8718_v7 = vld [vmem:[#allocation10 + $0x454] ss:$8 sps:$4 sm:$0xff]  }
 0x275   :  { %7738 = vmatprep.subr.msk.bf16.mxu1 %vm587_vm2, %v8650_v8  ;;  %v8716_v8 = vld [vmem:[#allocation10 + $0x450] ss:$8 sps:$4 sm:$0xff]  }
 0x278   :  { %1141 = vmatpush1.bf16.msra.mxu1 %v1105_v13  ;;  %v8719_v13 = vld [vmem:[#allocation10 + $0x460] ss:$8 sps:$4 sm:$0xff]  }
 0x30e   :  { %v628_v59 = vpop.f32.mrb[0].mxu1 }
 0x30f   :  { %v629_v60 = vadd.f32 %v628_v59, %v418_v57  ;;  %v630_v61 = vpop.f32.mrb[1].mxu1  ;;  %v8698_v57 = vld [vmem:[#allocation10 + $0x3f4] ss:$8 sps:$4 sm:$0x1f]  }
 0x310   :  { %v631_v62 = vadd.f32 %v630_v61, %v422_v58  ;;  %v632_v63 = vpop.f32.mrb[2].mxu1  ;;  %v8700_v58 = vld [vmem:[#allocation10 + $0x3f0] ss:$8 sps:$4 sm:$0x1f]   ;;  %v8703_v61 = vld [vmem:[#allocation10 + $0x404] ss:$8 sps:$4 sm:$0xff]  }
 0x311   :  { %v635_v1 = vmax.f32 %v629_v60, 0.0  ;;  %v633_v2 = vpop.f32.mrb[3].mxu1  ;;  %v1363_v59 = vsel %vm587_vm2, %v8700_v58, 0  ;;  %v8701_v60 = vld [vmem:[#allocation10 + $0x400] ss:$8 sps:$4 sm:$0xff]   ;;  %1626 = vmatprep.subr.bf16.mxu1 %v8703_v61 }
 0x312   :  { %v636_v3 = vmax.f32 %v631_v62, 0.0  ;;  %v8706_v62 = vld [vmem:[#allocation10 + $0x414] ss:$8 sps:$4 sm:$0xff]   ;;  %v8704_v63 = vld [vmem:[#allocation10 + $0x410] ss:$8 sps:$4 sm:$0xff]  }
 0x313   :  { %v672_v5 = vpack.c.bf16 %v635_v1, %v635_v1  ;;  %v8709_v1 = vld [vmem:[#allocation10 + $0x424] ss:$8 sps:$4 sm:$0xff]   ;;  %v8707_v2 = vld [vmem:[#allocation10 + $0x420] ss:$8 sps:$4 sm:$0xff]  }
 0x314   :  { %v673_v4 = vpack.c.bf16 %v636_v3, %v636_v3  ;;  %v8712_v3 = vld [vmem:[#allocation10 + $0x434] ss:$8 sps:$4 sm:$0xff]   ;;  %v1187_v58 = vld [vmem:[#allocation11 + $0x6] sm:$0x3] }
 0x316   :  { %7705 = vmatprep.mubr.msk.bf16.mxu0 %vm583_vm3, %v673_v4  ;;  %v8710_v4 = vld [vmem:[#allocation10 + $0x430] ss:$8 sps:$4 sm:$0xff]  }
 0x317   :  { %885 = vmatmul.mubr.bf16.vlgmr.msra.gmra.mrb[4].mxu0 %v672_v5  ;;  %v8715_v5 = vld [vmem:[#allocation10 + $0x444] ss:$8 sps:$4 sm:$0xff]  }
 0x318   :  { %1369 = vmatpush1.bf16.msra.mxu0 %v8653_v14  ;;  %v8724_v14 = vld [vmem:[#allocation10 + $0x474] ss:$8 sps:$4 sm:$0xff]  }
 0x319   :  { %1370 = vmatprep.subr.bf16.mxu0 %v8658_v16  ;;  %v8727_v16 = vld [vmem:[#allocation10 + $0x484] ss:$8 sps:$4 sm:$0xff]  }
 0x31c   :  { %1371 = vmatpush1.bf16.msra.mxu0 %v8656_v17  ;;  %v8725_v17 = vld [vmem:[#allocation10 + $0x480] ss:$8 sps:$4 sm:$0xff]  }
 0x31d   :  { %1372 = vmatprep.subr.bf16.mxu0 %v8661_v18  ;;  %v8730_v18 = vld [vmem:[#allocation10 + $0x494] ss:$8 sps:$4 sm:$0xff]  }
 0x320   :  { %1373 = vmatpush1.bf16.msra.mxu0 %v8659_v19  ;;  %v8728_v19 = vld [vmem:[#allocation10 + $0x490] ss:$8 sps:$4 sm:$0xff]  }
 0x321   :  { %1374 = vmatprep.subr.bf16.mxu0 %v8664_v20  ;;  %v8733_v20 = vld [vmem:[#allocation10 + $0x4a4] ss:$8 sps:$4 sm:$0xff]  }
 0x324   :  { %1375 = vmatpush1.bf16.msra.mxu0 %v8662_v21  ;;  %v8731_v21 = vld [vmem:[#allocation10 + $0x4a0] ss:$8 sps:$4 sm:$0xff]  }
 0x325   :  { %1376 = vmatprep.subr.bf16.mxu0 %v8667_v22  ;;  %v8736_v22 = vld [vmem:[#allocation10 + $0x4b4] ss:$8 sps:$4 sm:$0xff]  }
 0x328   :  { %1377 = vmatpush1.bf16.msra.mxu0 %v8665_v23  ;;  %v8734_v23 = vld [vmem:[#allocation10 + $0x4b0] ss:$8 sps:$4 sm:$0xff]  }
 0x329   :  { %1378 = vmatprep.subr.bf16.mxu0 %v8670_v24  ;;  %v8739_v24 = vld [vmem:[#allocation10 + $0x4c4] ss:$8 sps:$4 sm:$0xff]  }
 0x32c   :  { %1379 = vmatpush1.bf16.msra.mxu0 %v8668_v25  ;;  %v8737_v25 = vld [vmem:[#allocation10 + $0x4c0] ss:$8 sps:$4 sm:$0xff]  }
 0x32d   :  { %1380 = vmatprep.subr.bf16.mxu0 %v8673_v26  ;;  %v8742_v26 = vld [vmem:[#allocation10 + $0x4d4] ss:$8 sps:$4 sm:$0xff]  }
 0x330   :  { %1381 = vmatpush1.bf16.msra.mxu0 %v8671_v27  ;;  %v8740_v27 = vld [vmem:[#allocation10 + $0x4d0] ss:$8 sps:$4 sm:$0xff]  }
 0x331   :  { %1382 = vmatprep.subr.bf16.mxu0 %v8676_v28  ;;  %v929_v28 = vld [vmem:[#allocation11 + $0x4] sm:$0x3] }
 0x334   :  { %1383 = vmatpush1.bf16.msra.mxu0 %v8674_v29  ;;  %v936_v29 = vrot.slane %v929_v28, %v10676_v11 }
 0x335   :  { %1384 = vmatprep.subr.bf16.mxu0 %v8679_v30  ;;  %v940_v30 = vrot.slane %v929_v28, %v10679_v12 }
 0x338   :  { %1385 = vmatpush1.bf16.msra.mxu0 %v8677_v31 }
 0x339   :  { %1386 = vmatprep.subr.bf16.mxu0 %v8682_v32 }
 0x33c   :  { %1387 = vmatpush1.bf16.msra.mxu0 %v8680_v33 }
 0x33d   :  { %1388 = vmatprep.subr.bf16.mxu0 %v8685_v34 }
 0x340   :  { %1389 = vmatpush1.bf16.msra.mxu0 %v8683_v35 }
 0x341   :  { %1390 = vmatprep.subr.bf16.mxu0 %v8688_v36 }
 0x344   :  { %1391 = vmatpush1.bf16.msra.mxu0 %v8686_v37 }
 0x345   :  { %1392 = vmatprep.subr.bf16.mxu0 %v8691_v38 }
 0x348   :  { %1393 = vmatpush1.bf16.msra.mxu0 %v8689_v39 }
 0x349   :  { %1394 = vmatprep.subr.bf16.mxu0 %v8694_v40 }
 0x34c   :  { %1395 = vmatpush1.bf16.msra.mxu0 %v8692_v41  ;;  %v8745_v41 = vld [vmem:[#allocation10 + $0x4e4] ss:$8 sps:$4 sm:$0xff]  }
 0x34d   :  { %1396 = vmatprep.subr.bf16.mxu0 %v8697_v55  ;;  %v8758_v55 = vld [vmem:[%s12733_s6 + $0x20] sm:$0xff]  }
 0x350   :  { %1397 = vmatpush1.bf16.msra.mxu0 %v8695_v56  ;;  %v8759_v56 = vld [vmem:[%s12733_s6 + $0x68] sm:$0xff]  }
 0x351   :  { %7772 = vmatprep.subr.msk.bf16.mxu0 %vm587_vm2, %v8698_v57  ;;  %v8760_v57 = vld [vmem:[%s12733_s6 + $0x28] sm:$0xff]  }
 0x354   :  { %1399 = vmatpush1.bf16.msra.mxu0 %v1363_v59  ;;  %v1194_v59 = vrot.slane %v1187_v58, %v10676_v11 }
 0x3ea   :  { %v886_v45 = vpop.f32.mrb[4].mxu0 }
 0x3eb   :  { %v887_v46 = vadd.f32 %v886_v45, %v678_v43  ;;  %v888_v47 = vpop.f32.mrb[5].mxu0  ;;  %v8746_v43 = vld [vmem:[#allocation10 + $0x4f4] ss:$8 sps:$4 sm:$0x1f]  }
 0x3ec   :  { %v889_v48 = vadd.f32 %v888_v47, %v682_v44  ;;  %v890_v49 = vpop.f32.mrb[6].mxu0  ;;  %v8748_v44 = vld [vmem:[#allocation10 + $0x4f0] ss:$8 sps:$4 sm:$0x1f]   ;;  %v8750_v47 = vld [vmem:[%s12733_s6] sm:$0xff]  }
 0x3ed   :  { %v893_v50 = vmax.f32 %v887_v46, 0.0  ;;  %v891_v51 = vpop.f32.mrb[7].mxu0  ;;  %v1621_v45 = vsel %vm587_vm2, %v8748_v44, 0  ;;  %v8749_v46 = vld [vmem:[%s12733_s6 + $0x40] sm:$0xff]   ;;  %v8752_v49 = vld [vmem:[%s12733_s6 + $0x8] sm:$0xff]  }
 0x3ee   :  { %v894_v52 = vmax.f32 %v889_v48, 0.0  ;;  %v8751_v48 = vld [vmem:[%s12733_s6 + $0x48] sm:$0xff]   ;;  %8362 = vmatprep.subr.bf16.mxu0 %v8749_v46  ;;  %v8754_v51 = vld [vmem:[%s12733_s6 + $0x10] sm:$0xff]  }
 0x3ef   :  { %v930_v54 = vpack.c.bf16 %v893_v50, %v893_v50  ;;  %v8753_v50 = vld [vmem:[%s12733_s6 + $0x50] sm:$0xff]  }
 0x3f0   :  { %v931_v53 = vpack.c.bf16 %v894_v52, %v894_v52  ;;  %v8755_v52 = vld [vmem:[%s12733_s6 + $0x58] sm:$0xff]  }
 0x3f1   :  { %v8773_v46 = vld [vmem:[#allocation16 + $0x8] ss:$16 sps:$4 sm:$0x1f]  }
 0x3f2   :  { %7739 = vmatprep.mubr.msk.bf16.mxu1 %vm583_vm3, %v931_v53  ;;  %v8756_v53 = vld [vmem:[%s12733_s6 + $0x18] sm:$0xff]  }
 0x3f3   :  { %1143 = vmatmul.mubr.bf16.vlgmr.msra.gmra.mrb[4].mxu1 %v930_v54  ;;  %v8757_v54 = vld [vmem:[%s12733_s6 + $0x60] sm:$0xff]  }
 0x3f4   :  { %1627 = vmatpush1.bf16.msra.mxu1 %v8701_v60  ;;  %v1198_v60 = vrot.slane %v1187_v58, %v10679_v12  ;;  %v8791_v58 = vld [vmem:[#allocation19 + $0x4] ss:$8 sps:$4 sm:$0xff]  }
 0x3f5   :  { %1628 = vmatprep.subr.bf16.mxu1 %v8706_v62 }
 0x3f8   :  { %1629 = vmatpush1.bf16.msra.mxu1 %v8704_v63 }
 0x3f9   :  { %1630 = vmatprep.subr.bf16.mxu1 %v8709_v1 }
 0x3fc   :  { %1631 = vmatpush1.bf16.msra.mxu1 %v8707_v2 }
 0x3fd   :  { %1632 = vmatprep.subr.bf16.mxu1 %v8712_v3 }
 0x400   :  { %1633 = vmatpush1.bf16.msra.mxu1 %v8710_v4 }
 0x401   :  { %1634 = vmatprep.subr.bf16.mxu1 %v8715_v5 }
 0x404   :  { %1635 = vmatpush1.bf16.msra.mxu1 %v8713_v6 }
 0x405   :  { %1636 = vmatprep.subr.bf16.mxu1 %v8718_v7 }
 0x408   :  { %1637 = vmatpush1.bf16.msra.mxu1 %v8716_v8  ;;  %v8761_v8 = vld [vmem:[%s12733_s6 + $0x70] sm:$0xff]  }
 0x409   :  { %1638 = vmatprep.subr.bf16.mxu1 %v8721_v10  ;;  %v8762_v10 = vld [vmem:[%s12733_s6 + $0x30] sm:$0xff]  }
 0x40c   :  { %1639 = vmatpush1.bf16.msra.mxu1 %v8719_v13  ;;  %v8763_v13 = vld [vmem:[%s12733_s6 + $0x78] sm:$0x1f]  }
 0x40d   :  { %1640 = vmatprep.subr.bf16.mxu1 %v8724_v14  ;;  %v8764_v14 = vld [vmem:[%s12733_s6 + $0x38] sm:$0xff]  }
 0x410   :  { %1641 = vmatpush1.bf16.msra.mxu1 %v8722_v15  ;;  %v8765_v15 = vld [vmem:[#allocation16 + $0x4] ss:$16 sps:$4 sm:$0x1f]  }
 0x411   :  { %1642 = vmatprep.subr.bf16.mxu1 %v8727_v16  ;;  %v1445_v16 = vld [vmem:[#allocation11 + $0x8] sm:$0x3] }
 0x414   :  { %1643 = vmatpush1.bf16.msra.mxu1 %v8725_v17  ;;  %v1452_v17 = vrot.slane %v1445_v16, %v10676_v11 }
 0x415   :  { %1644 = vmatprep.subr.bf16.mxu1 %v8730_v18  ;;  %v1456_v18 = vrot.slane %v1445_v16, %v10679_v12  ;;  %v8818_v16 = vld [vmem:[#allocation19 + $0x94] ss:$8 sps:$4 sm:$0xff]  }
 0x418   :  { %1645 = vmatpush1.bf16.msra.mxu1 %v8728_v19 }
 0x419   :  { %1646 = vmatprep.subr.bf16.mxu1 %v8733_v20 }
 0x41c   :  { %1647 = vmatpush1.bf16.msra.mxu1 %v8731_v21 }
 0x41d   :  { %1648 = vmatprep.subr.bf16.mxu1 %v8736_v22 }
 0x420   :  { %1649 = vmatpush1.bf16.msra.mxu1 %v8734_v23 }
 0x421   :  { %1650 = vmatprep.subr.bf16.mxu1 %v8739_v24 }
 0x424   :  { %1651 = vmatpush1.bf16.msra.mxu1 %v8737_v25 }
 0x425   :  { %1652 = vmatprep.subr.bf16.mxu1 %v8742_v26 }
 0x428   :  { %1653 = vmatpush1.bf16.msra.mxu1 %v8740_v27 }
 0x429   :  { %1654 = vmatprep.subr.bf16.mxu1 %v8745_v41 }
 0x42c   :  { %1655 = vmatpush1.bf16.msra.mxu1 %v8743_v42  ;;  %v7808_v42 = vld [vmem:[#allocation13] ss:$0 sm:$0xff] }
 0x42d   :  { %7806 = vmatprep.subr.msk.bf16.mxu1 %vm587_vm2, %v8746_v43 }
 0x430   :  { %1657 = vmatpush1.bf16.msra.mxu1 %v1621_v45 }
 0x4c6   :  { %v1144_v31 = vpop.f32.mrb[4].mxu1 }
 0x4c7   :  { %v1145_v32 = vadd.f32 %v1144_v31, %v936_v29  ;;  %v1146_v33 = vpop.f32.mrb[5].mxu1  ;;  %v8767_v29 = vld [vmem:[#allocation16] ss:$16 sps:$4 sm:$0x1f]   ;;  %v8770_v31 = vld [vmem:[#allocation14 + $0xc] ss:$16 sps:$4 sm:$0xff]  }
 0x4c8   :  { %v1147_v34 = vadd.f32 %v1146_v33, %v940_v30  ;;  %v1148_v35 = vpop.f32.mrb[6].mxu1  ;;  %v1891_v30 = vsel %vm587_vm2, %v8767_v29, 0  ;;  %2096 = vmatprep.subr.bf16.mxu1 %v8770_v31  ;;  %v8771_v33 = vld [vmem:[#allocation16 + $0xc] ss:$16 sps:$4 sm:$0x1f]  }
 0x4c9   :  { %v1151_v36 = vmax.f32 %v1145_v32, 0.0  ;;  %v1149_v37 = vpop.f32.mrb[7].mxu1  ;;  %v8768_v32 = vld [vmem:[#allocation14 + $0x8] ss:$16 sps:$4 sm:$0xff]   ;;  %v8831_v31 = vld [vmem:[#allocation19 + $0xe0] ss:$8 sps:$4 sm:$0xff]  }
 0x4ca   :  { %v1152_v38 = vmax.f32 %v1147_v34, 0.0  ;;  %v8776_v34 = vld [vmem:[#allocation14 + $0x2c] ss:$16 sps:$4 sm:$0xff]   ;;  %v8774_v35 = vld [vmem:[#allocation14 + $0x28] ss:$16 sps:$4 sm:$0xff]  }
 0x4cb   :  { %v1188_v40 = vpack.c.bf16 %v1151_v36, %v1151_v36  ;;  %v8777_v36 = vld [vmem:[#allocation14 + $0x4c] ss:$16 sps:$4 sm:$0x7f]   ;;  %v8779_v37 = vld [vmem:[#allocation14 + $0x48] ss:$16 sps:$4 sm:$0x7f]  }
 0x4cc   :  { %v1189_v39 = vpack.c.bf16 %v1152_v38, %v1152_v38  ;;  %v2050_v38 = vsel %vm331_vm0, %v8779_v37, 0  ;;  %v8830_v29 = vld [vmem:[#allocation19 + $0xd4] ss:$8 sps:$4 sm:$0xff]   ;;  %v8869_v37 = vld [vmem:[#allocation22 + $0x14] ss:$8 sps:$4 sm:$0xff]  }
 0x4ce   :  { %7773 = vmatprep.mubr.msk.bf16.mxu0 %vm583_vm3, %v1189_v39  ;;  %v1851_v39 = vld [vmem:[#allocation5] sm:$0xff] }
 0x4cf   :  { %1401 = vmatmul.mubr.bf16.vlgmr.msra.gmra.mrb[8].mxu0 %v1188_v40  ;;  %v1852_v40 = vpack.c.bf16 %v1851_v39, %v1851_v39  ;;  %v8872_v39 = vld [vmem:[#allocation22 + $0x24] ss:$8 sps:$4 sm:$0xff]  }
 0x4d0   :  { %8363 = vmatpush3.bf16.msra.mxu0 %v8750_v47 }
 0x4d1   :  { %8364 = vmatprep.subr.bf16.mxu0 %v8751_v48 }
 0x4d4   :  { %8365 = vmatpush3.bf16.msra.mxu0 %v8752_v49 }
 0x4d5   :  { %8366 = vmatprep.subr.bf16.mxu0 %v8753_v50  ;;  %v1897_v50 = vsel %vm587_vm2, %v8773_v46, 0  ;;  %v8879_v46 = vld [vmem:[#allocation22 + $0x50] ss:$8 sps:$4 sm:$0xff]  }
 0x4d8   :  { %8367 = vmatpush3.bf16.msra.mxu0 %v8754_v51  ;;  %v8782_v51 = vld [vmem:[#allocation14 + $0x4] ss:$16 sps:$4 sm:$0xff]  }
 0x4d9   :  { %8368 = vmatprep.subr.bf16.mxu0 %v8755_v52  ;;  %v8780_v52 = vld [vmem:[#allocation14] ss:$16 sps:$4 sm:$0xff]  }
 0x4dc   :  { %8369 = vmatpush3.bf16.msra.mxu0 %v8756_v53  ;;  %v8785_v53 = vld [vmem:[#allocation14 + $0x24] ss:$16 sps:$4 sm:$0xff]  }
 0x4dd   :  { %8370 = vmatprep.subr.bf16.mxu0 %v8757_v54  ;;  %v8783_v54 = vld [vmem:[#allocation14 + $0x20] ss:$16 sps:$4 sm:$0xff]  }
 0x4e0   :  { %8371 = vmatpush3.bf16.msra.mxu0 %v8758_v55  ;;  %v8786_v55 = vld [vmem:[#allocation14 + $0x44] ss:$16 sps:$4 sm:$0x7f]  }
 0x4e1   :  { %8372 = vmatprep.subr.bf16.mxu0 %v8759_v56  ;;  %v8788_v56 = vld [vmem:[#allocation14 + $0x40] ss:$16 sps:$4 sm:$0x7f]  }
 0x4e4   :  { %8373 = vmatpush3.bf16.msra.mxu0 %v8760_v57  ;;  %v2044_v57 = vsel %vm331_vm0, %v8788_v56, 0  ;;  %v8894_v56 = vld [vmem:[#allocation22 + $0xa0] ss:$8 sps:$4 sm:$0xff]  }
 0x4e5   :  { %8374 = vmatprep.subr.bf16.mxu0 %v8761_v8  ;;  %v8807_v8 = vld [vmem:[#allocation19 + $0x60] ss:$8 sps:$4 sm:$0xff]  }
 0x4e8   :  { %8375 = vmatpush3.bf16.msra.mxu0 %v8762_v10  ;;  %v8812_v10 = vld [vmem:[#allocation19 + $0x74] ss:$8 sps:$4 sm:$0xff]  }
 0x4e9   :  { %8412 = vmatprep.subr.msk.bf16.mxu0 %vm587_vm2, %v8763_v13  ;;  %v8810_v13 = vld [vmem:[#allocation19 + $0x70] ss:$8 sps:$4 sm:$0xff]  }
 0x4ec   :  { %8377 = vmatpush3.bf16.msra.mxu0 %v8764_v14  ;;  %v8815_v14 = vld [vmem:[#allocation19 + $0x84] ss:$8 sps:$4 sm:$0xff]  }
 0x4ed   :  { %7830 = vmatprep.subr.msk.bf16.mxu0 %vm587_vm2, %v8765_v15  ;;  %v8813_v15 = vld [vmem:[#allocation19 + $0x80] ss:$8 sps:$4 sm:$0xff]  }
 0x5a2   :  { %v1402_v61 = vpop.f32.mrb[8].mxu0 }
 0x5a3   :  { %v1403_v62 = vadd.f32 %v1402_v61, %v1194_v59  ;;  %v1404_v63 = vpop.f32.mrb[9].mxu0  ;;  %v8789_v59 = vld [vmem:[#allocation19] ss:$8 sps:$4 sm:$0xff]   ;;  %v8792_v61 = vld [vmem:[#allocation19 + $0x10] ss:$8 sps:$4 sm:$0xff]  }
 0x5a4   :  { %v1405_v1 = vadd.f32 %v1404_v63, %v1198_v60  ;;  %v1406_v2 = vpop.f32.mrb[10].mxu0  ;;  %v8794_v60 = vld [vmem:[#allocation19 + $0x14] ss:$8 sps:$4 sm:$0xff]   ;;  %v8795_v63 = vld [vmem:[#allocation19 + $0x20] ss:$8 sps:$4 sm:$0xff]  }
 0x5a5   :  { %v1409_v3 = vmax.f32 %v1403_v62, 0.0  ;;  %v1407_v4 = vpop.f32.mrb[11].mxu0  ;;  %v8797_v62 = vld [vmem:[#allocation19 + $0x24] ss:$8 sps:$4 sm:$0xff]   ;;  %v8798_v2 = vld [vmem:[#allocation19 + $0x30] ss:$8 sps:$4 sm:$0xff]  }
 0x5a6   :  { %v1410_v5 = vmax.f32 %v1405_v1, 0.0  ;;  %v8800_v1 = vld [vmem:[#allocation19 + $0x34] ss:$8 sps:$4 sm:$0xff]   ;;  %v8801_v4 = vld [vmem:[#allocation19 + $0x40] ss:$8 sps:$4 sm:$0xff]  }
 0x5a7   :  { %v1446_v7 = vpack.c.bf16 %v1409_v3, %v1409_v3  ;;  %v8803_v3 = vld [vmem:[#allocation19 + $0x44] ss:$8 sps:$4 sm:$0xff]  }
 0x5a8   :  { %v1447_v6 = vpack.c.bf16 %v1410_v5, %v1410_v5  ;;  %v8806_v5 = vld [vmem:[#allocation19 + $0x54] ss:$8 sps:$4 sm:$0xff]  }
 0x5aa   :  { %7807 = vmatprep.mubr.msk.bf16.mxu1 %vm583_vm3, %v1447_v6  ;;  %v8804_v6 = vld [vmem:[#allocation19 + $0x50] ss:$8 sps:$4 sm:$0xff]  }
 0x5ab   :  { %1659 = vmatmul.mubr.bf16.vlgmr.msra.gmra.mrb[8].mxu1 %v1446_v7  ;;  %v8809_v7 = vld [vmem:[#allocation19 + $0x64] ss:$8 sps:$4 sm:$0xff]  }
 0x5ac   :  { %2128 = vmatprep.mubr.bf16.mxu1 %v10288_v0  ;;  %2097 = vmatpush1.bf16.msra.mxu1 %v8768_v32  ;;  %v8836_v32 = vld [vmem:[#allocation19 + $0xf4] ss:$8 sps:$4 sm:$0xff]  }
 0x5ad   :  { %2098 = vmatprep.subr.bf16.mxu1 %v8776_v34  ;;  %v8839_v34 = vld [vmem:[#allocation19 + $0x104] ss:$8 sps:$4 sm:$0xff]  }
 0x5b0   :  { %2099 = vmatpush1.bf16.msra.mxu1 %v8774_v35  ;;  %v8864_v35 = vld [vmem:[#allocation22] ss:$8 sps:$4 sm:$0xff]  }
 0x5b1   :  { %7848 = vmatprep.subr.msk.bf16.mxu1 %vm331_vm0, %v8777_v36  ;;  %v8866_v36 = vld [vmem:[#allocation22 + $0x4] ss:$8 sps:$4 sm:$0xff]  }
 0x5b4   :  { %2101 = vmatpush1.bf16.msra.mxu1 %v2050_v38  ;;  %v8867_v38 = vld [vmem:[#allocation22 + $0x10] ss:$8 sps:$4 sm:$0xff]  }
 0x5b5   :  { %2784 = vmatprep.subr.bf16.mxu1 %v8866_v36  ;;  %v8845_v36 = vld [vmem:[#allocation19 + $0x124] ss:$8 sps:$4 sm:$0xff]  }
 0x5b7   :  { %7849 = vmatmul.mubr.msk.bf16.vlgmr.msra.gmra.mrb[12].mxu1 %vm327_vm1, %v1852_v40 }
 0x5b8   :  { %2785 = vmatpush1.bf16.msra.mxu1 %v8864_v35  ;;  %v8840_v35 = vld [vmem:[#allocation19 + $0x110] ss:$8 sps:$4 sm:$0xff]  }
 0x5b9   :  { %2786 = vmatprep.subr.bf16.mxu1 %v8869_v37  ;;  %v8843_v37 = vld [vmem:[#allocation19 + $0x120] ss:$8 sps:$4 sm:$0xff]  }
 0x5bc   :  { %2787 = vmatpush1.bf16.msra.mxu1 %v8867_v38  ;;  %v8848_v38 = vld [vmem:[#allocation19 + $0x134] ss:$8 sps:$4 sm:$0xff]  }
 0x5bd   :  { %2788 = vmatprep.subr.bf16.mxu1 %v8872_v39  ;;  %v8846_v39 = vld [vmem:[#allocation19 + $0x130] ss:$8 sps:$4 sm:$0xff]  }
 0x67e   :  { %v1660_v19 = vpop.f32.mrb[8].mxu1 }
 0x67f   :  { %v1661_v20 = vadd.f32 %v1660_v19, %v1452_v17  ;;  %v1662_v21 = vpop.f32.mrb[9].mxu1  ;;  %v8816_v17 = vld [vmem:[#allocation19 + $0x90] ss:$8 sps:$4 sm:$0xff]   ;;  %v8821_v19 = vld [vmem:[#allocation19 + $0xa4] ss:$8 sps:$4 sm:$0xff]  }
 0x680   :  { %v1663_v22 = vadd.f32 %v1662_v21, %v1456_v18  ;;  %v1664_v23 = vpop.f32.mrb[10].mxu1  ;;  %v8819_v18 = vld [vmem:[#allocation19 + $0xa0] ss:$8 sps:$4 sm:$0xff]  }
 0x681   :  { %v1667_v24 = vmax.f32 %v1661_v20, 0.0  ;;  %v1665_v25 = vpop.f32.mrb[11].mxu1  ;;  %v8824_v20 = vld [vmem:[#allocation19 + $0xb4] ss:$8 sps:$4 sm:$0xff]  }
 0x682   :  { %v1668_v26 = vmax.f32 %v1663_v22, 0.0  ;;  %v8822_v22 = vld [vmem:[#allocation19 + $0xb0] ss:$8 sps:$4 sm:$0xff]   ;;  %v8827_v25 = vld [vmem:[#allocation19 + $0xc4] ss:$8 sps:$4 sm:$0xff]  }
 0x683   :  { %v1702_v28 = vpack.c.bf16 %v1667_v24, %v1667_v24 }
 0x684   :  { %v1703_v27 = vpack.c.bf16 %v1668_v26, %v1668_v26 }
 0x686   :  { %7825 = vmatprep.mubr.msk.bf16.mxu0 %vm583_vm3, %v1703_v27  ;;  %v8825_v27 = vld [vmem:[#allocation19 + $0xc0] ss:$8 sps:$4 sm:$0xff]  }
 0x687   :  { %1844 = vmatmul.mubr.bf16.vlgmr.msra.gmra.mrb[12].mxu0 %v1702_v28  ;;  %v8828_v28 = vld [vmem:[#allocation19 + $0xd0] ss:$8 sps:$4 sm:$0xff]  }
 0x688   :  { %1934 = vmatprep.mubr.bf16.mxu0 %v10288_v0  ;;  %1903 = vmatpush1.bf16.msra.mxu0 %v1891_v30  ;;  %v8833_v30 = vld [vmem:[#allocation19 + $0xe4] ss:$8 sps:$4 sm:$0xff]  }
 0x689   :  { %7832 = vmatprep.subr.msk.bf16.mxu0 %vm587_vm2, %v8771_v33  ;;  %v8834_v33 = vld [vmem:[#allocation19 + $0xf0] ss:$8 sps:$4 sm:$0xff]  }
 0x68a   :  { %v10772_v21 = vpop.f32.mrb[12].mxu1 }
 0x68b   :  { %v10774_v23 = vpop.f32.mrb[13].mxu1 }
 0x68c   :  { %v2134_v24 = vpop.f32.mrb[14].mxu1 }
 0x68d   :  { %v2135_v26 = vpop.f32.mrb[15].mxu1 }
 0x75a   :  { %v8378_v41 = vpop.f32.mrb[12].mxu0 }
 0x75b   :  { %v8379_v43 = vpop.f32.mrb[13].mxu0 }
 0x75c   :  { %v8380_v44 = vadd.f32 %v8379_v43, %v8378_v41  ;;  %v8381_v45 = vpop.f32.mrb[14].mxu0  ;;  %v8875_v41 = vld [vmem:[#allocation22 + $0x34] ss:$8 sps:$4 sm:$0xff]   ;;  %v8878_v43 = vld [vmem:[#allocation22 + $0x44] ss:$8 sps:$4 sm:$0xff]  }
 0x75d   :  { %v8382_v47 = vpop.f32.mrb[15].mxu0  ;;  %v8881_v45 = vld [vmem:[#allocation22 + $0x54] ss:$8 sps:$4 sm:$0xff]  }
 0x75e   :  { %v1846_v48 = vadd.f32 %v8380_v44, %v7808_v42  ;;  %v8873_v42 = vld [vmem:[#allocation22 + $0x30] ss:$8 sps:$4 sm:$0xff]   ;;  %v8876_v44 = vld [vmem:[#allocation22 + $0x40] ss:$8 sps:$4 sm:$0xff]   ;;  %v8884_v47 = vld [vmem:[#allocation22 + $0x64] ss:$8 sps:$4 sm:$0xff]  }
 0x760   :  { %v1865_v49 = vpack.c.bf16 %v1846_v48, %v1846_v48  ;;  %v8882_v48 = vld [vmem:[#allocation22 + $0x60] ss:$8 sps:$4 sm:$0xff]  }
 0x762   :  { %7831 = vmatmul.mubr.msk.bf16.vlgmr.msra.gmra.mrb[16].mxu0 %vm1886_vm4, %v1865_v49 }
 0x763   :  { %1944 = vmatpush1.bf16.msra.mxu0 %v1897_v50  ;;  %1975 = vmatprep.mubr.bf16.mxu0 %v10288_v0  ;;  %v8885_v50 = vld [vmem:[#allocation22 + $0x70] ss:$8 sps:$4 sm:$0xff]  }
 0x764   :  { %2055 = vmatprep.subr.bf16.mxu0 %v8782_v51  ;;  %v8890_v51 = vld [vmem:[#allocation22 + $0x84] ss:$8 sps:$4 sm:$0xff]  }
 0x76a   :  { %7833 = vmatmul.mubr.msk.bf16.vlgmr.msra.gmra.mrb[20].mxu0 %vm1886_vm4, %v1865_v49  ;;  %v8887_v49 = vld [vmem:[#allocation22 + $0x74] ss:$8 sps:$4 sm:$0xff]  }
 0x76b   :  { %2056 = vmatpush1.bf16.msra.mxu0 %v8780_v52  ;;  %2087 = vmatprep.mubr.bf16.mxu0 %v10288_v0  ;;  %v8888_v52 = vld [vmem:[#allocation22 + $0x80] ss:$8 sps:$4 sm:$0xff]  }
 0x76c   :  { %2057 = vmatprep.subr.bf16.mxu0 %v8785_v53  ;;  %v8893_v53 = vld [vmem:[#allocation22 + $0x94] ss:$8 sps:$4 sm:$0xff]  }
 0x76f   :  { %2058 = vmatpush1.bf16.msra.mxu0 %v8783_v54  ;;  %v8891_v54 = vld [vmem:[#allocation22 + $0x90] ss:$8 sps:$4 sm:$0xff]  }
 0x770   :  { %7846 = vmatprep.subr.msk.bf16.mxu0 %vm331_vm0, %v8786_v55  ;;  %v8896_v55 = vld [vmem:[#allocation22 + $0xa4] ss:$8 sps:$4 sm:$0xff]  }
 0x773   :  { %2060 = vmatpush1.bf16.msra.mxu0 %v2044_v57  ;;  %v8899_v57 = vld [vmem:[#allocation22 + $0xb4] ss:$8 sps:$4 sm:$0xff]  }
 0x774   :  { %2487 = vmatprep.subr.bf16.mxu0 %v8791_v58  ;;  %v8897_v58 = vld [vmem:[#allocation22 + $0xb0] ss:$8 sps:$4 sm:$0xff]  }
 0x776   :  { %7847 = vmatmul.mubr.msk.bf16.vlgmr.msra.gmra.mrb[24].mxu0 %vm327_vm1, %v1852_v40  ;;  %v8870_v40 = vld [vmem:[#allocation22 + $0x20] ss:$8 sps:$4 sm:$0xff]  }
 0x777   :  { %2488 = vmatpush1.bf16.msra.mxu0 %v8789_v59  ;;  %2789 = vmatpush1.bf16.msra.mxu1 %v8870_v40  ;;  %v8902_v59 = vld [vmem:[#allocation22 + $0xc4] ss:$8 sps:$4 sm:$0xff]   ;;  %v8851_v40 = vld [vmem:[#allocation19 + $0x144] ss:$8 sps:$4 sm:$0xff]  }
 0x778   :  { %2489 = vmatprep.subr.bf16.mxu0 %v8794_v60  ;;  %2790 = vmatprep.subr.bf16.mxu1 %v8875_v41  ;;  %v8900_v60 = vld [vmem:[#allocation22 + $0xc0] ss:$8 sps:$4 sm:$0xff]   ;;  %v8849_v41 = vld [vmem:[#allocation19 + $0x140] ss:$8 sps:$4 sm:$0xff]  }
 0x77b   :  { %2490 = vmatpush1.bf16.msra.mxu0 %v8792_v61  ;;  %2791 = vmatpush1.bf16.msra.mxu1 %v8873_v42  ;;  %v8905_v61 = vld [vmem:[#allocation22 + $0xd4] ss:$8 sps:$4 sm:$0xff]   ;;  %v8854_v42 = vld [vmem:[#allocation19 + $0x154] ss:$8 sps:$4 sm:$0xff]  }
 0x77c   :  { %2491 = vmatprep.subr.bf16.mxu0 %v8797_v62  ;;  %2792 = vmatprep.subr.bf16.mxu1 %v8878_v43  ;;  %v8903_v62 = vld [vmem:[#allocation22 + $0xd0] ss:$8 sps:$4 sm:$0xff]   ;;  %v8852_v43 = vld [vmem:[#allocation19 + $0x150] ss:$8 sps:$4 sm:$0xff]  }
 0x77f   :  { %2492 = vmatpush1.bf16.msra.mxu0 %v8795_v63  ;;  %2793 = vmatpush1.bf16.msra.mxu1 %v8876_v44  ;;  %v10785_v44 = vsub.s32 2, %v10673_v9 }
 0x780   :  { %2493 = vmatprep.subr.bf16.mxu0 %v8800_v1  ;;  %2794 = vmatprep.subr.bf16.mxu1 %v8881_v45  ;;  %v8857_v45 = vld [vmem:[#allocation19 + $0x164] ss:$8 sps:$4 sm:$0xff]  }
 0x783   :  { %2494 = vmatpush1.bf16.msra.mxu0 %v8798_v2  ;;  %2795 = vmatpush1.bf16.msra.mxu1 %v8879_v46  ;;  %v8855_v46 = vld [vmem:[#allocation19 + $0x160] ss:$8 sps:$4 sm:$0xff]  }
 0x784   :  { %2495 = vmatprep.subr.bf16.mxu0 %v8803_v3  ;;  %2796 = vmatprep.subr.bf16.mxu1 %v8884_v47 }
 0x787   :  { %2496 = vmatpush1.bf16.msra.mxu0 %v8801_v4  ;;  %2797 = vmatpush1.bf16.msra.mxu1 %v8882_v48  ;;  %v8860_v48 = vld [vmem:[#allocation19 + $0x174] ss:$8 sps:$4 sm:$0xff]  }
 0x788   :  { %2497 = vmatprep.subr.bf16.mxu0 %v8806_v5  ;;  %2798 = vmatprep.subr.bf16.mxu1 %v8887_v49  ;;  %v8858_v49 = vld [vmem:[#allocation19 + $0x170] ss:$8 sps:$4 sm:$0xff]  }
 0x78b   :  { %2498 = vmatpush1.bf16.msra.mxu0 %v8804_v6  ;;  %2799 = vmatpush1.bf16.msra.mxu1 %v8885_v50 }
 0x78c   :  { %2499 = vmatprep.subr.bf16.mxu0 %v8809_v7  ;;  %2800 = vmatprep.subr.bf16.mxu1 %v8890_v51  ;;  %v8863_v51 = vld [vmem:[#allocation19 + $0x184] ss:$8 sps:$4 sm:$0xff]  }
 0x78f   :  { %2500 = vmatpush1.bf16.msra.mxu0 %v8807_v8  ;;  %2801 = vmatpush1.bf16.msra.mxu1 %v8888_v52  ;;  %v8861_v52 = vld [vmem:[#allocation19 + $0x180] ss:$8 sps:$4 sm:$0xff]  }
 0x790   :  { %2501 = vmatprep.subr.bf16.mxu0 %v8812_v10  ;;  %2802 = vmatprep.subr.bf16.mxu1 %v8893_v53 }
 0x793   :  { %2502 = vmatpush1.bf16.msra.mxu0 %v8810_v13  ;;  %2803 = vmatpush1.bf16.msra.mxu1 %v8891_v54  ;;  %v10779_v13 = vsub.s32 3, %v10673_v9 }
 0x794   :  { %2503 = vmatprep.subr.bf16.mxu0 %v8815_v14  ;;  %2804 = vmatprep.subr.bf16.mxu1 %v8896_v55  ;;  %v2137_v14 = vld [vmem:[#allocation17] sm:$0xf] }
 0x795   :  { %v2150_v47 = vrot.slane %v2137_v14, %v10785_v44  ;;  %v8908_v55 = vld [vmem:[#allocation22 + $0xe4] ss:$8 sps:$4 sm:$0xff]  }
 0x797   :  { %2504 = vmatpush1.bf16.msra.mxu0 %v8813_v15  ;;  %2805 = vmatpush1.bf16.msra.mxu1 %v8894_v56  ;;  %v2154_v15 = vrot.slane %v2137_v14, %v10779_v13  ;;  %v8906_v56 = vld [vmem:[#allocation22 + $0xe0] ss:$8 sps:$4 sm:$0xff]  }
 0x798   :  { %2505 = vmatprep.subr.bf16.mxu0 %v8818_v16  ;;  %2806 = vmatprep.subr.bf16.mxu1 %v8899_v57  ;;  %v2142_v16 = vrot.slane %v2137_v14, %v10676_v11  ;;  %v8909_v57 = vld [vmem:[#allocation22 + $0xf4] ss:$8 sps:$4 sm:$0x1f]  }
 0x79b   :  { %2506 = vmatpush1.bf16.msra.mxu0 %v8816_v17  ;;  %2807 = vmatpush1.bf16.msra.mxu1 %v8897_v58  ;;  %v8911_v58 = vld [vmem:[#allocation22 + $0xf0] ss:$8 sps:$4 sm:$0x1f]  }
 0x79c   :  { %2507 = vmatprep.subr.bf16.mxu0 %v8821_v19  ;;  %2808 = vmatprep.subr.bf16.mxu1 %v8902_v59  ;;  %v2779_v59 = vsel %vm587_vm2, %v8911_v58, 0  ;;  %v8977_v58 = vld [vmem:[#allocation22 + $0x254] ss:$8 sps:$4 sm:$0xff]  }
 0x79f   :  { %2508 = vmatpush1.bf16.msra.mxu0 %v8819_v18  ;;  %2809 = vmatpush1.bf16.msra.mxu1 %v8900_v60  ;;  %v2146_v18 = vrot.slane %v2137_v14, %v10679_v12  ;;  %v8914_v60 = vld [vmem:[#allocation22 + $0x104] ss:$8 sps:$4 sm:$0xff]   ;;  %v8912_v14 = vld [vmem:[#allocation22 + $0x100] ss:$8 sps:$4 sm:$0xff]  }
 0x7a0   :  { %2509 = vmatprep.subr.bf16.mxu0 %v8824_v20  ;;  %2810 = vmatprep.subr.bf16.mxu1 %v8905_v61  ;;  %v2217_v61 = vld [vmem:[#allocation20] sm:$0x3] }
 0x7a3   :  { %2510 = vmatpush1.bf16.msra.mxu0 %v8822_v22  ;;  %2811 = vmatpush1.bf16.msra.mxu1 %v8903_v62  ;;  %v2226_v62 = vrot.slane %v2217_v61, %v10676_v11 }
 0x7a4   :  { %2511 = vmatprep.subr.bf16.mxu0 %v8827_v25  ;;  %2812 = vmatprep.subr.bf16.mxu1 %v8908_v55  ;;  %v8969_v55 = vld [vmem:[#allocation22 + $0x230] ss:$8 sps:$4 sm:$0xff]  }
 0x7a7   :  { %2512 = vmatpush1.bf16.msra.mxu0 %v8825_v27  ;;  %2813 = vmatpush1.bf16.msra.mxu1 %v8906_v56  ;;  %v8974_v56 = vld [vmem:[#allocation22 + $0x244] ss:$8 sps:$4 sm:$0xff]  }
 0x7a8   :  { %2513 = vmatprep.subr.bf16.mxu0 %v8830_v29  ;;  %7933 = vmatprep.subr.msk.bf16.mxu1 %vm587_vm2, %v8909_v57  ;;  %v8972_v57 = vld [vmem:[#allocation22 + $0x240] ss:$8 sps:$4 sm:$0xff]  }
 0x7ab   :  { %2514 = vmatpush1.bf16.msra.mxu0 %v8828_v28  ;;  %2815 = vmatpush1.bf16.msra.mxu1 %v2779_v59  ;;  %v8975_v59 = vld [vmem:[#allocation22 + $0x250] ss:$8 sps:$4 sm:$0xff]  }
 0x7ac   :  { %2515 = vmatprep.subr.bf16.mxu0 %v8833_v30  ;;  %3042 = vmatprep.subr.bf16.mxu1 %v8914_v60  ;;  %v8980_v60 = vld [vmem:[#allocation22 + $0x264] ss:$8 sps:$4 sm:$0xff]  }
 0x7af   :  { %2516 = vmatpush1.bf16.msra.mxu0 %v8831_v31  ;;  %v8837_v31 = vld [vmem:[#allocation19 + $0x100] ss:$8 sps:$4 sm:$0xff]  }
 0x7b0   :  { %2517 = vmatprep.subr.bf16.mxu0 %v8836_v32 }
 0x7b3   :  { %2518 = vmatpush1.bf16.msra.mxu0 %v8834_v33  ;;  %v8842_v33 = vld [vmem:[#allocation19 + $0x114] ss:$8 sps:$4 sm:$0xff]  }
 0x7b4   :  { %2528 = vmatprep.subr.bf16.mxu0 %v8839_v34 }
 0x835   :  { %v1936_v63 = vpop.f32.mrb[16].mxu0 }
 0x836   :  { %v1938_v1 = vpop.f32.mrb[17].mxu0 }
 0x837   :  { %v1940_v2 = vpop.f32.mrb[18].mxu0 }
 0x838   :  { %v1941_v3 = vpop.f32.mrb[19].mxu0 }
 0x83d   :  { %v1977_v4 = vpop.f32.mrb[20].mxu0 }
 0x83e   :  { %v2131_v5 = vadd.f32 %v10772_v21, %v1977_v4  ;;  %v1979_v6 = vpop.f32.mrb[21].mxu0 }
 0x83f   :  { %v2133_v7 = vadd.f32 %v10774_v23, %v1979_v6  ;;  %v1981_v8 = vpop.f32.mrb[22].mxu0 }
 0x840   :  { %v1982_v10 = vpop.f32.mrb[23].mxu0  ;;  %v2161_v50 = vadd.f32 %v2150_v47, %v2131_v5 }
 0x841   :  { %v2162_v22 = vadd.f32 %v2154_v15, %v2133_v7 }
 0x842   :  { %v2165_v53 = vmax.f32 %v2161_v50, 0.0  ;;  %v8965_v50 = vld [vmem:[#allocation22 + $0x214] ss:$8 sps:$4 sm:$0xff]  }
 0x843   :  { %v2166_v28 = vmax.f32 %v2162_v22, 0.0  ;;  %v8921_v22 = vld [vmem:[#allocation22 + $0x130] ss:$8 sps:$4 sm:$0xff]  }
 0x844   :  { %v2220_v54 = vpack.c.bf16 %v2165_v53, %v2165_v53  ;;  %v8966_v53 = vld [vmem:[#allocation22 + $0x220] ss:$8 sps:$4 sm:$0xff]  }
 0x845   :  { %v2221_v34 = vpack.c.bf16 %v2166_v28, %v2166_v28  ;;  %v8935_v28 = vld [vmem:[#allocation22 + $0x174] ss:$8 sps:$4 sm:$0xff]  }
 0x849   :  { %v2089_v17 = vpop.f32.mrb[24].mxu0 }
 0x84a   :  { %v2090_v19 = vadd.f32 %v2089_v17, %v1936_v63  ;;  %v2091_v20 = vpop.f32.mrb[25].mxu0  ;;  %v2230_v63 = vrot.slane %v2217_v61, %v10679_v12  ;;  %v8915_v17 = vld [vmem:[#allocation22 + $0x110] ss:$8 sps:$4 sm:$0xff]   ;;  %v8978_v61 = vld [vmem:[#allocation22 + $0x260] ss:$8 sps:$4 sm:$0xff]  }
 0x84b   :  { %v2092_v21 = vadd.f32 %v2091_v20, %v1938_v1  ;;  %v2093_v24 = vpop.f32.mrb[26].mxu0  ;;  %v8923_v20 = vld [vmem:[#allocation22 + $0x134] ss:$8 sps:$4 sm:$0xff]  }
 0x84c   :  { %v2159_v25 = vadd.f32 %v2142_v16, %v2090_v19  ;;  %v2094_v23 = vpop.f32.mrb[27].mxu0  ;;  %v8917_v16 = vld [vmem:[#allocation22 + $0x114] ss:$8 sps:$4 sm:$0xff]   ;;  %v8918_v19 = vld [vmem:[#allocation22 + $0x120] ss:$8 sps:$4 sm:$0xff]  }
 0x84d   :  { %v2160_v26 = vadd.f32 %v2146_v18, %v2092_v21  ;;  %v8920_v18 = vld [vmem:[#allocation22 + $0x124] ss:$8 sps:$4 sm:$0xff]   ;;  %v8924_v24 = vld [vmem:[#allocation22 + $0x140] ss:$8 sps:$4 sm:$0xff]   ;;  %v8927_v23 = vld [vmem:[#allocation22 + $0x150] ss:$8 sps:$4 sm:$0xff]  }
 0x84e   :  { %v2163_v27 = vmax.f32 %v2159_v25, 0.0  ;;  %v8926_v21 = vld [vmem:[#allocation22 + $0x144] ss:$8 sps:$4 sm:$0xff]   ;;  %v8929_v25 = vld [vmem:[#allocation22 + $0x154] ss:$8 sps:$4 sm:$0xff]  }
 0x84f   :  { %v2164_v29 = vmax.f32 %v2160_v26, 0.0  ;;  %v8932_v26 = vld [vmem:[#allocation22 + $0x164] ss:$8 sps:$4 sm:$0xff]  }
 0x850   :  { %v2218_v32 = vpack.c.bf16 %v2163_v27, %v2163_v27  ;;  %v8930_v27 = vld [vmem:[#allocation22 + $0x160] ss:$8 sps:$4 sm:$0xff]  }
 0x851   :  { %v2219_v30 = vpack.c.bf16 %v2164_v29, %v2164_v29  ;;  %v8933_v29 = vld [vmem:[#allocation22 + $0x170] ss:$8 sps:$4 sm:$0xff]  }
 0x853   :  { %2519 = vmatprep.mubr.bf16.mxu0 %v2219_v30  ;;  %v8938_v30 = vld [vmem:[#allocation22 + $0x184] ss:$8 sps:$4 sm:$0xff]  }
 0x854   :  { %2520 = vmatmul.mubr.bf16.vlgmr.msra.gmra.mrb[28].mxu0 %v2218_v32  ;;  %v8941_v32 = vld [vmem:[#allocation22 + $0x194] ss:$8 sps:$4 sm:$0xff]  }
 0x855   :  { %2529 = vmatpush1.bf16.msra.mxu0 %v8837_v31  ;;  %7900 = vmatprep.mubr.msk.bf16.mxu0 %vm2483_vm5, %v2221_v34  ;;  %v8936_v31 = vld [vmem:[#allocation22 + $0x180] ss:$8 sps:$4 sm:$0xff]   ;;  %v8944_v34 = vld [vmem:[#allocation22 + $0x1a4] ss:$8 sps:$4 sm:$0xff]  }
 0x856   :  { %2530 = vmatprep.subr.bf16.mxu0 %v8842_v33  ;;  %v8939_v33 = vld [vmem:[#allocation22 + $0x190] ss:$8 sps:$4 sm:$0xff]  }
 0x859   :  { %2531 = vmatpush1.bf16.msra.mxu0 %v8840_v35  ;;  %v8942_v35 = vld [vmem:[#allocation22 + $0x1a0] ss:$8 sps:$4 sm:$0xff]  }
 0x85a   :  { %2532 = vmatprep.subr.bf16.mxu0 %v8845_v36  ;;  %v8947_v36 = vld [vmem:[#allocation22 + $0x1b4] ss:$8 sps:$4 sm:$0xff]  }
 0x85d   :  { %2533 = vmatpush1.bf16.msra.mxu0 %v8843_v37  ;;  %v8945_v37 = vld [vmem:[#allocation22 + $0x1b0] ss:$8 sps:$4 sm:$0xff]  }
 0x85e   :  { %2534 = vmatprep.subr.bf16.mxu0 %v8848_v38  ;;  %v8950_v38 = vld [vmem:[#allocation22 + $0x1c4] ss:$8 sps:$4 sm:$0xff]  }
 0x861   :  { %2535 = vmatpush1.bf16.msra.mxu0 %v8846_v39  ;;  %v8948_v39 = vld [vmem:[#allocation22 + $0x1c0] ss:$8 sps:$4 sm:$0xff]  }
 0x862   :  { %2536 = vmatprep.subr.bf16.mxu0 %v8851_v40  ;;  %v8953_v40 = vld [vmem:[#allocation22 + $0x1d4] ss:$8 sps:$4 sm:$0xff]  }
 0x865   :  { %2537 = vmatpush1.bf16.msra.mxu0 %v8849_v41  ;;  %v8951_v41 = vld [vmem:[#allocation22 + $0x1d0] ss:$8 sps:$4 sm:$0xff]  }
 0x866   :  { %2538 = vmatprep.subr.bf16.mxu0 %v8854_v42  ;;  %v8956_v42 = vld [vmem:[#allocation22 + $0x1e4] ss:$8 sps:$4 sm:$0xff]  }
 0x869   :  { %2539 = vmatpush1.bf16.msra.mxu0 %v8852_v43  ;;  %v8954_v43 = vld [vmem:[#allocation22 + $0x1e0] ss:$8 sps:$4 sm:$0xff]  }
 0x86a   :  { %2540 = vmatprep.subr.bf16.mxu0 %v8857_v45  ;;  %v8957_v45 = vld [vmem:[#allocation22 + $0x1f4] ss:$8 sps:$4 sm:$0x1f]  }
 0x86d   :  { %2541 = vmatpush1.bf16.msra.mxu0 %v8855_v46  ;;  %v8959_v46 = vld [vmem:[#allocation22 + $0x1f0] ss:$8 sps:$4 sm:$0x1f]  }
 0x86e   :  { %2542 = vmatprep.subr.bf16.mxu0 %v8860_v48  ;;  %v3037_v47 = vsel %vm587_vm2, %v8959_v46, 0  ;;  %v8960_v48 = vld [vmem:[#allocation22 + $0x200] ss:$8 sps:$4 sm:$0xff]   ;;  %v9025_v46 = vld [vmem:[#allocation22 + $0x354] ss:$8 sps:$4 sm:$0xff]  }
 0x871   :  { %2543 = vmatpush1.bf16.msra.mxu0 %v8858_v49  ;;  %v8962_v49 = vld [vmem:[#allocation22 + $0x204] ss:$8 sps:$4 sm:$0xff]  }
 0x872   :  { %2544 = vmatprep.subr.bf16.mxu0 %v8863_v51  ;;  %v8963_v51 = vld [vmem:[#allocation22 + $0x210] ss:$8 sps:$4 sm:$0xff]  }
 0x875   :  { %2545 = vmatpush1.bf16.msra.mxu0 %v8861_v52  ;;  %v8968_v52 = vld [vmem:[#allocation22 + $0x224] ss:$8 sps:$4 sm:$0xff]  }
 0x876   :  { %3300 = vmatprep.subr.bf16.mxu0 %v8962_v49  ;;  %v9026_v49 = vld [vmem:[#allocation22 + $0x360] ss:$8 sps:$4 sm:$0xff]  }
 0x878   :  { %2561 = vmatmul.mubr.bf16.vlgmr.msra.gmra.mrb[28].mxu0 %v2220_v54  ;;  %v8971_v54 = vld [vmem:[#allocation22 + $0x234] ss:$8 sps:$4 sm:$0xff]  }
 0x879   :  { %3301 = vmatpush1.bf16.msra.mxu0 %v8960_v48  ;;  %v9028_v48 = vld [vmem:[#allocation22 + $0x364] ss:$8 sps:$4 sm:$0xff]  }
 0x87a   :  { %3302 = vmatprep.subr.bf16.mxu0 %v8965_v50  ;;  %v9031_v50 = vld [vmem:[#allocation22 + $0x374] ss:$8 sps:$4 sm:$0xff]  }
 0x87d   :  { %3303 = vmatpush1.bf16.msra.mxu0 %v8963_v51  ;;  %v9029_v51 = vld [vmem:[#allocation22 + $0x370] ss:$8 sps:$4 sm:$0xff]  }
 0x87e   :  { %3304 = vmatprep.subr.bf16.mxu0 %v8968_v52  ;;  %v9034_v52 = vld [vmem:[#allocation22 + $0x384] ss:$8 sps:$4 sm:$0xff]  }
 0x881   :  { %3305 = vmatpush1.bf16.msra.mxu0 %v8966_v53  ;;  %v9032_v53 = vld [vmem:[#allocation22 + $0x380] ss:$8 sps:$4 sm:$0xff]  }
 0x882   :  { %3306 = vmatprep.subr.bf16.mxu0 %v8971_v54  ;;  %v9037_v54 = vld [vmem:[#allocation22 + $0x394] ss:$8 sps:$4 sm:$0xff]  }
 0x885   :  { %3307 = vmatpush1.bf16.msra.mxu0 %v8969_v55  ;;  %v9035_v55 = vld [vmem:[#allocation22 + $0x390] ss:$8 sps:$4 sm:$0xff]  }
 0x886   :  { %3308 = vmatprep.subr.bf16.mxu0 %v8974_v56  ;;  %v9040_v56 = vld [vmem:[#allocation22 + $0x3a4] ss:$8 sps:$4 sm:$0xff]  }
 0x889   :  { %3309 = vmatpush1.bf16.msra.mxu0 %v8972_v57  ;;  %v9038_v57 = vld [vmem:[#allocation22 + $0x3a0] ss:$8 sps:$4 sm:$0xff]  }
 0x88a   :  { %3310 = vmatprep.subr.bf16.mxu0 %v8977_v58  ;;  %v9043_v58 = vld [vmem:[#allocation22 + $0x3b4] ss:$8 sps:$4 sm:$0xff]  }
 0x88d   :  { %3311 = vmatpush1.bf16.msra.mxu0 %v8975_v59  ;;  %v9041_v59 = vld [vmem:[#allocation22 + $0x3b0] ss:$8 sps:$4 sm:$0xff]  }
 0x88e   :  { %3312 = vmatprep.subr.bf16.mxu0 %v8980_v60  ;;  %v9046_v60 = vld [vmem:[#allocation22 + $0x3c4] ss:$8 sps:$4 sm:$0xff]  }
 0x891   :  { %3313 = vmatpush1.bf16.msra.mxu0 %v8978_v61  ;;  %v9044_v61 = vld [vmem:[#allocation22 + $0x3c0] ss:$8 sps:$4 sm:$0xff]  }
 0x94b   :  { %v2562_v1 = vpop.f32.mrb[28].mxu0 }
 0x94c   :  { %v8406_v2 = vadd.f32 %v2562_v1, %v2226_v62  ;;  %v2564_v3 = vpop.f32.mrb[29].mxu0  ;;  %v8983_v62 = vld [vmem:[#allocation22 + $0x274] ss:$8 sps:$4 sm:$0xff]   ;;  %v8986_v1 = vld [vmem:[#allocation22 + $0x284] ss:$8 sps:$4 sm:$0xff]  }
 0x94d   :  { %v8407_v4 = vadd.f32 %v2564_v3, %v2230_v63  ;;  %v2566_v5 = vpop.f32.mrb[30].mxu0  ;;  %v8981_v63 = vld [vmem:[#allocation22 + $0x270] ss:$8 sps:$4 sm:$0xff]   ;;  %3314 = vmatprep.subr.bf16.mxu0 %v8983_v62  ;;  %v8989_v3 = vld [vmem:[#allocation22 + $0x294] ss:$8 sps:$4 sm:$0xff]  }
 0x94e   :  { %v2569_v6 = vmax.f32 %v8406_v2, 0.0  ;;  %v2567_v7 = vpop.f32.mrb[31].mxu0  ;;  %3315 = vmatpush1.bf16.msra.mxu0 %v8981_v63  ;;  %v8984_v2 = vld [vmem:[#allocation22 + $0x280] ss:$8 sps:$4 sm:$0xff]   ;;  %v8992_v5 = vld [vmem:[#allocation22 + $0x2a4] ss:$8 sps:$4 sm:$0xff]  }
 0x94f   :  { %v2570_v8 = vmax.f32 %v8407_v4, 0.0  ;;  %3316 = vmatprep.subr.bf16.mxu0 %v8986_v1  ;;  %v8987_v4 = vld [vmem:[#allocation22 + $0x290] ss:$8 sps:$4 sm:$0xff]   ;;  %v8995_v7 = vld [vmem:[#allocation22 + $0x2b4] ss:$8 sps:$4 sm:$0xff]  }
 0x950   :  { %v2604_v15 = vpack.c.bf16 %v2569_v6, %v2569_v6  ;;  %v8990_v6 = vld [vmem:[#allocation22 + $0x2a0] ss:$8 sps:$4 sm:$0xff]   ;;  %v9049_v62 = vld [vmem:[#allocation22 + $0x3d4] ss:$8 sps:$4 sm:$0xff]   ;;  %v9047_v63 = vld [vmem:[#allocation22 + $0x3d0] ss:$8 sps:$4 sm:$0xff]  }
 0x951   :  { %v2605_v10 = vpack.c.bf16 %v2570_v8, %v2570_v8  ;;  %v8993_v8 = vld [vmem:[#allocation22 + $0x2b0] ss:$8 sps:$4 sm:$0xff]   ;;  %v2861_v1 = vld [vmem:[#allocation23 + $0x2] sm:$0x3] }
 0x952   :  { %3317 = vmatpush1.bf16.msra.mxu0 %v8984_v2  ;;  %v2868_v2 = vrot.slane %v2861_v1, %v10676_v11 }
 0x953   :  { %7934 = vmatprep.mubr.msk.bf16.mxu1 %vm583_vm3, %v2605_v10  ;;  %3318 = vmatprep.subr.bf16.mxu0 %v8989_v3  ;;  %v8998_v10 = vld [vmem:[#allocation22 + $0x2c4] ss:$8 sps:$4 sm:$0xff]   ;;  %v2872_v3 = vrot.slane %v2861_v1, %v10679_v12 }
 0x954   :  { %2817 = vmatmul.mubr.bf16.vlgmr.msra.gmra.mrb[16].mxu1 %v2604_v15  ;;  %v9001_v15 = vld [vmem:[#allocation22 + $0x2d4] ss:$8 sps:$4 sm:$0xff]  }
 0x955   :  { %3043 = vmatpush1.bf16.msra.mxu1 %v8912_v14  ;;  %v8996_v14 = vld [vmem:[#allocation22 + $0x2c0] ss:$8 sps:$4 sm:$0xff]  }
 0x956   :  { %3044 = vmatprep.subr.bf16.mxu1 %v8917_v16  ;;  %3319 = vmatpush1.bf16.msra.mxu0 %v8987_v4  ;;  %v8999_v16 = vld [vmem:[#allocation22 + $0x2d0] ss:$8 sps:$4 sm:$0xff]  }
 0x957   :  { %3320 = vmatprep.subr.bf16.mxu0 %v8992_v5 }
 0x959   :  { %3045 = vmatpush1.bf16.msra.mxu1 %v8915_v17  ;;  %v2603_v17 = vld [vmem:[#allocation23] sm:$0x3] }
 0x95a   :  { %3046 = vmatprep.subr.bf16.mxu1 %v8920_v18  ;;  %3321 = vmatpush1.bf16.msra.mxu0 %v8990_v6  ;;  %v2610_v18 = vrot.slane %v2603_v17, %v10676_v11 }
 0x95b   :  { %3322 = vmatprep.subr.bf16.mxu0 %v8995_v7 }
 0x95d   :  { %3047 = vmatpush1.bf16.msra.mxu1 %v8918_v19  ;;  %v2614_v19 = vrot.slane %v2603_v17, %v10679_v12 }
 0x95e   :  { %3048 = vmatprep.subr.bf16.mxu1 %v8923_v20  ;;  %3323 = vmatpush1.bf16.msra.mxu0 %v8993_v8 }
 0x95f   :  { %3324 = vmatprep.subr.bf16.mxu0 %v8998_v10 }
 0x961   :  { %3049 = vmatpush1.bf16.msra.mxu1 %v8921_v22 }
 0x962   :  { %3050 = vmatprep.subr.bf16.mxu1 %v8926_v21  ;;  %3325 = vmatpush1.bf16.msra.mxu0 %v8996_v14 }
 0x963   :  { %3326 = vmatprep.subr.bf16.mxu0 %v9001_v15 }
 0x965   :  { %3051 = vmatpush1.bf16.msra.mxu1 %v8924_v24 }
 0x966   :  { %3052 = vmatprep.subr.bf16.mxu1 %v8929_v25  ;;  %3327 = vmatpush1.bf16.msra.mxu0 %v8999_v16 }
 0x969   :  { %3053 = vmatpush1.bf16.msra.mxu1 %v8927_v23 }
 0x96a   :  { %3054 = vmatprep.subr.bf16.mxu1 %v8932_v26 }
 0x96d   :  { %3055 = vmatpush1.bf16.msra.mxu1 %v8930_v27 }
 0x96e   :  { %3056 = vmatprep.subr.bf16.mxu1 %v8935_v28 }
 0x971   :  { %3057 = vmatpush1.bf16.msra.mxu1 %v8933_v29 }
 0x972   :  { %3058 = vmatprep.subr.bf16.mxu1 %v8938_v30  ;;  %v9004_v30 = vld [vmem:[#allocation22 + $0x2e4] ss:$8 sps:$4 sm:$0xff]  }
 0x973   :  { %3328 = vmatprep.subr.bf16.mxu0 %v9004_v30  ;;  %v9065_v30 = vld [vmem:[#allocation22 + $0x430] ss:$8 sps:$4 sm:$0xff]  }
 0x975   :  { %3059 = vmatpush1.bf16.msra.mxu1 %v8936_v31  ;;  %v9002_v31 = vld [vmem:[#allocation22 + $0x2e0] ss:$8 sps:$4 sm:$0xff]  }
 0x976   :  { %3060 = vmatprep.subr.bf16.mxu1 %v8941_v32  ;;  %3329 = vmatpush1.bf16.msra.mxu0 %v9002_v31  ;;  %v9005_v32 = vld [vmem:[#allocation22 + $0x2f4] ss:$8 sps:$4 sm:$0x1f]   ;;  %v9070_v31 = vld [vmem:[#allocation22 + $0x444] ss:$8 sps:$4 sm:$0xff]  }
 0x977   :  { %8001 = vmatprep.subr.msk.bf16.mxu0 %vm587_vm2, %v9005_v32  ;;  %v9068_v32 = vld [vmem:[#allocation22 + $0x440] ss:$8 sps:$4 sm:$0xff]  }
 0x979   :  { %3061 = vmatpush1.bf16.msra.mxu1 %v8939_v33  ;;  %v9007_v33 = vld [vmem:[#allocation22 + $0x2f0] ss:$8 sps:$4 sm:$0x1f]  }
 0x97a   :  { %3062 = vmatprep.subr.bf16.mxu1 %v8944_v34  ;;  %v3295_v34 = vsel %vm587_vm2, %v9007_v33, 0  ;;  %v9073_v33 = vld [vmem:[#allocation22 + $0x454] ss:$8 sps:$4 sm:$0xff]  }
 0x97b   :  { %3331 = vmatpush1.bf16.msra.mxu0 %v3295_v34  ;;  %v9071_v34 = vld [vmem:[#allocation22 + $0x450] ss:$8 sps:$4 sm:$0xff]  }
 0x97d   :  { %3063 = vmatpush1.bf16.msra.mxu1 %v8942_v35  ;;  %v9008_v35 = vld [vmem:[#allocation22 + $0x300] ss:$8 sps:$4 sm:$0xff]  }
 0x97e   :  { %3064 = vmatprep.subr.bf16.mxu1 %v8947_v36  ;;  %v9010_v36 = vld [vmem:[#allocation22 + $0x304] ss:$8 sps:$4 sm:$0xff]  }
 0x981   :  { %3065 = vmatpush1.bf16.msra.mxu1 %v8945_v37  ;;  %v9013_v37 = vld [vmem:[#allocation22 + $0x314] ss:$8 sps:$4 sm:$0xff]  }
 0x982   :  { %3066 = vmatprep.subr.bf16.mxu1 %v8950_v38  ;;  %v9011_v38 = vld [vmem:[#allocation22 + $0x310] ss:$8 sps:$4 sm:$0xff]  }
 0x985   :  { %3067 = vmatpush1.bf16.msra.mxu1 %v8948_v39  ;;  %v9016_v39 = vld [vmem:[#allocation22 + $0x324] ss:$8 sps:$4 sm:$0xff]  }
 0x986   :  { %3068 = vmatprep.subr.bf16.mxu1 %v8953_v40  ;;  %v9014_v40 = vld [vmem:[#allocation22 + $0x320] ss:$8 sps:$4 sm:$0xff]  }
 0x989   :  { %3069 = vmatpush1.bf16.msra.mxu1 %v8951_v41  ;;  %v9019_v41 = vld [vmem:[#allocation22 + $0x334] ss:$8 sps:$4 sm:$0xff]  }
 0x98a   :  { %3070 = vmatprep.subr.bf16.mxu1 %v8956_v42  ;;  %v9017_v42 = vld [vmem:[#allocation22 + $0x330] ss:$8 sps:$4 sm:$0xff]  }
 0x98d   :  { %3071 = vmatpush1.bf16.msra.mxu1 %v8954_v43  ;;  %v9022_v43 = vld [vmem:[#allocation22 + $0x344] ss:$8 sps:$4 sm:$0xff]  }
 0x98e   :  { %7967 = vmatprep.subr.msk.bf16.mxu1 %vm587_vm2, %v8957_v45  ;;  %v9020_v45 = vld [vmem:[#allocation22 + $0x340] ss:$8 sps:$4 sm:$0xff]  }
 0x991   :  { %3073 = vmatpush1.bf16.msra.mxu1 %v3037_v47  ;;  %v9023_v47 = vld [vmem:[#allocation22 + $0x350] ss:$8 sps:$4 sm:$0xff]  }
 0x992   :  { %3558 = vmatprep.subr.bf16.mxu1 %v9010_v36  ;;  %v9074_v36 = vld [vmem:[#allocation22 + $0x460] ss:$8 sps:$4 sm:$0xff]  }
 0xa27   :  { %v2818_v20 = vpop.f32.mrb[16].mxu1 }
 0xa28   :  { %v2819_v22 = vadd.f32 %v2818_v20, %v2610_v18  ;;  %v2820_v21 = vpop.f32.mrb[17].mxu1  ;;  %v9052_v18 = vld [vmem:[#allocation22 + $0x3e4] ss:$8 sps:$4 sm:$0xff]   ;;  %v9053_v20 = vld [vmem:[#allocation22 + $0x3f4] ss:$8 sps:$4 sm:$0x1f]  }
 0xa29   :  { %v2821_v24 = vadd.f32 %v2820_v21, %v2614_v19  ;;  %v2822_v25 = vpop.f32.mrb[18].mxu1  ;;  %v9050_v19 = vld [vmem:[#allocation22 + $0x3e0] ss:$8 sps:$4 sm:$0xff]  }
 0xa2a   :  { %v2825_v23 = vmax.f32 %v2819_v22, 0.0  ;;  %v2823_v26 = vpop.f32.mrb[19].mxu1  ;;  %v9055_v22 = vld [vmem:[#allocation22 + $0x3f0] ss:$8 sps:$4 sm:$0x1f]  }
 0xa2b   :  { %v2826_v27 = vmax.f32 %v2821_v24, 0.0  ;;  %v3553_v21 = vsel %vm587_vm2, %v9055_v22, 0  ;;  %v9056_v24 = vld [vmem:[#allocation22 + $0x400] ss:$8 sps:$4 sm:$0xff]   ;;  %v9058_v25 = vld [vmem:[#allocation22 + $0x404] ss:$8 sps:$4 sm:$0xff]  }
 0xa2c   :  { %v2862_v29 = vpack.c.bf16 %v2825_v23, %v2825_v23  ;;  %v9061_v23 = vld [vmem:[#allocation22 + $0x414] ss:$8 sps:$4 sm:$0xff]   ;;  %3816 = vmatprep.subr.bf16.mxu0 %v9058_v25  ;;  %v9059_v26 = vld [vmem:[#allocation22 + $0x410] ss:$8 sps:$4 sm:$0xff]   ;;  %v9122_v25 = vld [vmem:[#allocation22 + $0x560] ss:$8 sps:$4 sm:$0xff]  }
 0xa2d   :  { %v2863_v28 = vpack.c.bf16 %v2826_v27, %v2826_v27  ;;  %v9064_v27 = vld [vmem:[#allocation22 + $0x424] ss:$8 sps:$4 sm:$0xff]   ;;  %v9121_v22 = vld [vmem:[#allocation22 + $0x554] ss:$8 sps:$4 sm:$0xff]  }
 0xa2f   :  { %7968 = vmatprep.mubr.msk.bf16.mxu1 %vm583_vm3, %v2863_v28  ;;  %v9062_v28 = vld [vmem:[#allocation22 + $0x420] ss:$8 sps:$4 sm:$0xff]  }
 0xa30   :  { %3075 = vmatmul.mubr.bf16.vlgmr.msra.gmra.mrb[20].mxu1 %v2862_v29  ;;  %v9067_v29 = vld [vmem:[#allocation22 + $0x434] ss:$8 sps:$4 sm:$0xff]  }
 0xa31   :  { %3559 = vmatpush1.bf16.msra.mxu1 %v9008_v35  ;;  %v9076_v35 = vld [vmem:[#allocation22 + $0x464] ss:$8 sps:$4 sm:$0xff]  }
 0xa32   :  { %3560 = vmatprep.subr.bf16.mxu1 %v9013_v37  ;;  %v9079_v37 = vld [vmem:[#allocation22 + $0x474] ss:$8 sps:$4 sm:$0xff]  }
 0xa35   :  { %3561 = vmatpush1.bf16.msra.mxu1 %v9011_v38  ;;  %v9077_v38 = vld [vmem:[#allocation22 + $0x470] ss:$8 sps:$4 sm:$0xff]  }
 0xa36   :  { %3562 = vmatprep.subr.bf16.mxu1 %v9016_v39  ;;  %v9082_v39 = vld [vmem:[#allocation22 + $0x484] ss:$8 sps:$4 sm:$0xff]  }
 0xa39   :  { %3563 = vmatpush1.bf16.msra.mxu1 %v9014_v40  ;;  %v9080_v40 = vld [vmem:[#allocation22 + $0x480] ss:$8 sps:$4 sm:$0xff]  }
 0xa3a   :  { %3564 = vmatprep.subr.bf16.mxu1 %v9019_v41  ;;  %v9085_v41 = vld [vmem:[#allocation22 + $0x494] ss:$8 sps:$4 sm:$0xff]  }
 0xa3d   :  { %3565 = vmatpush1.bf16.msra.mxu1 %v9017_v42  ;;  %v9083_v42 = vld [vmem:[#allocation22 + $0x490] ss:$8 sps:$4 sm:$0xff]  }
 0xa3e   :  { %3566 = vmatprep.subr.bf16.mxu1 %v9022_v43  ;;  %v9088_v43 = vld [vmem:[#allocation22 + $0x4a4] ss:$8 sps:$4 sm:$0xff]  }
 0xa41   :  { %3567 = vmatpush1.bf16.msra.mxu1 %v9020_v45  ;;  %v9086_v45 = vld [vmem:[#allocation22 + $0x4a0] ss:$8 sps:$4 sm:$0xff]  }
 0xa42   :  { %3568 = vmatprep.subr.bf16.mxu1 %v9025_v46  ;;  %v9091_v46 = vld [vmem:[#allocation22 + $0x4b4] ss:$8 sps:$4 sm:$0xff]  }
 0xa45   :  { %3569 = vmatpush1.bf16.msra.mxu1 %v9023_v47  ;;  %v9089_v47 = vld [vmem:[#allocation22 + $0x4b0] ss:$8 sps:$4 sm:$0xff]  }
 0xa46   :  { %3570 = vmatprep.subr.bf16.mxu1 %v9028_v48  ;;  %v9094_v48 = vld [vmem:[#allocation22 + $0x4c4] ss:$8 sps:$4 sm:$0xff]  }
 0xa49   :  { %3571 = vmatpush1.bf16.msra.mxu1 %v9026_v49  ;;  %v9092_v49 = vld [vmem:[#allocation22 + $0x4c0] ss:$8 sps:$4 sm:$0xff]  }
 0xa4a   :  { %3572 = vmatprep.subr.bf16.mxu1 %v9031_v50  ;;  %v9097_v50 = vld [vmem:[#allocation22 + $0x4d4] ss:$8 sps:$4 sm:$0xff]  }
 0xa4d   :  { %3573 = vmatpush1.bf16.msra.mxu1 %v9029_v51  ;;  %v9095_v51 = vld [vmem:[#allocation22 + $0x4d0] ss:$8 sps:$4 sm:$0xff]  }
 0xa4e   :  { %3574 = vmatprep.subr.bf16.mxu1 %v9034_v52  ;;  %v3119_v52 = vld [vmem:[#allocation23 + $0x4] sm:$0x3] }
 0xa51   :  { %3575 = vmatpush1.bf16.msra.mxu1 %v9032_v53  ;;  %v3126_v53 = vrot.slane %v3119_v52, %v10676_v11 }
 0xa52   :  { %3576 = vmatprep.subr.bf16.mxu1 %v9037_v54  ;;  %v3130_v54 = vrot.slane %v3119_v52, %v10679_v12 }
 0xa55   :  { %3577 = vmatpush1.bf16.msra.mxu1 %v9035_v55 }
 0xa56   :  { %3578 = vmatprep.subr.bf16.mxu1 %v9040_v56 }
 0xa59   :  { %3579 = vmatpush1.bf16.msra.mxu1 %v9038_v57 }
 0xa5a   :  { %3580 = vmatprep.subr.bf16.mxu1 %v9043_v58 }
 0xa5d   :  { %3581 = vmatpush1.bf16.msra.mxu1 %v9041_v59 }
 0xa5e   :  { %3582 = vmatprep.subr.bf16.mxu1 %v9046_v60 }
 0xa61   :  { %3583 = vmatpush1.bf16.msra.mxu1 %v9044_v61 }
 0xa62   :  { %3584 = vmatprep.subr.bf16.mxu1 %v9049_v62 }
 0xa65   :  { %3585 = vmatpush1.bf16.msra.mxu1 %v9047_v63 }
 0xa66   :  { %3586 = vmatprep.subr.bf16.mxu1 %v9052_v18  ;;  %v9113_v18 = vld [vmem:[#allocation22 + $0x530] ss:$8 sps:$4 sm:$0xff]  }
 0xa69   :  { %3587 = vmatpush1.bf16.msra.mxu1 %v9050_v19  ;;  %v9118_v19 = vld [vmem:[#allocation22 + $0x544] ss:$8 sps:$4 sm:$0xff]  }
 0xa6a   :  { %8035 = vmatprep.subr.msk.bf16.mxu1 %vm587_vm2, %v9053_v20  ;;  %v9116_v20 = vld [vmem:[#allocation22 + $0x540] ss:$8 sps:$4 sm:$0xff]  }
 0xa6d   :  { %3589 = vmatpush1.bf16.msra.mxu1 %v3553_v21  ;;  %v9119_v21 = vld [vmem:[#allocation22 + $0x550] ss:$8 sps:$4 sm:$0xff]  }
 0xb03   :  { %v3076_v4 = vpop.f32.mrb[20].mxu1 }
 0xb04   :  { %v3077_v5 = vadd.f32 %v3076_v4, %v2868_v2  ;;  %v3078_v6 = vpop.f32.mrb[21].mxu1  ;;  %v9100_v2 = vld [vmem:[#allocation22 + $0x4e4] ss:$8 sps:$4 sm:$0xff]   ;;  %v9101_v4 = vld [vmem:[#allocation22 + $0x4f4] ss:$8 sps:$4 sm:$0x1f]  }
 0xb05   :  { %v3079_v7 = vadd.f32 %v3078_v6, %v2872_v3  ;;  %v3080_v8 = vpop.f32.mrb[22].mxu1  ;;  %v9098_v3 = vld [vmem:[#allocation22 + $0x4e0] ss:$8 sps:$4 sm:$0xff]  }
 0xb06   :  { %v3083_v10 = vmax.f32 %v3077_v5, 0.0  ;;  %v3081_v14 = vpop.f32.mrb[23].mxu1  ;;  %v9103_v5 = vld [vmem:[#allocation22 + $0x4f0] ss:$8 sps:$4 sm:$0x1f]  }
 0xb07   :  { %v3084_v15 = vmax.f32 %v3079_v7, 0.0  ;;  %v3811_v6 = vsel %vm587_vm2, %v9103_v5, 0  ;;  %v9104_v7 = vld [vmem:[#allocation22 + $0x500] ss:$8 sps:$4 sm:$0xff]   ;;  %v9106_v8 = vld [vmem:[#allocation22 + $0x504] ss:$8 sps:$4 sm:$0xff]  }
 0xb08   :  { %v3120_v17 = vpack.c.bf16 %v3083_v10, %v3083_v10  ;;  %v9109_v10 = vld [vmem:[#allocation22 + $0x514] ss:$8 sps:$4 sm:$0xff]   ;;  %4074 = vmatprep.subr.bf16.mxu1 %v9106_v8  ;;  %v9107_v14 = vld [vmem:[#allocation22 + $0x510] ss:$8 sps:$4 sm:$0xff]   ;;  %v9170_v8 = vld [vmem:[#allocation22 + $0x660] ss:$8 sps:$4 sm:$0xff]  }
 0xb09   :  { %v3121_v16 = vpack.c.bf16 %v3084_v15, %v3084_v15  ;;  %v9112_v15 = vld [vmem:[#allocation22 + $0x524] ss:$8 sps:$4 sm:$0xff]   ;;  %v9169_v5 = vld [vmem:[#allocation22 + $0x654] ss:$8 sps:$4 sm:$0xff]  }
 0xb0b   :  { %8002 = vmatprep.mubr.msk.bf16.mxu0 %vm583_vm3, %v3121_v16  ;;  %v9110_v16 = vld [vmem:[#allocation22 + $0x520] ss:$8 sps:$4 sm:$0xff]  }
 0xb0c   :  { %3333 = vmatmul.mubr.bf16.vlgmr.msra.gmra.mrb[32].mxu0 %v3120_v17  ;;  %v9115_v17 = vld [vmem:[#allocation22 + $0x534] ss:$8 sps:$4 sm:$0xff]  }
 0xb0d   :  { %3817 = vmatpush1.bf16.msra.mxu0 %v9056_v24  ;;  %v9124_v24 = vld [vmem:[#allocation22 + $0x564] ss:$8 sps:$4 sm:$0xff]  }
 0xb0e   :  { %3818 = vmatprep.subr.bf16.mxu0 %v9061_v23  ;;  %v9127_v23 = vld [vmem:[#allocation22 + $0x574] ss:$8 sps:$4 sm:$0xff]  }
 0xb11   :  { %3819 = vmatpush1.bf16.msra.mxu0 %v9059_v26  ;;  %v9125_v26 = vld [vmem:[#allocation22 + $0x570] ss:$8 sps:$4 sm:$0xff]  }
 0xb12   :  { %3820 = vmatprep.subr.bf16.mxu0 %v9064_v27  ;;  %v9130_v27 = vld [vmem:[#allocation22 + $0x584] ss:$8 sps:$4 sm:$0xff]  }
 0xb15   :  { %3821 = vmatpush1.bf16.msra.mxu0 %v9062_v28  ;;  %v9128_v28 = vld [vmem:[#allocation22 + $0x580] ss:$8 sps:$4 sm:$0xff]  }
 0xb16   :  { %3822 = vmatprep.subr.bf16.mxu0 %v9067_v29  ;;  %v9133_v29 = vld [vmem:[#allocation22 + $0x594] ss:$8 sps:$4 sm:$0xff]  }
 0xb19   :  { %3823 = vmatpush1.bf16.msra.mxu0 %v9065_v30  ;;  %v9131_v30 = vld [vmem:[#allocation22 + $0x590] ss:$8 sps:$4 sm:$0xff]  }
 0xb1a   :  { %3824 = vmatprep.subr.bf16.mxu0 %v9070_v31  ;;  %v9136_v31 = vld [vmem:[#allocation22 + $0x5a4] ss:$8 sps:$4 sm:$0xff]  }
 0xb1d   :  { %3825 = vmatpush1.bf16.msra.mxu0 %v9068_v32  ;;  %v9134_v32 = vld [vmem:[#allocation22 + $0x5a0] ss:$8 sps:$4 sm:$0xff]  }
 0xb1e   :  { %3826 = vmatprep.subr.bf16.mxu0 %v9073_v33  ;;  %v9139_v33 = vld [vmem:[#allocation22 + $0x5b4] ss:$8 sps:$4 sm:$0xff]  }
 0xb21   :  { %3827 = vmatpush1.bf16.msra.mxu0 %v9071_v34  ;;  %v9137_v34 = vld [vmem:[#allocation22 + $0x5b0] ss:$8 sps:$4 sm:$0xff]  }
 0xb22   :  { %3828 = vmatprep.subr.bf16.mxu0 %v9076_v35  ;;  %v9142_v35 = vld [vmem:[#allocation22 + $0x5c4] ss:$8 sps:$4 sm:$0xff]  }
 0xb25   :  { %3829 = vmatpush1.bf16.msra.mxu0 %v9074_v36  ;;  %v9140_v36 = vld [vmem:[#allocation22 + $0x5c0] ss:$8 sps:$4 sm:$0xff]  }
 0xb26   :  { %3830 = vmatprep.subr.bf16.mxu0 %v9079_v37  ;;  %v9145_v37 = vld [vmem:[#allocation22 + $0x5d4] ss:$8 sps:$4 sm:$0xff]  }
 0xb29   :  { %3831 = vmatpush1.bf16.msra.mxu0 %v9077_v38  ;;  %v9143_v38 = vld [vmem:[#allocation22 + $0x5d0] ss:$8 sps:$4 sm:$0xff]  }
 0xb2a   :  { %3832 = vmatprep.subr.bf16.mxu0 %v9082_v39  ;;  %v3377_v39 = vld [vmem:[#allocation23 + $0x6] sm:$0x3] }
 0xb2d   :  { %3833 = vmatpush1.bf16.msra.mxu0 %v9080_v40  ;;  %v3384_v40 = vrot.slane %v3377_v39, %v10676_v11 }
 0xb2e   :  { %3834 = vmatprep.subr.bf16.mxu0 %v9085_v41  ;;  %v3388_v41 = vrot.slane %v3377_v39, %v10679_v12 }
 0xb31   :  { %3835 = vmatpush1.bf16.msra.mxu0 %v9083_v42 }
 0xb32   :  { %3836 = vmatprep.subr.bf16.mxu0 %v9088_v43 }
 0xb35   :  { %3837 = vmatpush1.bf16.msra.mxu0 %v9086_v45 }
 0xb36   :  { %3838 = vmatprep.subr.bf16.mxu0 %v9091_v46 }
 0xb39   :  { %3839 = vmatpush1.bf16.msra.mxu0 %v9089_v47 }
 0xb3a   :  { %3840 = vmatprep.subr.bf16.mxu0 %v9094_v48 }
 0xb3d   :  { %3841 = vmatpush1.bf16.msra.mxu0 %v9092_v49 }
 0xb3e   :  { %3842 = vmatprep.subr.bf16.mxu0 %v9097_v50 }
 0xb41   :  { %3843 = vmatpush1.bf16.msra.mxu0 %v9095_v51 }
 0xb42   :  { %3844 = vmatprep.subr.bf16.mxu0 %v9100_v2  ;;  %v9161_v2 = vld [vmem:[#allocation22 + $0x630] ss:$8 sps:$4 sm:$0xff]  }
 0xb45   :  { %3845 = vmatpush1.bf16.msra.mxu0 %v9098_v3  ;;  %v9166_v3 = vld [vmem:[#allocation22 + $0x644] ss:$8 sps:$4 sm:$0xff]  }
 0xb46   :  { %8069 = vmatprep.subr.msk.bf16.mxu0 %vm587_vm2, %v9101_v4  ;;  %v9164_v4 = vld [vmem:[#allocation22 + $0x640] ss:$8 sps:$4 sm:$0xff]  }
 0xb49   :  { %3847 = vmatpush1.bf16.msra.mxu0 %v3811_v6  ;;  %v9167_v6 = vld [vmem:[#allocation22 + $0x650] ss:$8 sps:$4 sm:$0xff]  }
 0xbdf   :  { %v3334_v55 = vpop.f32.mrb[32].mxu0 }
 0xbe0   :  { %v3335_v56 = vadd.f32 %v3334_v55, %v3126_v53  ;;  %v3336_v57 = vpop.f32.mrb[33].mxu0  ;;  %v9148_v53 = vld [vmem:[#allocation22 + $0x5e4] ss:$8 sps:$4 sm:$0xff]   ;;  %v9149_v55 = vld [vmem:[#allocation22 + $0x5f4] ss:$8 sps:$4 sm:$0x1f]  }
 0xbe1   :  { %v3337_v58 = vadd.f32 %v3336_v57, %v3130_v54  ;;  %v3338_v59 = vpop.f32.mrb[34].mxu0  ;;  %v9146_v54 = vld [vmem:[#allocation22 + $0x5e0] ss:$8 sps:$4 sm:$0xff]  }
 0xbe2   :  { %v3341_v60 = vmax.f32 %v3335_v56, 0.0  ;;  %v3339_v61 = vpop.f32.mrb[35].mxu0  ;;  %v9151_v56 = vld [vmem:[#allocation22 + $0x5f0] ss:$8 sps:$4 sm:$0x1f]  }
 0xbe3   :  { %v3342_v62 = vmax.f32 %v3337_v58, 0.0  ;;  %v4069_v57 = vsel %vm587_vm2, %v9151_v56, 0  ;;  %v9152_v58 = vld [vmem:[#allocation22 + $0x600] ss:$8 sps:$4 sm:$0xff]   ;;  %v9154_v59 = vld [vmem:[#allocation22 + $0x604] ss:$8 sps:$4 sm:$0xff]  }
 0xbe4   :  { %v3378_v1 = vpack.c.bf16 %v3341_v60, %v3341_v60  ;;  %v9157_v60 = vld [vmem:[#allocation22 + $0x614] ss:$8 sps:$4 sm:$0xff]   ;;  %4332 = vmatprep.subr.bf16.mxu0 %v9154_v59  ;;  %v9155_v61 = vld [vmem:[#allocation22 + $0x610] ss:$8 sps:$4 sm:$0xff]   ;;  %v9218_v59 = vld [vmem:[#allocation22 + $0x760] ss:$8 sps:$4 sm:$0xff]  }
 0xbe5   :  { %v3379_v63 = vpack.c.bf16 %v3342_v62, %v3342_v62  ;;  %v9160_v62 = vld [vmem:[#allocation22 + $0x624] ss:$8 sps:$4 sm:$0xff]   ;;  %v9217_v56 = vld [vmem:[#allocation22 + $0x754] ss:$8 sps:$4 sm:$0xff]  }
 0xbe7   :  { %8036 = vmatprep.mubr.msk.bf16.mxu1 %vm583_vm3, %v3379_v63  ;;  %v9158_v63 = vld [vmem:[#allocation22 + $0x620] ss:$8 sps:$4 sm:$0xff]  }
 0xbe8   :  { %3591 = vmatmul.mubr.bf16.vlgmr.msra.gmra.mrb[24].mxu1 %v3378_v1  ;;  %v9163_v1 = vld [vmem:[#allocation22 + $0x634] ss:$8 sps:$4 sm:$0xff]  }
 0xbe9   :  { %4075 = vmatpush1.bf16.msra.mxu1 %v9104_v7  ;;  %v9172_v7 = vld [vmem:[#allocation22 + $0x664] ss:$8 sps:$4 sm:$0xff]  }
 0xbea   :  { %4076 = vmatprep.subr.bf16.mxu1 %v9109_v10  ;;  %v9175_v10 = vld [vmem:[#allocation22 + $0x674] ss:$8 sps:$4 sm:$0xff]  }
 0xbed   :  { %4077 = vmatpush1.bf16.msra.mxu1 %v9107_v14  ;;  %v9173_v14 = vld [vmem:[#allocation22 + $0x670] ss:$8 sps:$4 sm:$0xff]  }
 0xbee   :  { %4078 = vmatprep.subr.bf16.mxu1 %v9112_v15  ;;  %v9178_v15 = vld [vmem:[#allocation22 + $0x684] ss:$8 sps:$4 sm:$0xff]  }
 0xbf1   :  { %4079 = vmatpush1.bf16.msra.mxu1 %v9110_v16  ;;  %v9176_v16 = vld [vmem:[#allocation22 + $0x680] ss:$8 sps:$4 sm:$0xff]  }
 0xbf2   :  { %4080 = vmatprep.subr.bf16.mxu1 %v9115_v17  ;;  %v9181_v17 = vld [vmem:[#allocation22 + $0x694] ss:$8 sps:$4 sm:$0xff]  }
 0xbf5   :  { %4081 = vmatpush1.bf16.msra.mxu1 %v9113_v18  ;;  %v9179_v18 = vld [vmem:[#allocation22 + $0x690] ss:$8 sps:$4 sm:$0xff]  }
 0xbf6   :  { %4082 = vmatprep.subr.bf16.mxu1 %v9118_v19  ;;  %v9184_v19 = vld [vmem:[#allocation22 + $0x6a4] ss:$8 sps:$4 sm:$0xff]  }
 0xbf9   :  { %4083 = vmatpush1.bf16.msra.mxu1 %v9116_v20  ;;  %v9182_v20 = vld [vmem:[#allocation22 + $0x6a0] ss:$8 sps:$4 sm:$0xff]  }
 0xbfa   :  { %4084 = vmatprep.subr.bf16.mxu1 %v9121_v22  ;;  %v9187_v22 = vld [vmem:[#allocation22 + $0x6b4] ss:$8 sps:$4 sm:$0xff]  }
 0xbfd   :  { %4085 = vmatpush1.bf16.msra.mxu1 %v9119_v21  ;;  %v9185_v21 = vld [vmem:[#allocation22 + $0x6b0] ss:$8 sps:$4 sm:$0xff]  }
 0xbfe   :  { %4086 = vmatprep.subr.bf16.mxu1 %v9124_v24  ;;  %v9190_v24 = vld [vmem:[#allocation22 + $0x6c4] ss:$8 sps:$4 sm:$0xff]  }
 0xc01   :  { %4087 = vmatpush1.bf16.msra.mxu1 %v9122_v25  ;;  %v9188_v25 = vld [vmem:[#allocation22 + $0x6c0] ss:$8 sps:$4 sm:$0xff]  }
 0xc02   :  { %4088 = vmatprep.subr.bf16.mxu1 %v9127_v23  ;;  %v9193_v23 = vld [vmem:[#allocation22 + $0x6d4] ss:$8 sps:$4 sm:$0xff]  }
 0xc05   :  { %4089 = vmatpush1.bf16.msra.mxu1 %v9125_v26  ;;  %v9191_v26 = vld [vmem:[#allocation22 + $0x6d0] ss:$8 sps:$4 sm:$0xff]  }
 0xc06   :  { %4090 = vmatprep.subr.bf16.mxu1 %v9130_v27  ;;  %v3635_v27 = vld [vmem:[#allocation23 + $0x8] sm:$0x3] }
 0xc09   :  { %4091 = vmatpush1.bf16.msra.mxu1 %v9128_v28  ;;  %v3642_v28 = vrot.slane %v3635_v27, %v10676_v11 }
 0xc0a   :  { %4092 = vmatprep.subr.bf16.mxu1 %v9133_v29  ;;  %v3646_v29 = vrot.slane %v3635_v27, %v10679_v12 }
 0xc0d   :  { %4093 = vmatpush1.bf16.msra.mxu1 %v9131_v30 }
 0xc0e   :  { %4094 = vmatprep.subr.bf16.mxu1 %v9136_v31 }
 0xc11   :  { %4095 = vmatpush1.bf16.msra.mxu1 %v9134_v32 }
 0xc12   :  { %4096 = vmatprep.subr.bf16.mxu1 %v9139_v33 }
 0xc15   :  { %4097 = vmatpush1.bf16.msra.mxu1 %v9137_v34 }
 0xc16   :  { %4098 = vmatprep.subr.bf16.mxu1 %v9142_v35 }
 0xc19   :  { %4099 = vmatpush1.bf16.msra.mxu1 %v9140_v36 }
 0xc1a   :  { %4100 = vmatprep.subr.bf16.mxu1 %v9145_v37 }
 0xc1d   :  { %4101 = vmatpush1.bf16.msra.mxu1 %v9143_v38 }
 0xc1e   :  { %4102 = vmatprep.subr.bf16.mxu1 %v9148_v53  ;;  %v9209_v53 = vld [vmem:[#allocation22 + $0x730] ss:$8 sps:$4 sm:$0xff]  }
 0xc21   :  { %4103 = vmatpush1.bf16.msra.mxu1 %v9146_v54  ;;  %v9214_v54 = vld [vmem:[#allocation22 + $0x744] ss:$8 sps:$4 sm:$0xff]  }
 0xc22   :  { %8103 = vmatprep.subr.msk.bf16.mxu1 %vm587_vm2, %v9149_v55  ;;  %v9212_v55 = vld [vmem:[#allocation22 + $0x740] ss:$8 sps:$4 sm:$0xff]  }
 0xc25   :  { %4105 = vmatpush1.bf16.msra.mxu1 %v4069_v57  ;;  %v9215_v57 = vld [vmem:[#allocation22 + $0x750] ss:$8 sps:$4 sm:$0xff]  }
 0xcbb   :  { %v3592_v42 = vpop.f32.mrb[24].mxu1 }
 0xcbc   :  { %v3593_v43 = vadd.f32 %v3592_v42, %v3384_v40  ;;  %v3594_v45 = vpop.f32.mrb[25].mxu1  ;;  %v9196_v40 = vld [vmem:[#allocation22 + $0x6e4] ss:$8 sps:$4 sm:$0xff]   ;;  %v9197_v42 = vld [vmem:[#allocation22 + $0x6f4] ss:$8 sps:$4 sm:$0x1f]  }
 0xcbd   :  { %v3595_v46 = vadd.f32 %v3594_v45, %v3388_v41  ;;  %v3596_v47 = vpop.f32.mrb[26].mxu1  ;;  %v9194_v41 = vld [vmem:[#allocation22 + $0x6e0] ss:$8 sps:$4 sm:$0xff]  }
 0xcbe   :  { %v3599_v48 = vmax.f32 %v3593_v43, 0.0  ;;  %v3597_v49 = vpop.f32.mrb[27].mxu1  ;;  %v9199_v43 = vld [vmem:[#allocation22 + $0x6f0] ss:$8 sps:$4 sm:$0x1f]  }
 0xcbf   :  { %v3600_v50 = vmax.f32 %v3595_v46, 0.0  ;;  %v4327_v45 = vsel %vm587_vm2, %v9199_v43, 0  ;;  %v9200_v46 = vld [vmem:[#allocation22 + $0x700] ss:$8 sps:$4 sm:$0xff]   ;;  %v9202_v47 = vld [vmem:[#allocation22 + $0x704] ss:$8 sps:$4 sm:$0xff]  }
 0xcc0   :  { %v3636_v52 = vpack.c.bf16 %v3599_v48, %v3599_v48  ;;  %v9205_v48 = vld [vmem:[#allocation22 + $0x714] ss:$8 sps:$4 sm:$0xff]   ;;  %4590 = vmatprep.subr.bf16.mxu1 %v9202_v47  ;;  %v9203_v49 = vld [vmem:[#allocation22 + $0x710] ss:$8 sps:$4 sm:$0xff]   ;;  %v9266_v47 = vld [vmem:[#allocation22 + $0x860] ss:$8 sps:$4 sm:$0xff]  }
 0xcc1   :  { %v3637_v51 = vpack.c.bf16 %v3600_v50, %v3600_v50  ;;  %v9208_v50 = vld [vmem:[#allocation22 + $0x724] ss:$8 sps:$4 sm:$0xff]   ;;  %v9265_v43 = vld [vmem:[#allocation22 + $0x854] ss:$8 sps:$4 sm:$0xff]  }
 0xcc3   :  { %8070 = vmatprep.mubr.msk.bf16.mxu0 %vm583_vm3, %v3637_v51  ;;  %v9206_v51 = vld [vmem:[#allocation22 + $0x720] ss:$8 sps:$4 sm:$0xff]  }
 0xcc4   :  { %3849 = vmatmul.mubr.bf16.vlgmr.msra.gmra.mrb[36].mxu0 %v3636_v52  ;;  %v9211_v52 = vld [vmem:[#allocation22 + $0x734] ss:$8 sps:$4 sm:$0xff]  }
 0xcc5   :  { %4333 = vmatpush1.bf16.msra.mxu0 %v9152_v58  ;;  %v9220_v58 = vld [vmem:[#allocation22 + $0x764] ss:$8 sps:$4 sm:$0xff]  }
 0xcc6   :  { %4334 = vmatprep.subr.bf16.mxu0 %v9157_v60  ;;  %v9223_v60 = vld [vmem:[#allocation22 + $0x774] ss:$8 sps:$4 sm:$0xff]  }
 0xcc9   :  { %4335 = vmatpush1.bf16.msra.mxu0 %v9155_v61  ;;  %v9221_v61 = vld [vmem:[#allocation22 + $0x770] ss:$8 sps:$4 sm:$0xff]  }
 0xcca   :  { %4336 = vmatprep.subr.bf16.mxu0 %v9160_v62  ;;  %v9226_v62 = vld [vmem:[#allocation22 + $0x784] ss:$8 sps:$4 sm:$0xff]  }
 0xccd   :  { %4337 = vmatpush1.bf16.msra.mxu0 %v9158_v63  ;;  %v9224_v63 = vld [vmem:[#allocation22 + $0x780] ss:$8 sps:$4 sm:$0xff]  }
 0xcce   :  { %4338 = vmatprep.subr.bf16.mxu0 %v9163_v1  ;;  %v9229_v1 = vld [vmem:[#allocation22 + $0x794] ss:$8 sps:$4 sm:$0xff]  }
 0xcd1   :  { %4339 = vmatpush1.bf16.msra.mxu0 %v9161_v2  ;;  %v9227_v2 = vld [vmem:[#allocation22 + $0x790] ss:$8 sps:$4 sm:$0xff]  }
 0xcd2   :  { %4340 = vmatprep.subr.bf16.mxu0 %v9166_v3  ;;  %v9232_v3 = vld [vmem:[#allocation22 + $0x7a4] ss:$8 sps:$4 sm:$0xff]  }
 0xcd5   :  { %4341 = vmatpush1.bf16.msra.mxu0 %v9164_v4  ;;  %v9230_v4 = vld [vmem:[#allocation22 + $0x7a0] ss:$8 sps:$4 sm:$0xff]  }
 0xcd6   :  { %4342 = vmatprep.subr.bf16.mxu0 %v9169_v5  ;;  %v9235_v5 = vld [vmem:[#allocation22 + $0x7b4] ss:$8 sps:$4 sm:$0xff]  }
 0xcd9   :  { %4343 = vmatpush1.bf16.msra.mxu0 %v9167_v6  ;;  %v9233_v6 = vld [vmem:[#allocation22 + $0x7b0] ss:$8 sps:$4 sm:$0xff]  }
 0xcda   :  { %4344 = vmatprep.subr.bf16.mxu0 %v9172_v7  ;;  %v9238_v7 = vld [vmem:[#allocation22 + $0x7c4] ss:$8 sps:$4 sm:$0xff]  }
 0xcdd   :  { %4345 = vmatpush1.bf16.msra.mxu0 %v9170_v8  ;;  %v9236_v8 = vld [vmem:[#allocation22 + $0x7c0] ss:$8 sps:$4 sm:$0xff]  }
 0xcde   :  { %4346 = vmatprep.subr.bf16.mxu0 %v9175_v10  ;;  %v9241_v10 = vld [vmem:[#allocation22 + $0x7d4] ss:$8 sps:$4 sm:$0xff]  }
 0xce1   :  { %4347 = vmatpush1.bf16.msra.mxu0 %v9173_v14  ;;  %v9239_v14 = vld [vmem:[#allocation22 + $0x7d0] ss:$8 sps:$4 sm:$0xff]  }
 0xce2   :  { %4348 = vmatprep.subr.bf16.mxu0 %v9178_v15  ;;  %v3893_v15 = vld [vmem:[#allocation23 + $0xa] sm:$0x3] }
 0xce5   :  { %4349 = vmatpush1.bf16.msra.mxu0 %v9176_v16  ;;  %v3900_v16 = vrot.slane %v3893_v15, %v10676_v11 }
 0xce6   :  { %4350 = vmatprep.subr.bf16.mxu0 %v9181_v17  ;;  %v3904_v17 = vrot.slane %v3893_v15, %v10679_v12 }
 0xce9   :  { %4351 = vmatpush1.bf16.msra.mxu0 %v9179_v18 }
 0xcea   :  { %4352 = vmatprep.subr.bf16.mxu0 %v9184_v19 }
 0xced   :  { %4353 = vmatpush1.bf16.msra.mxu0 %v9182_v20 }
 0xcee   :  { %4354 = vmatprep.subr.bf16.mxu0 %v9187_v22 }
 0xcf1   :  { %4355 = vmatpush1.bf16.msra.mxu0 %v9185_v21 }
 0xcf2   :  { %4356 = vmatprep.subr.bf16.mxu0 %v9190_v24 }
 0xcf5   :  { %4357 = vmatpush1.bf16.msra.mxu0 %v9188_v25 }
 0xcf6   :  { %4358 = vmatprep.subr.bf16.mxu0 %v9193_v23 }
 0xcf9   :  { %4359 = vmatpush1.bf16.msra.mxu0 %v9191_v26 }
 0xcfa   :  { %4360 = vmatprep.subr.bf16.mxu0 %v9196_v40  ;;  %v9257_v40 = vld [vmem:[#allocation22 + $0x830] ss:$8 sps:$4 sm:$0xff]  }
 0xcfd   :  { %4361 = vmatpush1.bf16.msra.mxu0 %v9194_v41  ;;  %v9262_v41 = vld [vmem:[#allocation22 + $0x844] ss:$8 sps:$4 sm:$0xff]  }
 0xcfe   :  { %8137 = vmatprep.subr.msk.bf16.mxu0 %vm587_vm2, %v9197_v42  ;;  %v9260_v42 = vld [vmem:[#allocation22 + $0x840] ss:$8 sps:$4 sm:$0xff]  }
 0xd01   :  { %4363 = vmatpush1.bf16.msra.mxu0 %v4327_v45  ;;  %v9263_v45 = vld [vmem:[#allocation22 + $0x850] ss:$8 sps:$4 sm:$0xff]  }
 0xd97   :  { %v3850_v30 = vpop.f32.mrb[36].mxu0 }
 0xd98   :  { %v3851_v31 = vadd.f32 %v3850_v30, %v3642_v28  ;;  %v3852_v32 = vpop.f32.mrb[37].mxu0  ;;  %v9244_v28 = vld [vmem:[#allocation22 + $0x7e4] ss:$8 sps:$4 sm:$0xff]   ;;  %v9245_v30 = vld [vmem:[#allocation22 + $0x7f4] ss:$8 sps:$4 sm:$0x1f]  }
 0xd99   :  { %v3853_v33 = vadd.f32 %v3852_v32, %v3646_v29  ;;  %v3854_v34 = vpop.f32.mrb[38].mxu0  ;;  %v9242_v29 = vld [vmem:[#allocation22 + $0x7e0] ss:$8 sps:$4 sm:$0xff]  }
 0xd9a   :  { %v3857_v35 = vmax.f32 %v3851_v31, 0.0  ;;  %v3855_v36 = vpop.f32.mrb[39].mxu0  ;;  %v9247_v31 = vld [vmem:[#allocation22 + $0x7f0] ss:$8 sps:$4 sm:$0x1f]  }
 0xd9b   :  { %v3858_v37 = vmax.f32 %v3853_v33, 0.0  ;;  %v4585_v32 = vsel %vm587_vm2, %v9247_v31, 0  ;;  %v9248_v33 = vld [vmem:[#allocation22 + $0x800] ss:$8 sps:$4 sm:$0xff]   ;;  %v9250_v34 = vld [vmem:[#allocation22 + $0x804] ss:$8 sps:$4 sm:$0xff]  }
 0xd9c   :  { %v3894_v39 = vpack.c.bf16 %v3857_v35, %v3857_v35  ;;  %v9253_v35 = vld [vmem:[#allocation22 + $0x814] ss:$8 sps:$4 sm:$0xff]   ;;  %4848 = vmatprep.subr.bf16.mxu0 %v9250_v34  ;;  %v9251_v36 = vld [vmem:[#allocation22 + $0x810] ss:$8 sps:$4 sm:$0xff]   ;;  %v9314_v34 = vld [vmem:[#allocation22 + $0x960] ss:$8 sps:$4 sm:$0xff]  }
 0xd9d   :  { %v3895_v38 = vpack.c.bf16 %v3858_v37, %v3858_v37  ;;  %v9256_v37 = vld [vmem:[#allocation22 + $0x824] ss:$8 sps:$4 sm:$0xff]   ;;  %v9313_v31 = vld [vmem:[#allocation22 + $0x954] ss:$8 sps:$4 sm:$0xff]  }
 0xd9f   :  { %8104 = vmatprep.mubr.msk.bf16.mxu1 %vm583_vm3, %v3895_v38  ;;  %v9254_v38 = vld [vmem:[#allocation22 + $0x820] ss:$8 sps:$4 sm:$0xff]  }
 0xda0   :  { %4107 = vmatmul.mubr.bf16.vlgmr.msra.gmra.mrb[28].mxu1 %v3894_v39  ;;  %v9259_v39 = vld [vmem:[#allocation22 + $0x834] ss:$8 sps:$4 sm:$0xff]  }
 0xda1   :  { %4591 = vmatpush1.bf16.msra.mxu1 %v9200_v46  ;;  %v9268_v46 = vld [vmem:[#allocation22 + $0x864] ss:$8 sps:$4 sm:$0xff]  }
 0xda2   :  { %4592 = vmatprep.subr.bf16.mxu1 %v9205_v48  ;;  %v9271_v48 = vld [vmem:[#allocation22 + $0x874] ss:$8 sps:$4 sm:$0xff]  }
 0xda5   :  { %4593 = vmatpush1.bf16.msra.mxu1 %v9203_v49  ;;  %v9269_v49 = vld [vmem:[#allocation22 + $0x870] ss:$8 sps:$4 sm:$0xff]  }
 0xda6   :  { %4594 = vmatprep.subr.bf16.mxu1 %v9208_v50  ;;  %v9274_v50 = vld [vmem:[#allocation22 + $0x884] ss:$8 sps:$4 sm:$0xff]  }
 0xda9   :  { %4595 = vmatpush1.bf16.msra.mxu1 %v9206_v51  ;;  %v9272_v51 = vld [vmem:[#allocation22 + $0x880] ss:$8 sps:$4 sm:$0xff]  }
 0xdaa   :  { %4596 = vmatprep.subr.bf16.mxu1 %v9211_v52  ;;  %v9277_v52 = vld [vmem:[#allocation22 + $0x894] ss:$8 sps:$4 sm:$0xff]  }
 0xdad   :  { %4597 = vmatpush1.bf16.msra.mxu1 %v9209_v53  ;;  %v9275_v53 = vld [vmem:[#allocation22 + $0x890] ss:$8 sps:$4 sm:$0xff]  }
 0xdae   :  { %4598 = vmatprep.subr.bf16.mxu1 %v9214_v54  ;;  %v9280_v54 = vld [vmem:[#allocation22 + $0x8a4] ss:$8 sps:$4 sm:$0xff]  }
 0xdb1   :  { %4599 = vmatpush1.bf16.msra.mxu1 %v9212_v55  ;;  %v9278_v55 = vld [vmem:[#allocation22 + $0x8a0] ss:$8 sps:$4 sm:$0xff]  }
 0xdb2   :  { %4600 = vmatprep.subr.bf16.mxu1 %v9217_v56  ;;  %v9283_v56 = vld [vmem:[#allocation22 + $0x8b4] ss:$8 sps:$4 sm:$0xff]  }
 0xdb5   :  { %4601 = vmatpush1.bf16.msra.mxu1 %v9215_v57  ;;  %v9281_v57 = vld [vmem:[#allocation22 + $0x8b0] ss:$8 sps:$4 sm:$0xff]  }
 0xdb6   :  { %4602 = vmatprep.subr.bf16.mxu1 %v9220_v58  ;;  %v9286_v58 = vld [vmem:[#allocation22 + $0x8c4] ss:$8 sps:$4 sm:$0xff]  }
 0xdb9   :  { %4603 = vmatpush1.bf16.msra.mxu1 %v9218_v59  ;;  %v9284_v59 = vld [vmem:[#allocation22 + $0x8c0] ss:$8 sps:$4 sm:$0xff]  }
 0xdba   :  { %4604 = vmatprep.subr.bf16.mxu1 %v9223_v60  ;;  %v9289_v60 = vld [vmem:[#allocation22 + $0x8d4] ss:$8 sps:$4 sm:$0xff]  }
 0xdbd   :  { %4605 = vmatpush1.bf16.msra.mxu1 %v9221_v61  ;;  %v9287_v61 = vld [vmem:[#allocation22 + $0x8d0] ss:$8 sps:$4 sm:$0xff]  }
 0xdbe   :  { %4606 = vmatprep.subr.bf16.mxu1 %v9226_v62  ;;  %v4151_v62 = vld [vmem:[#allocation23 + $0xc] sm:$0x3] }
 0xdc1   :  { %4607 = vmatpush1.bf16.msra.mxu1 %v9224_v63  ;;  %v4158_v63 = vrot.slane %v4151_v62, %v10676_v11 }
 0xdc2   :  { %4608 = vmatprep.subr.bf16.mxu1 %v9229_v1  ;;  %v4162_v1 = vrot.slane %v4151_v62, %v10679_v12 }
 0xdc5   :  { %4609 = vmatpush1.bf16.msra.mxu1 %v9227_v2 }
 0xdc6   :  { %4610 = vmatprep.subr.bf16.mxu1 %v9232_v3 }
 0xdc9   :  { %4611 = vmatpush1.bf16.msra.mxu1 %v9230_v4 }
 0xdca   :  { %4612 = vmatprep.subr.bf16.mxu1 %v9235_v5 }
 0xdcd   :  { %4613 = vmatpush1.bf16.msra.mxu1 %v9233_v6 }
 0xdce   :  { %4614 = vmatprep.subr.bf16.mxu1 %v9238_v7 }
 0xdd1   :  { %4615 = vmatpush1.bf16.msra.mxu1 %v9236_v8 }
 0xdd2   :  { %4616 = vmatprep.subr.bf16.mxu1 %v9241_v10 }
 0xdd5   :  { %4617 = vmatpush1.bf16.msra.mxu1 %v9239_v14 }
 0xdd6   :  { %4618 = vmatprep.subr.bf16.mxu1 %v9244_v28  ;;  %v9305_v28 = vld [vmem:[#allocation22 + $0x930] ss:$8 sps:$4 sm:$0xff]  }
 0xdd9   :  { %4619 = vmatpush1.bf16.msra.mxu1 %v9242_v29  ;;  %v9310_v29 = vld [vmem:[#allocation22 + $0x944] ss:$8 sps:$4 sm:$0xff]  }
 0xdda   :  { %8171 = vmatprep.subr.msk.bf16.mxu1 %vm587_vm2, %v9245_v30  ;;  %v9308_v30 = vld [vmem:[#allocation22 + $0x940] ss:$8 sps:$4 sm:$0xff]  }
 0xddd   :  { %4621 = vmatpush1.bf16.msra.mxu1 %v4585_v32  ;;  %v9311_v32 = vld [vmem:[#allocation22 + $0x950] ss:$8 sps:$4 sm:$0xff]  }
 0xe73   :  { %v4108_v18 = vpop.f32.mrb[28].mxu1 }
 0xe74   :  { %v4109_v19 = vadd.f32 %v4108_v18, %v3900_v16  ;;  %v4110_v20 = vpop.f32.mrb[29].mxu1  ;;  %v9292_v16 = vld [vmem:[#allocation22 + $0x8e4] ss:$8 sps:$4 sm:$0xff]   ;;  %v9293_v18 = vld [vmem:[#allocation22 + $0x8f4] ss:$8 sps:$4 sm:$0x1f]  }
 0xe75   :  { %v4111_v22 = vadd.f32 %v4110_v20, %v3904_v17  ;;  %v4112_v21 = vpop.f32.mrb[30].mxu1  ;;  %v9290_v17 = vld [vmem:[#allocation22 + $0x8e0] ss:$8 sps:$4 sm:$0xff]  }
 0xe76   :  { %v4115_v24 = vmax.f32 %v4109_v19, 0.0  ;;  %v4113_v25 = vpop.f32.mrb[31].mxu1  ;;  %v9295_v19 = vld [vmem:[#allocation22 + $0x8f0] ss:$8 sps:$4 sm:$0x1f]  }
 0xe77   :  { %v4116_v23 = vmax.f32 %v4111_v22, 0.0  ;;  %v4843_v20 = vsel %vm587_vm2, %v9295_v19, 0  ;;  %v9296_v22 = vld [vmem:[#allocation22 + $0x900] ss:$8 sps:$4 sm:$0xff]   ;;  %v9298_v21 = vld [vmem:[#allocation22 + $0x904] ss:$8 sps:$4 sm:$0xff]  }
 0xe78   :  { %v4152_v27 = vpack.c.bf16 %v4115_v24, %v4115_v24  ;;  %v9301_v24 = vld [vmem:[#allocation22 + $0x914] ss:$8 sps:$4 sm:$0xff]   ;;  %5106 = vmatprep.subr.bf16.mxu1 %v9298_v21  ;;  %v9299_v25 = vld [vmem:[#allocation22 + $0x910] ss:$8 sps:$4 sm:$0xff]   ;;  %v9362_v21 = vld [vmem:[#allocation22 + $0xa60] ss:$8 sps:$4 sm:$0xff]  }
 0xe79   :  { %v4153_v26 = vpack.c.bf16 %v4116_v23, %v4116_v23  ;;  %v9304_v23 = vld [vmem:[#allocation22 + $0x924] ss:$8 sps:$4 sm:$0xff]   ;;  %v9361_v19 = vld [vmem:[#allocation22 + $0xa54] ss:$8 sps:$4 sm:$0xff]  }
 0xe7b   :  { %8138 = vmatprep.mubr.msk.bf16.mxu0 %vm583_vm3, %v4153_v26  ;;  %v9302_v26 = vld [vmem:[#allocation22 + $0x920] ss:$8 sps:$4 sm:$0xff]  }
 0xe7c   :  { %4365 = vmatmul.mubr.bf16.vlgmr.msra.gmra.mrb[40].mxu0 %v4152_v27  ;;  %v9307_v27 = vld [vmem:[#allocation22 + $0x934] ss:$8 sps:$4 sm:$0xff]  }
 0xe7d   :  { %4849 = vmatpush1.bf16.msra.mxu0 %v9248_v33  ;;  %v9316_v33 = vld [vmem:[#allocation22 + $0x964] ss:$8 sps:$4 sm:$0xff]  }
 0xe7e   :  { %4850 = vmatprep.subr.bf16.mxu0 %v9253_v35  ;;  %v9319_v35 = vld [vmem:[#allocation22 + $0x974] ss:$8 sps:$4 sm:$0xff]  }
 0xe81   :  { %4851 = vmatpush1.bf16.msra.mxu0 %v9251_v36  ;;  %v9317_v36 = vld [vmem:[#allocation22 + $0x970] ss:$8 sps:$4 sm:$0xff]  }
 0xe82   :  { %4852 = vmatprep.subr.bf16.mxu0 %v9256_v37  ;;  %v9322_v37 = vld [vmem:[#allocation22 + $0x984] ss:$8 sps:$4 sm:$0xff]  }
 0xe85   :  { %4853 = vmatpush1.bf16.msra.mxu0 %v9254_v38  ;;  %v9320_v38 = vld [vmem:[#allocation22 + $0x980] ss:$8 sps:$4 sm:$0xff]  }
 0xe86   :  { %4854 = vmatprep.subr.bf16.mxu0 %v9259_v39  ;;  %v9325_v39 = vld [vmem:[#allocation22 + $0x994] ss:$8 sps:$4 sm:$0xff]  }
 0xe89   :  { %4855 = vmatpush1.bf16.msra.mxu0 %v9257_v40  ;;  %v9323_v40 = vld [vmem:[#allocation22 + $0x990] ss:$8 sps:$4 sm:$0xff]  }
 0xe8a   :  { %4856 = vmatprep.subr.bf16.mxu0 %v9262_v41  ;;  %v9328_v41 = vld [vmem:[#allocation22 + $0x9a4] ss:$8 sps:$4 sm:$0xff]  }
 0xe8d   :  { %4857 = vmatpush1.bf16.msra.mxu0 %v9260_v42  ;;  %v9326_v42 = vld [vmem:[#allocation22 + $0x9a0] ss:$8 sps:$4 sm:$0xff]  }
 0xe8e   :  { %4858 = vmatprep.subr.bf16.mxu0 %v9265_v43  ;;  %v9331_v43 = vld [vmem:[#allocation22 + $0x9b4] ss:$8 sps:$4 sm:$0xff]  }
 0xe91   :  { %4859 = vmatpush1.bf16.msra.mxu0 %v9263_v45  ;;  %v9329_v45 = vld [vmem:[#allocation22 + $0x9b0] ss:$8 sps:$4 sm:$0xff]  }
 0xe92   :  { %4860 = vmatprep.subr.bf16.mxu0 %v9268_v46  ;;  %v9334_v46 = vld [vmem:[#allocation22 + $0x9c4] ss:$8 sps:$4 sm:$0xff]  }
 0xe95   :  { %4861 = vmatpush1.bf16.msra.mxu0 %v9266_v47  ;;  %v9332_v47 = vld [vmem:[#allocation22 + $0x9c0] ss:$8 sps:$4 sm:$0xff]  }
 0xe96   :  { %4862 = vmatprep.subr.bf16.mxu0 %v9271_v48  ;;  %v9337_v48 = vld [vmem:[#allocation22 + $0x9d4] ss:$8 sps:$4 sm:$0xff]  }
 0xe99   :  { %4863 = vmatpush1.bf16.msra.mxu0 %v9269_v49  ;;  %v9335_v49 = vld [vmem:[#allocation22 + $0x9d0] ss:$8 sps:$4 sm:$0xff]  }
 0xe9a   :  { %4864 = vmatprep.subr.bf16.mxu0 %v9274_v50  ;;  %v4409_v50 = vld [vmem:[#allocation23 + $0xe] sm:$0x3] }
 0xe9d   :  { %4865 = vmatpush1.bf16.msra.mxu0 %v9272_v51  ;;  %v4416_v51 = vrot.slane %v4409_v50, %v10676_v11 }
 0xe9e   :  { %4866 = vmatprep.subr.bf16.mxu0 %v9277_v52  ;;  %v4420_v52 = vrot.slane %v4409_v50, %v10679_v12 }
 0xea1   :  { %4867 = vmatpush1.bf16.msra.mxu0 %v9275_v53 }
 0xea2   :  { %4868 = vmatprep.subr.bf16.mxu0 %v9280_v54 }
 0xea5   :  { %4869 = vmatpush1.bf16.msra.mxu0 %v9278_v55 }
 0xea6   :  { %4870 = vmatprep.subr.bf16.mxu0 %v9283_v56 }
 0xea9   :  { %4871 = vmatpush1.bf16.msra.mxu0 %v9281_v57 }
 0xeaa   :  { %4872 = vmatprep.subr.bf16.mxu0 %v9286_v58 }
 0xead   :  { %4873 = vmatpush1.bf16.msra.mxu0 %v9284_v59 }
 0xeae   :  { %4874 = vmatprep.subr.bf16.mxu0 %v9289_v60 }
 0xeb1   :  { %4875 = vmatpush1.bf16.msra.mxu0 %v9287_v61 }
 0xeb2   :  { %4876 = vmatprep.subr.bf16.mxu0 %v9292_v16  ;;  %v9353_v16 = vld [vmem:[#allocation22 + $0xa30] ss:$8 sps:$4 sm:$0xff]  }
 0xeb5   :  { %4877 = vmatpush1.bf16.msra.mxu0 %v9290_v17  ;;  %v9358_v17 = vld [vmem:[#allocation22 + $0xa44] ss:$8 sps:$4 sm:$0xff]  }
 0xeb6   :  { %8205 = vmatprep.subr.msk.bf16.mxu0 %vm587_vm2, %v9293_v18  ;;  %v9356_v18 = vld [vmem:[#allocation22 + $0xa40] ss:$8 sps:$4 sm:$0xff]  }
 0xeb9   :  { %4879 = vmatpush1.bf16.msra.mxu0 %v4843_v20  ;;  %v9359_v20 = vld [vmem:[#allocation22 + $0xa50] ss:$8 sps:$4 sm:$0xff]  }
 0xf4f   :  { %v4366_v2 = vpop.f32.mrb[40].mxu0 }
 0xf50   :  { %v4367_v3 = vadd.f32 %v4366_v2, %v4158_v63  ;;  %v4368_v4 = vpop.f32.mrb[41].mxu0  ;;  %v9340_v63 = vld [vmem:[#allocation22 + $0x9e4] ss:$8 sps:$4 sm:$0xff]   ;;  %v9341_v2 = vld [vmem:[#allocation22 + $0x9f4] ss:$8 sps:$4 sm:$0x1f]  }
 0xf51   :  { %v4369_v5 = vadd.f32 %v4368_v4, %v4162_v1  ;;  %v4370_v6 = vpop.f32.mrb[42].mxu0  ;;  %v9338_v1 = vld [vmem:[#allocation22 + $0x9e0] ss:$8 sps:$4 sm:$0xff]  }
 0xf52   :  { %v4373_v7 = vmax.f32 %v4367_v3, 0.0  ;;  %v4371_v8 = vpop.f32.mrb[43].mxu0  ;;  %v9343_v3 = vld [vmem:[#allocation22 + $0x9f0] ss:$8 sps:$4 sm:$0x1f]  }
 0xf53   :  { %v4374_v10 = vmax.f32 %v4369_v5, 0.0  ;;  %v5101_v4 = vsel %vm587_vm2, %v9343_v3, 0  ;;  %v9344_v5 = vld [vmem:[#allocation22 + $0xa00] ss:$8 sps:$4 sm:$0xff]   ;;  %v9346_v6 = vld [vmem:[#allocation22 + $0xa04] ss:$8 sps:$4 sm:$0xff]  }
 0xf54   :  { %v4410_v15 = vpack.c.bf16 %v4373_v7, %v4373_v7  ;;  %v9349_v7 = vld [vmem:[#allocation22 + $0xa14] ss:$8 sps:$4 sm:$0xff]   ;;  %5364 = vmatprep.subr.bf16.mxu0 %v9346_v6  ;;  %v9347_v8 = vld [vmem:[#allocation22 + $0xa10] ss:$8 sps:$4 sm:$0xff]   ;;  %v9410_v6 = vld [vmem:[#allocation22 + $0xb60] ss:$8 sps:$4 sm:$0xff]  }
 0xf55   :  { %v4411_v14 = vpack.c.bf16 %v4374_v10, %v4374_v10  ;;  %v9352_v10 = vld [vmem:[#allocation22 + $0xa24] ss:$8 sps:$4 sm:$0xff]   ;;  %v9409_v3 = vld [vmem:[#allocation22 + $0xb54] ss:$8 sps:$4 sm:$0xff]  }
 0xf57   :  { %8172 = vmatprep.mubr.msk.bf16.mxu1 %vm583_vm3, %v4411_v14  ;;  %v9350_v14 = vld [vmem:[#allocation22 + $0xa20] ss:$8 sps:$4 sm:$0xff]  }
 0xf58   :  { %4623 = vmatmul.mubr.bf16.vlgmr.msra.gmra.mrb[32].mxu1 %v4410_v15  ;;  %v9355_v15 = vld [vmem:[#allocation22 + $0xa34] ss:$8 sps:$4 sm:$0xff]  }
 0xf59   :  { %5107 = vmatpush1.bf16.msra.mxu1 %v9296_v22  ;;  %v9364_v22 = vld [vmem:[#allocation22 + $0xa64] ss:$8 sps:$4 sm:$0xff]  }
 0xf5a   :  { %5108 = vmatprep.subr.bf16.mxu1 %v9301_v24  ;;  %v9367_v24 = vld [vmem:[#allocation22 + $0xa74] ss:$8 sps:$4 sm:$0xff]  }
 0xf5d   :  { %5109 = vmatpush1.bf16.msra.mxu1 %v9299_v25  ;;  %v9365_v25 = vld [vmem:[#allocation22 + $0xa70] ss:$8 sps:$4 sm:$0xff]  }
 0xf5e   :  { %5110 = vmatprep.subr.bf16.mxu1 %v9304_v23  ;;  %v9370_v23 = vld [vmem:[#allocation22 + $0xa84] ss:$8 sps:$4 sm:$0xff]  }
 0xf61   :  { %5111 = vmatpush1.bf16.msra.mxu1 %v9302_v26  ;;  %v9368_v26 = vld [vmem:[#allocation22 + $0xa80] ss:$8 sps:$4 sm:$0xff]  }
 0xf62   :  { %5112 = vmatprep.subr.bf16.mxu1 %v9307_v27  ;;  %v9373_v27 = vld [vmem:[#allocation22 + $0xa94] ss:$8 sps:$4 sm:$0xff]  }
 0xf65   :  { %5113 = vmatpush1.bf16.msra.mxu1 %v9305_v28  ;;  %v9371_v28 = vld [vmem:[#allocation22 + $0xa90] ss:$8 sps:$4 sm:$0xff]  }
 0xf66   :  { %5114 = vmatprep.subr.bf16.mxu1 %v9310_v29  ;;  %v9376_v29 = vld [vmem:[#allocation22 + $0xaa4] ss:$8 sps:$4 sm:$0xff]  }
 0xf69   :  { %5115 = vmatpush1.bf16.msra.mxu1 %v9308_v30  ;;  %v9374_v30 = vld [vmem:[#allocation22 + $0xaa0] ss:$8 sps:$4 sm:$0xff]  }
 0xf6a   :  { %5116 = vmatprep.subr.bf16.mxu1 %v9313_v31  ;;  %v9379_v31 = vld [vmem:[#allocation22 + $0xab4] ss:$8 sps:$4 sm:$0xff]  }
 0xf6d   :  { %5117 = vmatpush1.bf16.msra.mxu1 %v9311_v32  ;;  %v9377_v32 = vld [vmem:[#allocation22 + $0xab0] ss:$8 sps:$4 sm:$0xff]  }
 0xf6e   :  { %5118 = vmatprep.subr.bf16.mxu1 %v9316_v33  ;;  %v9382_v33 = vld [vmem:[#allocation22 + $0xac4] ss:$8 sps:$4 sm:$0xff]  }
 0xf71   :  { %5119 = vmatpush1.bf16.msra.mxu1 %v9314_v34  ;;  %v9380_v34 = vld [vmem:[#allocation22 + $0xac0] ss:$8 sps:$4 sm:$0xff]  }
 0xf72   :  { %5120 = vmatprep.subr.bf16.mxu1 %v9319_v35  ;;  %v9385_v35 = vld [vmem:[#allocation22 + $0xad4] ss:$8 sps:$4 sm:$0xff]  }
 0xf75   :  { %5121 = vmatpush1.bf16.msra.mxu1 %v9317_v36  ;;  %v9383_v36 = vld [vmem:[#allocation22 + $0xad0] ss:$8 sps:$4 sm:$0xff]  }
 0xf76   :  { %5122 = vmatprep.subr.bf16.mxu1 %v9322_v37  ;;  %v4667_v37 = vld [vmem:[#allocation23 + $0x10] sm:$0x3] }
 0xf79   :  { %5123 = vmatpush1.bf16.msra.mxu1 %v9320_v38  ;;  %v4674_v38 = vrot.slane %v4667_v37, %v10676_v11 }
 0xf7a   :  { %5124 = vmatprep.subr.bf16.mxu1 %v9325_v39  ;;  %v4678_v39 = vrot.slane %v4667_v37, %v10679_v12 }
 0xf7d   :  { %5125 = vmatpush1.bf16.msra.mxu1 %v9323_v40 }
 0xf7e   :  { %5126 = vmatprep.subr.bf16.mxu1 %v9328_v41 }
 0xf81   :  { %5127 = vmatpush1.bf16.msra.mxu1 %v9326_v42 }
 0xf82   :  { %5128 = vmatprep.subr.bf16.mxu1 %v9331_v43 }
 0xf85   :  { %5129 = vmatpush1.bf16.msra.mxu1 %v9329_v45 }
 0xf86   :  { %5130 = vmatprep.subr.bf16.mxu1 %v9334_v46 }
 0xf89   :  { %5131 = vmatpush1.bf16.msra.mxu1 %v9332_v47 }
 0xf8a   :  { %5132 = vmatprep.subr.bf16.mxu1 %v9337_v48 }
 0xf8d   :  { %5133 = vmatpush1.bf16.msra.mxu1 %v9335_v49 }
 0xf8e   :  { %5134 = vmatprep.subr.bf16.mxu1 %v9340_v63  ;;  %v9401_v63 = vld [vmem:[#allocation22 + $0xb30] ss:$8 sps:$4 sm:$0xff]  }
 0xf91   :  { %5135 = vmatpush1.bf16.msra.mxu1 %v9338_v1  ;;  %v9406_v1 = vld [vmem:[#allocation22 + $0xb44] ss:$8 sps:$4 sm:$0xff]  }
 0xf92   :  { %8239 = vmatprep.subr.msk.bf16.mxu1 %vm587_vm2, %v9341_v2  ;;  %v9404_v2 = vld [vmem:[#allocation22 + $0xb40] ss:$8 sps:$4 sm:$0xff]  }
 0xf95   :  { %5137 = vmatpush1.bf16.msra.mxu1 %v5101_v4  ;;  %v9407_v4 = vld [vmem:[#allocation22 + $0xb50] ss:$8 sps:$4 sm:$0xff]  }
0x102b   :  { %v4624_v53 = vpop.f32.mrb[32].mxu1 }
0x102c   :  { %v4625_v54 = vadd.f32 %v4624_v53, %v4416_v51  ;;  %v4626_v55 = vpop.f32.mrb[33].mxu1  ;;  %v9388_v51 = vld [vmem:[#allocation22 + $0xae4] ss:$8 sps:$4 sm:$0xff]   ;;  %v9389_v53 = vld [vmem:[#allocation22 + $0xaf4] ss:$8 sps:$4 sm:$0x1f]  }
0x102d   :  { %v4627_v56 = vadd.f32 %v4626_v55, %v4420_v52  ;;  %v4628_v57 = vpop.f32.mrb[34].mxu1  ;;  %v9386_v52 = vld [vmem:[#allocation22 + $0xae0] ss:$8 sps:$4 sm:$0xff]  }
0x102e   :  { %v4631_v58 = vmax.f32 %v4625_v54, 0.0  ;;  %v4629_v59 = vpop.f32.mrb[35].mxu1  ;;  %v9391_v54 = vld [vmem:[#allocation22 + $0xaf0] ss:$8 sps:$4 sm:$0x1f]  }
0x102f   :  { %v4632_v60 = vmax.f32 %v4627_v56, 0.0  ;;  %v5359_v55 = vsel %vm587_vm2, %v9391_v54, 0  ;;  %v9392_v56 = vld [vmem:[#allocation22 + $0xb00] ss:$8 sps:$4 sm:$0xff]   ;;  %v9394_v57 = vld [vmem:[#allocation22 + $0xb04] ss:$8 sps:$4 sm:$0xff]  }
0x1030   :  { %v4668_v62 = vpack.c.bf16 %v4631_v58, %v4631_v58  ;;  %v9397_v58 = vld [vmem:[#allocation22 + $0xb14] ss:$8 sps:$4 sm:$0xff]   ;;  %5622 = vmatprep.subr.bf16.mxu1 %v9394_v57  ;;  %v9395_v59 = vld [vmem:[#allocation22 + $0xb10] ss:$8 sps:$4 sm:$0xff]   ;;  %v9458_v57 = vld [vmem:[#allocation22 + $0xc60] ss:$8 sps:$4 sm:$0xff]  }
0x1031   :  { %v4669_v61 = vpack.c.bf16 %v4632_v60, %v4632_v60  ;;  %v9400_v60 = vld [vmem:[#allocation22 + $0xb24] ss:$8 sps:$4 sm:$0xff]   ;;  %v9457_v54 = vld [vmem:[#allocation22 + $0xc54] ss:$8 sps:$4 sm:$0xff]  }
0x1033   :  { %8206 = vmatprep.mubr.msk.bf16.mxu0 %vm583_vm3, %v4669_v61  ;;  %v9398_v61 = vld [vmem:[#allocation22 + $0xb20] ss:$8 sps:$4 sm:$0xff]  }
0x1034   :  { %4881 = vmatmul.mubr.bf16.vlgmr.msra.gmra.mrb[44].mxu0 %v4668_v62  ;;  %v9403_v62 = vld [vmem:[#allocation22 + $0xb34] ss:$8 sps:$4 sm:$0xff]  }
0x1035   :  { %5365 = vmatpush1.bf16.msra.mxu0 %v9344_v5  ;;  %v9412_v5 = vld [vmem:[#allocation22 + $0xb64] ss:$8 sps:$4 sm:$0xff]  }
0x1036   :  { %5366 = vmatprep.subr.bf16.mxu0 %v9349_v7  ;;  %v9415_v7 = vld [vmem:[#allocation22 + $0xb74] ss:$8 sps:$4 sm:$0xff]  }
0x1039   :  { %5367 = vmatpush1.bf16.msra.mxu0 %v9347_v8  ;;  %v9413_v8 = vld [vmem:[#allocation22 + $0xb70] ss:$8 sps:$4 sm:$0xff]  }
0x103a   :  { %5368 = vmatprep.subr.bf16.mxu0 %v9352_v10  ;;  %v9418_v10 = vld [vmem:[#allocation22 + $0xb84] ss:$8 sps:$4 sm:$0xff]  }
0x103d   :  { %5369 = vmatpush1.bf16.msra.mxu0 %v9350_v14  ;;  %v9416_v14 = vld [vmem:[#allocation22 + $0xb80] ss:$8 sps:$4 sm:$0xff]  }
0x103e   :  { %5370 = vmatprep.subr.bf16.mxu0 %v9355_v15  ;;  %v9421_v15 = vld [vmem:[#allocation22 + $0xb94] ss:$8 sps:$4 sm:$0xff]  }
0x1041   :  { %5371 = vmatpush1.bf16.msra.mxu0 %v9353_v16  ;;  %v9419_v16 = vld [vmem:[#allocation22 + $0xb90] ss:$8 sps:$4 sm:$0xff]  }
0x1042   :  { %5372 = vmatprep.subr.bf16.mxu0 %v9358_v17  ;;  %v9424_v17 = vld [vmem:[#allocation22 + $0xba4] ss:$8 sps:$4 sm:$0xff]  }
0x1045   :  { %5373 = vmatpush1.bf16.msra.mxu0 %v9356_v18  ;;  %v9422_v18 = vld [vmem:[#allocation22 + $0xba0] ss:$8 sps:$4 sm:$0xff]  }
0x1046   :  { %5374 = vmatprep.subr.bf16.mxu0 %v9361_v19  ;;  %v9427_v19 = vld [vmem:[#allocation22 + $0xbb4] ss:$8 sps:$4 sm:$0xff]  }
0x1049   :  { %5375 = vmatpush1.bf16.msra.mxu0 %v9359_v20  ;;  %v9425_v20 = vld [vmem:[#allocation22 + $0xbb0] ss:$8 sps:$4 sm:$0xff]  }
0x104a   :  { %5376 = vmatprep.subr.bf16.mxu0 %v9364_v22  ;;  %v9430_v22 = vld [vmem:[#allocation22 + $0xbc4] ss:$8 sps:$4 sm:$0xff]  }
0x104d   :  { %5377 = vmatpush1.bf16.msra.mxu0 %v9362_v21  ;;  %v9428_v21 = vld [vmem:[#allocation22 + $0xbc0] ss:$8 sps:$4 sm:$0xff]  }
0x104e   :  { %5378 = vmatprep.subr.bf16.mxu0 %v9367_v24  ;;  %v9433_v24 = vld [vmem:[#allocation22 + $0xbd4] ss:$8 sps:$4 sm:$0xff]  }
0x1051   :  { %5379 = vmatpush1.bf16.msra.mxu0 %v9365_v25  ;;  %v9431_v25 = vld [vmem:[#allocation22 + $0xbd0] ss:$8 sps:$4 sm:$0xff]  }
0x1052   :  { %5380 = vmatprep.subr.bf16.mxu0 %v9370_v23  ;;  %v4925_v23 = vld [vmem:[#allocation23 + $0x12] sm:$0x3] }
0x1055   :  { %5381 = vmatpush1.bf16.msra.mxu0 %v9368_v26  ;;  %v4932_v26 = vrot.slane %v4925_v23, %v10676_v11 }
0x1056   :  { %5382 = vmatprep.subr.bf16.mxu0 %v9373_v27  ;;  %v4936_v27 = vrot.slane %v4925_v23, %v10679_v12 }
0x1059   :  { %5383 = vmatpush1.bf16.msra.mxu0 %v9371_v28 }
0x105a   :  { %5384 = vmatprep.subr.bf16.mxu0 %v9376_v29 }
0x105d   :  { %5385 = vmatpush1.bf16.msra.mxu0 %v9374_v30 }
0x105e   :  { %5386 = vmatprep.subr.bf16.mxu0 %v9379_v31 }
0x1061   :  { %5387 = vmatpush1.bf16.msra.mxu0 %v9377_v32 }
0x1062   :  { %5388 = vmatprep.subr.bf16.mxu0 %v9382_v33 }
0x1065   :  { %5389 = vmatpush1.bf16.msra.mxu0 %v9380_v34 }
0x1066   :  { %5390 = vmatprep.subr.bf16.mxu0 %v9385_v35 }
0x1069   :  { %5391 = vmatpush1.bf16.msra.mxu0 %v9383_v36 }
0x106a   :  { %5392 = vmatprep.subr.bf16.mxu0 %v9388_v51  ;;  %v9449_v51 = vld [vmem:[#allocation22 + $0xc30] ss:$8 sps:$4 sm:$0xff]  }
0x106d   :  { %5393 = vmatpush1.bf16.msra.mxu0 %v9386_v52  ;;  %v9454_v52 = vld [vmem:[#allocation22 + $0xc44] ss:$8 sps:$4 sm:$0xff]  }
0x106e   :  { %8273 = vmatprep.subr.msk.bf16.mxu0 %vm587_vm2, %v9389_v53  ;;  %v9452_v53 = vld [vmem:[#allocation22 + $0xc40] ss:$8 sps:$4 sm:$0xff]  }
0x1071   :  { %5395 = vmatpush1.bf16.msra.mxu0 %v5359_v55  ;;  %v9455_v55 = vld [vmem:[#allocation22 + $0xc50] ss:$8 sps:$4 sm:$0xff]  }
0x1107   :  { %v4882_v40 = vpop.f32.mrb[44].mxu0 }
0x1108   :  { %v4883_v41 = vadd.f32 %v4882_v40, %v4674_v38  ;;  %v4884_v42 = vpop.f32.mrb[45].mxu0  ;;  %v9436_v38 = vld [vmem:[#allocation22 + $0xbe4] ss:$8 sps:$4 sm:$0xff]   ;;  %v9437_v40 = vld [vmem:[#allocation22 + $0xbf4] ss:$8 sps:$4 sm:$0x1f]  }
0x1109   :  { %v4885_v43 = vadd.f32 %v4884_v42, %v4678_v39  ;;  %v4886_v45 = vpop.f32.mrb[46].mxu0  ;;  %v9434_v39 = vld [vmem:[#allocation22 + $0xbe0] ss:$8 sps:$4 sm:$0xff]  }
0x110a   :  { %v4889_v46 = vmax.f32 %v4883_v41, 0.0  ;;  %v4887_v47 = vpop.f32.mrb[47].mxu0  ;;  %v9439_v41 = vld [vmem:[#allocation22 + $0xbf0] ss:$8 sps:$4 sm:$0x1f]  }
0x110b   :  { %v4890_v48 = vmax.f32 %v4885_v43, 0.0  ;;  %v5617_v42 = vsel %vm587_vm2, %v9439_v41, 0  ;;  %v9440_v43 = vld [vmem:[#allocation22 + $0xc00] ss:$8 sps:$4 sm:$0xff]   ;;  %v9442_v45 = vld [vmem:[#allocation22 + $0xc04] ss:$8 sps:$4 sm:$0xff]  }
0x110c   :  { %v4926_v50 = vpack.c.bf16 %v4889_v46, %v4889_v46  ;;  %v9445_v46 = vld [vmem:[#allocation22 + $0xc14] ss:$8 sps:$4 sm:$0xff]   ;;  %5880 = vmatprep.subr.bf16.mxu0 %v9442_v45  ;;  %v9443_v47 = vld [vmem:[#allocation22 + $0xc10] ss:$8 sps:$4 sm:$0xff]  }
0x110d   :  { %v4927_v49 = vpack.c.bf16 %v4890_v48, %v4890_v48  ;;  %v9448_v48 = vld [vmem:[#allocation22 + $0xc24] ss:$8 sps:$4 sm:$0xff]  }
0x110f   :  { %8240 = vmatprep.mubr.msk.bf16.mxu1 %vm583_vm3, %v4927_v49  ;;  %v9446_v49 = vld [vmem:[#allocation22 + $0xc20] ss:$8 sps:$4 sm:$0xff]  }
0x1110   :  { %5139 = vmatmul.mubr.bf16.vlgmr.msra.gmra.mrb[36].mxu1 %v4926_v50  ;;  %v9451_v50 = vld [vmem:[#allocation22 + $0xc34] ss:$8 sps:$4 sm:$0xff]  }
0x1111   :  { %5623 = vmatpush1.bf16.msra.mxu1 %v9392_v56  ;;  %v9460_v56 = vld [vmem:[#allocation22 + $0xc64] ss:$8 sps:$4 sm:$0xff]  }
0x1112   :  { %5624 = vmatprep.subr.bf16.mxu1 %v9397_v58  ;;  %v9463_v58 = vld [vmem:[#allocation22 + $0xc74] ss:$8 sps:$4 sm:$0xff]  }
0x1115   :  { %5625 = vmatpush1.bf16.msra.mxu1 %v9395_v59  ;;  %v9461_v59 = vld [vmem:[#allocation22 + $0xc70] ss:$8 sps:$4 sm:$0xff]  }
0x1116   :  { %5626 = vmatprep.subr.bf16.mxu1 %v9400_v60  ;;  %v9466_v60 = vld [vmem:[#allocation22 + $0xc84] ss:$8 sps:$4 sm:$0xff]  }
0x1119   :  { %5627 = vmatpush1.bf16.msra.mxu1 %v9398_v61  ;;  %v9464_v61 = vld [vmem:[#allocation22 + $0xc80] ss:$8 sps:$4 sm:$0xff]  }
0x111a   :  { %5628 = vmatprep.subr.bf16.mxu1 %v9403_v62  ;;  %v9469_v62 = vld [vmem:[#allocation22 + $0xc94] ss:$8 sps:$4 sm:$0xff]  }
0x111d   :  { %5629 = vmatpush1.bf16.msra.mxu1 %v9401_v63  ;;  %v9467_v63 = vld [vmem:[#allocation22 + $0xc90] ss:$8 sps:$4 sm:$0xff]  }
0x111e   :  { %5630 = vmatprep.subr.bf16.mxu1 %v9406_v1  ;;  %v9472_v1 = vld [vmem:[#allocation22 + $0xca4] ss:$8 sps:$4 sm:$0xff]  }
0x1121   :  { %5631 = vmatpush1.bf16.msra.mxu1 %v9404_v2  ;;  %v9470_v2 = vld [vmem:[#allocation22 + $0xca0] ss:$8 sps:$4 sm:$0xff]  }
0x1122   :  { %5632 = vmatprep.subr.bf16.mxu1 %v9409_v3  ;;  %v9475_v3 = vld [vmem:[#allocation22 + $0xcb4] ss:$8 sps:$4 sm:$0xff]  }
0x1125   :  { %5633 = vmatpush1.bf16.msra.mxu1 %v9407_v4  ;;  %v9473_v4 = vld [vmem:[#allocation22 + $0xcb0] ss:$8 sps:$4 sm:$0xff]  }
0x1126   :  { %5634 = vmatprep.subr.bf16.mxu1 %v9412_v5  ;;  %v9478_v5 = vld [vmem:[#allocation22 + $0xcc4] ss:$8 sps:$4 sm:$0xff]  }
0x1129   :  { %5635 = vmatpush1.bf16.msra.mxu1 %v9410_v6  ;;  %v9476_v6 = vld [vmem:[#allocation22 + $0xcc0] ss:$8 sps:$4 sm:$0xff]  }
0x112a   :  { %5636 = vmatprep.subr.bf16.mxu1 %v9415_v7  ;;  %v9481_v7 = vld [vmem:[#allocation22 + $0xcd4] ss:$8 sps:$4 sm:$0xff]  }
0x112d   :  { %5637 = vmatpush1.bf16.msra.mxu1 %v9413_v8  ;;  %v9479_v8 = vld [vmem:[#allocation22 + $0xcd0] ss:$8 sps:$4 sm:$0xff]  }
0x112e   :  { %5638 = vmatprep.subr.bf16.mxu1 %v9418_v10  ;;  %v5183_v10 = vld [vmem:[#allocation23 + $0x14] sm:$0x3] }
0x1131   :  { %5639 = vmatpush1.bf16.msra.mxu1 %v9416_v14  ;;  %v5190_v14 = vrot.slane %v5183_v10, %v10676_v11 }
0x1132   :  { %5640 = vmatprep.subr.bf16.mxu1 %v9421_v15  ;;  %v5194_v15 = vrot.slane %v5183_v10, %v10679_v12 }
0x1135   :  { %5641 = vmatpush1.bf16.msra.mxu1 %v9419_v16 }
0x1136   :  { %5642 = vmatprep.subr.bf16.mxu1 %v9424_v17 }
0x1139   :  { %5643 = vmatpush1.bf16.msra.mxu1 %v9422_v18 }
0x113a   :  { %5644 = vmatprep.subr.bf16.mxu1 %v9427_v19 }
0x113d   :  { %5645 = vmatpush1.bf16.msra.mxu1 %v9425_v20 }
0x113e   :  { %5646 = vmatprep.subr.bf16.mxu1 %v9430_v22 }
0x1141   :  { %5647 = vmatpush1.bf16.msra.mxu1 %v9428_v21 }
0x1142   :  { %5648 = vmatprep.subr.bf16.mxu1 %v9433_v24 }
0x1145   :  { %5649 = vmatpush1.bf16.msra.mxu1 %v9431_v25 }
0x1146   :  { %5650 = vmatprep.subr.bf16.mxu1 %v9436_v38  ;;  %v9495_v38 = vld [vmem:[%s12744_s17 + $0x18] sm:$0xff]  }
0x1149   :  { %5651 = vmatpush1.bf16.msra.mxu1 %v9434_v39  ;;  %v9496_v39 = vld [vmem:[%s12744_s17 + $0x60] sm:$0xff]  }
0x114a   :  { %8307 = vmatprep.subr.msk.bf16.mxu1 %vm587_vm2, %v9437_v40  ;;  %v5441_v40 = vld [vmem:[#allocation23 + $0x16] sm:$0x3] }
0x114b   :  { %v5448_v41 = vrot.slane %v5441_v40, %v10676_v11 }
0x114d   :  { %5653 = vmatpush1.bf16.msra.mxu1 %v5617_v42  ;;  %v5452_v42 = vrot.slane %v5441_v40, %v10679_v12 }
0x11e3   :  { %v5140_v28 = vpop.f32.mrb[36].mxu1 }
0x11e4   :  { %v5141_v29 = vadd.f32 %v5140_v28, %v4932_v26  ;;  %v5142_v30 = vpop.f32.mrb[37].mxu1  ;;  %v9484_v26 = vld [vmem:[#allocation22 + $0xce4] ss:$8 sps:$4 sm:$0xff]   ;;  %v9485_v28 = vld [vmem:[#allocation22 + $0xcf4] ss:$8 sps:$4 sm:$0x1f]  }
0x11e5   :  { %v5143_v31 = vadd.f32 %v5142_v30, %v4936_v27  ;;  %v5144_v32 = vpop.f32.mrb[38].mxu1  ;;  %v9482_v27 = vld [vmem:[#allocation22 + $0xce0] ss:$8 sps:$4 sm:$0xff]  }
0x11e6   :  { %v5147_v33 = vmax.f32 %v5141_v29, 0.0  ;;  %v5145_v34 = vpop.f32.mrb[39].mxu1  ;;  %v9487_v29 = vld [vmem:[#allocation22 + $0xcf0] ss:$8 sps:$4 sm:$0x1f]   ;;  %v9489_v32 = vld [vmem:[%s12744_s17] sm:$0xff]  }
0x11e7   :  { %v5148_v35 = vmax.f32 %v5143_v31, 0.0  ;;  %v5875_v30 = vsel %vm587_vm2, %v9487_v29, 0  ;;  %v9488_v31 = vld [vmem:[%s12744_s17 + $0x40] sm:$0xff]   ;;  %v9491_v34 = vld [vmem:[%s12744_s17 + $0x8] sm:$0xff]  }
0x11e8   :  { %v5184_v37 = vpack.c.bf16 %v5147_v33, %v5147_v33  ;;  %v9490_v33 = vld [vmem:[%s12744_s17 + $0x48] sm:$0xff]   ;;  %8384 = vmatprep.subr.bf16.mxu1 %v9488_v31  ;;  %v8343_v29 = vld [vmem:[#allocation28] ss:$0 sm:$0xff] }
0x11e9   :  { %v5185_v36 = vpack.c.bf16 %v5148_v35, %v5148_v35  ;;  %v9492_v35 = vld [vmem:[%s12744_s17 + $0x50] sm:$0xff]  }
0x11eb   :  { %8274 = vmatprep.mubr.msk.bf16.mxu0 %vm583_vm3, %v5185_v36  ;;  %v9493_v36 = vld [vmem:[%s12744_s17 + $0x10] sm:$0xff]  }
0x11ec   :  { %5397 = vmatmul.mubr.bf16.vlgmr.msra.gmra.mrb[48].mxu0 %v5184_v37  ;;  %v9494_v37 = vld [vmem:[%s12744_s17 + $0x58] sm:$0xff]  }
0x11ed   :  { %5881 = vmatpush1.bf16.msra.mxu0 %v9440_v43 }
0x11ee   :  { %5882 = vmatprep.subr.bf16.mxu0 %v9445_v46 }
0x11f1   :  { %5883 = vmatpush1.bf16.msra.mxu0 %v9443_v47 }
0x11f2   :  { %5884 = vmatprep.subr.bf16.mxu0 %v9448_v48 }
0x11f5   :  { %5885 = vmatpush1.bf16.msra.mxu0 %v9446_v49 }
0x11f6   :  { %5886 = vmatprep.subr.bf16.mxu0 %v9451_v50 }
0x11f9   :  { %5887 = vmatpush1.bf16.msra.mxu0 %v9449_v51 }
0x11fa   :  { %5888 = vmatprep.subr.bf16.mxu0 %v9454_v52 }
0x11fd   :  { %5889 = vmatpush1.bf16.msra.mxu0 %v9452_v53 }
0x11fe   :  { %5890 = vmatprep.subr.bf16.mxu0 %v9457_v54  ;;  %v9497_v54 = vld [vmem:[%s12744_s17 + $0x20] sm:$0xff]  }
0x1201   :  { %5891 = vmatpush1.bf16.msra.mxu0 %v9455_v55  ;;  %v9498_v55 = vld [vmem:[%s12744_s17 + $0x68] sm:$0xff]  }
0x1202   :  { %5892 = vmatprep.subr.bf16.mxu0 %v9460_v56  ;;  %v9499_v56 = vld [vmem:[%s12744_s17 + $0x28] sm:$0xff]  }
0x1205   :  { %5893 = vmatpush1.bf16.msra.mxu0 %v9458_v57  ;;  %v9500_v57 = vld [vmem:[%s12744_s17 + $0x70] sm:$0xff]  }
0x1206   :  { %5894 = vmatprep.subr.bf16.mxu0 %v9463_v58  ;;  %v9501_v58 = vld [vmem:[%s12744_s17 + $0x30] sm:$0xff]  }
0x1209   :  { %5895 = vmatpush1.bf16.msra.mxu0 %v9461_v59  ;;  %v9502_v59 = vld [vmem:[%s12744_s17 + $0x78] sm:$0x1f]  }
0x120a   :  { %5896 = vmatprep.subr.bf16.mxu0 %v9466_v60  ;;  %v9503_v60 = vld [vmem:[%s12744_s17 + $0x38] sm:$0xff]   ;;  %s10290_s17 = smov 108  }
0x120d   :  { %5897 = vmatpush1.bf16.msra.mxu0 %v9464_v61  ;;  %v5699_v61 = vld [vmem:[#allocation23 + $0x18] sm:$0x3] }
0x120e   :  { %5898 = vmatprep.subr.bf16.mxu0 %v9469_v62  ;;  %v5706_v62 = vrot.slane %v5699_v61, %v10676_v11 }
0x1211   :  { %5899 = vmatpush1.bf16.msra.mxu0 %v9467_v63  ;;  %v5923_v63 = vld [vmem:[#allocation25] sm:$0x3] }
0x1212   :  { %5900 = vmatprep.subr.bf16.mxu0 %v9472_v1  ;;  %v5710_v1 = vrot.slane %v5699_v61, %v10679_v12  ;;  %v6136_v61 = vld [vmem:[%s12746_s19 + $0x8] sm:$0xff] }
0x1215   :  { %5901 = vmatpush1.bf16.msra.mxu0 %v9470_v2 }
0x1216   :  { %5902 = vmatprep.subr.bf16.mxu0 %v9475_v3  ;;  %v5937_v3 = vld [vmem:[#allocation26] sm:$0x3] }
0x1219   :  { %5903 = vmatpush1.bf16.msra.mxu0 %v9473_v4 }
0x121a   :  { %5904 = vmatprep.subr.bf16.mxu0 %v9478_v5  ;;  %v5928_v5 = vrot.slane %v5923_v63, %v10676_v11 }
0x121d   :  { %5905 = vmatpush1.bf16.msra.mxu0 %v9476_v6 }
0x121e   :  { %5906 = vmatprep.subr.bf16.mxu0 %v9481_v7 }
0x1221   :  { %5907 = vmatpush1.bf16.msra.mxu0 %v9479_v8  ;;  %v5932_v8 = vrot.slane %v5923_v63, %v10679_v12  ;;  %v6184_v63 = vsub.s32 7, %v10673_v9 }
0x1222   :  { %5908 = vmatprep.subr.bf16.mxu0 %v9484_v26 }
0x1225   :  { %5909 = vmatpush1.bf16.msra.mxu0 %v9482_v27  ;;  %v10289_v27 = vmov 10  }
0x1226   :  { %8341 = vmatprep.subr.msk.bf16.mxu0 %vm587_vm2, %v9485_v28  ;;  %8469 = vset.pattern.permute.xlu1 %v10289_v27 }
0x1229   :  { %5911 = vmatpush1.bf16.msra.mxu0 %v5875_v30 }
0x12bf   :  { %v5398_v16 = vpop.f32.mrb[48].mxu0 }
0x12c0   :  { %v5399_v17 = vadd.f32 %v5398_v16, %v5190_v14  ;;  %v5400_v18 = vpop.f32.mrb[49].mxu0 }
0x12c1   :  { %v5401_v19 = vadd.f32 %v5400_v18, %v5194_v15  ;;  %v5402_v20 = vpop.f32.mrb[50].mxu0  ;;  %v5942_v15 = vrot.slane %v5937_v3, %v10676_v11  ;;  %v5946_v18 = vrot.slane %v5937_v3, %v10679_v12 }
0x12c2   :  { %v5405_v22 = vmax.f32 %v5399_v17, 0.0  ;;  %v5403_v21 = vpop.f32.mrb[51].mxu0 }
0x12c3   :  { %v5406_v24 = vmax.f32 %v5401_v19, 0.0 }
0x12c4   :  { %v5442_v23 = vpack.c.bf16 %v5405_v22, %v5405_v22 }
0x12c5   :  { %v5443_v25 = vpack.c.bf16 %v5406_v24, %v5406_v24 }
0x12c7   :  { %8308 = vmatprep.mubr.msk.bf16.mxu1 %vm583_vm3, %v5443_v25 }
0x12c8   :  { %5655 = vmatmul.mubr.bf16.vlgmr.msra.gmra.mrb[40].mxu1 %v5442_v23 }
0x12c9   :  { %8385 = vmatpush3.bf16.msra.mxu1 %v9489_v32 }
0x12ca   :  { %8386 = vmatprep.subr.bf16.mxu1 %v9490_v33 }
0x12cd   :  { %8387 = vmatpush3.bf16.msra.mxu1 %v9491_v34 }
0x12ce   :  { %8388 = vmatprep.subr.bf16.mxu1 %v9492_v35 }
0x12d1   :  { %8389 = vmatpush3.bf16.msra.mxu1 %v9493_v36 }
0x12d2   :  { %8390 = vmatprep.subr.bf16.mxu1 %v9494_v37  ;;  %v10291_v37 = vmov 11  }
0x12d5   :  { %8391 = vmatpush3.bf16.msra.mxu1 %v9495_v38  ;;  %v10292_v38 = vmov 12  }
0x12d6   :  { %8392 = vmatprep.subr.bf16.mxu1 %v9496_v39  ;;  %v10293_v39 = vmov 14  }
0x12d7   :  { %8476 = vset.pattern.permute.xlu0 %v10293_v39 }
0x12d9   :  { %8393 = vmatpush3.bf16.msra.mxu1 %v9497_v54  ;;  %v10305_v54 = vmov 27  }
0x12da   :  { %8394 = vmatprep.subr.bf16.mxu1 %v9498_v55  ;;  %v10306_v55 = vmov 28  }
0x12dd   :  { %8395 = vmatpush3.bf16.msra.mxu1 %v9499_v56 }
0x12de   :  { %8396 = vmatprep.subr.bf16.mxu1 %v9500_v57 }
0x12e1   :  { %8397 = vmatpush3.bf16.msra.mxu1 %v9501_v58 }
0x12e2   :  { %8413 = vmatprep.subr.msk.bf16.mxu1 %vm587_vm2, %v9502_v59  ;;  %v6135_v59 = vld [vmem:[%s12746_s19] sm:$0xff] }
0x12e3   :  { %v10954_v3 = vrot.slane %v6135_v59, %v10676_v11 }
0x12e5   :  { %8399 = vmatpush3.bf16.msra.mxu1 %v9503_v60  ;;  %v6172_v60 = vsub.s32 4, %v10673_v9  ;;  %12794 = vst [vmem:[#allocation42_spill] sm:$0xff] %v10954_v3 }
0x139b   :  { %v5656_v43 = vpop.f32.mrb[40].mxu1 }
0x139c   :  { %v5657_v45 = vadd.f32 %v5656_v43, %v5448_v41  ;;  %v5658_v46 = vpop.f32.mrb[41].mxu1  ;;  %v10294_v41 = vmov 20   ;;  %v10295_v43 = vmov 21  }
0x139d   :  { %v5659_v47 = vadd.f32 %v5658_v46, %v5452_v42  ;;  %v5660_v48 = vpop.f32.mrb[42].mxu1  ;;  %v10297_v46 = vmov 22  }
0x139e   :  { %v5663_v49 = vmax.f32 %v5657_v45, 0.0  ;;  %v5661_v50 = vpop.f32.mrb[43].mxu1  ;;  %v10296_v45 = vmov 13   ;;  %v10299_v48 = vmov 15  }
0x139f   :  { %v5664_v51 = vmax.f32 %v5659_v47, 0.0  ;;  %v10298_v47 = vmov 23   ;;  %v10301_v50 = vmov 16  }
0x13a0   :  { %v5700_v53 = vpack.c.bf16 %v5663_v49, %v5663_v49  ;;  %v10300_v49 = vmov 24  }
0x13a1   :  { %v5701_v52 = vpack.c.bf16 %v5664_v51, %v5664_v51  ;;  %v10302_v51 = vmov 25  }
0x13a3   :  { %8342 = vmatprep.mubr.msk.bf16.mxu0 %vm583_vm3, %v5701_v52  ;;  %v10303_v52 = vmov 17  }
0x13a4   :  { %5913 = vmatmul.mubr.bf16.vlgmr.msra.gmra.mrb[52].mxu0 %v5700_v53  ;;  %v10304_v53 = vmov 26  }
0x1477   :  { %v5914_v2 = vpop.f32.mrb[52].mxu0 }
0x1478   :  { %v5915_v4 = vadd.f32 %v5914_v2, %v5706_v62  ;;  %v5916_v6 = vpop.f32.mrb[53].mxu0  ;;  %v6180_v62 = vsub.s32 6, %v10673_v9  ;;  %v10951_v2 = vrot.slane %v6135_v59, %v10779_v13 }
0x1479   :  { %v5917_v7 = vadd.f32 %v5916_v6, %v5710_v1  ;;  %v5918_v10 = vpop.f32.mrb[54].mxu0  ;;  %v10948_v1 = vrot.slane %v6135_v59, %v10785_v44  ;;  %v10962_v6 = vrot.slane %v6136_v61, %v10676_v11 }
0x147a   :  { %v5921_v14 = vmax.f32 %v5915_v4, 0.0  ;;  %v5919_v16 = vpop.f32.mrb[55].mxu0  ;;  %v10957_v4 = vrot.slane %v6135_v59, %v10679_v12  ;;  %v10972_v10 = vrot.slane %v6136_v61, %v10779_v13 }
0x147b   :  { %v5922_v17 = vmax.f32 %v5917_v7, 0.0  ;;  %v10979_v16 = vrot.slane %v6136_v61, %v6172_v60 }
0x147c   :  { %v5935_v19 = vmul.f32 %v5928_v5, %v5921_v14  ;;  %12795 = vst [vmem:[#allocation43_spill] sm:$0xff] %v10957_v4  ;;  %v10959_v5 = vrot.slane %v6135_v59, %v6172_v60  ;;  %v10974_v14 = vrot.slane %v6135_v59, %v6184_v63 }
0x147d   :  { %v5936_v20 = vmul.f32 %v5932_v8, %v5922_v17  ;;  %v10969_v8 = vrot.slane %v6136_v61, %v10785_v44  ;;  %12796 = vst [vmem:[#allocation44_spill] sm:$0xff] %v10979_v16 }
0x147e   :  { %v5949_v22 = vadd.f32 %v5942_v15, %v5935_v19  ;;  %v10977_v15 = vrot.slane %v6136_v61, %v10679_v12  ;;  %v10985_v19 = vrot.slane %v6136_v61, %v6184_v63  ;;  %v10994_v12 = vld [vmem:[%s12746_s19 + $0x10] ss:$0 sm:$0xff] }
0x147f   :  { %v5950_v21 = vadd.f32 %v5946_v18, %v5936_v20  ;;  %v10983_v18 = vrot.slane %v6136_v61, %v6180_v62 }
0x1480   :  { %v5951_v24 = vmax.f32 %v5949_v22, 0.0  ;;  %12798 = vst [vmem:[#allocation46_spill] sm:$0xff] %v10985_v19 }
0x1481   :  { %v5952_v25 = vmax.f32 %v5950_v21, 0.0 }
0x1482   :  { %v5986_v26 = vpack.c.bf16 %v5951_v24, %v5951_v24 }
0x1483   :  { %v5987_v23 = vpack.c.bf16 %v5952_v25, %v5952_v25 }
0x1485   :  { %8360 = vmatprep.mubr.msk.bf16.mxu1 %vm583_vm3, %v5987_v23 }
0x1486   :  { %6128 = vmatmul.mubr.bf16.vlgmr.msra.gmra.mrb[44].mxu1 %v5986_v26 }
0x1559   :  { %v8400_v28 = vpop.f32.mrb[44].mxu1 }
0x155a   :  { %v8401_v30 = vpop.f32.mrb[45].mxu1 }
0x155b   :  { %v8402_v31 = vadd.f32 %v8401_v30, %v8400_v28  ;;  %v8403_v32 = vpop.f32.mrb[46].mxu1 }
0x155c   :  { %v8404_v33 = vpop.f32.mrb[47].mxu1 }
0x155d   :  { %v10909_v34 = vadd.f32 %v8402_v31, %v8343_v29 }
0x155f   :  { %6240 = vperm.xlu1 %8469, %v10909_v34   ;;  %6139 = vrot.lane.b32.xlu0 %v10909_v34, %s10290_s17  ;;  %v6143_v35 = vmul.f32 -2.0, %v10909_v34 }
0x1561   :  { %v6144_v36 = vmul.f32 1.442695, %v6143_v35 }
0x1563   :  { %8470 = vset.pattern.permute.xlu1 %v10291_v37  ;;  %9504 = vpow2.f32 %v6144_v36 }
0x1564   :  { %6373 = vperm.xlu1 %8470, %v10909_v34  }
0x1568   :  { %8471 = vset.pattern.permute.xlu1 %v10292_v38 }
0x1569   :  { %6504 = vperm.xlu1 %8471, %v10909_v34  }
0x156d   :  { %v9505_v40 = vpop.eup %9504  ;;  %8472 = vset.pattern.permute.xlu1 %v10294_v41 }
0x156e   :  { %v10916_v42 = vmul.f32 0.5, %v9505_v40 }
0x1570   :  { %12792 = vst [vmem:[#allocation40_spill] sm:$0xff] %v10916_v42  ;;  %6279 = vperm.xlu1 %8472, %v10916_v42  }
0x1574   :  { %8473 = vset.pattern.permute.xlu1 %v10295_v43 }
0x1575   :  { %6411 = vperm.xlu1 %8473, %v10916_v42  }
0x1579   :  { %8474 = vset.pattern.permute.xlu1 %v10296_v45 }
0x157a   :  { %6635 = vperm.xlu1 %8474, %v10909_v34  }
0x157e   :  { %8475 = vset.pattern.permute.xlu1 %v10297_v46 }
0x157f   :  { %6542 = vperm.xlu1 %8475, %v10916_v42  }
0x1583   :  { %8477 = vset.pattern.permute.xlu1 %v10298_v47 }
0x1584   :  { %6673 = vperm.xlu1 %8477, %v10916_v42  }
0x1588   :  { %8478 = vset.pattern.permute.xlu1 %v10299_v48 }
0x1589   :  { %6897 = vperm.xlu1 %8478, %v10909_v34  }
0x158d   :  { %8479 = vset.pattern.permute.xlu1 %v10300_v49 }
0x158e   :  { %6804 = vperm.xlu1 %8479, %v10916_v42  }
0x1592   :  { %8480 = vset.pattern.permute.xlu1 %v10301_v50 }
0x1593   :  { %7028 = vperm.xlu1 %8480, %v10909_v34  }
0x1597   :  { %8481 = vset.pattern.permute.xlu1 %v10302_v51 }
0x1598   :  { %6935 = vperm.xlu1 %8481, %v10916_v42  }
0x159c   :  { %8482 = vset.pattern.permute.xlu1 %v10303_v52 }
0x159d   :  { %7159 = vperm.xlu1 %8482, %v10909_v34  }
0x15a1   :  { %8483 = vset.pattern.permute.xlu1 %v10304_v53 }
0x15a2   :  { %7066 = vperm.xlu1 %8483, %v10916_v42  }
0x15a6   :  { %8485 = vset.pattern.permute.xlu1 %v10305_v54 }
0x15a7   :  { %7197 = vperm.xlu1 %8485, %v10916_v42  }
0x15ab   :  { %8487 = vset.pattern.permute.xlu1 %v10306_v55 }
0x15ac   :  { %7328 = vperm.xlu1 %8487, %v10916_v42  }
0x15b0   :  { %8488 = vset.pattern.permute.xlu1 %v10288_v0  ;;  %v6176_v0 = vsub.s32 5, %v10673_v9  ;;  %v10966_v9 = vrot.slane %v6135_v59, %v6180_v62 }
0x15b2   :  { %v10964_v7 = vrot.slane %v6135_v59, %v6176_v0  ;;  %v10981_v17 = vrot.slane %v6136_v61, %v6176_v0 }
0x15b4   :  { %12797 = vst [vmem:[#allocation45_spill] sm:$0xff] %v10981_v17 }
0x15d1   :  { %v6140_v56 = vpop.permute.xlu0 %6139 }
0x15d2   :  { %v10933_v57 = vsub.f32 %v10909_v34, %v6140_v56 }
0x15d4   :  { %12793 = vst [vmem:[#allocation41_spill] sm:$0xff] %v10933_v57  ;;  %v6147_v58 = vsel %vm1886_vm4, %v10933_v57, -inf }
0x15d5   :  { %6148 = vmax.xlane.f32.xlu0 %v6147_v58 }
0x15de   :  { %v6241_v11 = vpop.permute.xlu1 %6240 }
0x15df   :  { %v6245_v44 = vsub.f32 %v10948_v1, %v6241_v11  ;;  %v6246_v20 = vsub.f32 %v10951_v2, %v6241_v11  ;;  %v6243_v13 = vsub.f32 %v10954_v3, %v6241_v11  ;;  %v6244_v22 = vsub.f32 %v10957_v4, %v6241_v11 }
0x15e0   :  { %v6247_v21 = vsub.f32 %v10959_v5, %v6241_v11  ;;  %v6248_v24 = vsub.f32 %v10964_v7, %v6241_v11  ;;  %v6253_v25 = vsub.f32 %v10969_v8, %v6241_v11  ;;  %v6254_v23 = vsub.f32 %v10972_v10, %v6241_v11 }
0x15e1   :  { %v6249_v26 = vsub.f32 %v10966_v9, %v6241_v11  ;;  %v6250_v27 = vsub.f32 %v10974_v14, %v6241_v11  ;;  %v6251_v28 = vsub.f32 %v10962_v6, %v6241_v11  ;;  %v6252_v29 = vsub.f32 %v10977_v15, %v6241_v11 }
0x15e2   :  { %v6255_v30 = vsub.f32 %v10979_v16, %v6241_v11  ;;  %v6256_v31 = vsub.f32 %v10981_v17, %v6241_v11  ;;  %v6257_v32 = vsub.f32 %v10983_v18, %v6241_v11  ;;  %v6258_v33 = vsub.f32 %v10985_v19, %v6241_v11 }
0x15e3   :  { %v6259_v35 = vsub.f32 %v10994_v12, %v6241_v11  ;;  %v6260_v36 = vmul.f32 %v6243_v13, %v6243_v13  ;;  %v6261_v37 = vmul.f32 %v6244_v22, %v6244_v22  ;;  %v6374_v38 = vpop.permute.xlu1 %6373  ;;  %v6262_v39 = vmul.f32 %v6245_v44, %v6245_v44 }
0x15e4   :  { %v6263_v40 = vmul.f32 %v6246_v20, %v6246_v20  ;;  %v6264_v41 = vmul.f32 %v6247_v21, %v6247_v21  ;;  %v6265_v43 = vmul.f32 %v6248_v24, %v6248_v24  ;;  %v6266_v45 = vmul.f32 %v6249_v26, %v6249_v26 }
0x15e5   :  { %v6267_v46 = vmul.f32 %v6250_v27, %v6250_v27  ;;  %v6268_v47 = vmul.f32 %v6251_v28, %v6251_v28  ;;  %v6269_v48 = vmul.f32 %v6252_v29, %v6252_v29  ;;  %v6270_v49 = vmul.f32 %v6253_v25, %v6253_v25 }
0x15e6   :  { %v6271_v50 = vmul.f32 %v6254_v23, %v6254_v23  ;;  %v6272_v51 = vmul.f32 %v6255_v30, %v6255_v30  ;;  %v6273_v52 = vmul.f32 %v6256_v31, %v6256_v31  ;;  %v6274_v53 = vmul.f32 %v6257_v32, %v6257_v32 }
0x15e7   :  { %v6275_v54 = vmul.f32 %v6258_v33, %v6258_v33  ;;  %v6378_v55 = vsub.f32 %v10948_v1, %v6374_v38  ;;  %v6379_v56 = vsub.f32 %v10951_v2, %v6374_v38  ;;  %v6276_v58 = vmul.f32 %v6259_v35, %v6259_v35 }
0x15e8   :  { %v6376_v59 = vsub.f32 %v10954_v3, %v6374_v38  ;;  %v6377_v60 = vsub.f32 %v10957_v4, %v6374_v38  ;;  %v6380_v61 = vsub.f32 %v10959_v5, %v6374_v38  ;;  %v6381_v0 = vsub.f32 %v10964_v7, %v6374_v38  ;;  %v11018_v44 = vpop.permute.xlu1 %6504 }
0x15e9   :  { %v6382_v62 = vsub.f32 %v10966_v9, %v6374_v38  ;;  %v6383_v63 = vsub.f32 %v10974_v14, %v6374_v38  ;;  %v6386_v11 = vsub.f32 %v10969_v8, %v6374_v38  ;;  %v6384_v20 = vsub.f32 %v10962_v6, %v6374_v38 }
0x15ea   :  { %v6385_v13 = vsub.f32 %v10977_v15, %v6374_v38  ;;  %v6387_v22 = vsub.f32 %v10972_v10, %v6374_v38  ;;  %v6388_v21 = vsub.f32 %v10979_v16, %v6374_v38  ;;  %v6389_v24 = vsub.f32 %v10981_v17, %v6374_v38 }
0x15eb   :  { %6766 = vperm.xlu0 %8476, %v10909_v34   ;;  %v6390_v25 = vsub.f32 %v10983_v18, %v6374_v38  ;;  %v6391_v23 = vsub.f32 %v10985_v19, %v6374_v38  ;;  %v6392_v26 = vsub.f32 %v10994_v12, %v6374_v38  ;;  %v6393_v27 = vmul.f32 %v6376_v59, %v6376_v59 }
0x15ec   :  { %v6394_v28 = vmul.f32 %v6377_v60, %v6377_v60  ;;  %v6395_v29 = vmul.f32 %v6378_v55, %v6378_v55  ;;  %v6396_v30 = vmul.f32 %v6379_v56, %v6379_v56  ;;  %v6397_v31 = vmul.f32 %v6380_v61, %v6380_v61 }
0x15ed   :  { %v6398_v32 = vmul.f32 %v6381_v0, %v6381_v0  ;;  %v6399_v33 = vmul.f32 %v6382_v62, %v6382_v62  ;;  %v6400_v35 = vmul.f32 %v6383_v63, %v6383_v63  ;;  %v10307_v4 = vmov 18  }
0x15ee   :  { %v6401_v42 = vmul.f32 %v6384_v20, %v6384_v20  ;;  %v6402_v57 = vmul.f32 %v6385_v13, %v6385_v13  ;;  %v6403_v17 = vmul.f32 %v6386_v11, %v6386_v11  ;;  %v6404_v16 = vmul.f32 %v6387_v22, %v6387_v22 }
0x15ef   :  { %8484 = vset.pattern.permute.xlu0 %v10307_v4  ;;  %v6280_v3 = vpop.permute.xlu1 %6279  ;;  %v6407_v11 = vmul.f32 %v6390_v25, %v6390_v25 }
0x15f0   :  { %7290 = vperm.xlu0 %8484, %v10909_v34   ;;  %v11030_v19 = vmul.f32 %v6280_v3, %v6260_v36  ;;  %v11032_v38 = vmul.f32 %v6280_v3, %v6261_v37  ;;  %v11034_v59 = vmul.f32 %v6280_v3, %v6262_v39  ;;  %v11036_v55 = vmul.f32 %v6280_v3, %v6263_v40 }
0x15f1   :  { %v11038_v56 = vmul.f32 %v6280_v3, %v6264_v41  ;;  %v11040_v60 = vmul.f32 %v6280_v3, %v6265_v43  ;;  %v11042_v4 = vmul.f32 %v6280_v3, %v6266_v45  ;;  %v11044_v61 = vmul.f32 %v6280_v3, %v6267_v46 }
0x15f2   :  { %v11046_v0 = vmul.f32 %v6280_v3, %v6268_v47  ;;  %v11048_v62 = vmul.f32 %v6280_v3, %v6269_v48  ;;  %v11050_v36 = vmul.f32 %v6280_v3, %v6270_v49  ;;  %v11052_v37 = vmul.f32 %v6280_v3, %v6271_v50 }
0x15f3   :  { %v11054_v39 = vmul.f32 %v6280_v3, %v6272_v51  ;;  %v11056_v40 = vmul.f32 %v6280_v3, %v6273_v52  ;;  %v11058_v41 = vmul.f32 %v6280_v3, %v6274_v53  ;;  %v11060_v43 = vmul.f32 %v6280_v3, %v6275_v54 }
0x15f4   :  { %12799 = vst [vmem:[#allocation47_spill] sm:$0xff] %v11050_v36  ;;  %12800 = vst [vmem:[#allocation48_spill] sm:$0xff] %v11052_v37  ;;  %v10308_v45 = vmov 19   ;;  %v6412_v46 = vpop.permute.xlu1 %6411  ;;  %v11062_v63 = vmul.f32 %v6280_v3, %v6276_v58  ;;  %v6405_v47 = vmul.f32 %v6388_v21, %v6388_v21  ;;  %v6406_v48 = vmul.f32 %v6389_v24, %v6389_v24 }
0x15f5   :  { %12801 = vst [vmem:[#allocation49_spill] sm:$0xff] %v11054_v39  ;;  %12802 = vst [vmem:[#allocation50_spill] sm:$0xff] %v11056_v40  ;;  %8486 = vset.pattern.permute.xlu0 %v10308_v45  ;;  %v6408_v49 = vmul.f32 %v6391_v23, %v6391_v23  ;;  %v6409_v50 = vmul.f32 %v6392_v26, %v6392_v26  ;;  %v11065_v51 = vmul.f32 %v6412_v46, %v6393_v27  ;;  %v10309_v27 = vmov 8  }
0x15f6   :  { %12803 = vst [vmem:[#allocation51_spill] sm:$0xff] %v11058_v41  ;;  %12804 = vst [vmem:[#allocation52_spill] sm:$0xff] %v11060_v43  ;;  %7421 = vperm.xlu0 %8486, %v10909_v34   ;;  %v11067_v52 = vmul.f32 %v6412_v46, %v6394_v28  ;;  %v11069_v53 = vmul.f32 %v6412_v46, %v6395_v29  ;;  %v11071_v54 = vmul.f32 %v6412_v46, %v6396_v30 }
0x15f7   :  { %12805 = vst [vmem:[#allocation53_spill] sm:$0xff] %v11062_v63  ;;  %12806 = vst [vmem:[#allocation54_spill] sm:$0xff] %v11065_v51  ;;  %v11073_v20 = vmul.f32 %v6412_v46, %v6397_v31  ;;  %v11075_v13 = vmul.f32 %v6412_v46, %v6398_v32  ;;  %v11077_v3 = vmul.f32 %v6412_v46, %v6399_v33 }
0x15f8   :  { %12807 = vst [vmem:[#allocation55_spill] sm:$0xff] %v11067_v52  ;;  %12808 = vst [vmem:[#allocation56_spill] sm:$0xff] %v11069_v53  ;;  %v11079_v58 = vmul.f32 %v6412_v46, %v6400_v35  ;;  %v11081_v22 = vmul.f32 %v6412_v46, %v6401_v42  ;;  %v11083_v34 = vmul.f32 %v6412_v46, %v6402_v57 }
0x15f9   :  { %12809 = vst [vmem:[#allocation57_spill] sm:$0xff] %v11071_v54  ;;  %12810 = vst [vmem:[#allocation58_spill] sm:$0xff] %v11073_v20  ;;  %v11085_v21 = vmul.f32 %v6412_v46, %v6403_v17  ;;  %v11087_v24 = vmul.f32 %v6412_v46, %v6404_v16  ;;  %v11089_v25 = vmul.f32 %v6412_v46, %v6405_v47  ;;  %v11093_v26 = vpop.permute.xlu1 %6635 }
0x15fa   :  { %12811 = vst [vmem:[#allocation59_spill] sm:$0xff] %v11075_v13  ;;  %12812 = vst [vmem:[#allocation60_spill] sm:$0xff] %v11077_v3  ;;  %v11091_v23 = vmul.f32 %v6412_v46, %v6406_v48  ;;  %8496 = vset.pattern.permute.xlu0 %v10309_v27  ;;  %v11095_v28 = vmul.f32 %v6412_v46, %v6407_v11  ;;  %v11097_v29 = vmul.f32 %v6412_v46, %v6408_v49  ;;  %v12823_v48 = vld [vmem:[#allocation44_spill] sm:$0xff]  ;;  %v12824_v49 = vld [vmem:[#allocation45_spill] sm:$0xff] }
0x15fb   :  { %12813 = vst [vmem:[#allocation61_spill] sm:$0xff] %v11079_v58  ;;  %12814 = vst [vmem:[#allocation62_spill] sm:$0xff] %v11081_v22  ;;  %v11099_v42 = vmul.f32 %v6412_v46, %v6409_v50  ;;  %v11103_v57 = vsub.f32 %v10948_v1, %v11018_v44  ;;  %v6510_v16 = vsub.f32 %v10951_v2, %v11018_v44 }
0x15fc   :  { %12815 = vst [vmem:[#allocation63_spill] sm:$0xff] %v11083_v34  ;;  %12816 = vst [vmem:[#allocation64_spill] sm:$0xff] %v11085_v21  ;;  %v6511_v17 = vsub.f32 %v10959_v5, %v11018_v44  ;;  %v6512_v30 = vsub.f32 %v10964_v7, %v11018_v44  ;;  %v6517_v31 = vsub.f32 %v10969_v8, %v11018_v44 }
0x15fd   :  { %12817 = vst [vmem:[#allocation65_spill] sm:$0xff] %v11087_v24  ;;  %12818 = vst [vmem:[#allocation66_spill] sm:$0xff] %v11089_v25  ;;  %v6518_v32 = vsub.f32 %v10972_v10, %v11018_v44  ;;  %v6513_v33 = vsub.f32 %v10966_v9, %v11018_v44  ;;  %v6514_v35 = vsub.f32 %v10974_v14, %v11018_v44 }
0x15fe   :  { %12819 = vst [vmem:[#allocation67_spill] sm:$0xff] %v11091_v23  ;;  %12820 = vst [vmem:[#allocation68_spill] sm:$0xff] %v11095_v28  ;;  %v6515_v45 = vsub.f32 %v10962_v6, %v11018_v44  ;;  %v6516_v46 = vsub.f32 %v10977_v15, %v11018_v44  ;;  %v11123_v47 = vpop.permute.xlu1 %6542  ;;  %v6519_v11 = vsub.f32 %v12823_v48, %v11018_v44 }
0x15ff   :  { %12821 = vst [vmem:[#allocation69_spill] sm:$0xff] %v11097_v29  ;;  %12822 = vst [vmem:[#allocation70_spill] sm:$0xff] %v11099_v42  ;;  %v6520_v50 = vsub.f32 %v12824_v49, %v11018_v44  ;;  %v6521_v27 = vsub.f32 %v10983_v18, %v11018_v44  ;;  %v12825_v42 = vld [vmem:[#allocation46_spill] sm:$0xff]  ;;  %v6523_v28 = vsub.f32 %v10994_v12, %v11018_v44 }
0x1600   :  { %v6522_v29 = vsub.f32 %v12825_v42, %v11018_v44  ;;  %v6527_v23 = vmul.f32 %v6510_v16, %v6510_v16  ;;  %v6528_v25 = vmul.f32 %v6511_v17, %v6511_v17  ;;  %v6529_v24 = vmul.f32 %v6512_v30, %v6512_v30 }
0x1601   :  { %v6530_v21 = vmul.f32 %v6513_v33, %v6513_v33  ;;  %v6531_v34 = vmul.f32 %v6514_v35, %v6514_v35  ;;  %v6532_v22 = vmul.f32 %v6515_v45, %v6515_v45  ;;  %v6533_v58 = vmul.f32 %v6516_v46, %v6516_v46 }
0x1602   :  { %v6534_v3 = vmul.f32 %v6517_v31, %v6517_v31  ;;  %v6535_v13 = vmul.f32 %v6518_v32, %v6518_v32  ;;  %v6536_v20 = vmul.f32 %v6519_v11, %v6519_v11  ;;  %v6537_v54 = vmul.f32 %v6520_v50, %v6520_v50 }
0x1603   :  { %v6538_v53 = vmul.f32 %v6521_v27, %v6521_v27  ;;  %v6539_v52 = vmul.f32 %v6522_v29, %v6522_v29  ;;  %v6540_v51 = vmul.f32 %v6523_v28, %v6523_v28  ;;  %v11136_v63 = vmul.f32 %v11123_v47, %v6527_v23  ;;  %v11138_v43 = vpop.permute.xlu1 %6673 }
0x1604   :  { %v11141_v16 = vmul.f32 %v11123_v47, %v6528_v25  ;;  %v11144_v17 = vmul.f32 %v11123_v47, %v6529_v24  ;;  %v11147_v30 = vmul.f32 %v11123_v47, %v6530_v21  ;;  %v11150_v31 = vmul.f32 %v11123_v47, %v6531_v34 }
0x1605   :  { %12826 = vst [vmem:[#allocation44_spill] sm:$0xff] %v11136_v63  ;;  %v11153_v29 = vmul.f32 %v11123_v47, %v6532_v22  ;;  %v11156_v23 = vmul.f32 %v11123_v47, %v6533_v58  ;;  %v11159_v28 = vmul.f32 %v11123_v47, %v6534_v3  ;;  %v11162_v25 = vmul.f32 %v11123_v47, %v6535_v13 }
0x1606   :  { %12827 = vst [vmem:[#allocation45_spill] sm:$0xff] %v11141_v16  ;;  %12828 = vst [vmem:[#allocation46_spill] sm:$0xff] %v11144_v17  ;;  %v11165_v24 = vmul.f32 %v11123_v47, %v6536_v20  ;;  %v11168_v21 = vmul.f32 %v11123_v47, %v6537_v54  ;;  %v11171_v34 = vmul.f32 %v11123_v47, %v6538_v53 }
0x1607   :  { %12829 = vst [vmem:[#allocation71_spill] sm:$0xff] %v11147_v30  ;;  %12830 = vst [vmem:[#allocation72_spill] sm:$0xff] %v11150_v31  ;;  %v11174_v22 = vmul.f32 %v11123_v47, %v6539_v52  ;;  %v11177_v58 = vmul.f32 %v11123_v47, %v6540_v51  ;;  %v11181_v3 = vsub.f32 %v10948_v1, %v11093_v26 }
0x1608   :  { %12831 = vst [vmem:[#allocation73_spill] sm:$0xff] %v11153_v29  ;;  %12832 = vst [vmem:[#allocation74_spill] sm:$0xff] %v11156_v23  ;;  %v11185_v20 = vsub.f32 %v10951_v2, %v11093_v26  ;;  %v6642_v54 = vsub.f32 %v10959_v5, %v11093_v26  ;;  %v6643_v53 = vsub.f32 %v10964_v7, %v11093_v26  ;;  %v11191_v13 = vpop.permute.xlu1 %6897 }
0x1609   :  { %12833 = vst [vmem:[#allocation75_spill] sm:$0xff] %v11159_v28  ;;  %12834 = vst [vmem:[#allocation76_spill] sm:$0xff] %v11162_v25  ;;  %v6644_v51 = vsub.f32 %v10966_v9, %v11093_v26  ;;  %v6645_v52 = vsub.f32 %v10974_v14, %v11093_v26  ;;  %v6648_v32 = vsub.f32 %v10969_v8, %v11093_v26 }
0x160a   :  { %12835 = vst [vmem:[#allocation77_spill] sm:$0xff] %v11165_v24  ;;  %12836 = vst [vmem:[#allocation78_spill] sm:$0xff] %v11168_v21  ;;  %v6649_v33 = vsub.f32 %v10972_v10, %v11093_v26  ;;  %v6646_v35 = vsub.f32 %v10962_v6, %v11093_v26  ;;  %v6647_v45 = vsub.f32 %v10977_v15, %v11093_v26 }
0x160b   :  { %12837 = vst [vmem:[#allocation79_spill] sm:$0xff] %v11171_v34  ;;  %12838 = vst [vmem:[#allocation80_spill] sm:$0xff] %v11174_v22  ;;  %v6650_v46 = vsub.f32 %v12823_v48, %v11093_v26  ;;  %v6651_v11 = vsub.f32 %v12824_v49, %v11093_v26  ;;  %v6652_v50 = vsub.f32 %v10983_v18, %v11093_v26 }
0x160c   :  { %12839 = vst [vmem:[#allocation81_spill] sm:$0xff] %v11177_v58  ;;  %v6653_v27 = vsub.f32 %v12825_v42, %v11093_v26  ;;  %v6654_v58 = vsub.f32 %v10994_v12, %v11093_v26  ;;  %v6659_v22 = vmul.f32 %v6642_v54, %v6642_v54  ;;  %v6660_v34 = vmul.f32 %v6643_v53, %v6643_v53 }
0x160d   :  { %v6661_v21 = vmul.f32 %v6644_v51, %v6644_v51  ;;  %v6662_v24 = vmul.f32 %v6645_v52, %v6645_v52  ;;  %v6663_v25 = vmul.f32 %v6646_v35, %v6646_v35  ;;  %v6664_v28 = vmul.f32 %v6647_v45, %v6647_v45  ;;  %v11215_v31 = vpop.permute.xlu1 %6804 }
0x160e   :  { %v6665_v23 = vmul.f32 %v6648_v32, %v6648_v32  ;;  %v6666_v29 = vmul.f32 %v6649_v33, %v6649_v33  ;;  %v6667_v30 = vmul.f32 %v6650_v46, %v6650_v46  ;;  %v6668_v17 = vmul.f32 %v6651_v11, %v6651_v11 }
0x160f   :  { %v6669_v16 = vmul.f32 %v6652_v50, %v6652_v50  ;;  %v6670_v63 = vmul.f32 %v6653_v27, %v6653_v27  ;;  %v6671_v41 = vmul.f32 %v6654_v58, %v6654_v58  ;;  %v11218_v40 = vmul.f32 %v11138_v43, %v6659_v22 }
0x1610   :  { %v11221_v39 = vmul.f32 %v11138_v43, %v6660_v34  ;;  %v11224_v54 = vmul.f32 %v11138_v43, %v6661_v21  ;;  %v11227_v53 = vmul.f32 %v11138_v43, %v6662_v24  ;;  %v11230_v51 = vmul.f32 %v11138_v43, %v6663_v25 }
0x1611   :  { %12840 = vst [vmem:[#allocation82_spill] sm:$0xff] %v11218_v40  ;;  %v11233_v52 = vmul.f32 %v11138_v43, %v6664_v28  ;;  %v11236_v58 = vmul.f32 %v11138_v43, %v6665_v23  ;;  %v11239_v22 = vmul.f32 %v11138_v43, %v6666_v29  ;;  %v11242_v34 = vmul.f32 %v11138_v43, %v6667_v30 }
0x1612   :  { %12841 = vst [vmem:[#allocation83_spill] sm:$0xff] %v11221_v39  ;;  %12842 = vst [vmem:[#allocation84_spill] sm:$0xff] %v11224_v54  ;;  %v11245_v21 = vmul.f32 %v11138_v43, %v6668_v17  ;;  %v11248_v24 = vmul.f32 %v11138_v43, %v6669_v16  ;;  %v11251_v25 = vmul.f32 %v11138_v43, %v6670_v63  ;;  %v11256_v23 = vpop.permute.xlu1 %7028 }
0x1613   :  { %12843 = vst [vmem:[#allocation85_spill] sm:$0xff] %v11227_v53  ;;  %12844 = vst [vmem:[#allocation86_spill] sm:$0xff] %v11230_v51  ;;  %v11254_v28 = vmul.f32 %v11138_v43, %v6671_v41  ;;  %v6910_v29 = vsub.f32 %v10969_v8, %v11191_v13  ;;  %v6911_v30 = vsub.f32 %v10972_v10, %v11191_v13 }
0x1614   :  { %12845 = vst [vmem:[#allocation87_spill] sm:$0xff] %v11233_v52  ;;  %12846 = vst [vmem:[#allocation88_spill] sm:$0xff] %v11236_v58  ;;  %v6912_v17 = vsub.f32 %v12823_v48, %v11191_v13  ;;  %v6913_v16 = vsub.f32 %v12824_v49, %v11191_v13  ;;  %v6914_v63 = vsub.f32 %v10983_v18, %v11191_v13 }
0x1615   :  { %12847 = vst [vmem:[#allocation89_spill] sm:$0xff] %v11239_v22  ;;  %12848 = vst [vmem:[#allocation90_spill] sm:$0xff] %v11242_v34  ;;  %v6915_v41 = vsub.f32 %v12825_v42, %v11191_v13  ;;  %v6916_v32 = vsub.f32 %v10994_v12, %v11191_v13  ;;  %v6927_v35 = vmul.f32 %v6910_v29, %v6910_v29  ;;  %v10311_v22 = vmov 9  }
0x1616   :  { %12849 = vst [vmem:[#allocation91_spill] sm:$0xff] %v11245_v21  ;;  %12850 = vst [vmem:[#allocation92_spill] sm:$0xff] %v11248_v24  ;;  %v6928_v45 = vmul.f32 %v6911_v30, %v6911_v30  ;;  %v6929_v46 = vmul.f32 %v6912_v17, %v6912_v17  ;;  %v6930_v11 = vmul.f32 %v6913_v16, %v6913_v16 }
0x1617   :  { %12851 = vst [vmem:[#allocation93_spill] sm:$0xff] %v11251_v25  ;;  %12852 = vst [vmem:[#allocation94_spill] sm:$0xff] %v11254_v28  ;;  %v11272_v33 = vpop.permute.xlu1 %6935  ;;  %v6931_v50 = vmul.f32 %v6914_v63, %v6914_v63  ;;  %v6932_v27 = vmul.f32 %v6915_v41, %v6915_v41  ;;  %v6933_v28 = vmul.f32 %v6916_v32, %v6916_v32 }
0x1618   :  { %v11275_v25 = vmul.f32 %v11272_v33, %v6927_v35  ;;  %v11278_v24 = vmul.f32 %v11272_v33, %v6928_v45  ;;  %v11281_v21 = vmul.f32 %v11272_v33, %v6929_v46  ;;  %v11284_v34 = vmul.f32 %v11272_v33, %v6930_v11 }
0x1619   :  { %v11287_v29 = vmul.f32 %v11272_v33, %v6931_v50  ;;  %v11290_v30 = vmul.f32 %v11272_v33, %v6932_v27  ;;  %v11293_v17 = vmul.f32 %v11272_v33, %v6933_v28  ;;  %v11297_v16 = vsub.f32 %v10969_v8, %v11256_v23 }
0x161a   :  { %12853 = vst [vmem:[#allocation95_spill] sm:$0xff] %v11275_v25  ;;  %12854 = vst [vmem:[#allocation96_spill] sm:$0xff] %v11278_v24  ;;  %v11303_v41 = vsub.f32 %v10972_v10, %v11256_v23  ;;  %v7044_v32 = vsub.f32 %v12824_v49, %v11256_v23  ;;  %v7045_v35 = vsub.f32 %v10983_v18, %v11256_v23  ;;  %v10310_v25 = vmov 1  }
0x161b   :  { %12855 = vst [vmem:[#allocation97_spill] sm:$0xff] %v11281_v21  ;;  %12856 = vst [vmem:[#allocation98_spill] sm:$0xff] %v11284_v34  ;;  %v7046_v28 = vsub.f32 %v12825_v42, %v11256_v23  ;;  %v7047_v45 = vsub.f32 %v10994_v12, %v11256_v23  ;;  %v6909_v51 = vsub.f32 %v10977_v15, %v11191_v13 }
0x161c   :  { %12857 = vst [vmem:[#allocation99_spill] sm:$0xff] %v11287_v29  ;;  %12858 = vst [vmem:[#allocation100_spill] sm:$0xff] %v11290_v30  ;;  %v11299_v63 = vpop.permute.xlu1 %7159  ;;  %v7061_v11 = vmul.f32 %v7044_v32, %v7044_v32  ;;  %v7062_v50 = vmul.f32 %v7045_v35, %v7045_v35 }
0x161d   :  { %12859 = vst [vmem:[#allocation101_spill] sm:$0xff] %v11293_v17  ;;  %v7063_v27 = vmul.f32 %v7046_v28, %v7046_v28  ;;  %v7064_v17 = vmul.f32 %v7047_v45, %v7047_v45  ;;  %v7176_v24 = vsub.f32 %v10983_v18, %v11299_v63  ;;  %v7177_v32 = vsub.f32 %v12825_v42, %v11299_v63 }
0x161e   :  { %v7178_v35 = vsub.f32 %v10994_v12, %v11299_v63  ;;  %v6926_v37 = vmul.f32 %v6909_v51, %v6909_v51 }
0x161f   :  { %v7193_v45 = vmul.f32 %v7176_v24, %v7176_v24  ;;  %v10312_v24 = vmov 2  }
0x1621   :  { %v11313_v46 = vpop.permute.xlu1 %7066 }
0x1622   :  { %v11316_v30 = vmul.f32 %v11313_v46, %v7061_v11  ;;  %v11319_v29 = vmul.f32 %v11313_v46, %v7062_v50  ;;  %v11322_v34 = vmul.f32 %v11313_v46, %v7063_v27  ;;  %v11325_v21 = vmul.f32 %v11313_v46, %v7064_v17 }
0x1623   :  { %v7194_v11 = vmul.f32 %v7177_v32, %v7177_v32  ;;  %v7195_v50 = vmul.f32 %v7178_v35, %v7178_v35  ;;  %v10313_v32 = vmov 3   ;;  %v10314_v35 = vmov 4  }
0x1624   :  { %12860 = vst [vmem:[#allocation102_spill] sm:$0xff] %v11316_v30  ;;  %12861 = vst [vmem:[#allocation103_spill] sm:$0xff] %v11319_v29  ;;  %v12867_v29 = vld [vmem:[#allocation41_spill] sm:$0xff] }
0x1625   :  { %12862 = vst [vmem:[#allocation104_spill] sm:$0xff] %v11322_v34  ;;  %12863 = vst [vmem:[#allocation105_spill] sm:$0xff] %v11325_v21 }
0x1626   :  { %v11333_v28 = vpop.permute.xlu1 %7197 }
0x1627   :  { %v11336_v27 = vmul.f32 %v11333_v28, %v7193_v45  ;;  %v11339_v17 = vmul.f32 %v11333_v28, %v7194_v11  ;;  %v11342_v21 = vmul.f32 %v11333_v28, %v7195_v50  ;;  %v10315_v45 = vmov 5   ;;  %v12868_v11 = vld [vmem:[#allocation40_spill] sm:$0xff]  ;;  %v12869_v50 = vld [vmem:[#allocation42_spill] sm:$0xff] }
0x1629   :  { %12864 = vst [vmem:[#allocation106_spill] sm:$0xff] %v11336_v27  ;;  %12865 = vst [vmem:[#allocation107_spill] sm:$0xff] %v11339_v17  ;;  %v6657_v17 = vmul.f32 %v11181_v3, %v11181_v3  ;;  %v6900_v27 = vsub.f32 %v12869_v50, %v11191_v13  ;;  %v6905_v3 = vsub.f32 %v10964_v7, %v11191_v13 }
0x162a   :  { %12866 = vst [vmem:[#allocation108_spill] sm:$0xff] %v11342_v21 }
0x162b   :  { %v11396_v54 = vmul.f32 %v11138_v43, %v6657_v17 }
0x162d   :  { %12876 = vst [vmem:[#allocation110_spill] sm:$0xff] %v11396_v54 }
0x1662   :  { %v6149_v34 = vpop.xlane.xlu0 %6148 }
0x1663   :  { %v6150_v30 = vsub.f32 %v12867_v29, %v6149_v34  ;;  %v10316_v34 = vmov 6   ;;  %v10317_v29 = vmov 7  }
0x1665   :  { %7349 = vperm.xlu0 %8496, %v6150_v30   ;;  %6301 = vperm.xlu1 %8488, %v6150_v30  }
0x1669   :  { %8489 = vset.pattern.permute.xlu1 %v10310_v25  ;;  %8499 = vset.pattern.permute.xlu0 %v10311_v22  ;;  %v10318_v25 = vmov 29  }
0x166a   :  { %6432 = vperm.xlu1 %8489, %v6150_v30   ;;  %v6767_v54 = vpop.permute.xlu0 %6766 }
0x166e   :  { %8490 = vset.pattern.permute.xlu1 %v10312_v24  ;;  %v6507_v24 = vsub.f32 %v12869_v50, %v11018_v44 }
0x166f   :  { %6563 = vperm.xlu1 %8490, %v6150_v30  }
0x1673   :  { %8491 = vset.pattern.permute.xlu1 %v10313_v32  ;;  %v12870_v32 = vld [vmem:[#allocation43_spill] sm:$0xff] }
0x1674   :  { %6694 = vperm.xlu1 %8491, %v6150_v30   ;;  %v7032_v51 = vsub.f32 %v12870_v32, %v11256_v23 }
0x1678   :  { %8492 = vset.pattern.permute.xlu1 %v10314_v35  ;;  %v6508_v35 = vsub.f32 %v12870_v32, %v11018_v44  ;;  %v6658_v44 = vmul.f32 %v11185_v20, %v11185_v20  ;;  %v6906_v20 = vsub.f32 %v10966_v9, %v11191_v13 }
0x1679   :  { %6825 = vperm.xlu1 %8492, %v6150_v30  }
0x167a   :  { %v6525_v21 = vmul.f32 %v6508_v35, %v6508_v35  ;;  %v6904_v35 = vsub.f32 %v10959_v5, %v11191_v13  ;;  %v11399_v39 = vmul.f32 %v11138_v43, %v6658_v44  ;;  %v7031_v44 = vsub.f32 %v12869_v50, %v11256_v23 }
0x167c   :  { %12877 = vst [vmem:[#allocation111_spill] sm:$0xff] %v11399_v39 }
0x167d   :  { %8493 = vset.pattern.permute.xlu1 %v10315_v45  ;;  %v6638_v45 = vsub.f32 %v12869_v50, %v11093_v26 }
0x167e   :  { %6956 = vperm.xlu1 %8493, %v6150_v30  }
0x1682   :  { %8494 = vset.pattern.permute.xlu1 %v10316_v34  ;;  %v6639_v34 = vsub.f32 %v12870_v32, %v11093_v26  ;;  %v6901_v26 = vsub.f32 %v12870_v32, %v11191_v13 }
0x1683   :  { %7087 = vperm.xlu1 %8494, %v6150_v30  }
0x1684   :  { %v6918_v40 = vmul.f32 %v6901_v26, %v6901_v26  ;;  %v7033_v26 = vsub.f32 %v10948_v1, %v11256_v23 }
0x1687   :  { %8495 = vset.pattern.permute.xlu1 %v10317_v29  ;;  %v6524_v29 = vmul.f32 %v6507_v24, %v6507_v24  ;;  %v6903_v24 = vsub.f32 %v10951_v2, %v11191_v13 }
0x1688   :  { %7218 = vperm.xlu1 %8495, %v6150_v30  }
0x168c   :  { %8497 = vset.pattern.permute.xlu1 %v10318_v25  ;;  %v6526_v25 = vmul.f32 %v11103_v57, %v11103_v57  ;;  %v6902_v57 = vsub.f32 %v10948_v1, %v11191_v13 }
0x168d   :  { %7459 = vperm.xlu1 %8497, %v12868_v11   ;;  %v6656_v11 = vmul.f32 %v6639_v34, %v6639_v34  ;;  %v6908_v34 = vsub.f32 %v10962_v6, %v11191_v13 }
0x168e   :  { %v11385_v58 = vmul.f32 %v11123_v47, %v6526_v25  ;;  %v6921_v25 = vmul.f32 %v6904_v35, %v6904_v35  ;;  %v7037_v35 = vsub.f32 %v10966_v9, %v11256_v23 }
0x168f   :  { %v11393_v53 = vmul.f32 %v11138_v43, %v6656_v11  ;;  %v11405_v11 = vmul.f32 %v11272_v33, %v6918_v40  ;;  %v7034_v40 = vsub.f32 %v10951_v2, %v11256_v23 }
0x1690   :  { %12873 = vst [vmem:[#allocation42_spill] sm:$0xff] %v11385_v58  ;;  %v6922_v58 = vmul.f32 %v6905_v3, %v6905_v3  ;;  %v7038_v3 = vsub.f32 %v10974_v14, %v11256_v23 }
0x1691   :  { %8498 = vset.pattern.permute.xlu1 %v10311_v22  ;;  %v11357_v22 = vmul.f32 %v11123_v47, %v6524_v29  ;;  %v11382_v29 = vmul.f32 %v11123_v47, %v6525_v21  ;;  %12875 = vst [vmem:[#allocation109_spill] sm:$0xff] %v11393_v53  ;;  %v6917_v21 = vmul.f32 %v6900_v27, %v6900_v27  ;;  %12879 = vst [vmem:[#allocation113_spill] sm:$0xff] %v11405_v11 }
0x1692   :  { %7480 = vperm.xlu1 %8498, %v6150_v30   ;;  %v6655_v30 = vmul.f32 %v6638_v45, %v6638_v45  ;;  %v6907_v45 = vsub.f32 %v10974_v14, %v11191_v13  ;;  %v6920_v47 = vmul.f32 %v6903_v24, %v6903_v24  ;;  %v11414_v27 = vmul.f32 %v11272_v33, %v6921_v25 }
0x1693   :  { %12871 = vst [vmem:[#allocation41_spill] sm:$0xff] %v11357_v22  ;;  %12872 = vst [vmem:[#allocation40_spill] sm:$0xff] %v11382_v29  ;;  %v6919_v29 = vmul.f32 %v6902_v57, %v6902_v57  ;;  %v6925_v22 = vmul.f32 %v6908_v34, %v6908_v34  ;;  %v11402_v13 = vmul.f32 %v11272_v33, %v6917_v21 }
0x1694   :  { %v11388_v52 = vmul.f32 %v11138_v43, %v6655_v30  ;;  %v6923_v30 = vmul.f32 %v6906_v20, %v6906_v20  ;;  %v11411_v43 = vmul.f32 %v11272_v33, %v6920_v47  ;;  %12882 = vst [vmem:[#allocation116_spill] sm:$0xff] %v11414_v27  ;;  %v7035_v57 = vsub.f32 %v10959_v5, %v11256_v23 }
0x1695   :  { %12878 = vst [vmem:[#allocation112_spill] sm:$0xff] %v11402_v13  ;;  %v11408_v17 = vmul.f32 %v11272_v33, %v6919_v29  ;;  %v7036_v24 = vsub.f32 %v10964_v7, %v11256_v23  ;;  %v7039_v20 = vsub.f32 %v10962_v6, %v11256_v23  ;;  %v11437_v34 = vmul.f32 %v11272_v33, %v6922_v58 }
0x1696   :  { %12874 = vst [vmem:[#allocation43_spill] sm:$0xff] %v11388_v52  ;;  %v6924_v52 = vmul.f32 %v6907_v45, %v6907_v45  ;;  %12881 = vst [vmem:[#allocation115_spill] sm:$0xff] %v11411_v43  ;;  %v7040_v45 = vsub.f32 %v10977_v15, %v11256_v23  ;;  %v11440_v29 = vmul.f32 %v11272_v33, %v6923_v30 }
0x1697   :  { %12880 = vst [vmem:[#allocation114_spill] sm:$0xff] %v11408_v17  ;;  %12883 = vst [vmem:[#allocation117_spill] sm:$0xff] %v11437_v34  ;;  %v7043_v47 = vsub.f32 %v12823_v48, %v11256_v23  ;;  %v11448_v25 = vmul.f32 %v11272_v33, %v6925_v22  ;;  %v11451_v27 = vmul.f32 %v11272_v33, %v6926_v37 }
0x1698   :  { %12884 = vst [vmem:[#allocation118_spill] sm:$0xff] %v11440_v29  ;;  %v11443_v21 = vmul.f32 %v11272_v33, %v6924_v52  ;;  %v7048_v11 = vmul.f32 %v7031_v44, %v7031_v44  ;;  %v7049_v13 = vmul.f32 %v7032_v51, %v7032_v51  ;;  %v7050_v43 = vmul.f32 %v7033_v26, %v7033_v26 }
0x1699   :  { %12886 = vst [vmem:[#allocation120_spill] sm:$0xff] %v11448_v25  ;;  %12887 = vst [vmem:[#allocation121_spill] sm:$0xff] %v11451_v27  ;;  %v7051_v58 = vmul.f32 %v7034_v40, %v7034_v40  ;;  %v7052_v34 = vmul.f32 %v7035_v57, %v7035_v57  ;;  %v7053_v17 = vmul.f32 %v7036_v24, %v7036_v24 }
0x169a   :  { %12885 = vst [vmem:[#allocation119_spill] sm:$0xff] %v11443_v21  ;;  %v7054_v30 = vmul.f32 %v7037_v35, %v7037_v35  ;;  %v7055_v29 = vmul.f32 %v7038_v3, %v7038_v3  ;;  %v7056_v53 = vmul.f32 %v7039_v20, %v7039_v20  ;;  %v7057_v52 = vmul.f32 %v7040_v45, %v7040_v45 }
0x169b   :  { %v7058_v21 = vmul.f32 %v11297_v16, %v11297_v16  ;;  %v7059_v23 = vmul.f32 %v11303_v41, %v11303_v41  ;;  %v7060_v22 = vmul.f32 %v7043_v47, %v7043_v47  ;;  %v11458_v37 = vmul.f32 %v11313_v46, %v7048_v11 }
0x169c   :  { %v11461_v33 = vmul.f32 %v11313_v46, %v7049_v13  ;;  %v11464_v44 = vmul.f32 %v11313_v46, %v7050_v43  ;;  %v11467_v51 = vmul.f32 %v11313_v46, %v7051_v58  ;;  %v11470_v26 = vmul.f32 %v11313_v46, %v7052_v34 }
0x169d   :  { %12888 = vst [vmem:[#allocation122_spill] sm:$0xff] %v11458_v37  ;;  %v11473_v16 = vmul.f32 %v11313_v46, %v7053_v17  ;;  %v11476_v41 = vmul.f32 %v11313_v46, %v7054_v30  ;;  %v11479_v11 = vmul.f32 %v11313_v46, %v7055_v29  ;;  %v11482_v13 = vmul.f32 %v11313_v46, %v7056_v53 }
0x169e   :  { %12889 = vst [vmem:[#allocation123_spill] sm:$0xff] %v11461_v33  ;;  %12890 = vst [vmem:[#allocation124_spill] sm:$0xff] %v11464_v44  ;;  %v11485_v43 = vmul.f32 %v11313_v46, %v7057_v52  ;;  %v11488_v40 = vmul.f32 %v11313_v46, %v7058_v21  ;;  %v7162_v57 = vsub.f32 %v12869_v50, %v11299_v63 }
0x169f   :  { %12891 = vst [vmem:[#allocation125_spill] sm:$0xff] %v11467_v51  ;;  %12892 = vst [vmem:[#allocation126_spill] sm:$0xff] %v11470_v26  ;;  %v7163_v17 = vsub.f32 %v12870_v32, %v11299_v63  ;;  %v7164_v24 = vsub.f32 %v10948_v1, %v11299_v63  ;;  %v7165_v35 = vsub.f32 %v10951_v2, %v11299_v63 }
0x16a0   :  { %12893 = vst [vmem:[#allocation127_spill] sm:$0xff] %v11473_v16  ;;  %12894 = vst [vmem:[#allocation128_spill] sm:$0xff] %v11476_v41  ;;  %v7166_v53 = vsub.f32 %v10959_v5, %v11299_v63  ;;  %v7167_v3 = vsub.f32 %v10964_v7, %v11299_v63  ;;  %v7168_v20 = vsub.f32 %v10966_v9, %v11299_v63 }
0x16a1   :  { %12895 = vst [vmem:[#allocation129_spill] sm:$0xff] %v11479_v11  ;;  %12896 = vst [vmem:[#allocation130_spill] sm:$0xff] %v11482_v13  ;;  %v7169_v45 = vsub.f32 %v10974_v14, %v11299_v63  ;;  %v7170_v34 = vsub.f32 %v10962_v6, %v11299_v63  ;;  %v7171_v29 = vsub.f32 %v10977_v15, %v11299_v63 }
0x16a2   :  { %12897 = vst [vmem:[#allocation131_spill] sm:$0xff] %v11485_v43  ;;  %12898 = vst [vmem:[#allocation132_spill] sm:$0xff] %v11488_v40  ;;  %v7172_v21 = vsub.f32 %v10969_v8, %v11299_v63  ;;  %v7173_v47 = vsub.f32 %v10972_v10, %v11299_v63  ;;  %v7174_v58 = vsub.f32 %v12823_v48, %v11299_v63 }
0x16a3   :  { %v7175_v30 = vsub.f32 %v12824_v49, %v11299_v63  ;;  %v11519_v52 = vmul.f32 %v11313_v46, %v7059_v23  ;;  %v11522_v13 = vmul.f32 %v11313_v46, %v7060_v22  ;;  %v7179_v40 = vmul.f32 %v7162_v57, %v7162_v57 }
0x16a4   :  { %v7180_v43 = vmul.f32 %v7163_v17, %v7163_v17  ;;  %v7181_v11 = vmul.f32 %v7164_v24, %v7164_v24  ;;  %v7182_v41 = vmul.f32 %v7165_v35, %v7165_v35  ;;  %v7183_v16 = vmul.f32 %v7166_v53, %v7166_v53 }
0x16a5   :  { %12899 = vst [vmem:[#allocation133_spill] sm:$0xff] %v11519_v52  ;;  %12900 = vst [vmem:[#allocation134_spill] sm:$0xff] %v11522_v13  ;;  %v7184_v26 = vmul.f32 %v7167_v3, %v7167_v3  ;;  %v7185_v33 = vmul.f32 %v7168_v20, %v7168_v20  ;;  %v7186_v37 = vmul.f32 %v7169_v45, %v7169_v45 }
0x16a6   :  { %v7187_v51 = vmul.f32 %v7170_v34, %v7170_v34  ;;  %v7188_v44 = vmul.f32 %v7171_v29, %v7171_v29  ;;  %v7189_v27 = vmul.f32 %v7172_v21, %v7172_v21  ;;  %v7190_v25 = vmul.f32 %v7173_v47, %v7173_v47 }
0x16a7   :  { %v7191_v39 = vmul.f32 %v7174_v58, %v7174_v58  ;;  %v7192_v63 = vmul.f32 %v7175_v30, %v7175_v30  ;;  %v11525_v23 = vmul.f32 %v11333_v28, %v7179_v40  ;;  %v11528_v46 = vmul.f32 %v11333_v28, %v7180_v43 }
0x16a8   :  { %v11531_v22 = vmul.f32 %v11333_v28, %v7181_v11  ;;  %v11534_v57 = vmul.f32 %v11333_v28, %v7182_v41  ;;  %v11537_v17 = vmul.f32 %v11333_v28, %v7183_v16  ;;  %v11540_v24 = vmul.f32 %v11333_v28, %v7184_v26 }
0x16a9   :  { %12901 = vst [vmem:[#allocation135_spill] sm:$0xff] %v11525_v23  ;;  %12902 = vst [vmem:[#allocation136_spill] sm:$0xff] %v11528_v46  ;;  %v11543_v35 = vmul.f32 %v11333_v28, %v7185_v33  ;;  %v11546_v40 = vmul.f32 %v11333_v28, %v7186_v37  ;;  %v11549_v43 = vmul.f32 %v11333_v28, %v7187_v51 }
0x16aa   :  { %12903 = vst [vmem:[#allocation137_spill] sm:$0xff] %v11531_v22  ;;  %12904 = vst [vmem:[#allocation138_spill] sm:$0xff] %v11534_v57  ;;  %v11552_v11 = vmul.f32 %v11333_v28, %v7188_v44  ;;  %v11555_v41 = vmul.f32 %v11333_v28, %v7189_v27  ;;  %v11558_v16 = vmul.f32 %v11333_v28, %v7190_v25 }
0x16ab   :  { %12905 = vst [vmem:[#allocation139_spill] sm:$0xff] %v11537_v17  ;;  %12906 = vst [vmem:[#allocation140_spill] sm:$0xff] %v11540_v24  ;;  %v6769_v26 = vsub.f32 %v12869_v50, %v6767_v54  ;;  %v6770_v33 = vsub.f32 %v12870_v32, %v6767_v54  ;;  %v11563_v53 = vmul.f32 %v11333_v28, %v7191_v39 }
0x16ac   :  { %12907 = vst [vmem:[#allocation141_spill] sm:$0xff] %v11543_v35  ;;  %12908 = vst [vmem:[#allocation142_spill] sm:$0xff] %v11546_v40  ;;  %v11566_v37 = vmul.f32 %v11333_v28, %v7192_v63  ;;  %v6771_v51 = vsub.f32 %v10948_v1, %v6767_v54  ;;  %v6772_v44 = vsub.f32 %v10951_v2, %v6767_v54 }
0x16ad   :  { %12909 = vst [vmem:[#allocation143_spill] sm:$0xff] %v11549_v43  ;;  %12910 = vst [vmem:[#allocation144_spill] sm:$0xff] %v11552_v11  ;;  %v6773_v27 = vsub.f32 %v10959_v5, %v6767_v54  ;;  %v6774_v3 = vsub.f32 %v10964_v7, %v6767_v54  ;;  %v6775_v25 = vsub.f32 %v10966_v9, %v6767_v54 }
0x16ae   :  { %12911 = vst [vmem:[#allocation145_spill] sm:$0xff] %v11555_v41  ;;  %12912 = vst [vmem:[#allocation146_spill] sm:$0xff] %v11558_v16  ;;  %v6776_v20 = vsub.f32 %v10974_v14, %v6767_v54  ;;  %v6777_v45 = vsub.f32 %v10962_v6, %v6767_v54  ;;  %v6778_v39 = vsub.f32 %v10977_v15, %v6767_v54 }
0x16af   :  { %12913 = vst [vmem:[#allocation147_spill] sm:$0xff] %v11563_v53  ;;  %12914 = vst [vmem:[#allocation148_spill] sm:$0xff] %v11566_v37  ;;  %v6779_v34 = vsub.f32 %v10969_v8, %v6767_v54  ;;  %v6780_v28 = vsub.f32 %v10972_v10, %v6767_v54  ;;  %v6781_v29 = vsub.f32 %v12823_v48, %v6767_v54 }
0x16b0   :  { %v6782_v21 = vsub.f32 %v12824_v49, %v6767_v54  ;;  %v6783_v47 = vsub.f32 %v10983_v18, %v6767_v54  ;;  %v6784_v58 = vsub.f32 %v12825_v42, %v6767_v54  ;;  %v6785_v30 = vsub.f32 %v10994_v12, %v6767_v54 }
0x16b1   :  { %v6786_v63 = vmul.f32 %v6769_v26, %v6769_v26  ;;  %v6787_v37 = vmul.f32 %v6770_v33, %v6770_v33  ;;  %v6788_v53 = vmul.f32 %v6771_v51, %v6771_v51  ;;  %v6789_v16 = vmul.f32 %v6772_v44, %v6772_v44  ;;  %v7291_v51 = vpop.permute.xlu0 %7290 }
0x16b2   :  { %v6790_v11 = vmul.f32 %v6773_v27, %v6773_v27  ;;  %v6791_v41 = vmul.f32 %v6774_v3, %v6774_v3  ;;  %v6792_v43 = vmul.f32 %v6775_v25, %v6775_v25  ;;  %v6793_v40 = vmul.f32 %v6776_v20, %v6776_v20 }
0x16b3   :  { %v6794_v35 = vmul.f32 %v6777_v45, %v6777_v45  ;;  %v6795_v24 = vmul.f32 %v6778_v39, %v6778_v39  ;;  %v6796_v17 = vmul.f32 %v6779_v34, %v6779_v34  ;;  %v6797_v46 = vmul.f32 %v6780_v28, %v6780_v28 }
0x16b4   :  { %v6798_v23 = vmul.f32 %v6781_v29, %v6781_v29  ;;  %v6799_v57 = vmul.f32 %v6782_v21, %v6782_v21  ;;  %v6800_v22 = vmul.f32 %v6783_v47, %v6783_v47  ;;  %v6801_v13 = vmul.f32 %v6784_v58, %v6784_v58 }
0x16b5   :  { %v6802_v52 = vmul.f32 %v6785_v30, %v6785_v30  ;;  %v11584_v36 = vmul.f32 %v11215_v31, %v6786_v63  ;;  %v11587_v54 = vmul.f32 %v11215_v31, %v6787_v37  ;;  %v11590_v26 = vmul.f32 %v11215_v31, %v6788_v53 }
0x16b6   :  { %v11593_v33 = vmul.f32 %v11215_v31, %v6789_v16  ;;  %v11596_v44 = vmul.f32 %v11215_v31, %v6790_v11  ;;  %v11599_v27 = vmul.f32 %v11215_v31, %v6791_v41  ;;  %v11602_v3 = vmul.f32 %v11215_v31, %v6792_v43 }
0x16b7   :  { %v11605_v25 = vmul.f32 %v11215_v31, %v6793_v40  ;;  %v11608_v37 = vmul.f32 %v11215_v31, %v6794_v35  ;;  %v11611_v53 = vmul.f32 %v11215_v31, %v6795_v24  ;;  %v11614_v16 = vmul.f32 %v11215_v31, %v6796_v17 }
0x16b8   :  { %12915 = vst [vmem:[#allocation149_spill] sm:$0xff] %v11602_v3  ;;  %v11617_v11 = vmul.f32 %v11215_v31, %v6797_v46  ;;  %v11620_v41 = vmul.f32 %v11215_v31, %v6798_v23  ;;  %v11623_v43 = vmul.f32 %v11215_v31, %v6799_v57  ;;  %v11626_v40 = vmul.f32 %v11215_v31, %v6800_v22  ;;  %v11637_v23 = vpop.permute.xlu1 %7328 }
0x16b9   :  { %12916 = vst [vmem:[#allocation150_spill] sm:$0xff] %v11605_v25  ;;  %12917 = vst [vmem:[#allocation151_spill] sm:$0xff] %v11608_v37  ;;  %v11629_v35 = vmul.f32 %v11215_v31, %v6801_v13  ;;  %v11632_v24 = vmul.f32 %v11215_v31, %v6802_v52  ;;  %v7293_v17 = vsub.f32 %v12869_v50, %v7291_v51 }
0x16ba   :  { %12918 = vst [vmem:[#allocation152_spill] sm:$0xff] %v11611_v53  ;;  %12919 = vst [vmem:[#allocation153_spill] sm:$0xff] %v11617_v11  ;;  %v7294_v46 = vsub.f32 %v12870_v32, %v7291_v51  ;;  %v7295_v20 = vsub.f32 %v10948_v1, %v7291_v51  ;;  %v7296_v57 = vsub.f32 %v10951_v2, %v7291_v51 }
0x16bb   :  { %12920 = vst [vmem:[#allocation154_spill] sm:$0xff] %v11620_v41  ;;  %12921 = vst [vmem:[#allocation155_spill] sm:$0xff] %v11623_v43  ;;  %v7297_v45 = vsub.f32 %v10959_v5, %v7291_v51  ;;  %v7298_v22 = vsub.f32 %v10964_v7, %v7291_v51  ;;  %v7299_v13 = vsub.f32 %v10966_v9, %v7291_v51 }
0x16bc   :  { %12922 = vst [vmem:[#allocation156_spill] sm:$0xff] %v11626_v40  ;;  %12923 = vst [vmem:[#allocation157_spill] sm:$0xff] %v11629_v35  ;;  %v7300_v39 = vsub.f32 %v10974_v14, %v7291_v51  ;;  %v7301_v31 = vsub.f32 %v10962_v6, %v7291_v51  ;;  %v7302_v52 = vsub.f32 %v10977_v15, %v7291_v51 }
0x16bd   :  { %12924 = vst [vmem:[#allocation158_spill] sm:$0xff] %v11632_v24  ;;  %v7303_v34 = vsub.f32 %v10969_v8, %v7291_v51  ;;  %v7304_v28 = vsub.f32 %v10972_v10, %v7291_v51  ;;  %v7305_v29 = vsub.f32 %v12823_v48, %v7291_v51  ;;  %v7306_v21 = vsub.f32 %v12824_v49, %v7291_v51 }
0x16be   :  { %v7307_v47 = vsub.f32 %v10983_v18, %v7291_v51  ;;  %v7308_v58 = vsub.f32 %v12825_v42, %v7291_v51  ;;  %v7309_v30 = vsub.f32 %v10994_v12, %v7291_v51  ;;  %v7310_v63 = vmul.f32 %v7293_v17, %v7293_v17 }
0x16bf   :  { %v7311_v24 = vmul.f32 %v7294_v46, %v7294_v46  ;;  %v7312_v40 = vmul.f32 %v7295_v20, %v7295_v20  ;;  %v7313_v43 = vmul.f32 %v7296_v57, %v7296_v57  ;;  %v7314_v41 = vmul.f32 %v7297_v45, %v7297_v45 }
0x16c0   :  { %v7315_v53 = vmul.f32 %v7298_v22, %v7298_v22  ;;  %v7316_v11 = vmul.f32 %v7299_v13, %v7299_v13  ;;  %v7317_v51 = vmul.f32 %v7300_v39, %v7300_v39  ;;  %v7318_v17 = vmul.f32 %v7301_v31, %v7301_v31 }
0x16c1   :  { %v7319_v46 = vmul.f32 %v7302_v52, %v7302_v52  ;;  %v7320_v57 = vmul.f32 %v7303_v34, %v7303_v34  ;;  %v7321_v45 = vmul.f32 %v7304_v28, %v7304_v28  ;;  %v11665_v22 = vmul.f32 %v7305_v29, %v7305_v29 }
0x16c2   :  { %v11673_v13 = vmul.f32 %v7308_v58, %v7308_v58  ;;  %v11679_v28 = vmul.f32 %v7309_v30, %v7309_v30  ;;  %v12929_v30 = vld [vmem:[#allocation48_spill] sm:$0xff] }
0x16e4   :  { %v11653_v35 = vpop.permute.xlu1 %6301 }
0x16e5   :  { %v6304_v37 = vsub.f32 %v11653_v35, %v11030_v19  ;;  %v6305_v25 = vsub.f32 %v11653_v35, %v11032_v38  ;;  %v6306_v3 = vsub.f32 %v11653_v35, %v11034_v59  ;;  %v6307_v12 = vsub.f32 %v11653_v35, %v11036_v55 }
0x16e6   :  { %v6308_v20 = vsub.f32 %v11653_v35, %v11038_v56  ;;  %v6309_v19 = vsub.f32 %v11653_v35, %v11040_v60  ;;  %v11669_v38 = vmul.f32 %v7306_v21, %v7306_v21  ;;  %v11671_v59 = vmul.f32 %v7307_v47, %v7307_v47 }
0x16e7   :  { %v6310_v55 = vsub.f32 %v11653_v35, %v11042_v4  ;;  %v6321_v39 = vmul.f32 1.442695, %v6304_v37  ;;  %v6323_v31 = vmul.f32 1.442695, %v6305_v25  ;;  %v6325_v52 = vmul.f32 1.442695, %v6306_v3 }
0x16e8   :  { %v6311_v56 = vsub.f32 %v11653_v35, %v11044_v61  ;;  %v6327_v34 = vmul.f32 1.442695, %v6307_v12  ;;  %v11682_v60 = vmul.f32 %v11637_v23, %v7310_v63  ;;  %v6312_v29 = vsub.f32 %v11653_v35, %v11046_v0  ;;  %v12927_v25 = vld [vmem:[#allocation47_spill] sm:$0xff]  ;;  %v12931_v12 = vld [vmem:[#allocation49_spill] sm:$0xff] }
0x16e9   :  { %9506 = vpow2.f32 %v6321_v39  ;;  %v6329_v21 = vmul.f32 1.442695, %v6308_v20  ;;  %v11687_v47 = vmul.f32 %v11637_v23, %v7311_v24  ;;  %v6313_v4 = vsub.f32 %v11653_v35, %v11048_v62 }
0x16ea   :  { %12925 = vst [vmem:[#allocation159_spill] sm:$0xff] %v11682_v60  ;;  %9508 = vpow2.f32 %v6323_v31  ;;  %v6331_v3 = vmul.f32 1.442695, %v6309_v19  ;;  %v11692_v61 = vmul.f32 %v11637_v23, %v7312_v40  ;;  %v6314_v37 = vsub.f32 %v11653_v35, %v12927_v25 }
0x16eb   :  { %12926 = vst [vmem:[#allocation160_spill] sm:$0xff] %v11687_v47  ;;  %9510 = vpow2.f32 %v6325_v52  ;;  %v6333_v58 = vmul.f32 1.442695, %v6310_v55  ;;  %v11697_v0 = vmul.f32 %v11637_v23, %v7313_v43  ;;  %v6315_v24 = vsub.f32 %v11653_v35, %v12929_v30  ;;  %v12933_v55 = vld [vmem:[#allocation50_spill] sm:$0xff]  ;;  %v11714_v52 = vpop.permute.xlu1 %6432 }
0x16ec   :  { %9512 = vpow2.f32 %v6327_v34  ;;  %v6335_v63 = vmul.f32 1.442695, %v6311_v56  ;;  %v11702_v62 = vmul.f32 %v11637_v23, %v7314_v41  ;;  %v6316_v40 = vsub.f32 %v11653_v35, %v12931_v12  ;;  %v12935_v41 = vld [vmem:[#allocation51_spill] sm:$0xff] }
0x16ed   :  { %12928 = vst [vmem:[#allocation47_spill] sm:$0xff] %v11697_v0  ;;  %9514 = vpow2.f32 %v6329_v21  ;;  %v6337_v20 = vmul.f32 1.442695, %v6312_v29  ;;  %v11707_v19 = vmul.f32 %v11637_v23, %v7315_v53  ;;  %v6317_v43 = vsub.f32 %v11653_v35, %v12933_v55  ;;  %v12937_v53 = vld [vmem:[#allocation52_spill] sm:$0xff] }
0x16ee   :  { %12930 = vst [vmem:[#allocation48_spill] sm:$0xff] %v11702_v62  ;;  %9516 = vpow2.f32 %v6331_v3  ;;  %v6339_v39 = vmul.f32 1.442695, %v6313_v4  ;;  %v11712_v31 = vmul.f32 %v11637_v23, %v7316_v11  ;;  %v6318_v56 = vsub.f32 %v11653_v35, %v12935_v41  ;;  %v12939_v11 = vld [vmem:[#allocation53_spill] sm:$0xff] }
0x16ef   :  { %12932 = vst [vmem:[#allocation49_spill] sm:$0xff] %v11707_v19  ;;  %9518 = vpow2.f32 %v6333_v58  ;;  %v6341_v34 = vmul.f32 1.442695, %v6314_v37  ;;  %v11719_v29 = vmul.f32 %v11637_v23, %v7317_v51  ;;  %v6319_v21 = vsub.f32 %v11653_v35, %v12937_v53  ;;  %v12941_v51 = vld [vmem:[#allocation54_spill] sm:$0xff] }
0x16f0   :  { %12934 = vst [vmem:[#allocation50_spill] sm:$0xff] %v11712_v31  ;;  %9520 = vpow2.f32 %v6335_v63  ;;  %v6343_v25 = vmul.f32 1.442695, %v6315_v24  ;;  %v11724_v4 = vmul.f32 %v11637_v23, %v7318_v17  ;;  %v6320_v3 = vsub.f32 %v11653_v35, %v12939_v11  ;;  %v12943_v63 = vld [vmem:[#allocation55_spill] sm:$0xff]  ;;  %v12949_v11 = vld [vmem:[#allocation58_spill] sm:$0xff] }
0x16f1   :  { %12936 = vst [vmem:[#allocation51_spill] sm:$0xff] %v11719_v29  ;;  %9522 = vpow2.f32 %v6337_v20  ;;  %v6345_v30 = vmul.f32 1.442695, %v6316_v40  ;;  %v11729_v12 = vmul.f32 %v11637_v23, %v7319_v46  ;;  %v6347_v37 = vmul.f32 1.442695, %v6317_v43  ;;  %v12945_v43 = vld [vmem:[#allocation56_spill] sm:$0xff] }
0x16f2   :  { %12938 = vst [vmem:[#allocation52_spill] sm:$0xff] %v11724_v4  ;;  %9524 = vpow2.f32 %v6339_v39  ;;  %v6435_v58 = vsub.f32 %v11714_v52, %v12941_v51  ;;  %v11734_v55 = vmul.f32 %v11637_v23, %v7320_v57  ;;  %v6349_v17 = vmul.f32 1.442695, %v6318_v56 }
0x16f3   :  { %12940 = vst [vmem:[#allocation53_spill] sm:$0xff] %v11729_v12  ;;  %v11736_v24 = vpop.eup %9506  ;;  %9526 = vpow2.f32 %v6341_v34  ;;  %v6436_v35 = vsub.f32 %v11714_v52, %v12943_v63  ;;  %v11741_v40 = vmul.f32 %v11637_v23, %v7321_v45  ;;  %v6351_v20 = vmul.f32 1.442695, %v6319_v21  ;;  %v12947_v34 = vld [vmem:[#allocation57_spill] sm:$0xff]  ;;  %v11761_v21 = vpop.permute.xlu0 %7421  ;;  %v12951_v63 = vld [vmem:[#allocation59_spill] sm:$0xff] }
0x16f4   :  { %12942 = vst [vmem:[#allocation54_spill] sm:$0xff] %v11734_v55  ;;  %v11743_v46 = vpop.eup %9508  ;;  %9528 = vpow2.f32 %v6343_v25  ;;  %v6437_v39 = vsub.f32 %v11714_v52, %v12945_v43  ;;  %v11749_v57 = vmul.f32 %v11637_v23, %v11665_v22  ;;  %v6353_v56 = vmul.f32 1.442695, %v6320_v3 }
0x16f5   :  { %12944 = vst [vmem:[#allocation55_spill] sm:$0xff] %v11741_v40  ;;  %v11751_v41 = vpop.eup %9510  ;;  %9530 = vpow2.f32 %v6345_v30  ;;  %v6438_v53 = vsub.f32 %v11714_v52, %v12947_v34  ;;  %v11757_v45 = vmul.f32 %v11637_v23, %v11669_v38  ;;  %v6439_v22 = vsub.f32 %v11714_v52, %v12949_v11  ;;  %v12953_v11 = vld [vmem:[#allocation60_spill] sm:$0xff] }
0x16f6   :  { %12946 = vst [vmem:[#allocation56_spill] sm:$0xff] %v11749_v57  ;;  %v11759_v25 = vpop.eup %9512  ;;  %9532 = vpow2.f32 %v6347_v37  ;;  %v6452_v51 = vmul.f32 1.442695, %v6435_v58  ;;  %v11767_v30 = vmul.f32 %v11637_v23, %v11671_v59  ;;  %v6440_v38 = vsub.f32 %v11714_v52, %v12951_v63  ;;  %v12955_v63 = vld [vmem:[#allocation61_spill] sm:$0xff] }
0x16f7   :  { %12948 = vst [vmem:[#allocation57_spill] sm:$0xff] %v11757_v45  ;;  %v11769_v3 = vpop.eup %9514  ;;  %9534 = vpow2.f32 %v6349_v17  ;;  %v6454_v43 = vmul.f32 1.442695, %v6436_v35  ;;  %v11775_v34 = vmul.f32 %v11637_v23, %v11673_v13  ;;  %v6441_v58 = vsub.f32 %v11714_v52, %v12953_v11 }
0x16f8   :  { %12950 = vst [vmem:[#allocation58_spill] sm:$0xff] %v11767_v30  ;;  %v11777_v37 = vpop.eup %9516  ;;  %9536 = vpow2.f32 %v6351_v20  ;;  %v6456_v45 = vmul.f32 1.442695, %v6437_v39  ;;  %v11783_v59 = vmul.f32 %v11637_v23, %v11679_v28  ;;  %v6442_v35 = vsub.f32 %v11714_v52, %v12955_v63 }
0x16f9   :  { %12952 = vst [vmem:[#allocation59_spill] sm:$0xff] %v11775_v34  ;;  %v11785_v17 = vpop.eup %9518  ;;  %9538 = vpow2.f32 %v6353_v56  ;;  %v6458_v30 = vmul.f32 1.442695, %v6438_v53  ;;  %v11791_v13 = vsub.f32 %v12869_v50, %v11761_v21  ;;  %v12956_v34 = vld [vmem:[#allocation62_spill] sm:$0xff]  ;;  %v6460_v11 = vmul.f32 1.442695, %v6439_v22 }
0x16fa   :  { %12954 = vst [vmem:[#allocation60_spill] sm:$0xff] %v11783_v59  ;;  %v11793_v20 = vpop.eup %9520  ;;  %v6443_v39 = vsub.f32 %v11714_v52, %v12956_v34  ;;  %9540 = vpow2.f32 %v6452_v51  ;;  %v11799_v23 = vsub.f32 %v12870_v32, %v11761_v21  ;;  %v12957_v56 = vld [vmem:[#allocation63_spill] sm:$0xff]  ;;  %v6462_v63 = vmul.f32 1.442695, %v6440_v38  ;;  %v12958_v34 = vld [vmem:[#allocation64_spill] sm:$0xff] }
0x16fb   :  { %v11801_v28 = vpop.eup %9522  ;;  %v6444_v53 = vsub.f32 %v11714_v52, %v12957_v56  ;;  %9542 = vpow2.f32 %v6454_v43  ;;  %v11807_v50 = vsub.f32 %v10948_v1, %v11761_v21  ;;  %v6445_v22 = vsub.f32 %v11714_v52, %v12958_v34  ;;  %v12959_v56 = vld [vmem:[#allocation65_spill] sm:$0xff]  ;;  %v12960_v34 = vld [vmem:[#allocation66_spill] sm:$0xff] }
0x16fc   :  { %v11809_v59 = vpop.eup %9524  ;;  %9544 = vpow2.f32 %v6456_v45  ;;  %v6464_v51 = vmul.f32 1.442695, %v6441_v58  ;;  %v11815_v32 = vsub.f32 %v10951_v2, %v11761_v21  ;;  %v6446_v38 = vsub.f32 %v11714_v52, %v12959_v56  ;;  %v12961_v56 = vld [vmem:[#allocation67_spill] sm:$0xff] }
0x16fd   :  { %v11817_v57 = vpop.eup %9526  ;;  %9546 = vpow2.f32 %v6458_v30  ;;  %v6466_v43 = vmul.f32 1.442695, %v6442_v35  ;;  %v11823_v1 = vsub.f32 %v10959_v5, %v11761_v21  ;;  %v6447_v45 = vsub.f32 %v11714_v52, %v12960_v34  ;;  %v11843_v34 = vpop.permute.xlu1 %6563 }
0x16fe   :  { %v11825_v40 = vpop.eup %9528  ;;  %9548 = vpow2.f32 %v6460_v11  ;;  %v6468_v58 = vmul.f32 1.442695, %v6443_v39  ;;  %v11831_v2 = vsub.f32 %v10964_v7, %v11761_v21  ;;  %v6448_v30 = vsub.f32 %v11714_v52, %v12961_v56  ;;  %v12962_v39 = vld [vmem:[#allocation68_spill] sm:$0xff] }
0x16ff   :  { %v11833_v55 = vpop.eup %9530  ;;  %9550 = vpow2.f32 %v6462_v63  ;;  %v6470_v35 = vmul.f32 1.442695, %v6444_v53  ;;  %v11839_v5 = vsub.f32 %v10966_v9, %v11761_v21  ;;  %v6449_v11 = vsub.f32 %v11714_v52, %v12962_v39  ;;  %v12963_v53 = vld [vmem:[#allocation69_spill] sm:$0xff]  ;;  %v12964_v39 = vld [vmem:[#allocation70_spill] sm:$0xff] }
0x1700   :  { %v11841_v12 = vpop.eup %9532  ;;  %9552 = vpow2.f32 %v6464_v51  ;;  %v6472_v7 = vmul.f32 1.442695, %v6445_v22  ;;  %v11849_v4 = vsub.f32 %v10974_v14, %v11761_v21  ;;  %v6450_v63 = vsub.f32 %v11714_v52, %v12963_v53 }
0x1701   :  { %v11851_v56 = vpop.eup %9534  ;;  %9554 = vpow2.f32 %v6466_v43  ;;  %v6474_v9 = vmul.f32 1.442695, %v6446_v38  ;;  %v11857_v29 = vsub.f32 %v10962_v6, %v11761_v21  ;;  %v6451_v22 = vsub.f32 %v11714_v52, %v12964_v39  ;;  %v12965_v38 = vld [vmem:[#allocation41_spill] sm:$0xff] }
0x1702   :  { %v11859_v31 = vpop.eup %9536  ;;  %9556 = vpow2.f32 %v6468_v58  ;;  %v6476_v51 = vmul.f32 1.442695, %v6447_v45  ;;  %v11865_v14 = vsub.f32 %v10977_v15, %v11761_v21  ;;  %v6478_v43 = vmul.f32 1.442695, %v6448_v30  ;;  %v12966_v58 = vld [vmem:[#allocation40_spill] sm:$0xff] }
0x1703   :  { %v11867_v19 = vpop.eup %9538  ;;  %9558 = vpow2.f32 %v6470_v35  ;;  %v6566_v53 = vsub.f32 %v11843_v34, %v12965_v38  ;;  %v11873_v6 = vsub.f32 %v10969_v8, %v11761_v21  ;;  %v6480_v52 = vmul.f32 1.442695, %v6449_v11  ;;  %v12967_v38 = vld [vmem:[#allocation42_spill] sm:$0xff] }
0x1704   :  { %v9541_v62 = vpop.eup %9540  ;;  %9560 = vpow2.f32 %v6472_v7  ;;  %v6567_v45 = vsub.f32 %v11843_v34, %v12966_v58  ;;  %v11879_v15 = vsub.f32 %v10972_v10, %v11761_v21  ;;  %v6482_v30 = vmul.f32 1.442695, %v6450_v63  ;;  %v12968_v58 = vld [vmem:[#allocation44_spill] sm:$0xff]  ;;  %v12969_v63 = vld [vmem:[#allocation45_spill] sm:$0xff] }
0x1705   :  { %v9543_v39 = vpop.eup %9542  ;;  %9562 = vpow2.f32 %v6474_v9  ;;  %v11882_v35 = vadd.f32 %v9541_v62, %v11736_v24  ;;  %v6568_v8 = vsub.f32 %v11843_v34, %v12967_v38  ;;  %v6484_v7 = vmul.f32 1.442695, %v6451_v22  ;;  %v12970_v22 = vld [vmem:[#allocation46_spill] sm:$0xff] }
0x1706   :  { %v9545_v47 = vpop.eup %9544  ;;  %9564 = vpow2.f32 %v6476_v51  ;;  %v11887_v11 = vadd.f32 %v9543_v39, %v11743_v46  ;;  %v6569_v60 = vsub.f32 %v11843_v34, %v12968_v58  ;;  %v6570_v62 = vsub.f32 %v11843_v34, %v12969_v63 }
0x1707   :  { %v9547_v10 = vpop.eup %9546  ;;  %9566 = vpow2.f32 %v6478_v43  ;;  %v11892_v9 = vadd.f32 %v9545_v47, %v11751_v41  ;;  %v6583_v24 = vmul.f32 1.442695, %v6566_v53  ;;  %v6571_v46 = vsub.f32 %v11843_v34, %v12970_v22  ;;  %v12971_v47 = vld [vmem:[#allocation71_spill] sm:$0xff] }
0x1708   :  { %v9549_v0 = vpop.eup %9548  ;;  %9568 = vpow2.f32 %v6480_v52  ;;  %v11897_v51 = vadd.f32 %v9547_v10, %v11759_v25  ;;  %v6585_v39 = vmul.f32 1.442695, %v6567_v45  ;;  %v6572_v41 = vsub.f32 %v11843_v34, %v12971_v47  ;;  %v12972_v25 = vld [vmem:[#allocation72_spill] sm:$0xff] }
0x1709   :  { %v9551_v38 = vpop.eup %9550  ;;  %9570 = vpow2.f32 %v6482_v30  ;;  %v11902_v43 = vadd.f32 %v9549_v0, %v11769_v3  ;;  %v6587_v58 = vmul.f32 1.442695, %v6568_v8  ;;  %v6573_v52 = vsub.f32 %v11843_v34, %v12972_v25  ;;  %v12973_v30 = vld [vmem:[#allocation73_spill] sm:$0xff] }
0x170a   :  { %v9553_v63 = vpop.eup %9552  ;;  %9572 = vpow2.f32 %v6484_v7  ;;  %v11907_v53 = vadd.f32 %v9551_v38, %v11777_v37  ;;  %v6589_v10 = vmul.f32 1.442695, %v6569_v60  ;;  %v6574_v0 = vsub.f32 %v11843_v34, %v12973_v30  ;;  %v12974_v7 = vld [vmem:[#allocation74_spill] sm:$0xff] }
0x170b   :  { %v9555_v22 = vpop.eup %9554  ;;  %v11912_v45 = vadd.f32 %v9553_v63, %v11785_v17  ;;  %9574 = vpow2.f32 %v6583_v24  ;;  %v6591_v3 = vmul.f32 1.442695, %v6570_v62  ;;  %v6575_v37 = vsub.f32 %v11843_v34, %v12974_v7  ;;  %v12975_v17 = vld [vmem:[#allocation75_spill] sm:$0xff] }
0x170c   :  { %v9557_v47 = vpop.eup %9556  ;;  %v11917_v8 = vadd.f32 %v9555_v22, %v11793_v20  ;;  %9576 = vpow2.f32 %v6585_v39  ;;  %v6593_v38 = vmul.f32 1.442695, %v6571_v46  ;;  %v6576_v63 = vsub.f32 %v11843_v34, %v12975_v17  ;;  %v12976_v20 = vld [vmem:[#allocation76_spill] sm:$0xff] }
0x170d   :  { %v9559_v25 = vpop.eup %9558  ;;  %v11922_v60 = vadd.f32 %v9557_v47, %v11801_v28  ;;  %9578 = vpow2.f32 %v6587_v58  ;;  %v6595_v30 = vmul.f32 1.442695, %v6572_v41  ;;  %v6577_v22 = vsub.f32 %v11843_v34, %v12976_v20  ;;  %v12977_v28 = vld [vmem:[#allocation77_spill] sm:$0xff] }
0x170e   :  { %v9561_v24 = vpop.eup %9560  ;;  %v11927_v62 = vadd.f32 %v9559_v25, %v11809_v59  ;;  %9580 = vpow2.f32 %v6589_v10  ;;  %v6597_v7 = vmul.f32 1.442695, %v6573_v52  ;;  %v6578_v47 = vsub.f32 %v11843_v34, %v12977_v28  ;;  %v12978_v59 = vld [vmem:[#allocation78_spill] sm:$0xff] }
0x170f   :  { %v9563_v39 = vpop.eup %9562  ;;  %v11932_v46 = vadd.f32 %v9561_v24, %v11817_v57  ;;  %9582 = vpow2.f32 %v6591_v3  ;;  %v6599_v17 = vmul.f32 1.442695, %v6574_v0  ;;  %v6579_v25 = vsub.f32 %v11843_v34, %v12978_v59  ;;  %v12979_v57 = vld [vmem:[#allocation79_spill] sm:$0xff] }
0x1710   :  { %v9565_v58 = vpop.eup %9564  ;;  %v11937_v41 = vadd.f32 %v9563_v39, %v11825_v40  ;;  %9584 = vpow2.f32 %v6593_v38  ;;  %v6601_v20 = vmul.f32 1.442695, %v6575_v37  ;;  %v6580_v24 = vsub.f32 %v11843_v34, %v12979_v57  ;;  %v12980_v40 = vld [vmem:[#allocation80_spill] sm:$0xff]  ;;  %v11951_v37 = vpop.permute.xlu1 %6694 }
0x1711   :  { %v9567_v10 = vpop.eup %9566  ;;  %v11942_v52 = vadd.f32 %v9565_v58, %v11833_v55  ;;  %9586 = vpow2.f32 %v6595_v30  ;;  %v6603_v28 = vmul.f32 1.442695, %v6576_v63  ;;  %v6581_v39 = vsub.f32 %v11843_v34, %v12980_v40  ;;  %v12981_v58 = vld [vmem:[#allocation81_spill] sm:$0xff] }
0x1712   :  { %v9569_v3 = vpop.eup %9568  ;;  %v11947_v0 = vadd.f32 %v9567_v10, %v11841_v12  ;;  %9588 = vpow2.f32 %v6597_v7  ;;  %v6605_v59 = vmul.f32 1.442695, %v6577_v22  ;;  %v6582_v57 = vsub.f32 %v11843_v34, %v12981_v58 }
0x1713   :  { %v9571_v38 = vpop.eup %9570  ;;  %v11954_v55 = vadd.f32 %v9569_v3, %v11851_v56  ;;  %9590 = vpow2.f32 %v6599_v17  ;;  %v6607_v63 = vmul.f32 1.442695, %v6578_v47  ;;  %v6609_v10 = vmul.f32 1.442695, %v6579_v25  ;;  %v12982_v25 = vld [vmem:[#allocation110_spill] sm:$0xff] }
0x1714   :  { %v9573_v30 = vpop.eup %9572  ;;  %v11959_v12 = vadd.f32 %v9571_v38, %v11859_v31  ;;  %9592 = vpow2.f32 %v6601_v20  ;;  %v11963_v22 = vsub.f32 %v12823_v48, %v11761_v21  ;;  %v6611_v56 = vmul.f32 1.442695, %v6580_v24  ;;  %v12983_v24 = vld [vmem:[#allocation111_spill] sm:$0xff] }
0x1715   :  { %v9575_v7 = vpop.eup %9574  ;;  %v11966_v40 = vadd.f32 %v9573_v30, %v11867_v19  ;;  %9594 = vpow2.f32 %v6603_v28  ;;  %v11970_v34 = vsub.f32 %v12824_v49, %v11761_v21  ;;  %v6613_v31 = vmul.f32 1.442695, %v6581_v39  ;;  %v12984_v39 = vld [vmem:[#allocation82_spill] sm:$0xff] }
0x1716   :  { %v9577_v47 = vpop.eup %9576  ;;  %9596 = vpow2.f32 %v6605_v59  ;;  %v11973_v17 = vadd.f32 %v9575_v7, %v11882_v35  ;;  %v6699_v48 = vsub.f32 %v11951_v37, %v12982_v25  ;;  %v6615_v3 = vmul.f32 1.442695, %v6582_v57  ;;  %v12985_v57 = vld [vmem:[#allocation83_spill] sm:$0xff]  ;;  %v12986_v7 = vld [vmem:[#allocation84_spill] sm:$0xff]  ;;  %v12987_v25 = vld [vmem:[#allocation85_spill] sm:$0xff] }
0x1717   :  { %v9579_v20 = vpop.eup %9578  ;;  %9598 = vpow2.f32 %v6607_v63  ;;  %v11978_v19 = vadd.f32 %v9577_v47, %v11887_v11  ;;  %v6700_v28 = vsub.f32 %v11951_v37, %v12983_v24  ;;  %v6701_v35 = vsub.f32 %v11951_v37, %v12984_v39 }
0x1718   :  { %v9581_v49 = vpop.eup %9580  ;;  %9600 = vpow2.f32 %v6609_v10  ;;  %v11983_v59 = vadd.f32 %v9579_v20, %v11892_v9  ;;  %v11989_v38 = vsub.f32 %v10983_v18, %v11761_v21  ;;  %v6702_v63 = vsub.f32 %v11951_v37, %v12985_v57 }
0x1719   :  { %v9583_v58 = vpop.eup %9582  ;;  %9602 = vpow2.f32 %v6611_v56  ;;  %v11992_v11 = vadd.f32 %v9581_v49, %v11897_v51  ;;  %v11998_v30 = vsub.f32 %v12825_v42, %v11761_v21  ;;  %v6703_v18 = vsub.f32 %v11951_v37, %v12986_v7 }
0x171a   :  { %v9585_v9 = vpop.eup %9584  ;;  %9604 = vpow2.f32 %v6613_v31  ;;  %v12001_v10 = vadd.f32 %v9583_v58, %v11902_v43  ;;  %v6718_v47 = vmul.f32 1.442695, %v6699_v48  ;;  %v6704_v20 = vsub.f32 %v11951_v37, %v12987_v25  ;;  %v12988_v31 = vld [vmem:[#allocation86_spill] sm:$0xff]  ;;  %v9848_v48 = vld [vmem:[%s12746_s19 + $0x10] ss:$0 sm:$0xff]  ;;  %s10319_s19 = smov [#allocation29]  }
0x171b   :  { %v9587_v56 = vpop.eup %9586  ;;  %9606 = vpow2.f32 %v6615_v3  ;;  %v12006_v51 = vadd.f32 %v9585_v9, %v11907_v53  ;;  %v6720_v24 = vmul.f32 1.442695, %v6700_v28  ;;  %v6705_v43 = vsub.f32 %v11951_v37, %v12988_v31  ;;  %v12989_v28 = vld [vmem:[#allocation87_spill] sm:$0xff]  ;;  %s7613_s28 = sshll.u32 %s10319_s19, 4  ;;  %s7614_s28 = int_to_ptr.vmem [resolvable:$true] %s7613_s28 }
0x171c   :  { %v9589_v42 = vpop.eup %9588  ;;  %v12011_v49 = vadd.f32 %v9587_v56, %v11912_v45  ;;  %v6722_v39 = vmul.f32 1.442695, %v6701_v35  ;;  %v12019_v3 = vsub.f32 %v9848_v48, %v11761_v21  ;;  %v6706_v57 = vsub.f32 %v11951_v37, %v12989_v28  ;;  %v12990_v56 = vld [vmem:[#allocation88_spill] sm:$0xff]  ;;  %s10223_s8 = scalar_lea.vmem %s7614_s28, 2176  ;;  %p10228_p11 = scmp.lt.s32.totalorder %s7614_s28, %s7614_s28 }
0x171d   :  { %v9591_v53 = vpop.eup %9590  ;;  %v12022_v58 = vadd.f32 %v9589_v42, %v11917_v8  ;;  %v6724_v45 = vmul.f32 1.442695, %v6702_v63  ;;  %v12028_v9 = vmul.f32 %v11791_v13, %v11791_v13  ;;  %v6707_v21 = vsub.f32 %v11951_v37, %v12990_v56  ;;  %v12991_v42 = vld [vmem:[#allocation89_spill] sm:$0xff]  ;;  %p10224_p10 = scmp.ne.s32.totalorder %s7614_s28, %s10223_s8  ;;  %p10229_p12 = scmp.lt.s32.totalorder %s10223_s8, %s10223_s8 }
0x171e   :  { %v9593_v35 = vpop.eup %9592  ;;  %v12031_v7 = vadd.f32 %v9591_v53, %v11922_v60  ;;  %9608 = vpow2.f32 %v6718_v47  ;;  %v6726_v25 = vmul.f32 1.442695, %v6703_v18  ;;  %v6708_v63 = vsub.f32 %v11951_v37, %v12991_v42  ;;  %v12992_v60 = vld [vmem:[#allocation90_spill] sm:$0xff] }
0x171f   :  { %v9595_v31 = vpop.eup %9594  ;;  %v12036_v8 = vadd.f32 %v9593_v35, %v11927_v62  ;;  %9610 = vpow2.f32 %v6720_v24  ;;  %v6728_v48 = vmul.f32 1.442695, %v6704_v20  ;;  %v6709_v53 = vsub.f32 %v11951_v37, %v12992_v60  ;;  %v12993_v62 = vld [vmem:[#allocation91_spill] sm:$0xff]  ;;  %p10230_p13 = por %p10229_p12, %p10228_p11 }
0x1720   :  { %v9597_v13 = vpop.eup %9596  ;;  %v12041_v28 = vadd.f32 %v9595_v31, %v11932_v46  ;;  %9612 = vpow2.f32 %v6722_v39  ;;  %v6730_v56 = vmul.f32 1.442695, %v6705_v43  ;;  %v6710_v35 = vsub.f32 %v11951_v37, %v12993_v62  ;;  %v12994_v46 = vld [vmem:[#allocation92_spill] sm:$0xff] }
0x1721   :  { %v9599_v47 = vpop.eup %9598  ;;  %v12046_v18 = vadd.f32 %v9597_v13, %v11937_v41  ;;  %9614 = vpow2.f32 %v6724_v45  ;;  %v6732_v42 = vmul.f32 1.442695, %v6706_v57  ;;  %v6711_v31 = vsub.f32 %v11951_v37, %v12994_v46  ;;  %v12995_v41 = vld [vmem:[#allocation93_spill] sm:$0xff]  ;;  %v12060_v57 = vpop.permute.xlu1 %6825  ;;  %p10231_p0 = pnand %p10230_p13, %p10224_p10 }
0x1722   :  { %v9601_v24 = vpop.eup %9600  ;;  %v12051_v20 = vadd.f32 %v9599_v47, %v11942_v52  ;;  %9616 = vpow2.f32 %v6726_v25  ;;  %v6734_v60 = vmul.f32 1.442695, %v6707_v21  ;;  %v6712_v13 = vsub.f32 %v11951_v37, %v12995_v41  ;;  %v12996_v47 = vld [vmem:[#allocation94_spill] sm:$0xff] }
0x1723   :  { %v9603_v39 = vpop.eup %9602  ;;  %v12056_v43 = vadd.f32 %v9601_v24, %v11947_v0  ;;  %9618 = vpow2.f32 %v6728_v48  ;;  %v6736_v62 = vmul.f32 1.442695, %v6708_v63  ;;  %v6713_v46 = vsub.f32 %v11951_v37, %v12996_v47 }
0x1724   :  { %v9605_v45 = vpop.eup %9604  ;;  %v12063_v52 = vadd.f32 %v9603_v39, %v11954_v55  ;;  %9620 = vpow2.f32 %v6730_v56  ;;  %v6738_v21 = vmul.f32 1.442695, %v6709_v53  ;;  %v6740_v24 = vmul.f32 1.442695, %v6710_v35 }
0x1725   :  { %v9607_v25 = vpop.eup %9606  ;;  %v12068_v0 = vadd.f32 %v9605_v45, %v11959_v12  ;;  %9622 = vpow2.f32 %v6732_v42  ;;  %v12072_v63 = vmul.f32 %v11799_v23, %v11799_v23  ;;  %v6742_v55 = vmul.f32 1.442695, %v6711_v31  ;;  %v12997_v31 = vld [vmem:[#allocation43_spill] sm:$0xff] }
0x1726   :  { %v12075_v48 = vadd.f32 %v9607_v25, %v11966_v40  ;;  %9624 = vpow2.f32 %v6734_v60  ;;  %v12079_v39 = vmul.f32 %v11807_v50, %v11807_v50  ;;  %v6744_v53 = vmul.f32 1.442695, %v6712_v13  ;;  %v12998_v13 = vld [vmem:[#allocation109_spill] sm:$0xff] }
0x1727   :  { %9626 = vpow2.f32 %v6736_v62  ;;  %v6830_v12 = vsub.f32 %v12060_v57, %v11590_v26  ;;  %v12085_v56 = vmul.f32 %v11815_v32, %v11815_v32  ;;  %v6746_v35 = vmul.f32 1.442695, %v6713_v46 }
0x1728   :  { %v9609_v23 = vpop.eup %9608  ;;  %9628 = vpow2.f32 %v6738_v21  ;;  %v6831_v40 = vsub.f32 %v12060_v57, %v11593_v33  ;;  %v12091_v42 = vmul.f32 %v11823_v1, %v11823_v1  ;;  %v6697_v60 = vsub.f32 %v11951_v37, %v12997_v31 }
0x1729   :  { %v9611_v50 = vpop.eup %9610  ;;  %9630 = vpow2.f32 %v6740_v24  ;;  %v12096_v26 = vadd.f32 %v9609_v23, %v11983_v59  ;;  %v12100_v32 = vmul.f32 %v11831_v2, %v11831_v2  ;;  %v6698_v33 = vsub.f32 %v11951_v37, %v12998_v13 }
0x172a   :  { %v9613_v41 = vpop.eup %9612  ;;  %9632 = vpow2.f32 %v6742_v55  ;;  %v12105_v1 = vadd.f32 %v9611_v50, %v11992_v11  ;;  %v12109_v62 = vmul.f32 %v11839_v5, %v11839_v5  ;;  %v6828_v2 = vsub.f32 %v12060_v57, %v11584_v36 }
0x172b   :  { %v9615_v45 = vpop.eup %9614  ;;  %9634 = vpow2.f32 %v6744_v53  ;;  %v12112_v59 = vadd.f32 %v9613_v41, %v12001_v10  ;;  %v6849_v47 = vmul.f32 1.442695, %v6830_v12  ;;  %v6829_v11 = vsub.f32 %v12060_v57, %v11587_v54 }
0x172c   :  { %v9617_v46 = vpop.eup %9616  ;;  %9636 = vpow2.f32 %v6746_v35  ;;  %v12117_v37 = vadd.f32 %v9615_v45, %v12006_v51  ;;  %v6851_v21 = vmul.f32 1.442695, %v6831_v40  ;;  %v6714_v25 = vmul.f32 1.442695, %v6697_v60  ;;  %v13000_v40 = vld [vmem:[#allocation153_spill] sm:$0xff] }
0x172d   :  { %v9619_v5 = vpop.eup %9618  ;;  %v12122_v24 = vadd.f32 %v9617_v46, %v12011_v49  ;;  %v6832_v10 = vsub.f32 %v12060_v57, %v11596_v44  ;;  %v12128_v36 = vmul.f32 %v11849_v4, %v11849_v4  ;;  %v6716_v53 = vmul.f32 1.442695, %v6698_v33  ;;  %v13003_v46 = vld [vmem:[#allocation151_spill] sm:$0xff] }
0x172e   :  { %v9621_v55 = vpop.eup %9620  ;;  %v12131_v51 = vadd.f32 %v9619_v5, %v12022_v58  ;;  %v6833_v54 = vsub.f32 %v12060_v57, %v11599_v27  ;;  %v12137_v12 = vmul.f32 %v11857_v29, %v11857_v29  ;;  %v6838_v44 = vsub.f32 %v12060_v57, %v11614_v16 }
0x172f   :  { %v9623_v49 = vpop.eup %9622  ;;  %v12140_v23 = vadd.f32 %v9621_v55, %v12031_v7  ;;  %v6845_v4 = vmul.f32 1.442695, %v6828_v2  ;;  %9638 = vpow2.f32 %v6849_v47  ;;  %v6839_v27 = vsub.f32 %v12060_v57, %v13000_v40  ;;  %v13001_v7 = vld [vmem:[#allocation149_spill] sm:$0xff] }
0x1730   :  { %12999 = vst [vmem:[#allocation61_spill] sm:$0xff] %v12137_v12  ;;  %v9625_v35 = vpop.eup %9624  ;;  %v12145_v58 = vadd.f32 %v9623_v49, %v12036_v8  ;;  %v6847_v50 = vmul.f32 1.442695, %v6829_v11  ;;  %9640 = vpow2.f32 %v6851_v21  ;;  %v6834_v60 = vsub.f32 %v12060_v57, %v13001_v7  ;;  %v13002_v8 = vld [vmem:[#allocation150_spill] sm:$0xff] }
0x1731   :  { %v9627_v29 = vpop.eup %9626  ;;  %9642 = vpow2.f32 %v6714_v25  ;;  %v12150_v31 = vadd.f32 %v9625_v35, %v12041_v28  ;;  %v6853_v16 = vmul.f32 1.442695, %v6832_v10  ;;  %v6835_v33 = vsub.f32 %v12060_v57, %v13002_v8  ;;  %v13004_v25 = vld [vmem:[#allocation152_spill] sm:$0xff]  ;;  %v13006_v35 = vld [vmem:[#allocation155_spill] sm:$0xff] }
0x1732   :  { %v9629_v41 = vpop.eup %9628  ;;  %9644 = vpow2.f32 %v6716_v53  ;;  %v12155_v13 = vadd.f32 %v9627_v29, %v12046_v18  ;;  %v6855_v45 = vmul.f32 1.442695, %v6833_v54  ;;  %v6836_v28 = vsub.f32 %v12060_v57, %v13003_v46  ;;  %v12169_v53 = vpop.permute.xlu1 %6956  ;;  %v13005_v54 = vld [vmem:[#allocation154_spill] sm:$0xff]  ;;  %v13007_v29 = vld [vmem:[#allocation156_spill] sm:$0xff] }
0x1733   :  { %v9631_v2 = vpop.eup %9630  ;;  %v12160_v47 = vadd.f32 %v9629_v41, %v12051_v20  ;;  %9646 = vpow2.f32 %v6845_v4  ;;  %v6865_v11 = vmul.f32 1.442695, %v6838_v44  ;;  %v6837_v18 = vsub.f32 %v12060_v57, %v13004_v25 }
0x1734   :  { %v9633_v21 = vpop.eup %9632  ;;  %v12165_v5 = vadd.f32 %v9631_v2, %v12056_v43  ;;  %9648 = vpow2.f32 %v6847_v50  ;;  %v6867_v10 = vmul.f32 1.442695, %v6839_v27  ;;  %v6840_v49 = vsub.f32 %v12060_v57, %v13005_v54 }
0x1735   :  { %v9635_v55 = vpop.eup %9634  ;;  %v12172_v20 = vadd.f32 %v9633_v21, %v12063_v52  ;;  %9650 = vpow2.f32 %v6853_v16  ;;  %v6857_v44 = vmul.f32 1.442695, %v6834_v60  ;;  %v6841_v40 = vsub.f32 %v12060_v57, %v13006_v35  ;;  %v13008_v60 = vld [vmem:[#allocation114_spill] sm:$0xff] }
0x1736   :  { %v9637_v4 = vpop.eup %9636  ;;  %v12177_v43 = vadd.f32 %v9635_v55, %v12068_v0  ;;  %9652 = vpow2.f32 %v6855_v45  ;;  %v6859_v27 = vmul.f32 1.442695, %v6835_v33  ;;  %v6842_v52 = vsub.f32 %v12060_v57, %v13007_v29  ;;  %v13010_v45 = vld [vmem:[#allocation115_spill] sm:$0xff] }
0x1737   :  { %v12182_v50 = vadd.f32 %v9637_v4, %v12075_v48  ;;  %v6861_v7 = vmul.f32 1.442695, %v6836_v28  ;;  %9654 = vpow2.f32 %v6865_v11  ;;  %v6863_v41 = vmul.f32 1.442695, %v6837_v18  ;;  %v13011_v28 = vld [vmem:[#allocation157_spill] sm:$0xff]  ;;  %v13012_v18 = vld [vmem:[#allocation158_spill] sm:$0xff] }
0x1738   :  { %9656 = vpow2.f32 %v6867_v10  ;;  %v6961_v16 = vsub.f32 %v12169_v53, %v13008_v60  ;;  %v12190_v0 = vmul.f32 %v11865_v14, %v11865_v14  ;;  %v6869_v33 = vmul.f32 1.442695, %v6840_v49  ;;  %v13013_v49 = vld [vmem:[#allocation118_spill] sm:$0xff] }
0x1739   :  { %v9639_v8 = vpop.eup %9638  ;;  %9658 = vpow2.f32 %v6857_v44  ;;  %v6962_v48 = vsub.f32 %v12169_v53, %v13010_v45  ;;  %v12196_v2 = vmul.f32 %v11873_v6, %v11873_v6  ;;  %v6843_v11 = vsub.f32 %v12060_v57, %v13011_v28 }
0x173a   :  { %13009 = vst [vmem:[#allocation62_spill] sm:$0xff] %v12190_v0  ;;  %v9641_v46 = vpop.eup %9640  ;;  %9660 = vpow2.f32 %v6859_v27  ;;  %v6871_v21 = vmul.f32 1.442695, %v6841_v40  ;;  %v12201_v25 = vadd.f32 %v9639_v8, %v12096_v26  ;;  %v6844_v10 = vsub.f32 %v12060_v57, %v13012_v18  ;;  %v13015_v40 = vld [vmem:[#allocation119_spill] sm:$0xff]  ;;  %v13019_v8 = vld [vmem:[#allocation121_spill] sm:$0xff] }
0x173b   :  { %v9643_v14 = vpop.eup %9642  ;;  %9662 = vpow2.f32 %v6861_v7  ;;  %v6873_v55 = vmul.f32 1.442695, %v6842_v52  ;;  %v12206_v54 = vadd.f32 %v9641_v46, %v12105_v1  ;;  %v6965_v44 = vsub.f32 %v12169_v53, %v13013_v49  ;;  %v13017_v7 = vld [vmem:[#allocation120_spill] sm:$0xff] }
0x173c   :  { %v9645_v6 = vpop.eup %9644  ;;  %9664 = vpow2.f32 %v6863_v41  ;;  %v6980_v4 = vmul.f32 1.442695, %v6961_v16  ;;  %v12212_v35 = vmul.f32 %v11879_v15, %v11879_v15  ;;  %v6966_v57 = vsub.f32 %v12169_v53, %v13015_v40 }
0x173d   :  { %v12214_v26 = vpop.eup %9646  ;;  %9666 = vpow2.f32 %v6869_v33  ;;  %v6982_v27 = vmul.f32 1.442695, %v6962_v48  ;;  %v12220_v1 = vmul.f32 %v11963_v22, %v11963_v22  ;;  %v6875_v52 = vmul.f32 1.442695, %v6843_v11  ;;  %v13021_v48 = vld [vmem:[#allocation95_spill] sm:$0xff] }
0x173e   :  { %13014 = vst [vmem:[#allocation63_spill] sm:$0xff] %v12212_v35  ;;  %v12222_v29 = vpop.eup %9648  ;;  %9668 = vpow2.f32 %v6871_v21  ;;  %v6967_v41 = vsub.f32 %v12169_v53, %v13017_v7  ;;  %v12228_v15 = vmul.f32 %v11970_v34, %v11970_v34  ;;  %v6877_v16 = vmul.f32 1.442695, %v6844_v10  ;;  %v13023_v21 = vld [vmem:[#allocation96_spill] sm:$0xff] }
0x173f   :  { %13016 = vst [vmem:[#allocation64_spill] sm:$0xff] %v12220_v1  ;;  %v12230_v60 = vpop.eup %9650  ;;  %9670 = vpow2.f32 %v6873_v55  ;;  %v6968_v33 = vsub.f32 %v12169_v53, %v13019_v8  ;;  %v12236_v22 = vmul.f32 %v11989_v38, %v11989_v38  ;;  %v6969_v46 = vsub.f32 %v12169_v53, %v13021_v48  ;;  %v13027_v48 = vld [vmem:[#allocation112_spill] sm:$0xff] }
0x1740   :  { %13018 = vst [vmem:[#allocation65_spill] sm:$0xff] %v12228_v15  ;;  %v12238_v45 = vpop.eup %9652  ;;  %9672 = vpow2.f32 %v6980_v4  ;;  %v6988_v28 = vmul.f32 1.442695, %v6965_v44  ;;  %v12244_v34 = vmul.f32 %v11998_v30, %v11998_v30  ;;  %v6970_v18 = vsub.f32 %v12169_v53, %v13023_v21  ;;  %v13025_v44 = vld [vmem:[#allocation97_spill] sm:$0xff]  ;;  %v13028_v21 = vld [vmem:[#allocation99_spill] sm:$0xff] }
0x1741   :  { %13020 = vst [vmem:[#allocation66_spill] sm:$0xff] %v12236_v22  ;;  %v9655_v11 = vpop.eup %9654  ;;  %9674 = vpow2.f32 %v6982_v27  ;;  %v6990_v10 = vmul.f32 1.442695, %v6966_v57  ;;  %v12250_v38 = vmul.f32 %v12019_v3, %v12019_v3  ;;  %v6971_v4 = vsub.f32 %v12169_v53, %v13025_v44  ;;  %v13026_v27 = vld [vmem:[#allocation98_spill] sm:$0xff]  ;;  %v13032_v22 = vld [vmem:[#allocation101_spill] sm:$0xff] }
0x1742   :  { %13022 = vst [vmem:[#allocation67_spill] sm:$0xff] %v12244_v34  ;;  %v9657_v55 = vpop.eup %9656  ;;  %9676 = vpow2.f32 %v6875_v52  ;;  %v12253_v49 = vadd.f32 %v9655_v11, %v12150_v31  ;;  %v6992_v30 = vmul.f32 1.442695, %v6967_v41  ;;  %v6972_v57 = vsub.f32 %v12169_v53, %v13026_v27  ;;  %v13029_v41 = vld [vmem:[#allocation113_spill] sm:$0xff]  ;;  %v13030_v34 = vld [vmem:[#allocation100_spill] sm:$0xff] }
0x1743   :  { %13024 = vst [vmem:[#allocation68_spill] sm:$0xff] %v12250_v38  ;;  %v9659_v40 = vpop.eup %9658  ;;  %9678 = vpow2.f32 %v6877_v16  ;;  %v12258_v7 = vadd.f32 %v9657_v55, %v12155_v13  ;;  %v6994_v8 = vmul.f32 1.442695, %v6968_v33  ;;  %v6959_v52 = vsub.f32 %v12169_v53, %v13027_v48  ;;  %v12270_v33 = vpop.permute.xlu1 %7087  ;;  %v13031_v38 = vld [vmem:[#allocation116_spill] sm:$0xff] }
0x1744   :  { %v9661_v3 = vpop.eup %9660  ;;  %v6973_v31 = vsub.f32 %v12169_v53, %v13028_v21  ;;  %9680 = vpow2.f32 %v6988_v28  ;;  %v6996_v11 = vmul.f32 1.442695, %v6969_v46  ;;  %v6960_v16 = vsub.f32 %v12169_v53, %v13029_v41  ;;  %v13033_v41 = vld [vmem:[#allocation117_spill] sm:$0xff] }
0x1745   :  { %v9663_v44 = vpop.eup %9662  ;;  %v6974_v13 = vsub.f32 %v12169_v53, %v13030_v34  ;;  %9682 = vpow2.f32 %v6990_v10  ;;  %v6998_v55 = vmul.f32 1.442695, %v6970_v18  ;;  %v6963_v48 = vsub.f32 %v12169_v53, %v13031_v38 }
0x1746   :  { %v9665_v27 = vpop.eup %9664  ;;  %v6975_v21 = vsub.f32 %v12169_v53, %v13032_v22  ;;  %9684 = vpow2.f32 %v6992_v30  ;;  %v7000_v46 = vmul.f32 1.442695, %v6971_v4  ;;  %v6748_v15 = vadd.f32 %v9643_v14, %v11973_v17  ;;  %v13034_v4 = vld [vmem:[#allocation124_spill] sm:$0xff] }
0x1747   :  { %v9667_v28 = vpop.eup %9666  ;;  %v6964_v1 = vsub.f32 %v12169_v53, %v13033_v41  ;;  %9686 = vpow2.f32 %v6994_v8  ;;  %v7002_v34 = vmul.f32 1.442695, %v6972_v57  ;;  %v12280_v10 = vadd.f32 %v9645_v6, %v11978_v19  ;;  %v13035_v8 = vld [vmem:[#allocation125_spill] sm:$0xff] }
0x1748   :  { %v9669_v18 = vpop.eup %9668  ;;  %v6976_v0 = vmul.f32 1.442695, %v6959_v52  ;;  %9688 = vpow2.f32 %v6996_v11  ;;  %v7004_v38 = vmul.f32 1.442695, %v6973_v31  ;;  %v6978_v35 = vmul.f32 1.442695, %v6960_v16 }
0x1749   :  { %v9671_v12 = vpop.eup %9670  ;;  %9690 = vpow2.f32 %v6998_v55  ;;  %v7006_v22 = vmul.f32 1.442695, %v6974_v13  ;;  %v7092_v30 = vsub.f32 %v12270_v33, %v13034_v4  ;;  %v6984_v14 = vmul.f32 1.442695, %v6963_v48  ;;  %v13036_v52 = vld [vmem:[#allocation122_spill] sm:$0xff]  ;;  %v13037_v13 = vld [vmem:[#allocation123_spill] sm:$0xff] }
0x174a   :  { %v9673_v17 = vpop.eup %9672  ;;  %9692 = vpow2.f32 %v7000_v46  ;;  %v7008_v53 = vmul.f32 1.442695, %v6975_v21  ;;  %v7093_v57 = vsub.f32 %v12270_v33, %v13035_v8  ;;  %v6986_v19 = vmul.f32 1.442695, %v6964_v1  ;;  %v13038_v48 = vld [vmem:[#allocation126_spill] sm:$0xff]  ;;  %v13040_v31 = vld [vmem:[#allocation128_spill] sm:$0xff] }
0x174b   :  { %v9675_v41 = vpop.eup %9674  ;;  %9694 = vpow2.f32 %v7002_v34  ;;  %v12287_v6 = vadd.f32 %v9673_v17, %v12201_v25  ;;  %v6885_v1 = vadd.f32 %v9659_v40, %v12122_v24  ;;  %v13039_v25 = vld [vmem:[#allocation127_spill] sm:$0xff]  ;;  %v7111_v4 = vmul.f32 1.442695, %v7092_v30  ;;  %v13041_v40 = vld [vmem:[#allocation129_spill] sm:$0xff] }
0x174c   :  { %v9677_v11 = vpop.eup %9676  ;;  %9696 = vpow2.f32 %v7004_v38  ;;  %v12292_v16 = vadd.f32 %v9675_v41, %v12206_v54  ;;  %v12302_v38 = vadd.f32 %v12214_v26, %v6748_v15  ;;  %v6886_v54 = vadd.f32 %v9661_v3, %v12131_v51  ;;  %v13043_v15 = vld [vmem:[#allocation131_spill] sm:$0xff]  ;;  %v13044_v3 = vld [vmem:[#allocation132_spill] sm:$0xff] }
0x174d   :  { %v9679_v46 = vpop.eup %9678  ;;  %9698 = vpow2.f32 %v7006_v22  ;;  %v7113_v8 = vmul.f32 1.442695, %v7093_v57  ;;  %v6887_v55 = vadd.f32 %v9663_v44, %v12140_v23  ;;  %v6888_v34 = vadd.f32 %v9665_v27, %v12145_v58  ;;  %v13046_v57 = vld [vmem:[#allocation133_spill] sm:$0xff]  ;;  %v13048_v27 = vld [vmem:[#allocation102_spill] sm:$0xff] }
0x174e   :  { %v9681_v17 = vpop.eup %9680  ;;  %9700 = vpow2.f32 %v7008_v53  ;;  %v7099_v51 = vsub.f32 %v12270_v33, %v13043_v15  ;;  %v7100_v53 = vsub.f32 %v12270_v33, %v13044_v3 }
0x174f   :  { %v9683_v41 = vpop.eup %9682  ;;  %v12306_v21 = vadd.f32 %v9681_v17, %v6885_v1  ;;  %v7101_v1 = vsub.f32 %v12270_v33, %v13046_v57  ;;  %v13047_v17 = vld [vmem:[#allocation134_spill] sm:$0xff]  ;;  %9702 = vpow2.f32 %v7111_v4  ;;  %v13050_v57 = vld [vmem:[#allocation104_spill] sm:$0xff]  ;;  %v13051_v4 = vld [vmem:[#allocation105_spill] sm:$0xff] }
0x1750   :  { %v9685_v30 = vpop.eup %9684  ;;  %v12313_v26 = vadd.f32 %v9683_v41, %v6886_v54  ;;  %v7102_v22 = vsub.f32 %v12270_v33, %v13047_v17  ;;  %v7103_v54 = vsub.f32 %v12270_v33, %v13048_v27  ;;  %v13049_v41 = vld [vmem:[#allocation103_spill] sm:$0xff]  ;;  %9704 = vpow2.f32 %v7113_v8 }
0x1751   :  { %v9687_v23 = vpop.eup %9686  ;;  %v12319_v44 = vadd.f32 %v9685_v30, %v6887_v55  ;;  %v7104_v15 = vsub.f32 %v12270_v33, %v13049_v41  ;;  %v6891_v55 = vadd.f32 %v9667_v28, %v12160_v47  ;;  %v7105_v17 = vsub.f32 %v12270_v33, %v13050_v57 }
0x1752   :  { %13042 = vst [vmem:[#allocation69_spill] sm:$0xff] %v12313_v26  ;;  %v9689_v24 = vpop.eup %9688  ;;  %v12325_v58 = vadd.f32 %v9687_v23, %v6888_v34  ;;  %v7106_v34 = vsub.f32 %v12270_v33, %v13051_v4  ;;  %9706 = vpow2.f32 %v6976_v0  ;;  %v7125_v8 = vmul.f32 1.442695, %v7099_v51  ;;  %v12349_v0 = vpop.permute.xlu1 %7218 }
0x1753   :  { %13045 = vst [vmem:[#allocation70_spill] sm:$0xff] %v12319_v44  ;;  %v9691_v3 = vpop.eup %9690  ;;  %v12333_v30 = vadd.f32 %v9689_v24, %v12253_v49  ;;  %v6892_v44 = vadd.f32 %v9669_v18, %v12165_v5  ;;  %v6893_v47 = vadd.f32 %v9671_v12, %v12172_v20  ;;  %9708 = vpow2.f32 %v6978_v35 }
0x1754   :  { %v9693_v23 = vpop.eup %9692  ;;  %v12341_v27 = vadd.f32 %v9691_v3, %v12258_v7  ;;  %v7127_v28 = vmul.f32 1.442695, %v7100_v53  ;;  %v6894_v57 = vadd.f32 %v9677_v11, %v12177_v43  ;;  %9710 = vpow2.f32 %v6984_v14  ;;  %v13052_v11 = vld [vmem:[#allocation130_spill] sm:$0xff] }
0x1755   :  { %v9695_v41 = vpop.eup %9694  ;;  %v12344_v49 = vadd.f32 %v9693_v23, %v6891_v55  ;;  %v7129_v26 = vmul.f32 1.442695, %v7101_v1  ;;  %v6895_v7 = vadd.f32 %v9679_v46, %v12182_v50  ;;  %9712 = vpow2.f32 %v6986_v19  ;;  %v13053_v46 = vld [vmem:[#allocation137_spill] sm:$0xff] }
0x1756   :  { %v9697_v24 = vpop.eup %9696  ;;  %v12347_v4 = vadd.f32 %v9695_v41, %v6892_v44  ;;  %v7131_v12 = vmul.f32 1.442695, %v7102_v22  ;;  %v6880_v35 = vadd.f32 %v12222_v29, %v12280_v10  ;;  %9714 = vpow2.f32 %v7125_v8 }
0x1757   :  { %v9699_v5 = vpop.eup %9698  ;;  %v12352_v18 = vadd.f32 %v9697_v24, %v6893_v47  ;;  %v7133_v43 = vmul.f32 1.442695, %v7103_v54  ;;  %v7098_v53 = vsub.f32 %v12270_v33, %v13052_v11  ;;  %9716 = vpow2.f32 %v7127_v28  ;;  %v13054_v54 = vld [vmem:[#allocation138_spill] sm:$0xff] }
0x1758   :  { %v9701_v20 = vpop.eup %9700  ;;  %v12356_v51 = vadd.f32 %v9699_v5, %v6894_v57  ;;  %v7135_v44 = vmul.f32 1.442695, %v7104_v15  ;;  %v6883_v50 = vadd.f32 %v12230_v60, %v12112_v59  ;;  %9718 = vpow2.f32 %v7129_v26 }
0x1759   :  { %v12358_v14 = vadd.f32 %v9701_v20, %v6895_v7  ;;  %v7137_v19 = vmul.f32 1.442695, %v7105_v17  ;;  %v7223_v22 = vsub.f32 %v12349_v0, %v13053_v46  ;;  %v9703_v29 = vpop.eup %9702  ;;  %v12368_v10 = vadd.f32 %v12238_v45, %v12117_v37  ;;  %v13062_v7 = vld [vmem:[#allocation136_spill] sm:$0xff] }
0x175a   :  { %9720 = vpow2.f32 %v7131_v12  ;;  %v7139_v1 = vmul.f32 1.442695, %v7106_v34  ;;  %v7224_v3 = vsub.f32 %v12349_v0, %v13054_v54  ;;  %v9705_v55 = vpop.eup %9704  ;;  %v13055_v15 = vsub.f32 %v12270_v33, %v13036_v52 }
0x175b   :  { %v13056_v60 = vsub.f32 %v12270_v33, %v13037_v13  ;;  %9722 = vpow2.f32 %v7133_v43  ;;  %v12379_v17 = vadd.f32 %v9703_v29, %v12287_v6  ;;  %v13057_v37 = vsub.f32 %v12270_v33, %v13038_v48  ;;  %v13064_v43 = vld [vmem:[#allocation140_spill] sm:$0xff] }
0x175c   :  { %v7107_v59 = vmul.f32 1.442695, %v13055_v15  ;;  %v13058_v34 = vsub.f32 %v12270_v33, %v13039_v25  ;;  %9724 = vpow2.f32 %v7135_v44  ;;  %v12388_v52 = vadd.f32 %v9705_v55, %v12292_v16  ;;  %v9707_v8 = vpop.eup %9706  ;;  %v13061_v25 = vld [vmem:[#allocation135_spill] sm:$0xff] }
0x175d   :  { %v7109_v26 = vmul.f32 1.442695, %v13056_v60  ;;  %v7115_v45 = vmul.f32 1.442695, %v13057_v37  ;;  %v13059_v13 = vsub.f32 %v12270_v33, %v13040_v31  ;;  %v13060_v6 = vsub.f32 %v12270_v33, %v13041_v40  ;;  %v9709_v28 = vpop.eup %9708  ;;  %v13063_v31 = vld [vmem:[#allocation139_spill] sm:$0xff] }
0x175e   :  { %v7117_v23 = vmul.f32 1.442695, %v13058_v34  ;;  %9726 = vpow2.f32 %v7137_v19  ;;  %v7242_v48 = vmul.f32 1.442695, %v7223_v22  ;;  %v7123_v24 = vmul.f32 1.442695, %v7098_v53  ;;  %v9711_v16 = vpop.eup %9710 }
0x175f   :  { %v7119_v41 = vmul.f32 1.442695, %v13059_v13  ;;  %v7121_v47 = vmul.f32 1.442695, %v13060_v6  ;;  %9728 = vpow2.f32 %v7139_v1  ;;  %v7221_v57 = vsub.f32 %v12349_v0, %v13061_v25  ;;  %v9713_v40 = vpop.eup %9712  ;;  %v13065_v53 = vld [vmem:[#allocation141_spill] sm:$0xff]  ;;  %v13066_v19 = vld [vmem:[#allocation142_spill] sm:$0xff] }
0x1760   :  { %v7244_v5 = vmul.f32 1.442695, %v7224_v3  ;;  %9730 = vpow2.f32 %v7107_v59  ;;  %v7222_v12 = vsub.f32 %v12349_v0, %v13062_v7  ;;  %v7225_v20 = vsub.f32 %v12349_v0, %v13063_v31  ;;  %v9715_v22 = vpop.eup %9714  ;;  %v13067_v1 = vld [vmem:[#allocation143_spill] sm:$0xff]  ;;  %v13068_v3 = vld [vmem:[#allocation145_spill] sm:$0xff]  ;;  %v13069_v59 = vld [vmem:[#allocation144_spill] sm:$0xff] }
0x1761   :  { %v7226_v33 = vsub.f32 %v12349_v0, %v13064_v43  ;;  %v12405_v11 = vadd.f32 %v9707_v8, %v12302_v38  ;;  %9732 = vpow2.f32 %v7109_v26  ;;  %v7227_v44 = vsub.f32 %v12349_v0, %v13065_v53  ;;  %v9717_v15 = vpop.eup %9716  ;;  %v13070_v26 = vld [vmem:[#allocation146_spill] sm:$0xff]  ;;  %v13071_v8 = vld [vmem:[#allocation147_spill] sm:$0xff]  ;;  %v13072_v6 = vld [vmem:[#allocation148_spill] sm:$0xff] }
0x1762   :  { %v7228_v46 = vsub.f32 %v12349_v0, %v13066_v19  ;;  %v12411_v29 = vadd.f32 %v9709_v28, %v6880_v35  ;;  %v7229_v54 = vsub.f32 %v12349_v0, %v13067_v1  ;;  %v7231_v55 = vsub.f32 %v12349_v0, %v13068_v3  ;;  %v9719_v35 = vpop.eup %9718 }
0x1763   :  { %9734 = vpow2.f32 %v7242_v48  ;;  %v12418_v38 = vadd.f32 %v9715_v22, %v12325_v58  ;;  %v7230_v60 = vsub.f32 %v12349_v0, %v13069_v59  ;;  %v7232_v37 = vsub.f32 %v12349_v0, %v13070_v26 }
0x1764   :  { %9736 = vpow2.f32 %v7244_v5  ;;  %v12425_v34 = vadd.f32 %v9717_v15, %v12333_v30  ;;  %v7233_v13 = vsub.f32 %v12349_v0, %v13071_v8  ;;  %v7234_v48 = vsub.f32 %v12349_v0, %v13072_v6  ;;  %v9721_v58 = vpop.eup %9720  ;;  %v13073_v30 = vld [vmem:[#allocation106_spill] sm:$0xff]  ;;  %v13076_v8 = vld [vmem:[#allocation47_spill] sm:$0xff] }
0x1765   :  { %9738 = vpow2.f32 %v7115_v45  ;;  %v12431_v28 = vadd.f32 %v9711_v16, %v6883_v50  ;;  %v12434_v25 = vadd.f32 %v9719_v35, %v12341_v27  ;;  %v7238_v7 = vmul.f32 1.442695, %v7221_v57  ;;  %v9723_v5 = vpop.eup %9722  ;;  %v13074_v50 = vld [vmem:[#allocation107_spill] sm:$0xff]  ;;  %v12446_v57 = vpop.permute.xlu0 %7349 }
0x1766   :  { %9740 = vpow2.f32 %v7117_v23  ;;  %v12437_v45 = vadd.f32 %v9721_v58, %v12344_v49  ;;  %v7235_v31 = vsub.f32 %v12349_v0, %v13073_v30  ;;  %v7258_v43 = vmul.f32 1.442695, %v7231_v55  ;;  %v9725_v53 = vpop.eup %9724 }
0x1767   :  { %9742 = vpow2.f32 %v7119_v41  ;;  %v12442_v19 = vadd.f32 %v9723_v5, %v12347_v4  ;;  %v7236_v23 = vsub.f32 %v12349_v0, %v13074_v50  ;;  %v7260_v27 = vmul.f32 1.442695, %v7232_v37  ;;  %v13075_v41 = vld [vmem:[#allocation108_spill] sm:$0xff]  ;;  %v13077_v5 = vld [vmem:[#allocation159_spill] sm:$0xff] }
0x1768   :  { %9744 = vpow2.f32 %v7121_v47  ;;  %v9727_v16 = vpop.eup %9726  ;;  %v12449_v49 = vadd.f32 %v9725_v53, %v12352_v18  ;;  %v7237_v22 = vsub.f32 %v12349_v0, %v13075_v41  ;;  %v7262_v1 = vmul.f32 1.442695, %v7233_v13 }
0x1769   :  { %9746 = vpow2.f32 %v7123_v24  ;;  %v9729_v3 = vpop.eup %9728  ;;  %v12454_v47 = vadd.f32 %v9713_v40, %v12368_v10  ;;  %v12457_v4 = vadd.f32 %v9727_v16, %v12356_v51  ;;  %v7264_v55 = vmul.f32 1.442695, %v7234_v48  ;;  %v13081_v16 = vld [vmem:[#allocation50_spill] sm:$0xff] }
0x176a   :  { %9748 = vpow2.f32 %v7238_v7  ;;  %v9731_v15 = vpop.eup %9730  ;;  %v12460_v59 = vadd.f32 %v9729_v3, %v12358_v14  ;;  %v7240_v24 = vmul.f32 1.442695, %v7222_v12  ;;  %v7266_v18 = vmul.f32 1.442695, %v7235_v31  ;;  %v13078_v31 = vld [vmem:[#allocation160_spill] sm:$0xff] }
0x176b   :  { %9750 = vpow2.f32 %v7258_v43  ;;  %v9733_v26 = vpop.eup %9732  ;;  %v7246_v37 = vmul.f32 1.442695, %v7225_v20  ;;  %v7268_v0 = vmul.f32 1.442695, %v7236_v23  ;;  %v7354_v10 = vsub.f32 %v12446_v57, %v11692_v61  ;;  %v12486_v23 = vpop.permute.xlu1 %7459 }
0x176c   :  { %9752 = vpow2.f32 %v7260_v27  ;;  %v7248_v35 = vmul.f32 1.442695, %v7226_v33  ;;  %v7270_v51 = vmul.f32 1.442695, %v7237_v22  ;;  %v7355_v13 = vsub.f32 %v12446_v57, %v13076_v8  ;;  %v13082_v22 = vld [vmem:[#allocation51_spill] sm:$0xff] }
0x176d   :  { %v9735_v40 = vpop.eup %9734  ;;  %9754 = vpow2.f32 %v7262_v1  ;;  %v7250_v14 = vmul.f32 1.442695, %v7227_v44  ;;  %v7252_v48 = vmul.f32 1.442695, %v7228_v46  ;;  %v7254_v58 = vmul.f32 1.442695, %v7229_v54 }
0x176e   :  { %v9737_v6 = vpop.eup %9736  ;;  %9756 = vpow2.f32 %v7264_v55  ;;  %v12467_v12 = vadd.f32 %v9735_v40, %v12379_v17  ;;  %v7256_v7 = vmul.f32 1.442695, %v7230_v60  ;;  %v7352_v30 = vsub.f32 %v12446_v57, %v13077_v5  ;;  %v13079_v17 = vld [vmem:[#allocation48_spill] sm:$0xff]  ;;  %v13080_v60 = vld [vmem:[#allocation49_spill] sm:$0xff] }
0x176f   :  { %v9739_v20 = vpop.eup %9738  ;;  %9758 = vpow2.f32 %v7266_v18  ;;  %v12470_v61 = vadd.f32 %v9737_v6, %v12388_v52  ;;  %v7353_v44 = vsub.f32 %v12446_v57, %v13078_v31  ;;  %v7373_v46 = vmul.f32 1.442695, %v7354_v10  ;;  %v13083_v18 = vld [vmem:[#allocation52_spill] sm:$0xff]  ;;  %v13084_v10 = vld [vmem:[#allocation53_spill] sm:$0xff]  ;;  %v13089_v31 = vld [vmem:[#allocation58_spill] sm:$0xff] }
0x1770   :  { %v12472_v33 = vpop.eup %9740  ;;  %9760 = vpow2.f32 %v7268_v0  ;;  %v7356_v54 = vsub.f32 %v12446_v57, %v13079_v17  ;;  %v7357_v52 = vsub.f32 %v12446_v57, %v13080_v60  ;;  %v7375_v53 = vmul.f32 1.442695, %v7355_v13  ;;  %v13087_v13 = vld [vmem:[#allocation56_spill] sm:$0xff] }
0x1771   :  { %v12478_v43 = vpop.eup %9742  ;;  %9762 = vpow2.f32 %v7270_v51  ;;  %v12489_v27 = vadd.f32 %v9731_v15, %v12405_v11  ;;  %v7358_v41 = vsub.f32 %v12446_v57, %v13081_v16  ;;  %v7359_v1 = vsub.f32 %v12446_v57, %v13082_v22  ;;  %v13086_v51 = vld [vmem:[#allocation55_spill] sm:$0xff] }
0x1772   :  { %v12484_v50 = vpop.eup %9744  ;;  %9764 = vpow2.f32 %v7240_v24  ;;  %v12498_v55 = vadd.f32 %v9733_v26, %v12411_v29  ;;  %v13085_v24 = vld [vmem:[#allocation54_spill] sm:$0xff]  ;;  %v7363_v8 = vsub.f32 %v12446_v57, %v13086_v51  ;;  %v12513_v26 = vadd.f32 %v9739_v20, %v12431_v28  ;;  %v13090_v51 = vld [vmem:[#allocation59_spill] sm:$0xff] }
0x1773   :  { %v12495_v3 = vpop.eup %9746  ;;  %9766 = vpow2.f32 %v7246_v37  ;;  %v7362_v40 = vsub.f32 %v12446_v57, %v13085_v24  ;;  %v13088_v37 = vld [vmem:[#allocation57_spill] sm:$0xff]  ;;  %v7367_v6 = vsub.f32 %v12446_v57, %v13090_v51  ;;  %v7369_v5 = vmul.f32 1.442695, %v7352_v30 }
0x1774   :  { %v12504_v15 = vpop.eup %9748  ;;  %9768 = vpow2.f32 %v7373_v46  ;;  %v13091_v46 = vld [vmem:[#allocation60_spill] sm:$0xff]  ;;  %v7371_v0 = vmul.f32 1.442695, %v7353_v44 }
0x1775   :  { %v9751_v29 = vpop.eup %9750  ;;  %9770 = vpow2.f32 %v7375_v53  ;;  %v7368_v11 = vsub.f32 %v12446_v57, %v13091_v46  ;;  %v12529_v53 = vpop.permute.xlu1 %7480  ;;  %v7272_v16 = vadd.f32 %v12504_v15, %v12489_v27  ;;  %v13094_v27 = vld [vmem:[#allocation62_spill] sm:$0xff] }
0x1776   :  { %v9753_v60 = vpop.eup %9752  ;;  %9772 = vpow2.f32 %v7248_v35  ;;  %v12520_v24 = vadd.f32 %v9751_v29, %v12425_v34  ;;  %v7377_v35 = vmul.f32 1.442695, %v7356_v54  ;;  %v7389_v29 = vmul.f32 1.442695, %v7362_v40 }
0x1777   :  { %v9755_v28 = vpop.eup %9754  ;;  %9774 = vpow2.f32 %v7250_v14  ;;  %v12527_v20 = vadd.f32 %v9753_v60, %v12434_v25  ;;  %v7391_v14 = vmul.f32 1.442695, %v7363_v8  ;;  %v7462_v25 = vmul.f32 %v12486_v23, %v12028_v9 }
0x1778   :  { %v9757_v17 = vpop.eup %9756  ;;  %9776 = vpow2.f32 %v7252_v48  ;;  %v12532_v34 = vadd.f32 %v9755_v28, %v12437_v45  ;;  %v7379_v48 = vmul.f32 1.442695, %v7357_v52  ;;  %v7463_v45 = vmul.f32 %v12486_v23, %v12072_v63 }
0x1779   :  { %v9759_v51 = vpop.eup %9758  ;;  %9778 = vpow2.f32 %v7254_v58  ;;  %v12535_v46 = vadd.f32 %v9757_v17, %v12442_v19  ;;  %v7464_v19 = vmul.f32 %v12486_v23, %v12079_v39  ;;  %v7483_v58 = vsub.f32 %v12529_v53, %v7462_v25 }
0x177a   :  { %v9761_v30 = vpop.eup %9760  ;;  %9780 = vpow2.f32 %v7256_v7  ;;  %v12540_v44 = vadd.f32 %v9759_v51, %v12449_v49  ;;  %v7465_v49 = vmul.f32 %v12486_v23, %v12085_v56  ;;  %v7484_v63 = vsub.f32 %v12529_v53, %v7463_v45  ;;  %v13092_v45 = vld [vmem:[#allocation63_spill] sm:$0xff] }
0x177b   :  { %v9763_v54 = vpop.eup %9762  ;;  %v12545_v40 = vadd.f32 %v9761_v30, %v12457_v4  ;;  %9782 = vpow2.f32 %v7369_v5  ;;  %v12562_v4 = vadd.f32 %v12472_v33, %v12454_v47  ;;  %v7399_v39 = vmul.f32 1.442695, %v7367_v6 }
0x177c   :  { %v12550_v9 = vpop.eup %9764  ;;  %v12553_v7 = vadd.f32 %v9763_v54, %v12460_v59  ;;  %9784 = vpow2.f32 %v7389_v29  ;;  %v7485_v8 = vsub.f32 %v12529_v53, %v7464_v19  ;;  %v7401_v59 = vmul.f32 1.442695, %v7368_v11 }
0x177d   :  { %v12558_v52 = vpop.eup %9766  ;;  %9786 = vpow2.f32 %v7391_v14  ;;  %v7466_v17 = vmul.f32 %v12486_v23, %v12091_v42  ;;  %v7486_v56 = vsub.f32 %v12529_v53, %v7465_v49  ;;  %v7467_v47 = vmul.f32 %v12486_v23, %v12100_v32 }
0x177e   :  { %v9769_v5 = vpop.eup %9768  ;;  %9788 = vpow2.f32 %v7371_v0  ;;  %v7500_v33 = vmul.f32 1.442695, %v7483_v58  ;;  %v7502_v42 = vmul.f32 1.442695, %v7484_v63  ;;  %v7468_v32 = vmul.f32 %v12486_v23, %v12109_v62  ;;  %v13093_v63 = vld [vmem:[#allocation61_spill] sm:$0xff] }
0x177f   :  { %v9771_v60 = vpop.eup %9770  ;;  %9790 = vpow2.f32 %v7377_v35  ;;  %v12569_v28 = vadd.f32 %v9769_v5, %v12467_v12  ;;  %v7487_v11 = vsub.f32 %v12529_v53, %v7466_v17  ;;  %v12583_v35 = vadd.f32 %v12478_v43, %v12306_v21 }
0x1780   :  { %v12573_v6 = vpop.eup %9772  ;;  %9792 = vpow2.f32 %v7379_v48  ;;  %v12576_v0 = vadd.f32 %v9771_v60, %v12470_v61  ;;  %v7504_v12 = vmul.f32 1.442695, %v7485_v8  ;;  %v7469_v61 = vmul.f32 %v12486_v23, %v12128_v36 }
0x1781   :  { %v12579_v29 = vpop.eup %9774  ;;  %9794 = vpow2.f32 %v7399_v39  ;;  %v7488_v14 = vsub.f32 %v12529_v53, %v7467_v47  ;;  %v7506_v25 = vmul.f32 1.442695, %v7486_v56  ;;  %v7381_v21 = vmul.f32 1.442695, %v7358_v41 }
0x1782   :  { %v12587_v51 = vpop.eup %9776  ;;  %9796 = vpow2.f32 %v7401_v59  ;;  %v7472_v43 = vmul.f32 %v12486_v23, %v12196_v2  ;;  %v7489_v62 = vsub.f32 %v12529_v53, %v7468_v32  ;;  %v7473_v36 = vmul.f32 %v12486_v23, %v13092_v45 }
0x1783   :  { %v12592_v30 = vpop.eup %9778  ;;  %9798 = vpow2.f32 %v7500_v33  ;;  %v7490_v54 = vsub.f32 %v12529_v53, %v7469_v61  ;;  %v7508_v19 = vmul.f32 1.442695, %v7487_v11  ;;  %v7383_v2 = vmul.f32 1.442695, %v7359_v1  ;;  %v13095_v11 = vld [vmem:[#allocation69_spill] sm:$0xff]  ;;  %v13096_v61 = vld [vmem:[#allocation70_spill] sm:$0xff] }
0x1784   :  { %v12600_v48 = vpop.eup %9780  ;;  %9800 = vpow2.f32 %v7502_v42  ;;  %v7493_v41 = vsub.f32 %v12529_v53, %v7472_v43  ;;  %v7470_v39 = vmul.f32 %v12486_v23, %v13093_v63  ;;  %v7494_v8 = vsub.f32 %v12529_v53, %v7473_v36  ;;  %v13101_v63 = vld [vmem:[#allocation64_spill] sm:$0xff] }
0x1785   :  { %v9783_v58 = vpop.eup %9782  ;;  %9802 = vpow2.f32 %v7504_v12  ;;  %v7510_v5 = vmul.f32 1.442695, %v7488_v14  ;;  %v7471_v22 = vmul.f32 %v12486_v23, %v13094_v27  ;;  %v7512_v1 = vmul.f32 1.442695, %v7489_v62  ;;  %v13103_v27 = vld [vmem:[#allocation65_spill] sm:$0xff] }
0x1786   :  { %v9785_v49 = vpop.eup %9784  ;;  %9804 = vpow2.f32 %v7506_v25  ;;  %v7491_v60 = vsub.f32 %v12529_v53, %v7470_v39  ;;  %v7514_v47 = vmul.f32 1.442695, %v7490_v54  ;;  %v7148_v42 = vadd.f32 %v12484_v50, %v13095_v11 }
0x1787   :  { %v9787_v59 = vpop.eup %9786  ;;  %9806 = vpow2.f32 %v7381_v21  ;;  %v12615_v17 = vadd.f32 %v9785_v49, %v12520_v24  ;;  %v7273_v24 = vadd.f32 %v12550_v9, %v12498_v55  ;;  %v7520_v32 = vmul.f32 1.442695, %v7493_v41 }
0x1788   :  { %v9789_v15 = vpop.eup %9788  ;;  %v12620_v56 = vadd.f32 %v9787_v59, %v12527_v20  ;;  %9808 = vpow2.f32 %v7508_v19  ;;  %v7149_v14 = vadd.f32 %v12495_v3, %v13096_v61  ;;  %v7492_v20 = vsub.f32 %v12529_v53, %v7471_v22 }
0x1789   :  { %v9791_v33 = vpop.eup %9790  ;;  %9810 = vpow2.f32 %v7383_v2  ;;  %v7522_v25 = vmul.f32 1.442695, %v7494_v8  ;;  %v13097_v43 = vsub.f32 %v12446_v57, %v13083_v18  ;;  %v13098_v50 = vsub.f32 %v12446_v57, %v13084_v10 }
0x178a   :  { %v9793_v12 = vpop.eup %9792  ;;  %9812 = vpow2.f32 %v7510_v5  ;;  %v13099_v55 = vsub.f32 %v12446_v57, %v13087_v13  ;;  %v7403_v3 = vadd.f32 %v9783_v58, %v7272_v16  ;;  %v7516_v19 = vmul.f32 1.442695, %v7491_v60 }
0x178b   :  { %v9795_v21 = vpop.eup %9794  ;;  %v7385_v62 = vmul.f32 1.442695, %v13097_v43  ;;  %v7387_v45 = vmul.f32 1.442695, %v13098_v50  ;;  %9814 = vpow2.f32 %v7512_v1  ;;  %v13100_v18 = vsub.f32 %v12446_v57, %v13088_v37 }
0x178c   :  { %v7393_v9 = vmul.f32 1.442695, %v13099_v55  ;;  %v9797_v36 = vpop.eup %9796  ;;  %v12640_v54 = vadd.f32 %v9795_v21, %v12545_v40  ;;  %9816 = vpow2.f32 %v7514_v47  ;;  %v7404_v49 = vadd.f32 %v9789_v15, %v7273_v24  ;;  %v13104_v47 = vld [vmem:[#allocation66_spill] sm:$0xff]  ;;  %v13105_v24 = vld [vmem:[#allocation68_spill] sm:$0xff] }
0x178d   :  { %v9799_v2 = vpop.eup %9798  ;;  %v7395_v41 = vmul.f32 1.442695, %v13100_v18  ;;  %v12646_v10 = vadd.f32 %v9797_v36, %v12553_v7  ;;  %9818 = vpow2.f32 %v7520_v32  ;;  %v7474_v39 = vmul.f32 %v12486_v23, %v13101_v63 }
0x178e   :  { %v9801_v13 = vpop.eup %9800  ;;  %v7518_v58 = vmul.f32 1.442695, %v7492_v20  ;;  %9820 = vpow2.f32 %v7522_v25  ;;  %v12650_v40 = vadd.f32 %v9799_v2, %v7403_v3  ;;  %v7276_v8 = vadd.f32 %v12558_v52, %v12513_v26 }
0x178f   :  { %v9803_v16 = vpop.eup %9802  ;;  %9822 = vpow2.f32 %v7385_v62  ;;  %v13102_v37 = vsub.f32 %v12446_v57, %v13089_v31  ;;  %v12657_v7 = vadd.f32 %v9801_v13, %v7404_v49  ;;  %v7475_v22 = vmul.f32 %v12486_v23, %v13103_v27 }
0x1790   :  { %v9805_v59 = vpop.eup %9804  ;;  %v7495_v1 = vsub.f32 %v12529_v53, %v7474_v39  ;;  %9824 = vpow2.f32 %v7516_v19  ;;  %v12663_v15 = vadd.f32 %v9803_v16, %v12569_v28  ;;  %v7277_v26 = vadd.f32 %v12573_v6, %v12562_v4 }
0x1791   :  { %v7397_v5 = vmul.f32 1.442695, %v13102_v37  ;;  %v9807_v60 = vpop.eup %9806  ;;  %9826 = vpow2.f32 %v7387_v45  ;;  %v12668_v57 = vadd.f32 %v9805_v59, %v12576_v0  ;;  %v7551_v31 = vadd.f32 %v12657_v7, %v12650_v40  ;;  %v13106_v0 = vld [vmem:[#allocation67_spill] sm:$0xff] }
0x1792   :  { %v9809_v52 = vpop.eup %9808  ;;  %v7476_v11 = vmul.f32 %v12486_v23, %v13104_v47  ;;  %v7478_v32 = vmul.f32 %v12486_v23, %v13105_v24  ;;  %v7496_v28 = vsub.f32 %v12529_v53, %v7475_v22  ;;  %9828 = vpow2.f32 %v7518_v58 }
0x1793   :  { %v9811_v61 = vpop.eup %9810  ;;  %v7278_v4 = vadd.f32 %v12579_v29, %v12583_v35  ;;  %v7407_v6 = vadd.f32 %v9791_v33, %v7276_v8  ;;  %v7477_v20 = vmul.f32 %v12486_v23, %v13106_v0  ;;  %v7552_v25 = vadd.f32 %v7551_v31, %v12663_v15 }
0x1794   :  { %v9813_v21 = vpop.eup %9812  ;;  %v7279_v43 = vadd.f32 %v12587_v51, %v7148_v42  ;;  %v7497_v62 = vsub.f32 %v12529_v53, %v7476_v11  ;;  %v7499_v50 = vsub.f32 %v12529_v53, %v7478_v32  ;;  %v7524_v45 = vmul.f32 1.442695, %v7495_v1 }
0x1795   :  { %v9815_v55 = vpop.eup %9814  ;;  %v7280_v36 = vadd.f32 %v12592_v30, %v7149_v14  ;;  %v7408_v3 = vadd.f32 %v9793_v12, %v7277_v26  ;;  %v12686_v19 = vadd.f32 %v9809_v52, %v7407_v6  ;;  %v7553_v29 = vadd.f32 %v7552_v25, %v12668_v57 }
0x1796   :  { %v9817_v35 = vpop.eup %9816  ;;  %v7281_v23 = vadd.f32 %v12600_v48, %v12418_v38  ;;  %9830 = vpow2.f32 %v7393_v9  ;;  %v7498_v51 = vsub.f32 %v12529_v53, %v7477_v20  ;;  %v7526_v33 = vmul.f32 1.442695, %v7496_v28 }
0x1797   :  { %v9819_v42 = vpop.eup %9818  ;;  %9832 = vpow2.f32 %v7395_v41  ;;  %v7409_v2 = vadd.f32 %v9807_v60, %v7278_v4  ;;  %v12692_v18 = vadd.f32 %v9813_v21, %v7408_v3  ;;  %v7554_v30 = vadd.f32 %v7553_v29, %v12686_v19 }
0x1798   :  { %v9821_v12 = vpop.eup %9820  ;;  %9834 = vpow2.f32 %v7524_v45  ;;  %v7528_v14 = vmul.f32 1.442695, %v7497_v62  ;;  %v7532_v49 = vmul.f32 1.442695, %v7499_v50  ;;  %v12696_v13 = vadd.f32 %v9819_v42, %v12615_v17 }
0x1799   :  { %v9823_v63 = vpop.eup %9822  ;;  %v7410_v38 = vadd.f32 %v9811_v61, %v7279_v43  ;;  %v7540_v48 = vadd.f32 %v9815_v55, %v7409_v2  ;;  %v7545_v53 = vadd.f32 %v9821_v12, %v12620_v56  ;;  %v7555_v9 = vadd.f32 %v7554_v30, %v12692_v18 }
0x179a   :  { %v9825_v41 = vpop.eup %9824  ;;  %9836 = vpow2.f32 %v7526_v33  ;;  %v7530_v39 = vmul.f32 1.442695, %v7498_v51  ;;  %v7411_v16 = vadd.f32 %v9823_v63, %v7280_v36 }
0x179b   :  { %v9827_v58 = vpop.eup %9826  ;;  %9838 = vpow2.f32 %v7397_v5  ;;  %v7541_v8 = vadd.f32 %v9817_v35, %v7410_v38  ;;  %v7556_v37 = vadd.f32 %v7555_v9, %v7540_v48 }
0x179c   :  { %v9829_v59 = vpop.eup %9828  ;;  %9840 = vpow2.f32 %v7528_v14  ;;  %v7412_v27 = vadd.f32 %v9827_v58, %v7281_v23  ;;  %v7542_v17 = vadd.f32 %v9825_v41, %v7411_v16 }
0x179d   :  { %9842 = vpow2.f32 %v7532_v49  ;;  %v7557_v22 = vadd.f32 %v7556_v37, %v7541_v8 }
0x179e   :  { %9844 = vpow2.f32 %v7530_v39  ;;  %v7543_v1 = vadd.f32 %v9829_v59, %v7412_v27 }
0x179f   :  { %v7558_v60 = vadd.f32 %v7557_v22, %v7542_v17 }
0x17a0   :  { %v9831_v56 = vpop.eup %9830 }
0x17a1   :  { %v9833_v26 = vpop.eup %9832  ;;  %v7559_v31 = vadd.f32 %v7558_v60, %v7543_v1  ;;  %v7415_v47 = vadd.f32 %v9831_v56, %v12532_v34 }
0x17a2   :  { %v9835_v52 = vpop.eup %9834  ;;  %v7416_v32 = vadd.f32 %v9833_v26, %v12535_v46 }
0x17a3   :  { %v7560_v5 = vadd.f32 %v7559_v31, %v12696_v13  ;;  %v7546_v28 = vadd.f32 %v9835_v52, %v7415_v47 }
0x17a4   :  { %v9837_v11 = vpop.eup %9836 }
0x17a5   :  { %v9839_v24 = vpop.eup %9838  ;;  %v7561_v61 = vadd.f32 %v7560_v5, %v7545_v53  ;;  %v7547_v20 = vadd.f32 %v9837_v11, %v7416_v32 }
0x17a6   :  { %v9841_v4 = vpop.eup %9840  ;;  %v7417_v0 = vadd.f32 %v9839_v24, %v12540_v44 }
0x17a7   :  { %v9843_v6 = vpop.eup %9842  ;;  %v7562_v25 = vadd.f32 %v7561_v61, %v7546_v28 }
0x17a8   :  { %v9845_v21 = vpop.eup %9844  ;;  %v7548_v43 = vadd.f32 %v9841_v4, %v7417_v0  ;;  %v7550_v50 = vadd.f32 %v9843_v6, %v12646_v10 }
0x17a9   :  { %v7563_v62 = vadd.f32 %v7562_v25, %v7547_v20  ;;  %v7549_v34 = vadd.f32 %v9845_v21, %v12640_v54 }
0x17aa   :  { %v7567_v46 = vsel %vm7566_vm6, %v7550_v50, 0.0 }
0x17ab   :  { %v7564_v45 = vadd.f32 %v7563_v62, %v7548_v43 }
0x17ad   :  { %v7565_v55 = vadd.f32 %v7564_v45, %v7549_v34 }
0x17af   :  { %v7568_v36 = vadd.f32 %v7567_v46, %v7565_v55 }
0x17b1   :  { %7569 = vadd.xlane.f32.xlu0 %v7568_v36 }
0x183e   :  { %v7570_v3 = vpop.xlane.xlu0 %7569 }
0x183f   :  { %9846 = vrcp.f32 %v7570_v3 }
0x1849   :  { %v9847_v29 = vpop.eup %9846 }
0x184a   :  { %v7573_v44 = vmul.f32 %v9847_v29, %v12650_v40  ;;  %v7574_v35 = vmul.f32 %v9847_v29, %v12657_v7  ;;  %v7575_v23 = vmul.f32 %v9847_v29, %v12663_v15  ;;  %v7576_v10 = vmul.f32 %v9847_v29, %v12668_v57 }
0x184b   :  { %v7577_v54 = vmul.f32 %v9847_v29, %v12686_v19  ;;  %v7578_v51 = vmul.f32 %v9847_v29, %v12692_v18  ;;  %v7579_v33 = vmul.f32 %v9847_v29, %v7540_v48  ;;  %v7580_v42 = vmul.f32 %v9847_v29, %v7541_v8 }
0x184c   :  { %v7581_v2 = vmul.f32 %v9847_v29, %v7542_v17  ;;  %v7582_v30 = vmul.f32 %v9847_v29, %v7543_v1  ;;  %v7583_v12 = vmul.f32 %v9847_v29, %v12696_v13  ;;  %v7584_v14 = vmul.f32 %v9847_v29, %v7545_v53  ;;  %7590 = vst [vmem:[#allocation29] sm:$0xff] %v7573_v44 }
0x184d   :  { %7591 = vst [vmem:[#allocation29 + $0x8] sm:$0xff] %v7574_v35  ;;  %7592 = vst [vmem:[#allocation29 + $0x10] sm:$0xff] %v7575_v23  ;;  %v7585_v40 = vmul.f32 %v9847_v29, %v7546_v28  ;;  %v7586_v7 = vmul.f32 %v9847_v29, %v7547_v20  ;;  %v7587_v15 = vmul.f32 %v9847_v29, %v7548_v43 }
0x184e   :  { %7593 = vst [vmem:[#allocation29 + $0x18] sm:$0xff] %v7576_v10  ;;  %v7588_v57 = vmul.f32 %v9847_v29, %v7549_v34  ;;  %7594 = vst [vmem:[#allocation29 + $0x20] sm:$0xff] %v7577_v54  ;;  %v7589_v19 = vmul.f32 %v9847_v29, %v7550_v50 }
0x184f   :  { %7595 = vst [vmem:[#allocation29 + $0x28] sm:$0xff] %v7578_v51  ;;  %7596 = vst [vmem:[#allocation29 + $0x30] sm:$0xff] %v7579_v33 }
0x1850   :  { %7597 = vst [vmem:[#allocation29 + $0x38] sm:$0xff] %v7580_v42  ;;  %7598 = vst [vmem:[#allocation29 + $0x40] sm:$0xff] %v7581_v2 }
0x1851   :  { %7599 = vst [vmem:[#allocation29 + $0x48] sm:$0xff] %v7582_v30  ;;  %7600 = vst [vmem:[#allocation29 + $0x50] sm:$0xff] %v7583_v12 }
0x1852   :  { %7601 = vst [vmem:[#allocation29 + $0x58] sm:$0xff] %v7584_v14  ;;  %7602 = vst [vmem:[#allocation29 + $0x60] sm:$0xff] %v7585_v40 }
0x1853   :  { %7603 = vst [vmem:[#allocation29 + $0x68] sm:$0xff] %v7586_v7  ;;  %7604 = vst [vmem:[#allocation29 + $0x70] sm:$0xff] %v7587_v15 }
0x1854   :  { %7605 = vst [vmem:[#allocation29 + $0x78] sm:$0xff] %v7588_v57  ;;  %7606 = vst.msk [vmem:[#allocation29 + $0x80] sm:$0xff] %vm7566_vm6, %v7589_v19 }
0x1855   :  { %10234 = shalt.err (!%p10231_p0)
}
0x1856   :  { %s10235_s1 = scalar_lea.hbm %s12747_s20, 2176 }
0x1857   :  { %p10236_p1 = scmp.ne.s32.totalorder %s12747_s20, %s10235_s1  ;;  %p10239_p2 = scmp.lt.u32.totalorder %s10235_s1, %s12747_s20 }
0x1859   :  { %p10241_p3 = pnand %p10239_p2, %p10236_p1 }
0x185b   :  { %10244 = shalt.err (!%p10241_p3)
}
0x185c   :  { %7616 = dma.vmem_to_hbm [thread:$0]  %s7614_s28, 2176, %s12747_s20, [#allocation4]  }
0x185d   :  { %10263 = dma.done.wait [#allocation4], 2176  }
0x185e   :  { %10264 = vsyncadd [#allocation4], 4294965120 }
0x185f   :  { %7620 = vsyncpa [#allocation3], 1 }
0x1860   :  { %7621 = vsyncpa [#allocation6], 1 }
0x1861   :  { %7622 = vsyncpa [#allocation9], 1 }
0x1862   :  { %7623 = vsyncpa [#allocation12], 1 }
0x1863   :  { %7624 = vsyncpa [#allocation15], 1 }
0x1864   :  { %7625 = vsyncpa [#allocation18], 1 }
0x1865   :  { %7626 = vsyncpa [#allocation21], 1 }
0x1866   :  { %7627 = vsyncpa [#allocation24], 1 }
0x1867   :  { %7628 = vsyncpa [#allocation27], 1 }
0x1868   :  { %7629 = vsyncpa [#allocation4], 1 }

</bundles_post_ra>
